<compile_context>
chip_gen: v5e
topology: v5e:2x2
jax: 0.10.0
libtpu: 0.0.40
codegen_flags: <defaults>
</compile_context>

<pallas_src>
import functools

import jax
import jax.numpy as jnp
from jax.experimental import pallas as pl
from jax.experimental.pallas import tpu as pltpu

LANE = 128


def _round_up(x, m):
    return (x + m - 1) // m * m


def _pad_to(x, shape):
    return jnp.pad(x, [(0, t - s) for s, t in zip(x.shape, shape)])


def _pad_axis(x, axis, target):
    if x.shape[axis] == target:
        return x
    widths = [(0, 0)] * x.ndim
    widths[axis] = (0, target - x.shape[axis])
    return jnp.pad(x, widths)


def _is_v7x():
    try:
        return "7" in jax.devices()[0].device_kind
    except Exception:
        return False


# v7x has 64 MiB physical VMEM per TensorCore (vs 128 MiB on v5e/v6e); raise
# the scoped limit explicitly (default is 16-32 MiB) but keep headroom.
_VMEM_LIMIT = (48 if _is_v7x() else 96) * 1024 * 1024


@functools.lru_cache(maxsize=None)
def _buffered1_ok():
    """Probe once whether pipeline_mode=pl.Buffered(1) (single-buffered
    grid-invariant blocks) is supported by this JAX/Mosaic build."""
    if not hasattr(pl, "Buffered"):
        return False
    try:
        def k(x_ref, o_ref):
            o_ref[...] = x_ref[...] + 1.0

        out = pl.pallas_call(
            k,
            out_shape=jax.ShapeDtypeStruct((16, 128), jnp.float32),
            grid=(2,),
            in_specs=[pl.BlockSpec((8, 128), lambda i: (0, 0),
                                   pipeline_mode=pl.Buffered(1))],
            out_specs=pl.BlockSpec((8, 128), lambda i: (i, 0)),
        )(jnp.zeros((8, 128), jnp.float32))
        jax.block_until_ready(out)
        return True
    except Exception:
        return False


def _const_spec(block_shape, index_map):
    """BlockSpec for grid-invariant weight/bias blocks.  Single-buffered when
    supported (default double-buffering wastes resident VMEM on blocks whose
    index_map is constant -- ~7-8 MiB at real channel counts, which matters on
    v7x's 64 MiB VMEM); silently falls back to the default otherwise."""
    if _buffered1_ok():
        return pl.BlockSpec(block_shape, index_map,
                            pipeline_mode=pl.Buffered(1))
    return pl.BlockSpec(block_shape, index_map)


# ---------------------------------------------------------------------------
# Kernel 1: fused backbone 1x1 conv (ReLU) + EmbedNet.em_conv1 (ReLU)
# ---------------------------------------------------------------------------
def _backbone_em1_kernel(x_ref, wb_ref, bb_ref, w1_ref, b1_ref,
                         feat_ref, e1_ref):
    x = x_ref[...]
    f = jnp.dot(x, wb_ref[...], preferred_element_type=jnp.float32)
    f = jnp.maximum(f + bb_ref[...], 0.0)                    # backbone feature
    feat_ref[...] = f.astype(feat_ref.dtype)
    e = jnp.dot(f.astype(w1_ref.dtype), w1_ref[...],
                preferred_element_type=jnp.float32)
    e = jnp.maximum(e + b1_ref[...], 0.0)                    # em_conv1 + relu
    e1_ref[...] = e.astype(e1_ref.dtype)


def backbone_em1(x, wb, bb, w1, b1, tm=512):
    """x: [M, Cin_p] bf16 -> (feats [M, Cf_p], em1 [M, Ce1_p]) both bf16.

    Per-step VMEM is dominated by the (grid-invariant, single-buffered)
    weights, so tm=512 costs only the x/feat/e1 tiles while halving per-step
    overhead vs. tm=256.
    """
    M, K = x.shape
    Cf = wb.shape[1]
    Ce = w1.shape[1]
    tm = min(tm, _round_up(M, 8))
    Mp = _round_up(M, tm)
    xp = _pad_axis(x, 0, Mp)
    feat, e1 = pl.pallas_call(
        _backbone_em1_kernel,
        out_shape=(jax.ShapeDtypeStruct((Mp, Cf), jnp.bfloat16),
                   jax.ShapeDtypeStruct((Mp, Ce), jnp.bfloat16)),
        grid_spec=pltpu.PrefetchScalarGridSpec(
            num_scalar_prefetch=0,
            grid=(Mp // tm,),
            in_specs=[
                pl.BlockSpec((tm, K), lambda i: (i, 0)),
                _const_spec((K, Cf), lambda i: (0, 0)),
                _const_spec((1, Cf), lambda i: (0, 0)),
                _const_spec((Cf, Ce), lambda i: (0, 0)),
                _const_spec((1, Ce), lambda i: (0, 0)),
            ],
            out_specs=[pl.BlockSpec((tm, Cf), lambda i: (i, 0)),
                       pl.BlockSpec((tm, Ce), lambda i: (i, 0))],
        ),
        compiler_params=pltpu.CompilerParams(
            dimension_semantics=("parallel",),
            vmem_limit_bytes=_VMEM_LIMIT),
    )(xp, wb, bb.reshape(1, Cf), w1, b1.reshape(1, Ce))
    return feat[:M], e1[:M]


# ---------------------------------------------------------------------------
# Kernel 2: generic (M, N, K)-tiled matmul + bias + activation
# ---------------------------------------------------------------------------
def _matmul_kernel(x_ref, w_ref, b_ref, o_ref, acc_ref, *, act):
    @pl.when(pl.program_id(2) == 0)
    def _():
        acc_ref[...] = jnp.zeros_like(acc_ref)
    acc_ref[...] += jnp.dot(x_ref[...], w_ref[...],
                            preferred_element_type=jnp.float32)

    @pl.when(pl.program_id(2) == pl.num_programs(2) - 1)
    def _():
        y = acc_ref[...] + b_ref[...]
        if act == "relu":
            y = jnp.maximum(y, 0.0)
        o_ref[...] = y.astype(o_ref.dtype)


def matmul_bias_act(x, w, b, act="none", out_dtype=jnp.bfloat16,
                    tm=512, tn=512, tk=512):
    """x: [M, K] bf16, w: [K, N] bf16, b: [N] f32 -> [M, N].

    K and N are pre-padded to multiples of 128 at param init; M is padded to
    the tile here.  512-wide tiles halve HBM re-streaming vs. 256 (biggest
    payoff on v5e's ~820 GB/s HBM) and keep full 256-wide MXU columns on
    v6e/v7x; tn/tk are clamped down to divisors of N/K when the weights are
    small.
    """
    M, K = x.shape
    N = w.shape[1]
    tm = min(tm, _round_up(M, 8))
    tn = min(tn, N)
    while N % tn:
        tn -= LANE
    tk = min(tk, K)
    while K % tk:
        tk -= LANE
    Mp = _round_up(M, tm)
    xp = _pad_axis(x, 0, Mp)
    out = pl.pallas_call(
        functools.partial(_matmul_kernel, act=act),
        out_shape=jax.ShapeDtypeStruct((Mp, N), out_dtype),
        grid_spec=pltpu.PrefetchScalarGridSpec(
            num_scalar_prefetch=0,
            grid=(Mp // tm, N // tn, K // tk),
            in_specs=[
                pl.BlockSpec((tm, tk), lambda i, j, k: (i, k)),
                pl.BlockSpec((tk, tn), lambda i, j, k: (k, j)),
                pl.BlockSpec((1, tn), lambda i, j, k: (0, j)),
            ],
            out_specs=pl.BlockSpec((tm, tn), lambda i, j, k: (i, j)),
            scratch_shapes=[pltpu.VMEM((tm, tn), jnp.float32)],
        ),
        compiler_params=pltpu.CompilerParams(
            dimension_semantics=("parallel", "parallel", "arbitrary"),
            vmem_limit_bytes=_VMEM_LIMIT),
    )(xp, w, b.reshape(1, N))
    return out[:M]


# ---------------------------------------------------------------------------
# Kernel 3: 3x3 stride-1 pad-1 conv + bias + ReLU (EmbedNet.em_conv2)
# Gridded over (frame x row-strip); each strip carries a 1-row halo on each
# side.  The 3 dx taps are merged into one K=3*C operand (3 sublane-shifted
# slices + 1 lane concat + 3 matmuls); accumulation is in an f32 VMEM scratch.
# ---------------------------------------------------------------------------
def _conv3x3_relu_kernel(x_ref, w_ref, b_ref, o_ref, acc_ref, *, rows, W):
    # x_ref: [1, rows+2, W+2, C] bf16 (halo strip)
    # w_ref: [3, 3*C, Cout] bf16   (dy, dx*C+ci, co)
    # b_ref: [1, Cout] f32, o_ref: [1, rows*W, Cout], acc_ref: [rows*W, Cout] f32
    C = x_ref.shape[-1]
    Cout = o_ref.shape[-1]
    x = x_ref[0]                                             # (rows+2, W+2, C)
    # Merge the 3 dx taps into one K=3C operand: 3 shifted slices + 1 lane
    # concat instead of 9 sublane-misaligned slice copies.
    xc = jnp.concatenate(
        [x[:, 0:W, :], x[:, 1:W + 1, :], x[:, 2:W + 2, :]], axis=-1)
    acc_ref[...] = jnp.dot(xc[0:rows].reshape(rows * W, 3 * C), w_ref[0],
                           preferred_element_type=jnp.float32)
    for dy in (1, 2):
        acc_ref[...] += jnp.dot(
            xc[dy:dy + rows].reshape(rows * W, 3 * C), w_ref[dy],
            preferred_element_type=jnp.float32)
    y = jnp.maximum(acc_ref[...] + b_ref[...], 0.0)
    o_ref[...] = y.reshape(1, rows * W, Cout).astype(o_ref.dtype)


def conv3x3_relu_nhwc(x, w, b, rows=8):
    """x: [N, H, W, C] bf16, w: [3, 3, C, Cout] bf16, b: [Cout] f32."""
    N, H, W, C = x.shape
    Cout = w.shape[-1]
    rows = max(1, min(rows, H))
    while H % rows != 0:                 # keep strips exactly tiling H
        rows -= 1
    n_strips = H // rows
    xp = jnp.pad(x, ((0, 0), (1, 1), (1, 1), (0, 0)))        # spatial halo
    # Overlapping halo strips materialized once by XLA: (N*strips, rows+2, W+2, C).
    strips = jnp.stack(
        [xp[:, s * rows:s * rows + rows + 2] for s in range(n_strips)], axis=1)
    strips = strips.reshape(N * n_strips, rows + 2, W + 2, C)
    wm = w.reshape(3, 3 * C, Cout)       # (dy, dx*C+ci, co)
    y = pl.pallas_call(
        functools.partial(_conv3x3_relu_kernel, rows=rows, W=W),
        out_shape=jax.ShapeDtypeStruct((N * n_strips, rows * W, Cout),
                                       jnp.bfloat16),
        grid_spec=pltpu.PrefetchScalarGridSpec(
            num_scalar_prefetch=0,
            grid=(N * n_strips,),
            in_specs=[
                pl.BlockSpec((1, rows + 2, W + 2, C), lambda i: (i, 0, 0, 0)),
                _const_spec((3, 3 * C, Cout), lambda i: (0, 0, 0)),
                _const_spec((1, Cout), lambda i: (0, 0)),
            ],
            out_specs=pl.BlockSpec((1, rows * W, Cout), lambda i: (i, 0, 0)),
            scratch_shapes=[pltpu.VMEM((rows * W, Cout), jnp.float32)],
        ),
        compiler_params=pltpu.CompilerParams(
            dimension_semantics=("parallel",),
            vmem_limit_bytes=_VMEM_LIMIT),
    )(strips, wm, b.reshape(1, Cout))
    return y.reshape(N, H, W, Cout)


# ---------------------------------------------------------------------------
# Kernel 4: FGFA cosine weight + softmax(dim=0) + aggregation + tail 1x1 conv
# ---------------------------------------------------------------------------
def _fgfa_tail_kernel(cur_ref, refs_ref, warped_ref, wt_ref, o_ref):
    eps = 1e-10
    cur = cur_ref[...]                               # (thw, E) bf16
    thw = cur.shape[0]
    R = refs_ref.shape[0]
    Cf = warped_ref.shape[-1]

    # ||cur|| per pixel; bf16 products, f32 accumulation only in the reduce.
    cur_norm = jnp.sqrt(jnp.sum(cur * cur, axis=-1, keepdims=True,
                                dtype=jnp.float32)) + eps

    # cosine weight per reference frame, written as dot / ((|r|+eps)(|c|+eps))
    # -- mathematically identical to normalize-then-dot (same eps placement as
    # the PyTorch l2normalization) but without materializing normalized refs.
    ws = []
    for r in range(R):
        ref_r = refs_ref[r]                          # (thw, E) bf16
        dot_rc = jnp.sum(ref_r * cur, axis=-1, keepdims=True,
                         dtype=jnp.float32)
        ref_norm = jnp.sqrt(jnp.sum(ref_r * ref_r, axis=-1, keepdims=True,
                                    dtype=jnp.float32)) + eps
        ws.append(dot_rc * pl.reciprocal(ref_norm * cur_norm, approx=True))
    w = jnp.stack(ws, axis=0)                        # (R, thw, 1) f32

    # softmax over the reference-frame axis (dim=0 in the PyTorch code)
    m = jnp.max(w, axis=0, keepdims=True)
    e = jnp.exp(w - m)
    w = e * pl.reciprocal(jnp.sum(e, axis=0, keepdims=True), approx=True)

    # weighted aggregation streamed per reference frame: warped stays bf16,
    # the promote happens inside the FMA; no (R, thw, Cf) f32 temporary.
    feats = jnp.zeros((thw, Cf), jnp.float32)
    for r in range(R):
        feats = feats + w[r] * warped_ref[r]

    # fused tail 1x1 conv (bias=False)
    y = jnp.dot(feats.astype(wt_ref.dtype), wt_ref[...],
                preferred_element_type=jnp.float32)
    o_ref[...] = y.astype(o_ref.dtype)


def fgfa_aggregate_tail(embed_cur, embed_refs, warped_refs, tail_w,
                        tile_hw=None):
    HW, E = embed_cur.shape
    R = embed_refs.shape[0]
    Cf = warped_refs.shape[-1]
    Cout = tail_w.shape[-1]
    if tile_hw is None:
        # At real FGFA scale the (R, tile_hw, E)+(R, tile_hw, Cf) blocks are the
        # VMEM hog; keep them smaller on v7x's 64 MiB VMEM.
        tile_hw = 64 if _is_v7x() else 128
    tile_hw = min(tile_hw, _round_up(HW, 8))
    HWp = _round_up(HW, tile_hw)
    cur_p = _pad_axis(embed_cur, 0, HWp)
    refs_p = _pad_axis(embed_refs, 1, HWp)
    warped_p = _pad_axis(warped_refs, 1, HWp)
    out = pl.pallas_call(
        _fgfa_tail_kernel,
        out_shape=jax.ShapeDtypeStruct((HWp, Cout), jnp.float32),
        grid_spec=pltpu.PrefetchScalarGridSpec(
            num_scalar_prefetch=0,
            grid=(HWp // tile_hw,),
            in_specs=[
                pl.BlockSpec((tile_hw, E), lambda i: (i, 0)),
                pl.BlockSpec((R, tile_hw, E), lambda i: (0, i, 0)),
                pl.BlockSpec((R, tile_hw, Cf), lambda i: (0, i, 0)),
                _const_spec((Cf, Cout), lambda i: (0, 0)),
            ],
            out_specs=pl.BlockSpec((tile_hw, Cout), lambda i: (i, 0)),
        ),
        compiler_params=pltpu.CompilerParams(
            dimension_semantics=("parallel",),
            vmem_limit_bytes=_VMEM_LIMIT),
    )(cur_p, refs_p, warped_p, tail_w)
    return out[:HW]


# ---------------------------------------------------------------------------
# Model: parameters + forward
# ---------------------------------------------------------------------------
def init_params(key, cin=4, cf=32, ce1=16, ce3=64, anc_num=6, cls_num=4):
    """Synthetic parameters (scaled-down channels).  Every channel axis is
    zero-padded to a multiple of 128 so all Pallas kernels are lane-dense; the
    zero pad propagates exact zeros, so slicing the final output recovers the
    un-padded result."""
    out_c = anc_num * (5 + cls_num)
    cin_p, cf_p, ce1_p, ce3_p, out_p = (
        _round_up(c, LANE) for c in (cin, cf, ce1, ce3, out_c))
    ks = jax.random.split(key, 8)
    s = 0.1

    def wgt(k, shape, padded):
        return _pad_to(s * jax.random.normal(k, shape, jnp.float32),
                       padded).astype(jnp.bfloat16)

    def bias(k, n, n_p):
        return _pad_to(s * jax.random.normal(k, (n,), jnp.float32), (n_p,))

    return dict(
        # stand-in backbone (1x1 conv + ReLU): cin -> cf (1024 in the original)
        backbone_w=wgt(ks[0], (cin, cf), (cin_p, cf_p)),
        backbone_b=jnp.zeros((cf_p,), jnp.float32),
        # EmbedNet: 1024->512 (1x1), 512->512 (3x3), 512->2048 (1x1), scaled
        em1_w=wgt(ks[1], (cf, ce1), (cf_p, ce1_p)),
        em1_b=bias(ks[2], ce1, ce1_p),
        em2_w=wgt(ks[3], (3, 3, ce1, ce1), (3, 3, ce1_p, ce1_p)),
        em2_b=bias(ks[4], ce1, ce1_p),
        em3_w=wgt(ks[5], (ce1, ce3), (ce1_p, ce3_p)),
        em3_b=bias(ks[6], ce3, ce3_p),
        # tail: 1x1 conv, no bias, 1024 -> anc_num*(5+cls_num)
        tail_w=wgt(ks[7], (cf, out_c), (cf_p, out_p)),
    )


def yolov2_fgfa_forward(params, input_x, *, out_c):
    """input_x: [T, H, W, Cin] NHWC; frame 0 is the reference frame, frames 1:
    are the guide frames (mirrors `data[0].unsqueeze(0)` / `data[1:]`).
    Returns [y] with y: [1, H, W, anc_num*(5+cls_num)]."""
    T, H, W, _ = input_x.shape
    HW = H * W

    # lane-pad input channels + bf16 for the MXU.
    cin_p = params["backbone_w"].shape[0]
    x = _pad_axis(input_x, 3, cin_p).astype(jnp.bfloat16)

    # torch.cat([ref_images, guide_images], 0) == input_x -> identity, removed.
    x2d = x.reshape(T * HW, cin_p)

    # TODO(synk): YOLOV2_backbone is not defined in the reference source; a
    # 1x1-conv + ReLU stand-in with the same image->feature contract is used.
    # Fused kernel: backbone conv + EmbedNet.em_conv1 (+ReLU both).
    feats2d, e1 = backbone_em1(
        x2d, params["backbone_w"], params["backbone_b"],
        params["em1_w"], params["em1_b"])

    # TODO(synk): FLOW_FGFA + warp() are not defined in the reference source and
    # need an external checkpoint (torch.load); identity warp is used, so
    # torch.cat([feats_cur, warped_feats_refs], 0) == concat_feats -> removed.

    # EmbedNet.em_conv2 (3x3, ReLU): row-strip halo conv kernel.
    e2 = conv3x3_relu_nhwc(e1.reshape(T, H, W, -1),
                           params["em2_w"], params["em2_b"])

    # EmbedNet.em_conv3 (1x1, no activation): tiled M/N/K Pallas matmul.
    e3 = matmul_bias_act(e2.reshape(T * HW, -1),
                         params["em3_w"], params["em3_b"], act="none")

    e3 = e3.reshape(T, HW, -1)
    embed_cur = e3[0]                                  # [HW, E]
    embed_refs = e3[1:]                                # [R, HW, E]
    warped_refs = feats2d.reshape(T, HW, -1)[1:]       # [R, HW, Cf] (id. warp)

    # FGFA cosine weight + softmax(dim=0, guide frames only -- matches the
    # given PyTorch source) + aggregation + tail conv, fused.
    y = fgfa_aggregate_tail(embed_cur, embed_refs, warped_refs,
                            params["tail_w"])          # [HW, out_c padded]

    # strip the channel padding; already NHWC so the final permute is a no-op.
    y = y[:, :out_c].reshape(1, H, W, out_c)
    return [y]


# ---------------------------------------------------------------------------
if __name__ == "__main__":
    key = jax.random.PRNGKey(0)
    k_img, k_par = jax.random.split(key)

    T, H, W, Cin = 3, 16, 16, 4          # 1 reference frame + 2 guide frames
    anc_num, cls_num = 6, 4
    out_c = anc_num * (5 + cls_num)

    input_x = jax.random.normal(k_img, (T, H, W, Cin), jnp.float32)
    params = init_params(k_par, cin=Cin, anc_num=anc_num, cls_num=cls_num)

    _buffered1_ok()                      # warm the capability probe (eager)

    fwd = jax.jit(yolov2_fgfa_forward, static_argnames=("out_c",))
    out = fwd(params, input_x, out_c=out_c)
    out = [jax.block_until_ready(o) for o in out]

    assert out[0].shape == (1, H, W, out_c), out[0].shape
    assert out[0].dtype == jnp.float32
    assert bool(jnp.all(jnp.isfinite(out[0])))
    print("KERNEL_OK")
</pallas_src>

<mosaic_0001>
module attributes {stable_mosaic.version = 11 : i64} {
  func.func @k(%arg0: i32, %arg1: memref<8x128xf32, #tpu.memory_space<vmem>>, %arg2: memref<8x128xf32, #tpu.memory_space<vmem>>) attributes {dimension_semantics = [#tpu.dimension_semantics<arbitrary>], iteration_bounds = array<i64: 2>, scalar_prefetch = 0 : i64, scratch_operands = 0 : i64, tpu.core_type = #tpu.core_type<tc>, window_params = [{pipeline_mode = #tpu.pipeline_mode<synchronous>, transform_indices = @transform_0, window_bounds = array<i64: 8, 128>}, {transform_indices = @transform_1, window_bounds = array<i64: 8, 128>}]} {
    %c0 = arith.constant 0 : index
    %c0_0 = arith.constant 0 : index
    %0 = vector.load %arg1[%c0, %c0_0] : memref<8x128xf32, #tpu.memory_space<vmem>>, vector<8x128xf32>
    %cst = arith.constant 1.000000e+00 : f32
    %1 = vector.broadcast %cst : f32 to vector<8x128xf32>
    %2 = arith.addf %0, %1 : vector<8x128xf32>
    %c0_1 = arith.constant 0 : index
    %c0_2 = arith.constant 0 : index
    %3 = vector.load %arg2[%c0_1, %c0_2] : memref<8x128xf32, #tpu.memory_space<vmem>>, vector<8x128xf32>
    tpu.vector_store %arg2[%c0_1, %c0_2], %2 {strides = array<i32>} : memref<8x128xf32, #tpu.memory_space<vmem>>, vector<8x128xf32>,
    return
  }
  func.func @transform_0(%arg0: i32) -> (i32, i32) {
    %c0_i32 = arith.constant 0 : i32
    %c0_i32_0 = arith.constant 0 : i32
    %c0_i32_1 = arith.constant 0 : i32
    return %c0_i32, %c0_i32_0 : i32, i32
  }
  func.func @transform_1(%arg0: i32) -> (i32, i32) {
    %c0_i32 = arith.constant 0 : i32
    %c0_i32_0 = arith.constant 0 : i32
    return %arg0, %c0_i32 : i32, i32
  }
}

module attributes {stable_mosaic.version = 11 : i64} {
  func.func @_backbone_em1_kernel(%arg0: i32, %arg1: memref<512x128xbf16, #tpu.memory_space<vmem>>, %arg2: memref<128x128xbf16, #tpu.memory_space<vmem>>, %arg3: memref<1x128xf32, #tpu.memory_space<vmem>>, %arg4: memref<128x128xbf16, #tpu.memory_space<vmem>>, %arg5: memref<1x128xf32, #tpu.memory_space<vmem>>, %arg6: memref<512x128xbf16, #tpu.memory_space<vmem>>, %arg7: memref<512x128xbf16, #tpu.memory_space<vmem>>) attributes {dimension_semantics = [#tpu.dimension_semantics<parallel>], iteration_bounds = array<i64: 2>, scalar_prefetch = 0 : i64, scratch_operands = 0 : i64, tpu.core_type = #tpu.core_type<tc>, window_params = [{transform_indices = @transform_0, window_bounds = array<i64: 512, 128>}, {pipeline_mode = #tpu.pipeline_mode<synchronous>, transform_indices = @transform_1, window_bounds = array<i64: 128, 128>}, {pipeline_mode = #tpu.pipeline_mode<synchronous>, transform_indices = @transform_2, window_bounds = array<i64: 1, 128>}, {pipeline_mode = #tpu.pipeline_mode<synchronous>, transform_indices = @transform_3, window_bounds = array<i64: 128, 128>}, {pipeline_mode = #tpu.pipeline_mode<synchronous>, transform_indices = @transform_4, window_bounds = array<i64: 1, 128>}, {transform_indices = @transform_5, window_bounds = array<i64: 512, 128>}, {transform_indices = @transform_6, window_bounds = array<i64: 512, 128>}]} {
    %c0 = arith.constant 0 : index
    %c0_0 = arith.constant 0 : index
    %0 = vector.load %arg1[%c0, %c0_0] : memref<512x128xbf16, #tpu.memory_space<vmem>>, vector<512x128xbf16>
    %c0_1 = arith.constant 0 : index
    %c0_2 = arith.constant 0 : index
    %1 = vector.load %arg2[%c0_1, %c0_2] : memref<128x128xbf16, #tpu.memory_space<vmem>>, vector<128x128xbf16>
    %cst = arith.constant dense<0.000000e+00> : vector<512x128xf32>
    %2 = tpu.matmul %0, %1, %cst {dimension_numbers = #tpu.dot_dimension_numbers<[1], [0], [0], [1], [0, 0, 1, 1], [], []>} : vector<512x128xbf16>, vector<128x128xbf16>, vector<512x128xf32> -> vector<512x128xf32>
    %c0_3 = arith.constant 0 : index
    %c0_4 = arith.constant 0 : index
    %3 = vector.load %arg3[%c0_3, %c0_4] : memref<1x128xf32, #tpu.memory_space<vmem>>, vector<1x128xf32>
    %4 = vector.broadcast %3 : vector<1x128xf32> to vector<512x128xf32>
    %5 = arith.addf %2, %4 : vector<512x128xf32>
    %cst_5 = arith.constant 0.000000e+00 : f32
    %6 = vector.broadcast %cst_5 : f32 to vector<512x128xf32>
    %7 = arith.maximumf %5, %6 : vector<512x128xf32>
    %8 = arith.truncf %7 : vector<512x128xf32> to vector<512x128xbf16>
    %c0_6 = arith.constant 0 : index
    %c0_7 = arith.constant 0 : index
    %9 = vector.load %arg6[%c0_6, %c0_7] : memref<512x128xbf16, #tpu.memory_space<vmem>>, vector<512x128xbf16>
    tpu.vector_store %arg6[%c0_6, %c0_7], %8 {strides = array<i32>} : memref<512x128xbf16, #tpu.memory_space<vmem>>, vector<512x128xbf16>,
    %10 = arith.truncf %7 : vector<512x128xf32> to vector<512x128xbf16>
    %c0_8 = arith.constant 0 : index
    %c0_9 = arith.constant 0 : index
    %11 = vector.load %arg4[%c0_8, %c0_9] : memref<128x128xbf16, #tpu.memory_space<vmem>>, vector<128x128xbf16>
    %cst_10 = arith.constant dense<0.000000e+00> : vector<512x128xf32>
    %12 = tpu.matmul %10, %11, %cst_10 {dimension_numbers = #tpu.dot_dimension_numbers<[1], [0], [0], [1], [0, 0, 1, 1], [], []>} : vector<512x128xbf16>, vector<128x128xbf16>, vector<512x128xf32> -> vector<512x128xf32>
    %c0_11 = arith.constant 0 : index
    %c0_12 = arith.constant 0 : index
    %13 = vector.load %arg5[%c0_11, %c0_12] : memref<1x128xf32, #tpu.memory_space<vmem>>, vector<1x128xf32>
    %14 = vector.broadcast %13 : vector<1x128xf32> to vector<512x128xf32>
    %15 = arith.addf %12, %14 : vector<512x128xf32>
    %cst_13 = arith.constant 0.000000e+00 : f32
    %16 = vector.broadcast %cst_13 : f32 to vector<512x128xf32>
    %17 = arith.maximumf %15, %16 : vector<512x128xf32>
    %18 = arith.truncf %17 : vector<512x128xf32> to vector<512x128xbf16>
    %c0_14 = arith.constant 0 : index
    %c0_15 = arith.constant 0 : index
    %19 = vector.load %arg7[%c0_14, %c0_15] : memref<512x128xbf16, #tpu.memory_space<vmem>>, vector<512x128xbf16>
    tpu.vector_store %arg7[%c0_14, %c0_15], %18 {strides = array<i32>} : memref<512x128xbf16, #tpu.memory_space<vmem>>, vector<512x128xbf16>,
    return
  }
  func.func @transform_0(%arg0: i32) -> (i32, i32) {
    %c0_i32 = arith.constant 0 : i32
    %c0_i32_0 = arith.constant 0 : i32
    return %arg0, %c0_i32 : i32, i32
  }
  func.func @transform_1(%arg0: i32) -> (i32, i32) {
    %c0_i32 = arith.constant 0 : i32
    %c0_i32_0 = arith.constant 0 : i32
    %c0_i32_1 = arith.constant 0 : i32
    return %c0_i32, %c0_i32_0 : i32, i32
  }
  func.func @transform_2(%arg0: i32) -> (i32, i32) {
    %c0_i32 = arith.constant 0 : i32
    %c0_i32_0 = arith.constant 0 : i32
    %c0_i32_1 = arith.constant 0 : i32
    return %c0_i32, %c0_i32_0 : i32, i32
  }
  func.func @transform_3(%arg0: i32) -> (i32, i32) {
    %c0_i32 = arith.constant 0 : i32
    %c0_i32_0 = arith.constant 0 : i32
    %c0_i32_1 = arith.constant 0 : i32
    return %c0_i32, %c0_i32_0 : i32, i32
  }
  func.func @transform_4(%arg0: i32) -> (i32, i32) {
    %c0_i32 = arith.constant 0 : i32
    %c0_i32_0 = arith.constant 0 : i32
    %c0_i32_1 = arith.constant 0 : i32
    return %c0_i32, %c0_i32_0 : i32, i32
  }
  func.func @transform_5(%arg0: i32) -> (i32, i32) {
    %c0_i32 = arith.constant 0 : i32
    %c0_i32_0 = arith.constant 0 : i32
    return %arg0, %c0_i32 : i32, i32
  }
  func.func @transform_6(%arg0: i32) -> (i32, i32) {
    %c0_i32 = arith.constant 0 : i32
    %c0_i32_0 = arith.constant 0 : i32
    return %arg0, %c0_i32 : i32, i32
  }
}

module attributes {stable_mosaic.version = 11 : i64} {
  func.func @_matmul_kernel(%arg0: i32, %arg1: i32, %arg2: i32, %arg3: memref<512x128xbf16, #tpu.memory_space<vmem>>, %arg4: memref<128x128xbf16, #tpu.memory_space<vmem>>, %arg5: memref<1x128xf32, #tpu.memory_space<vmem>>, %arg6: memref<512x128xbf16, #tpu.memory_space<vmem>>, %arg7: memref<512x128xf32, #tpu.memory_space<vmem>>) attributes {dimension_semantics = [#tpu.dimension_semantics<parallel>, #tpu.dimension_semantics<parallel>, #tpu.dimension_semantics<arbitrary>], iteration_bounds = array<i64: 2, 1, 1>, scalar_prefetch = 0 : i64, scratch_operands = 1 : i64, tpu.core_type = #tpu.core_type<tc>, window_params = [{transform_indices = @transform_0, window_bounds = array<i64: 512, 128>}, {transform_indices = @transform_1, window_bounds = array<i64: 128, 128>}, {transform_indices = @transform_2, window_bounds = array<i64: 1, 128>}, {transform_indices = @transform_3, window_bounds = array<i64: 512, 128>}]} {
    %c0_i32 = arith.constant 0 : i32
    %0 = arith.cmpi eq, %arg2, %c0_i32 : i32
    %1 = arith.extui %0 : i1 to i32
    %c0_i32_0 = arith.constant 0 : i32
    %2 = arith.cmpi ne, %1, %c0_i32_0 : i32
    scf.if %2 {
      %cst_10 = arith.constant 0.000000e+00 : f32
      %12 = vector.broadcast %cst_10 : f32 to vector<512x128xf32>
      %c0_11 = arith.constant 0 : index
      %c0_12 = arith.constant 0 : index
      %13 = vector.load %arg7[%c0_11, %c0_12] : memref<512x128xf32, #tpu.memory_space<vmem>>, vector<512x128xf32>
      tpu.vector_store %arg7[%c0_11, %c0_12], %12 {strides = array<i32>} : memref<512x128xf32, #tpu.memory_space<vmem>>, vector<512x128xf32>,
    } else {
    }
    %c0 = arith.constant 0 : index
    %c0_1 = arith.constant 0 : index
    %3 = vector.load %arg7[%c0, %c0_1] : memref<512x128xf32, #tpu.memory_space<vmem>>, vector<512x128xf32>
    %c0_2 = arith.constant 0 : index
    %c0_3 = arith.constant 0 : index
    %4 = vector.load %arg3[%c0_2, %c0_3] : memref<512x128xbf16, #tpu.memory_space<vmem>>, vector<512x128xbf16>
    %c0_4 = arith.constant 0 : index
    %c0_5 = arith.constant 0 : index
    %5 = vector.load %arg4[%c0_4, %c0_5] : memref<128x128xbf16, #tpu.memory_space<vmem>>, vector<128x128xbf16>
    %cst = arith.constant dense<0.000000e+00> : vector<512x128xf32>
    %6 = tpu.matmul %4, %5, %cst {dimension_numbers = #tpu.dot_dimension_numbers<[1], [0], [0], [1], [0, 0, 1, 1], [], []>} : vector<512x128xbf16>, vector<128x128xbf16>, vector<512x128xf32> -> vector<512x128xf32>
    %7 = arith.addf %3, %6 : vector<512x128xf32>
    %c0_6 = arith.constant 0 : index
    %c0_7 = arith.constant 0 : index
    %8 = vector.load %arg7[%c0_6, %c0_7] : memref<512x128xf32, #tpu.memory_space<vmem>>, vector<512x128xf32>
    tpu.vector_store %arg7[%c0_6, %c0_7], %7 {strides = array<i32>} : memref<512x128xf32, #tpu.memory_space<vmem>>, vector<512x128xf32>,
    %c0_i32_8 = arith.constant 0 : i32
    %9 = arith.cmpi eq, %arg2, %c0_i32_8 : i32
    %10 = arith.extui %9 : i1 to i32
    %c0_i32_9 = arith.constant 0 : i32
    %11 = arith.cmpi ne, %10, %c0_i32_9 : i32
    scf.if %11 {
      %c0_10 = arith.constant 0 : index
      %c0_11 = arith.constant 0 : index
      %12 = vector.load %arg7[%c0_10, %c0_11] : memref<512x128xf32, #tpu.memory_space<vmem>>, vector<512x128xf32>
      %c0_12 = arith.constant 0 : index
      %c0_13 = arith.constant 0 : index
      %13 = vector.load %arg5[%c0_12, %c0_13] : memref<1x128xf32, #tpu.memory_space<vmem>>, vector<1x128xf32>
      %14 = vector.broadcast %13 : vector<1x128xf32> to vector<512x128xf32>
      %15 = arith.addf %12, %14 : vector<512x128xf32>
      %16 = arith.truncf %15 : vector<512x128xf32> to vector<512x128xbf16>
      %c0_14 = arith.constant 0 : index
      %c0_15 = arith.constant 0 : index
      %17 = vector.load %arg6[%c0_14, %c0_15] : memref<512x128xbf16, #tpu.memory_space<vmem>>, vector<512x128xbf16>
      tpu.vector_store %arg6[%c0_14, %c0_15], %16 {strides = array<i32>} : memref<512x128xbf16, #tpu.memory_space<vmem>>, vector<512x128xbf16>,
    } else {
    }
    return
  }
  func.func @transform_0(%arg0: i32, %arg1: i32, %arg2: i32) -> (i32, i32) {
    %c0_i32 = arith.constant 0 : i32
    return %arg0, %arg2 : i32, i32
  }
  func.func @transform_1(%arg0: i32, %arg1: i32, %arg2: i32) -> (i32, i32) {
    %c0_i32 = arith.constant 0 : i32
    return %arg2, %arg1 : i32, i32
  }
  func.func @transform_2(%arg0: i32, %arg1: i32, %arg2: i32) -> (i32, i32) {
    %c0_i32 = arith.constant 0 : i32
    %c0_i32_0 = arith.constant 0 : i32
    return %c0_i32, %arg1 : i32, i32
  }
  func.func @transform_3(%arg0: i32, %arg1: i32, %arg2: i32) -> (i32, i32) {
    %c0_i32 = arith.constant 0 : i32
    return %arg0, %arg1 : i32, i32
  }
}

module attributes {stable_mosaic.version = 11 : i64} {
  func.func @_conv3x3_relu_kernel(%arg0: i32, %arg1: memref<1x10x18x128xbf16, #tpu.memory_space<vmem>>, %arg2: memref<3x384x128xbf16, #tpu.memory_space<vmem>>, %arg3: memref<1x128xf32, #tpu.memory_space<vmem>>, %arg4: memref<1x128x128xbf16, #tpu.memory_space<vmem>>, %arg5: memref<128x128xf32, #tpu.memory_space<vmem>>) attributes {dimension_semantics = [#tpu.dimension_semantics<parallel>], iteration_bounds = array<i64: 6>, scalar_prefetch = 0 : i64, scratch_operands = 1 : i64, tpu.core_type = #tpu.core_type<tc>, window_params = [{transform_indices = @transform_0, window_bounds = array<i64: 1, 10, 18, 128>}, {pipeline_mode = #tpu.pipeline_mode<synchronous>, transform_indices = @transform_1, window_bounds = array<i64: 3, 384, 128>}, {pipeline_mode = #tpu.pipeline_mode<synchronous>, transform_indices = @transform_2, window_bounds = array<i64: 1, 128>}, {transform_indices = @transform_3, window_bounds = array<i64: 1, 128, 128>}]} {
    %c0 = arith.constant 0 : index
    %c0_0 = arith.constant 0 : index
    %c0_1 = arith.constant 0 : index
    %c0_2 = arith.constant 0 : index
    %0 = vector.load %arg1[%c0, %c0_0, %c0_1, %c0_2] : memref<1x10x18x128xbf16, #tpu.memory_space<vmem>>, vector<1x10x18x128xbf16>
    %1 = vector.shape_cast %0 : vector<1x10x18x128xbf16> to vector<10x18x128xbf16>
    %2 = vector.extract_strided_slice %1 {offsets = [0, 0, 0], sizes = [10, 16, 128], strides = [1, 1, 1]} : vector<10x18x128xbf16> to vector<10x16x128xbf16>
    %3 = vector.extract_strided_slice %1 {offsets = [0, 1, 0], sizes = [10, 16, 128], strides = [1, 1, 1]} : vector<10x18x128xbf16> to vector<10x16x128xbf16>
    %4 = vector.extract_strided_slice %1 {offsets = [0, 2, 0], sizes = [10, 16, 128], strides = [1, 1, 1]} : vector<10x18x128xbf16> to vector<10x16x128xbf16>
    %5 = tpu.concatenate %2, %3, %4 in 2 : vector<10x16x128xbf16>, vector<10x16x128xbf16>, vector<10x16x128xbf16> -> vector<10x16x384xbf16>
    %6 = vector.extract_strided_slice %5 {offsets = [0, 0, 0], sizes = [8, 16, 384], strides = [1, 1, 1]} : vector<10x16x384xbf16> to vector<8x16x384xbf16>
    %7 = vector.shape_cast %6 : vector<8x16x384xbf16> to vector<128x384xbf16>
    %c0_3 = arith.constant 0 : index
    %c0_4 = arith.constant 0 : index
    %c0_5 = arith.constant 0 : index
    %8 = vector.load %arg2[%c0_3, %c0_4, %c0_5] : memref<3x384x128xbf16, #tpu.memory_space<vmem>>, vector<1x384x128xbf16>
    %9 = vector.shape_cast %8 : vector<1x384x128xbf16> to vector<384x128xbf16>
    %cst = arith.constant dense<0.000000e+00> : vector<128x128xf32>
    %10 = tpu.matmul %7, %9, %cst {dimension_numbers = #tpu.dot_dimension_numbers<[1], [0], [0], [1], [0, 0, 1, 1], [], []>} : vector<128x384xbf16>, vector<384x128xbf16>, vector<128x128xf32> -> vector<128x128xf32>
    %c0_6 = arith.constant 0 : index
    %c0_7 = arith.constant 0 : index
    %11 = vector.load %arg5[%c0_6, %c0_7] : memref<128x128xf32, #tpu.memory_space<vmem>>, vector<128x128xf32>
    tpu.vector_store %arg5[%c0_6, %c0_7], %10 {strides = array<i32>} : memref<128x128xf32, #tpu.memory_space<vmem>>, vector<128x128xf32>,
    %c0_8 = arith.constant 0 : index
    %c0_9 = arith.constant 0 : index
    %12 = vector.load %arg5[%c0_8, %c0_9] : memref<128x128xf32, #tpu.memory_space<vmem>>, vector<128x128xf32>
    %13 = vector.extract_strided_slice %5 {offsets = [1, 0, 0], sizes = [8, 16, 384], strides = [1, 1, 1]} : vector<10x16x384xbf16> to vector<8x16x384xbf16>
    %14 = vector.shape_cast %13 : vector<8x16x384xbf16> to vector<128x384xbf16>
    %c1 = arith.constant 1 : index
    %c0_10 = arith.constant 0 : index
    %c0_11 = arith.constant 0 : index
    %15 = vector.load %arg2[%c1, %c0_10, %c0_11] : memref<3x384x128xbf16, #tpu.memory_space<vmem>>, vector<1x384x128xbf16>
    %16 = vector.shape_cast %15 : vector<1x384x128xbf16> to vector<384x128xbf16>
    %cst_12 = arith.constant dense<0.000000e+00> : vector<128x128xf32>
    %17 = tpu.matmul %14, %16, %cst_12 {dimension_numbers = #tpu.dot_dimension_numbers<[1], [0], [0], [1], [0, 0, 1, 1], [], []>} : vector<128x384xbf16>, vector<384x128xbf16>, vector<128x128xf32> -> vector<128x128xf32>
    %18 = arith.addf %12, %17 : vector<128x128xf32>
    %c0_13 = arith.constant 0 : index
    %c0_14 = arith.constant 0 : index
    %19 = vector.load %arg5[%c0_13, %c0_14] : memref<128x128xf32, #tpu.memory_space<vmem>>, vector<128x128xf32>
    tpu.vector_store %arg5[%c0_13, %c0_14], %18 {strides = array<i32>} : memref<128x128xf32, #tpu.memory_space<vmem>>, vector<128x128xf32>,
    %c0_15 = arith.constant 0 : index
    %c0_16 = arith.constant 0 : index
    %20 = vector.load %arg5[%c0_15, %c0_16] : memref<128x128xf32, #tpu.memory_space<vmem>>, vector<128x128xf32>
    %21 = vector.extract_strided_slice %5 {offsets = [2, 0, 0], sizes = [8, 16, 384], strides = [1, 1, 1]} : vector<10x16x384xbf16> to vector<8x16x384xbf16>
    %22 = vector.shape_cast %21 : vector<8x16x384xbf16> to vector<128x384xbf16>
    %c2 = arith.constant 2 : index
    %c0_17 = arith.constant 0 : index
    %c0_18 = arith.constant 0 : index
    %23 = vector.load %arg2[%c2, %c0_17, %c0_18] : memref<3x384x128xbf16, #tpu.memory_space<vmem>>, vector<1x384x128xbf16>
    %24 = vector.shape_cast %23 : vector<1x384x128xbf16> to vector<384x128xbf16>
    %cst_19 = arith.constant dense<0.000000e+00> : vector<128x128xf32>
    %25 = tpu.matmul %22, %24, %cst_19 {dimension_numbers = #tpu.dot_dimension_numbers<[1], [0], [0], [1], [0, 0, 1, 1], [], []>} : vector<128x384xbf16>, vector<384x128xbf16>, vector<128x128xf32> -> vector<128x128xf32>
    %26 = arith.addf %20, %25 : vector<128x128xf32>
    %c0_20 = arith.constant 0 : index
    %c0_21 = arith.constant 0 : index
    %27 = vector.load %arg5[%c0_20, %c0_21] : memref<128x128xf32, #tpu.memory_space<vmem>>, vector<128x128xf32>
    tpu.vector_store %arg5[%c0_20, %c0_21], %26 {strides = array<i32>} : memref<128x128xf32, #tpu.memory_space<vmem>>, vector<128x128xf32>,
    %c0_22 = arith.constant 0 : index
    %c0_23 = arith.constant 0 : index
    %28 = vector.load %arg5[%c0_22, %c0_23] : memref<128x128xf32, #tpu.memory_space<vmem>>, vector<128x128xf32>
    %c0_24 = arith.constant 0 : index
    %c0_25 = arith.constant 0 : index
    %29 = vector.load %arg3[%c0_24, %c0_25] : memref<1x128xf32, #tpu.memory_space<vmem>>, vector<1x128xf32>
    %30 = vector.broadcast %29 : vector<1x128xf32> to vector<128x128xf32>
    %31 = arith.addf %28, %30 : vector<128x128xf32>
    %cst_26 = arith.constant 0.000000e+00 : f32
    %32 = vector.broadcast %cst_26 : f32 to vector<128x128xf32>
    %33 = arith.maximumf %31, %32 : vector<128x128xf32>
    %34 = vector.shape_cast %33 : vector<128x128xf32> to vector<1x128x128xf32>
    %35 = arith.truncf %34 : vector<1x128x128xf32> to vector<1x128x128xbf16>
    %c0_27 = arith.constant 0 : index
    %c0_28 = arith.constant 0 : index
    %c0_29 = arith.constant 0 : index
    %36 = vector.load %arg4[%c0_27, %c0_28, %c0_29] : memref<1x128x128xbf16, #tpu.memory_space<vmem>>, vector<1x128x128xbf16>
    tpu.vector_store %arg4[%c0_27, %c0_28, %c0_29], %35 {strides = array<i32>} : memref<1x128x128xbf16, #tpu.memory_space<vmem>>, vector<1x128x128xbf16>,
    return
  }
  func.func @transform_0(%arg0: i32) -> (i32, i32, i32, i32) {
    %c0_i32 = arith.constant 0 : i32
    %c0_i32_0 = arith.constant 0 : i32
    %c0_i32_1 = arith.constant 0 : i32
    %c0_i32_2 = arith.constant 0 : i32
    return %arg0, %c0_i32, %c0_i32_0, %c0_i32_1 : i32, i32, i32, i32
  }
  func.func @transform_1(%arg0: i32) -> (i32, i32, i32) {
    %c0_i32 = arith.constant 0 : i32
    %c0_i32_0 = arith.constant 0 : i32
    %c0_i32_1 = arith.constant 0 : i32
    %c0_i32_2 = arith.constant 0 : i32
    return %c0_i32, %c0_i32_0, %c0_i32_1 : i32, i32, i32
  }
  func.func @transform_2(%arg0: i32) -> (i32, i32) {
    %c0_i32 = arith.constant 0 : i32
    %c0_i32_0 = arith.constant 0 : i32
    %c0_i32_1 = arith.constant 0 : i32
    return %c0_i32, %c0_i32_0 : i32, i32
  }
  func.func @transform_3(%arg0: i32) -> (i32, i32, i32) {
    %c0_i32 = arith.constant 0 : i32
    %c0_i32_0 = arith.constant 0 : i32
    %c0_i32_1 = arith.constant 0 : i32
    return %arg0, %c0_i32, %c0_i32_0 : i32, i32, i32
  }
}

module attributes {stable_mosaic.version = 11 : i64} {
  func.func @_fgfa_tail_kernel(%arg0: i32, %arg1: memref<128x128xbf16, #tpu.memory_space<vmem>>, %arg2: memref<2x128x128xbf16, #tpu.memory_space<vmem>>, %arg3: memref<2x128x128xbf16, #tpu.memory_space<vmem>>, %arg4: memref<128x128xbf16, #tpu.memory_space<vmem>>, %arg5: memref<128x128xf32, #tpu.memory_space<vmem>>) attributes {dimension_semantics = [#tpu.dimension_semantics<parallel>], iteration_bounds = array<i64: 2>, scalar_prefetch = 0 : i64, scratch_operands = 0 : i64, tpu.core_type = #tpu.core_type<tc>, window_params = [{transform_indices = @transform_0, window_bounds = array<i64: 128, 128>}, {transform_indices = @transform_1, window_bounds = array<i64: 2, 128, 128>}, {transform_indices = @transform_2, window_bounds = array<i64: 2, 128, 128>}, {pipeline_mode = #tpu.pipeline_mode<synchronous>, transform_indices = @transform_3, window_bounds = array<i64: 128, 128>}, {transform_indices = @transform_4, window_bounds = array<i64: 128, 128>}]} {
    %c0 = arith.constant 0 : index
    %c0_0 = arith.constant 0 : index
    %0 = vector.load %arg1[%c0, %c0_0] : memref<128x128xbf16, #tpu.memory_space<vmem>>, vector<128x128xbf16>
    %1 = arith.mulf %0, %0 : vector<128x128xbf16>
    %2 = arith.extf %1 : vector<128x128xbf16> to vector<128x128xf32>
    %cst = arith.constant dense<0.000000e+00> : vector<128xf32>
    %3 = vector.multi_reduction <add>, %2, %cst [1] : vector<128x128xf32> to vector<128xf32>
    %4 = vector.shape_cast %3 : vector<128xf32> to vector<128x1xf32>
    %5 = math.sqrt %4 : vector<128x1xf32>
    %cst_1 = arith.constant 1.000000e-10 : f32
    %6 = vector.broadcast %cst_1 : f32 to vector<128x1xf32>
    %7 = arith.addf %5, %6 : vector<128x1xf32>
    %c0_2 = arith.constant 0 : index
    %c0_3 = arith.constant 0 : index
    %c0_4 = arith.constant 0 : index
    %8 = vector.load %arg2[%c0_2, %c0_3, %c0_4] : memref<2x128x128xbf16, #tpu.memory_space<vmem>>, vector<1x128x128xbf16>
    %9 = vector.shape_cast %8 : vector<1x128x128xbf16> to vector<128x128xbf16>
    %10 = arith.mulf %9, %0 : vector<128x128xbf16>
    %11 = arith.extf %10 : vector<128x128xbf16> to vector<128x128xf32>
    %cst_5 = arith.constant dense<0.000000e+00> : vector<128xf32>
    %12 = vector.multi_reduction <add>, %11, %cst_5 [1] : vector<128x128xf32> to vector<128xf32>
    %13 = vector.shape_cast %12 : vector<128xf32> to vector<128x1xf32>
    %14 = arith.mulf %9, %9 : vector<128x128xbf16>
    %15 = arith.extf %14 : vector<128x128xbf16> to vector<128x128xf32>
    %cst_6 = arith.constant dense<0.000000e+00> : vector<128xf32>
    %16 = vector.multi_reduction <add>, %15, %cst_6 [1] : vector<128x128xf32> to vector<128xf32>
    %17 = vector.shape_cast %16 : vector<128xf32> to vector<128x1xf32>
    %18 = math.sqrt %17 : vector<128x1xf32>
    %cst_7 = arith.constant 1.000000e-10 : f32
    %19 = vector.broadcast %cst_7 : f32 to vector<128x1xf32>
    %20 = arith.addf %18, %19 : vector<128x1xf32>
    %21 = arith.mulf %20, %7 : vector<128x1xf32>
    %22 = tpu.reciprocal %21 {approx = true} : vector<128x1xf32> -> vector<128x1xf32>
    %23 = arith.mulf %13, %22 : vector<128x1xf32>
    %c1 = arith.constant 1 : index
    %c0_8 = arith.constant 0 : index
    %c0_9 = arith.constant 0 : index
    %24 = vector.load %arg2[%c1, %c0_8, %c0_9] : memref<2x128x128xbf16, #tpu.memory_space<vmem>>, vector<1x128x128xbf16>
    %25 = vector.shape_cast %24 : vector<1x128x128xbf16> to vector<128x128xbf16>
    %26 = arith.mulf %25, %0 : vector<128x128xbf16>
    %27 = arith.extf %26 : vector<128x128xbf16> to vector<128x128xf32>
    %cst_10 = arith.constant dense<0.000000e+00> : vector<128xf32>
    %28 = vector.multi_reduction <add>, %27, %cst_10 [1] : vector<128x128xf32> to vector<128xf32>
    %29 = vector.shape_cast %28 : vector<128xf32> to vector<128x1xf32>
    %30 = arith.mulf %25, %25 : vector<128x128xbf16>
    %31 = arith.extf %30 : vector<128x128xbf16> to vector<128x128xf32>
    %cst_11 = arith.constant dense<0.000000e+00> : vector<128xf32>
    %32 = vector.multi_reduction <add>, %31, %cst_11 [1] : vector<128x128xf32> to vector<128xf32>
    %33 = vector.shape_cast %32 : vector<128xf32> to vector<128x1xf32>
    %34 = math.sqrt %33 : vector<128x1xf32>
    %cst_12 = arith.constant 1.000000e-10 : f32
    %35 = vector.broadcast %cst_12 : f32 to vector<128x1xf32>
    %36 = arith.addf %34, %35 : vector<128x1xf32>
    %37 = arith.mulf %36, %7 : vector<128x1xf32>
    %38 = tpu.reciprocal %37 {approx = true} : vector<128x1xf32> -> vector<128x1xf32>
    %39 = arith.mulf %29, %38 : vector<128x1xf32>
    %40 = vector.shape_cast %23 : vector<128x1xf32> to vector<1x128x1xf32>
    %41 = vector.shape_cast %39 : vector<128x1xf32> to vector<1x128x1xf32>
    %42 = tpu.concatenate %40, %41 in 0 : vector<1x128x1xf32>, vector<1x128x1xf32> -> vector<2x128x1xf32>
    %cst_13 = arith.constant dense<0xFF800000> : vector<128x1xf32>
    %43 = vector.multi_reduction <maximumf>, %42, %cst_13 [0] : vector<2x128x1xf32> to vector<128x1xf32>
    %44 = vector.shape_cast %43 : vector<128x1xf32> to vector<1x128x1xf32>
    %45 = vector.broadcast %44 : vector<1x128x1xf32> to vector<2x128x1xf32>
    %46 = arith.subf %42, %45 : vector<2x128x1xf32>
    %47 = math.exp %46 : vector<2x128x1xf32>
    %cst_14 = arith.constant dense<0.000000e+00> : vector<128x1xf32>
    %48 = vector.multi_reduction <add>, %47, %cst_14 [0] : vector<2x128x1xf32> to vector<128x1xf32>
    %49 = vector.shape_cast %48 : vector<128x1xf32> to vector<1x128x1xf32>
    %50 = tpu.reciprocal %49 {approx = true} : vector<1x128x1xf32> -> vector<1x128x1xf32>
    %51 = vector.broadcast %50 : vector<1x128x1xf32> to vector<2x128x1xf32>
    %52 = arith.mulf %47, %51 : vector<2x128x1xf32>
    %cst_15 = arith.constant 0.000000e+00 : f32
    %53 = vector.broadcast %cst_15 : f32 to vector<128x128xf32>
    %54 = vector.extract_strided_slice %52 {offsets = [0, 0, 0], sizes = [1, 128, 1], strides = [1, 1, 1]} : vector<2x128x1xf32> to vector<1x128x1xf32>
    %55 = vector.shape_cast %54 : vector<1x128x1xf32> to vector<128x1xf32>
    %c0_16 = arith.constant 0 : index
    %c0_17 = arith.constant 0 : index
    %c0_18 = arith.constant 0 : index
    %56 = vector.load %arg3[%c0_16, %c0_17, %c0_18] : memref<2x128x128xbf16, #tpu.memory_space<vmem>>, vector<1x128x128xbf16>
    %57 = vector.shape_cast %56 : vector<1x128x128xbf16> to vector<128x128xbf16>
    %58 = arith.extf %57 : vector<128x128xbf16> to vector<128x128xf32>
    %59 = vector.broadcast %55 : vector<128x1xf32> to vector<128x128xf32>
    %60 = arith.mulf %59, %58 : vector<128x128xf32>
    %61 = arith.addf %53, %60 : vector<128x128xf32>
    %62 = vector.extract_strided_slice %52 {offsets = [1, 0, 0], sizes = [1, 128, 1], strides = [1, 1, 1]} : vector<2x128x1xf32> to vector<1x128x1xf32>
    %63 = vector.shape_cast %62 : vector<1x128x1xf32> to vector<128x1xf32>
    %c1_19 = arith.constant 1 : index
    %c0_20 = arith.constant 0 : index
    %c0_21 = arith.constant 0 : index
    %64 = vector.load %arg3[%c1_19, %c0_20, %c0_21] : memref<2x128x128xbf16, #tpu.memory_space<vmem>>, vector<1x128x128xbf16>
    %65 = vector.shape_cast %64 : vector<1x128x128xbf16> to vector<128x128xbf16>
    %66 = arith.extf %65 : vector<128x128xbf16> to vector<128x128xf32>
    %67 = vector.broadcast %63 : vector<128x1xf32> to vector<128x128xf32>
    %68 = arith.mulf %67, %66 : vector<128x128xf32>
    %69 = arith.addf %61, %68 : vector<128x128xf32>
    %70 = arith.truncf %69 : vector<128x128xf32> to vector<128x128xbf16>
    %c0_22 = arith.constant 0 : index
    %c0_23 = arith.constant 0 : index
    %71 = vector.load %arg4[%c0_22, %c0_23] : memref<128x128xbf16, #tpu.memory_space<vmem>>, vector<128x128xbf16>
    %cst_24 = arith.constant dense<0.000000e+00> : vector<128x128xf32>
    %72 = tpu.matmul %70, %71, %cst_24 {dimension_numbers = #tpu.dot_dimension_numbers<[1], [0], [0], [1], [0, 0, 1, 1], [], []>} : vector<128x128xbf16>, vector<128x128xbf16>, vector<128x128xf32> -> vector<128x128xf32>
    %c0_25 = arith.constant 0 : index
    %c0_26 = arith.constant 0 : index
    %73 = vector.load %arg5[%c0_25, %c0_26] : memref<128x128xf32, #tpu.memory_space<vmem>>, vector<128x128xf32>
    tpu.vector_store %arg5[%c0_25, %c0_26], %72 {strides = array<i32>} : memref<128x128xf32, #tpu.memory_space<vmem>>, vector<128x128xf32>,
    return
  }
  func.func @transform_0(%arg0: i32) -> (i32, i32) {
    %c0_i32 = arith.constant 0 : i32
    %c0_i32_0 = arith.constant 0 : i32
    return %arg0, %c0_i32 : i32, i32
  }
  func.func @transform_1(%arg0: i32) -> (i32, i32, i32) {
    %c0_i32 = arith.constant 0 : i32
    %c0_i32_0 = arith.constant 0 : i32
    %c0_i32_1 = arith.constant 0 : i32
    return %c0_i32, %arg0, %c0_i32_0 : i32, i32, i32
  }
  func.func @transform_2(%arg0: i32) -> (i32, i32, i32) {
    %c0_i32 = arith.constant 0 : i32
    %c0_i32_0 = arith.constant 0 : i32
    %c0_i32_1 = arith.constant 0 : i32
    return %c0_i32, %arg0, %c0_i32_0 : i32, i32, i32
  }
  func.func @transform_3(%arg0: i32) -> (i32, i32) {
    %c0_i32 = arith.constant 0 : i32
    %c0_i32_0 = arith.constant 0 : i32
    %c0_i32_1 = arith.constant 0 : i32
    return %c0_i32, %c0_i32_0 : i32, i32
  }
  func.func @transform_4(%arg0: i32) -> (i32, i32) {
    %c0_i32 = arith.constant 0 : i32
    %c0_i32_0 = arith.constant 0 : i32
    return %arg0, %c0_i32 : i32, i32
  }
}

</mosaic_0001>

<bundles_post_ra>
// kernel: tpu_custom_call.1
= control target key start
LH: loop header
LB: loop body
LE: loop exit
PB: predicated region body
PF: predicated region fallthrough
CT: control target
= control target key end

     0   :  { %6 = vsyncpa [#allocation3], 0  ;;  %s441_s0 = inlined_call_operand.hbm [shape: f32[8,128], index: 0, kind: input, shape index: {}]   ;;  %s442_s1 = inlined_call_operand.hbm [shape: f32[16,128], index: 1, kind: output, shape index: {}]  }
   0x1   :  { %7 = vsyncpa [#allocation4], 0 }
   0x2   :  { %9 = vsyncpa [#allocation4 + $0x1], 0  ;;  %s357_s6 = smov 0   ;;  %s359_s7 = smov 0  }
   0x3   :  { %s361_s8 = smov 0   ;;  %s363_s9 = smov 0  }
   0x4 LB: > { %s378_s10 = sadd.s32 4294967295, %s344_s9   ;;  %s188_s11 = sadd.s32 4294967294, %s344_s9   ;;  %s344_s9 = sphi %s363_s9, %s448_s9   ;;  %s340_s8 = sphi %s361_s8, %s447_s8   ;;  %s336_s7 = sphi %s359_s7, %s446_s7   ;;  %s332_s6 = sphi %s357_s6, %s445_s6  }
   0x5   : > { %s382_s12 = sadd.s32 1, %s344_s9   ;;  %s43_s13 = sadd.s32 1, %s340_s8 }
   0x6   : > { %s40_s14 = ssub.s32 %s344_s9, %s382_s12  ;;  %p53_p0 = scmp.ne.s32.totalorder %s340_s8, %s336_s7 }
   0x7   : > { %p41_p1 = scmp.eq.s32.totalorder %s40_s14, 0  ;;  %p54_p2 = scmp.eq.s32.totalorder %s378_s10, 1 }
   0x8   : > { %p59_p3 = scmp.ne.s32.totalorder %s336_s7, %s332_s6  ;;  %p60_p4 = scmp.eq.s32.totalorder %s188_s11, 1 }
   0x9   : > { %s393_s15 = scalar_select %p41_p1, %s340_s8, %s43_s13  }
   0xa   : > { %p395_p5 = por %p54_p2, %p53_p0  ;;  %p399_p6 = por %p60_p4, %p59_p3 }
   0xb   : > { %p189_p7 = scmp.ge.s32.totalorder %s344_s9, 1  ;;  %p67_p8 = scmp.lt.s32.totalorder %s344_s9, 3 }
   0xc   : > { %p212_p9 = scmp.eq.s32.totalorder %s378_s10, 0  ;;  %s79_s20 = sshll.u32 %s441_s0, 4  ;;  %s80_s20 = int_to_ptr.hbm [resolvable:$true] %s79_s20 }
   0xd   : > { %p68_p10 = pnand %p189_p7, %p67_p8  ;;  %s346_s21 = smov [#allocation2]  }
   0xe   : > { %s81_s22 = sshll.u32 %s346_s21, 4  ;;  %s82_s22 = int_to_ptr.vmem [resolvable:$true] %s81_s22 }
   0xf   : > { %p204_p11 = pneg %p68_p10  ;;  %94 = sbr.rel (%p68_p10) target bundleno = 37 (0x25), region = 24 }
  0x11   : > { %p205_p12 = pnand %p212_p9, %p204_p11 }
  0x13   : > { %207 = dma.hbm_to_vmem [thread:$0]  (!%p205_p12), %s80_s20, 128, %s82_s22, [#allocation3]  }
  0x14   : > { %323 = dma.done.wait (%p212_p9), [#allocation3], 128  }
  0x15   : > { %325 = vsyncadd (%p212_p9), [#allocation3], 4294967168  ;;  %s107_s23 = sand.u32 1, %s336_s7   ;;  %s195_s24 = sshll.u32 %s378_s10, 3  ;;  %v110_v0 = vld [vmem:[#allocation2] sm:$0xff] }
  0x16   : > { %s193_s25 = sshll.u32 %s107_s23, 3  ;;  %s124_s28 = scalar_lea.hbm %s442_s1, %s195_s24  ;;  %v111_v1 = vadd.f32 1.0, %v110_v0 }
  0x17   : > { %s109_s29 = scalar_lea.vmem [#allocation5], %s193_s25  ;;  %s128_s2 = sshll.u32 %s124_s28, 4  ;;  %s129_s2 = int_to_ptr.hbm [resolvable:$true] %s128_s2 }
  0x18   : > { %s126_s30 = sshll.u32 %s109_s29, 4  ;;  %112 = vst [vmem:[%s109_s29] sm:$0xff] %v111_v1  ;;  %s114_s3 = scalar_lea.sflag [#allocation4], %s107_s23  ;;  %s127_s30 = int_to_ptr.vmem [resolvable:$true] %s126_s30 }
  0x19   : > { %s292_s4 = sshra.s32 %s129_s2, 4  ;;  %s298_s13 = scalar_lea.hbm %s442_s1, 16  ;;  %s293_s4 = int_to_ptr.hbm [resolvable:$true] %s292_s4 }
  0x1a   : > { %s294_s5 = scalar_lea.hbm %s293_s4, 8  ;;  %p299_p2 = scmp.lt.s32.totalorder %s293_s4, %s442_s1 }
  0x1b   : > { %p295_p13 = scmp.ne.s32.totalorder %s293_s4, %s294_s5  ;;  %p300_p3 = scmp.lt.s32.totalorder %s298_s13, %s294_s5 }
  0x1d   : > { %p296_p0 = pnand %p295_p13, %p395_p5  ;;  %p301_p4 = por %p300_p3, %p299_p2 }
  0x1f   : > { %p297_p1 = pneg %p296_p0 }
  0x21   : > { %p302_p7 = pnand %p301_p4, %p297_p1 }
  0x23   : > { %305 = shalt.err (!%p302_p7)
}
  0x24   : > { %202 = dma.vmem_to_hbm [thread:$0]  (%p395_p5), %s127_s30, 128, %s129_s2, %s114_s3  }
  0x25 PF: > { %p214_p8 = scmp.ge.s32.totalorder %s344_s9, 2  ;;  %s140_s19 = sand.u32 1, %s332_s6  }
  0x26   : > { %s141_s20 = scalar_lea.sflag [#allocation4], %s140_s19 }
  0x27   : > { %p209_p9 = pnand %p214_p8, %p399_p6 }
  0x29   : > { %p210_p10 = pneg %p209_p9 }
  0x2b   : > { %327 = dma.done.wait (%p210_p10), %s141_s20, 128  }
  0x2c   : > { %329 = vsyncadd (%p210_p10), %s141_s20, 4294967168  ;;  %p12_p11 = scmp.ge.s32.totalorder %s382_s12, 4   ;;  %s445_s6 = smov %s336_s7 }
  0x2d   : > { %s446_s7 = smov %s340_s8  ;;  %s447_s8 = smov %s393_s15 }
  0x2e   : > { %s448_s9 = smov %s382_s12  ;;  %14 = sbr.rel (!%p12_p11) target bundleno = 4 (0x4), region = 61 }
  0x33   :  { %147 = vsyncpa [#allocation3], 1 }
  0x34   :  { %149 = vsyncpa [#allocation3 + $0x1], 1 }
  0x35   :  { %150 = vsyncpa [#allocation4], 1 }
  0x36   :  { %152 = vsyncpa [#allocation4 + $0x1], 1 }

// kernel: yolov2_fgfa_forward.6
= control target key start
LH: loop header
LB: loop body
LE: loop exit
PB: predicated region body
PF: predicated region fallthrough
CT: control target
= control target key end

     0   :  { %s1879_s12 = smov 0   ;;  %s1881_s13 = smov 0   ;;  %s2083_s0 = inlined_call_operand.vmem [shape: bf16[1024,128], index: 0, kind: input, shape index: {}]   ;;  %s2084_s1 = inlined_call_operand.vmem [shape: bf16[128,128], index: 1, kind: input, shape index: {}]   ;;  %s2085_s2 = inlined_call_operand.vmem [shape: f32[1,128], index: 2, kind: input, shape index: {}]   ;;  %s2086_s3 = inlined_call_operand.vmem [shape: bf16[1024,128], index: 3, kind: output, shape index: {}]  }
   0x1   :  { %s1883_s14 = smov 0  }
   0x2 LB: > { %s32_s15 = sadd.s32 1, %s1853_s13  ;;  %p1388_p0 = scmp.ge.s32.totalorder %s1857_s14, 1  ;;  %s1857_s14 = sphi %s1883_s14, %s13_s14   ;;  %s1853_s13 = sphi %s1881_s13, %s2088_s13   ;;  %s1849_s12 = sphi %s1879_s12, %s2087_s12  }
   0x3   : > { %p34_p1 = scmp.ge.s32.totalorder %s32_s15, 2  ;;  %p188_p2 = scmp.lt.s32.totalorder %s1857_s14, 3 }
   0x5   : > { %s2090_s15 = smov (%p34_p1, %s32_s15), 0  ;;  %p189_p3 = pnand %p1388_p0, %p188_p2 }
   0x6   : > { %s1389_s24 = sshll.u32 (!%p189_p3), %s1849_s12, 6 }
   0x7   : > { %192 = sbr.rel (%p189_p3) target bundleno = 303 (0x12f), region = 32  ;;  %p230_p4 = scmp.lt.s32.totalorder (!%p189_p3), %s1389_s24, 127 }
   0xc   : > { %v1594_v0 = vld [vmem:[%s2084_s1 + $0x38] sm:$0xff]  ;;  %v1593_v1 = vld [vmem:[%s2084_s1 + $0x30] sm:$0xff]  ;;  %v1592_v2 = vld [vmem:[%s2084_s1 + $0x28] sm:$0xff]  ;;  %s2092_s24 = smov (!%p230_p4, %s1389_s24), 127 }
   0xd   : > { %711 = vmatpush.bf16.msra.mxu0 %v1594_v0  ;;  %1786 = vmatpush.bf16.msra.mxu1 %v1594_v0  ;;  %v1591_v3 = vld [vmem:[%s2084_s1 + $0x20] sm:$0xff]  ;;  %v1590_v4 = vld [vmem:[%s2084_s1 + $0x18] sm:$0xff]  ;;  %v1589_v5 = vld [vmem:[%s2084_s1 + $0x10] sm:$0xff]  ;;  %s1390_s4 = sshll.u32 %s2092_s24, 2 }
   0xe   : > { %1787 = vmatpush.bf16.msra.mxu2 %v1594_v0  ;;  %1788 = vmatpush.bf16.msra.mxu3 %v1594_v0  ;;  %v1588_v6 = vld [vmem:[%s2084_s1 + $0x8] sm:$0xff]  ;;  %v1587_v7 = vld [vmem:[%s2084_s1] sm:$0xff]  ;;  %s1932_s9 = scalar_lea.vmem %s2083_s0, %s1390_s4  ;;  %s1980_s17 = scalar_lea.vmem %s2086_s3, %s1390_s4 }
   0xf   : > { %v1555_v8 = vld [vmem:[%s1932_s9] sm:$0xff]  ;;  %v1556_v12 = vld [vmem:[%s1932_s9 + $0x8] sm:$0xff]  ;;  %v1557_v16 = vld [vmem:[%s1932_s9 + $0x10] sm:$0xff] }
  0x10   : > { %v1563_v9 = vld [vmem:[%s1932_s9 + $0x40] sm:$0xff]  ;;  %v1564_v13 = vld [vmem:[%s1932_s9 + $0x48] sm:$0xff]  ;;  %v1565_v17 = vld [vmem:[%s1932_s9 + $0x50] sm:$0xff] }
  0x11   : > { %712 = vmatpush.bf16.msra.mxu0 %v1593_v1  ;;  %1789 = vmatpush.bf16.msra.mxu1 %v1593_v1  ;;  %v1571_v10 = vld [vmem:[%s1932_s9 + $0x80] sm:$0xff]  ;;  %v1572_v14 = vld [vmem:[%s1932_s9 + $0x88] sm:$0xff]  ;;  %v1573_v18 = vld [vmem:[%s1932_s9 + $0x90] sm:$0xff] }
  0x12   : > { %1790 = vmatpush.bf16.msra.mxu2 %v1593_v1  ;;  %1791 = vmatpush.bf16.msra.mxu3 %v1593_v1  ;;  %v1579_v11 = vld [vmem:[%s1932_s9 + $0xc0] sm:$0xff]  ;;  %v1580_v15 = vld [vmem:[%s1932_s9 + $0xc8] sm:$0xff]  ;;  %v1581_v19 = vld [vmem:[%s1932_s9 + $0xd0] sm:$0xff] }
  0x13   : > { %v1558_v20 = vld [vmem:[%s1932_s9 + $0x18] sm:$0xff]  ;;  %v1559_v24 = vld [vmem:[%s1932_s9 + $0x20] sm:$0xff]  ;;  %v1560_v28 = vld [vmem:[%s1932_s9 + $0x28] sm:$0xff] }
  0x14   : > { %v1566_v21 = vld [vmem:[%s1932_s9 + $0x58] sm:$0xff]  ;;  %v1567_v25 = vld [vmem:[%s1932_s9 + $0x60] sm:$0xff]  ;;  %v1568_v29 = vld [vmem:[%s1932_s9 + $0x68] sm:$0xff] }
  0x15   : > { %713 = vmatpush.bf16.msra.mxu0 %v1592_v2  ;;  %1792 = vmatpush.bf16.msra.mxu1 %v1592_v2  ;;  %v1574_v22 = vld [vmem:[%s1932_s9 + $0x98] sm:$0xff]  ;;  %v1575_v26 = vld [vmem:[%s1932_s9 + $0xa0] sm:$0xff]  ;;  %v1576_v30 = vld [vmem:[%s1932_s9 + $0xa8] sm:$0xff] }
  0x16   : > { %1793 = vmatpush.bf16.msra.mxu2 %v1592_v2  ;;  %1794 = vmatpush.bf16.msra.mxu3 %v1592_v2  ;;  %v1582_v23 = vld [vmem:[%s1932_s9 + $0xd8] sm:$0xff]  ;;  %v1583_v27 = vld [vmem:[%s1932_s9 + $0xe0] sm:$0xff]  ;;  %v1584_v31 = vld [vmem:[%s1932_s9 + $0xe8] sm:$0xff] }
  0x17   : > { %v1561_v32 = vld [vmem:[%s1932_s9 + $0x30] sm:$0xff]  ;;  %v1562_v36 = vld [vmem:[%s1932_s9 + $0x38] sm:$0xff]  ;;  %v1969_v42 = vld [vmem:[%s2085_s2] ss:$0 sm:$0xff] }
  0x18   : > { %v1569_v33 = vld [vmem:[%s1932_s9 + $0x70] sm:$0xff]  ;;  %v1570_v37 = vld [vmem:[%s1932_s9 + $0x78] sm:$0xff] }
  0x19   : > { %714 = vmatpush.bf16.msra.mxu0 %v1591_v3  ;;  %1795 = vmatpush.bf16.msra.mxu1 %v1591_v3  ;;  %v1577_v34 = vld [vmem:[%s1932_s9 + $0xb0] sm:$0xff]  ;;  %v1578_v38 = vld [vmem:[%s1932_s9 + $0xb8] sm:$0xff] }
  0x1a   : > { %1796 = vmatpush.bf16.msra.mxu2 %v1591_v3  ;;  %1797 = vmatpush.bf16.msra.mxu3 %v1591_v3  ;;  %v1585_v35 = vld [vmem:[%s1932_s9 + $0xf0] sm:$0xff]  ;;  %v1586_v39 = vld [vmem:[%s1932_s9 + $0xf8] sm:$0xff] }
  0x1d   : > { %715 = vmatpush.bf16.msra.mxu0 %v1590_v4  ;;  %1798 = vmatpush.bf16.msra.mxu1 %v1590_v4 }
  0x1e   : > { %1799 = vmatpush.bf16.msra.mxu2 %v1590_v4  ;;  %1800 = vmatpush.bf16.msra.mxu3 %v1590_v4 }
  0x21   : > { %716 = vmatpush.bf16.msra.mxu0 %v1589_v5  ;;  %1801 = vmatpush.bf16.msra.mxu1 %v1589_v5 }
  0x22   : > { %1802 = vmatpush.bf16.msra.mxu2 %v1589_v5  ;;  %1803 = vmatpush.bf16.msra.mxu3 %v1589_v5 }
  0x25   : > { %717 = vmatpush.bf16.msra.mxu0 %v1588_v6  ;;  %1804 = vmatpush.bf16.msra.mxu1 %v1588_v6 }
  0x26   : > { %1805 = vmatpush.bf16.msra.mxu2 %v1588_v6  ;;  %1806 = vmatpush.bf16.msra.mxu3 %v1588_v6 }
  0x29   : > { %718 = vmatpush.bf16.msra.mxu0 %v1587_v7  ;;  %1807 = vmatpush.bf16.msra.mxu1 %v1587_v7 }
  0x2a   : > { %1808 = vmatpush.bf16.msra.mxu2 %v1587_v7  ;;  %1809 = vmatpush.bf16.msra.mxu3 %v1587_v7 }
  0x2c   : > { %719 = vmatmul.bf16.vlgmr.msra.gmra.mxu0 %v1555_v8  ;;  %759 = vmatmul.bf16.vlgmr.msra.gmra.mxu1 %v1563_v9 }
  0x2d   : > { %799 = vmatmul.bf16.vlgmr.msra.gmra.mxu2 %v1571_v10  ;;  %839 = vmatmul.bf16.vlgmr.msra.gmra.mxu3 %v1579_v11 }
  0x3c   : > { %724 = vmatmul.bf16.gmra.mxu0 %v1556_v12  ;;  %764 = vmatmul.bf16.gmra.mxu1 %v1564_v13 }
  0x3d   : > { %804 = vmatmul.bf16.gmra.mxu2 %v1572_v14  ;;  %844 = vmatmul.bf16.gmra.mxu3 %v1580_v15 }
  0x4c   : > { %729 = vmatmul.bf16.gmra.mxu0 %v1557_v16  ;;  %769 = vmatmul.bf16.gmra.mxu1 %v1565_v17 }
  0x4d   : > { %809 = vmatmul.bf16.gmra.mxu2 %v1573_v18  ;;  %849 = vmatmul.bf16.gmra.mxu3 %v1581_v19 }
  0x5c   : > { %734 = vmatmul.bf16.gmra.mxu0 %v1558_v20  ;;  %774 = vmatmul.bf16.gmra.mxu1 %v1566_v21 }
  0x5d   : > { %814 = vmatmul.bf16.gmra.mxu2 %v1574_v22  ;;  %854 = vmatmul.bf16.gmra.mxu3 %v1582_v23 }
  0x6c   : > { %739 = vmatmul.bf16.gmra.mxu0 %v1559_v24  ;;  %779 = vmatmul.bf16.gmra.mxu1 %v1567_v25 }
  0x6d   : > { %819 = vmatmul.bf16.gmra.mxu2 %v1575_v26  ;;  %859 = vmatmul.bf16.gmra.mxu3 %v1583_v27 }
  0x7c   : > { %744 = vmatmul.bf16.gmra.mxu0 %v1560_v28  ;;  %784 = vmatmul.bf16.gmra.mxu1 %v1568_v29 }
  0x7d   : > { %824 = vmatmul.bf16.gmra.mxu2 %v1576_v30  ;;  %864 = vmatmul.bf16.gmra.mxu3 %v1584_v31 }
  0x8c   : > { %749 = vmatmul.bf16.gmra.mxu0 %v1561_v32  ;;  %789 = vmatmul.bf16.gmra.mxu1 %v1569_v33 }
  0x8d   : > { %829 = vmatmul.bf16.gmra.mxu2 %v1577_v34  ;;  %869 = vmatmul.bf16.gmra.mxu3 %v1585_v35 }
  0x9c   : > { %754 = vmatmul.bf16.gmra.mxu0 %v1562_v36  ;;  %794 = vmatmul.bf16.gmra.mxu1 %v1570_v37 }
  0x9d   : > { %834 = vmatmul.bf16.gmra.mxu2 %v1578_v38  ;;  %874 = vmatmul.bf16.gmra.mxu3 %v1586_v39 }
  0xa9   : > { %v720_v40 = vpop.f32.mrf.mxu0  ;;  %v760_v41 = vpop.f32.mrf.mxu1 }
  0xaa   : > { %v1079_v47 = vadd.f32 %v1969_v42, %v720_v40  ;;  %v1095_v48 = vadd.f32 %v1969_v42, %v760_v41 }
  0xb0   : > { %v800_v43 = vpop.f32.mrf.mxu2  ;;  %v840_v44 = vpop.f32.mrf.mxu3 }
  0xb1   : > { %v722_v45 = vpop.f32.mrf.mxu0  ;;  %v762_v46 = vpop.f32.mrf.mxu1  ;;  %v1111_v55 = vadd.f32 %v1969_v42, %v800_v43  ;;  %v1127_v56 = vadd.f32 %v1969_v42, %v840_v44 }
  0xb2   : > { %v1080_v49 = vadd.f32 %v1969_v42, %v722_v45  ;;  %v1096_v50 = vadd.f32 %v1969_v42, %v762_v46 }
  0xb4   : > { %v1598_v51 = vpack.c.bf16 %v1080_v49, %v1079_v47  ;;  %v1638_v52 = vpack.c.bf16 %v1096_v50, %v1095_v48 }
  0xb6   : > { %1599 = vst [vmem:[%s1980_s17] sm:$0xff] %v1598_v51  }
  0xb7   : > { %1762 = vst [vmem:[%s1980_s17 + $0x40] sm:$0xff] %v1638_v52  }
  0xb8   : > { %v802_v53 = vpop.f32.mrf.mxu2  ;;  %v842_v54 = vpop.f32.mrf.mxu3 }
  0xb9   : > { %v1112_v57 = vadd.f32 %v1969_v42, %v802_v53  ;;  %v1128_v58 = vadd.f32 %v1969_v42, %v842_v54  ;;  %v725_v59 = vpop.f32.mrf.mxu0  ;;  %v765_v60 = vpop.f32.mrf.mxu1 }
  0xba   : > { %v1081_v3 = vadd.f32 %v1969_v42, %v725_v59  ;;  %v1097_v4 = vadd.f32 %v1969_v42, %v765_v60 }
  0xbb   : > { %v1678_v61 = vpack.c.bf16 %v1112_v57, %v1111_v55  ;;  %v1718_v62 = vpack.c.bf16 %v1128_v58, %v1127_v56 }
  0xbd   : > { %1770 = vst [vmem:[%s1980_s17 + $0x80] sm:$0xff] %v1678_v61  }
  0xbe   : > { %1778 = vst [vmem:[%s1980_s17 + $0xc0] sm:$0xff] %v1718_v62  }
  0xc0   : > { %v805_v63 = vpop.f32.mrf.mxu2  ;;  %v845_v0 = vpop.f32.mrf.mxu3 }
  0xc1   : > { %v727_v1 = vpop.f32.mrf.mxu0  ;;  %v767_v2 = vpop.f32.mrf.mxu1  ;;  %v1113_v11 = vadd.f32 %v1969_v42, %v805_v63  ;;  %v1129_v12 = vadd.f32 %v1969_v42, %v845_v0 }
  0xc2   : > { %v1082_v5 = vadd.f32 %v1969_v42, %v727_v1  ;;  %v1098_v6 = vadd.f32 %v1969_v42, %v767_v2 }
  0xc4   : > { %v1603_v7 = vpack.c.bf16 %v1082_v5, %v1081_v3  ;;  %v1643_v8 = vpack.c.bf16 %v1098_v6, %v1097_v4 }
  0xc6   : > { %1755 = vst [vmem:[%s1980_s17 + $0x8] sm:$0xff] %v1603_v7  }
  0xc7   : > { %1763 = vst [vmem:[%s1980_s17 + $0x48] sm:$0xff] %v1643_v8  }
  0xc8   : > { %v807_v9 = vpop.f32.mrf.mxu2  ;;  %v847_v10 = vpop.f32.mrf.mxu3 }
  0xc9   : > { %v1114_v13 = vadd.f32 %v1969_v42, %v807_v9  ;;  %v1130_v14 = vadd.f32 %v1969_v42, %v847_v10  ;;  %v730_v15 = vpop.f32.mrf.mxu0  ;;  %v770_v16 = vpop.f32.mrf.mxu1 }
  0xca   : > { %v1083_v23 = vadd.f32 %v1969_v42, %v730_v15  ;;  %v1099_v24 = vadd.f32 %v1969_v42, %v770_v16 }
  0xcb   : > { %v1683_v17 = vpack.c.bf16 %v1114_v13, %v1113_v11  ;;  %v1723_v18 = vpack.c.bf16 %v1130_v14, %v1129_v12 }
  0xcd   : > { %1771 = vst [vmem:[%s1980_s17 + $0x88] sm:$0xff] %v1683_v17  }
  0xce   : > { %1779 = vst [vmem:[%s1980_s17 + $0xc8] sm:$0xff] %v1723_v18  }
  0xd0   : > { %v810_v19 = vpop.f32.mrf.mxu2  ;;  %v850_v20 = vpop.f32.mrf.mxu3 }
  0xd1   : > { %v732_v21 = vpop.f32.mrf.mxu0  ;;  %v772_v22 = vpop.f32.mrf.mxu1  ;;  %v1115_v31 = vadd.f32 %v1969_v42, %v810_v19  ;;  %v1131_v32 = vadd.f32 %v1969_v42, %v850_v20 }
  0xd2   : > { %v1084_v25 = vadd.f32 %v1969_v42, %v732_v21  ;;  %v1100_v26 = vadd.f32 %v1969_v42, %v772_v22 }
  0xd4   : > { %v1608_v27 = vpack.c.bf16 %v1084_v25, %v1083_v23  ;;  %v1648_v28 = vpack.c.bf16 %v1100_v26, %v1099_v24 }
  0xd6   : > { %1756 = vst [vmem:[%s1980_s17 + $0x10] sm:$0xff] %v1608_v27  }
  0xd7   : > { %1764 = vst [vmem:[%s1980_s17 + $0x50] sm:$0xff] %v1648_v28  }
  0xd8   : > { %v812_v29 = vpop.f32.mrf.mxu2  ;;  %v852_v30 = vpop.f32.mrf.mxu3 }
  0xd9   : > { %v1116_v33 = vadd.f32 %v1969_v42, %v812_v29  ;;  %v1132_v34 = vadd.f32 %v1969_v42, %v852_v30  ;;  %v735_v35 = vpop.f32.mrf.mxu0  ;;  %v775_v36 = vpop.f32.mrf.mxu1 }
  0xda   : > { %v1085_v44 = vadd.f32 %v1969_v42, %v735_v35  ;;  %v1101_v45 = vadd.f32 %v1969_v42, %v775_v36 }
  0xdb   : > { %v1688_v37 = vpack.c.bf16 %v1116_v33, %v1115_v31  ;;  %v1728_v38 = vpack.c.bf16 %v1132_v34, %v1131_v32 }
  0xdd   : > { %1772 = vst [vmem:[%s1980_s17 + $0x90] sm:$0xff] %v1688_v37  }
  0xde   : > { %1780 = vst [vmem:[%s1980_s17 + $0xd0] sm:$0xff] %v1728_v38  }
  0xe0   : > { %v815_v39 = vpop.f32.mrf.mxu2  ;;  %v855_v40 = vpop.f32.mrf.mxu3 }
  0xe1   : > { %v737_v41 = vpop.f32.mrf.mxu0  ;;  %v777_v43 = vpop.f32.mrf.mxu1  ;;  %v1117_v52 = vadd.f32 %v1969_v42, %v815_v39  ;;  %v1133_v53 = vadd.f32 %v1969_v42, %v855_v40 }
  0xe2   : > { %v1086_v46 = vadd.f32 %v1969_v42, %v737_v41  ;;  %v1102_v47 = vadd.f32 %v1969_v42, %v777_v43 }
  0xe4   : > { %v1613_v48 = vpack.c.bf16 %v1086_v46, %v1085_v44  ;;  %v1653_v49 = vpack.c.bf16 %v1102_v47, %v1101_v45 }
  0xe6   : > { %1757 = vst [vmem:[%s1980_s17 + $0x18] sm:$0xff] %v1613_v48  }
  0xe7   : > { %1765 = vst [vmem:[%s1980_s17 + $0x58] sm:$0xff] %v1653_v49  }
  0xe8   : > { %v817_v50 = vpop.f32.mrf.mxu2  ;;  %v857_v51 = vpop.f32.mrf.mxu3 }
  0xe9   : > { %v1118_v54 = vadd.f32 %v1969_v42, %v817_v50  ;;  %v1134_v55 = vadd.f32 %v1969_v42, %v857_v51  ;;  %v740_v56 = vpop.f32.mrf.mxu0  ;;  %v780_v57 = vpop.f32.mrf.mxu1 }
  0xea   : > { %v1087_v0 = vadd.f32 %v1969_v42, %v740_v56  ;;  %v1103_v1 = vadd.f32 %v1969_v42, %v780_v57 }
  0xeb   : > { %v1693_v58 = vpack.c.bf16 %v1118_v54, %v1117_v52  ;;  %v1733_v59 = vpack.c.bf16 %v1134_v55, %v1133_v53 }
  0xed   : > { %1773 = vst [vmem:[%s1980_s17 + $0x98] sm:$0xff] %v1693_v58  }
  0xee   : > { %1781 = vst [vmem:[%s1980_s17 + $0xd8] sm:$0xff] %v1733_v59  }
  0xf0   : > { %v820_v60 = vpop.f32.mrf.mxu2  ;;  %v860_v61 = vpop.f32.mrf.mxu3 }
  0xf1   : > { %v742_v62 = vpop.f32.mrf.mxu0  ;;  %v782_v63 = vpop.f32.mrf.mxu1  ;;  %v1119_v8 = vadd.f32 %v1969_v42, %v820_v60  ;;  %v1135_v9 = vadd.f32 %v1969_v42, %v860_v61 }
  0xf2   : > { %v1088_v2 = vadd.f32 %v1969_v42, %v742_v62  ;;  %v1104_v3 = vadd.f32 %v1969_v42, %v782_v63 }
  0xf4   : > { %v1618_v4 = vpack.c.bf16 %v1088_v2, %v1087_v0  ;;  %v1658_v5 = vpack.c.bf16 %v1104_v3, %v1103_v1 }
  0xf6   : > { %1758 = vst [vmem:[%s1980_s17 + $0x20] sm:$0xff] %v1618_v4  }
  0xf7   : > { %1766 = vst [vmem:[%s1980_s17 + $0x60] sm:$0xff] %v1658_v5  }
  0xf8   : > { %v822_v6 = vpop.f32.mrf.mxu2  ;;  %v862_v7 = vpop.f32.mrf.mxu3 }
  0xf9   : > { %v1120_v10 = vadd.f32 %v1969_v42, %v822_v6  ;;  %v1136_v11 = vadd.f32 %v1969_v42, %v862_v7  ;;  %v745_v12 = vpop.f32.mrf.mxu0  ;;  %v785_v13 = vpop.f32.mrf.mxu1 }
  0xfa   : > { %v1089_v20 = vadd.f32 %v1969_v42, %v745_v12  ;;  %v1105_v21 = vadd.f32 %v1969_v42, %v785_v13 }
  0xfb   : > { %v1698_v14 = vpack.c.bf16 %v1120_v10, %v1119_v8  ;;  %v1738_v15 = vpack.c.bf16 %v1136_v11, %v1135_v9 }
  0xfd   : > { %1774 = vst [vmem:[%s1980_s17 + $0xa0] sm:$0xff] %v1698_v14  }
  0xfe   : > { %1782 = vst [vmem:[%s1980_s17 + $0xe0] sm:$0xff] %v1738_v15  }
 0x100   : > { %v825_v16 = vpop.f32.mrf.mxu2  ;;  %v865_v17 = vpop.f32.mrf.mxu3 }
 0x101   : > { %v747_v18 = vpop.f32.mrf.mxu0  ;;  %v787_v19 = vpop.f32.mrf.mxu1  ;;  %v1121_v28 = vadd.f32 %v1969_v42, %v825_v16  ;;  %v1137_v29 = vadd.f32 %v1969_v42, %v865_v17 }
 0x102   : > { %v1090_v22 = vadd.f32 %v1969_v42, %v747_v18  ;;  %v1106_v23 = vadd.f32 %v1969_v42, %v787_v19 }
 0x104   : > { %v1623_v24 = vpack.c.bf16 %v1090_v22, %v1089_v20  ;;  %v1663_v25 = vpack.c.bf16 %v1106_v23, %v1105_v21 }
 0x106   : > { %1759 = vst [vmem:[%s1980_s17 + $0x28] sm:$0xff] %v1623_v24  }
 0x107   : > { %1767 = vst [vmem:[%s1980_s17 + $0x68] sm:$0xff] %v1663_v25  }
 0x108   : > { %v827_v26 = vpop.f32.mrf.mxu2  ;;  %v867_v27 = vpop.f32.mrf.mxu3 }
 0x109   : > { %v1122_v30 = vadd.f32 %v1969_v42, %v827_v26  ;;  %v1138_v31 = vadd.f32 %v1969_v42, %v867_v27  ;;  %v750_v32 = vpop.f32.mrf.mxu0  ;;  %v790_v33 = vpop.f32.mrf.mxu1 }
 0x10a   : > { %v1091_v40 = vadd.f32 %v1969_v42, %v750_v32  ;;  %v1107_v41 = vadd.f32 %v1969_v42, %v790_v33 }
 0x10b   : > { %v1703_v34 = vpack.c.bf16 %v1122_v30, %v1121_v28  ;;  %v1743_v35 = vpack.c.bf16 %v1138_v31, %v1137_v29 }
 0x10d   : > { %1775 = vst [vmem:[%s1980_s17 + $0xa8] sm:$0xff] %v1703_v34  }
 0x10e   : > { %1783 = vst [vmem:[%s1980_s17 + $0xe8] sm:$0xff] %v1743_v35  }
 0x110   : > { %v830_v36 = vpop.f32.mrf.mxu2  ;;  %v870_v37 = vpop.f32.mrf.mxu3 }
 0x111   : > { %v752_v38 = vpop.f32.mrf.mxu0  ;;  %v792_v39 = vpop.f32.mrf.mxu1  ;;  %v1123_v49 = vadd.f32 %v1969_v42, %v830_v36  ;;  %v1139_v50 = vadd.f32 %v1969_v42, %v870_v37 }
 0x112   : > { %v1092_v43 = vadd.f32 %v1969_v42, %v752_v38  ;;  %v1108_v44 = vadd.f32 %v1969_v42, %v792_v39 }
 0x114   : > { %v1628_v45 = vpack.c.bf16 %v1092_v43, %v1091_v40  ;;  %v1668_v46 = vpack.c.bf16 %v1108_v44, %v1107_v41 }
 0x116   : > { %1760 = vst [vmem:[%s1980_s17 + $0x30] sm:$0xff] %v1628_v45  }
 0x117   : > { %1768 = vst [vmem:[%s1980_s17 + $0x70] sm:$0xff] %v1668_v46  }
 0x118   : > { %v832_v47 = vpop.f32.mrf.mxu2  ;;  %v872_v48 = vpop.f32.mrf.mxu3 }
 0x119   : > { %v1124_v51 = vadd.f32 %v1969_v42, %v832_v47  ;;  %v1140_v52 = vadd.f32 %v1969_v42, %v872_v48  ;;  %v755_v53 = vpop.f32.mrf.mxu0  ;;  %v795_v54 = vpop.f32.mrf.mxu1 }
 0x11a   : > { %v1093_v61 = vadd.f32 %v1969_v42, %v755_v53  ;;  %v1109_v62 = vadd.f32 %v1969_v42, %v795_v54 }
 0x11b   : > { %v1708_v55 = vpack.c.bf16 %v1124_v51, %v1123_v49  ;;  %v1748_v56 = vpack.c.bf16 %v1140_v52, %v1139_v50 }
 0x11d   : > { %1776 = vst [vmem:[%s1980_s17 + $0xb0] sm:$0xff] %v1708_v55  }
 0x11e   : > { %1784 = vst [vmem:[%s1980_s17 + $0xf0] sm:$0xff] %v1748_v56  }
 0x120   : > { %v835_v57 = vpop.f32.mrf.mxu2  ;;  %v875_v58 = vpop.f32.mrf.mxu3 }
 0x121   : > { %v757_v59 = vpop.f32.mrf.mxu0  ;;  %v797_v60 = vpop.f32.mrf.mxu1  ;;  %v1125_v5 = vadd.f32 %v1969_v42, %v835_v57  ;;  %v1141_v6 = vadd.f32 %v1969_v42, %v875_v58 }
 0x122   : > { %v1094_v63 = vadd.f32 %v1969_v42, %v757_v59  ;;  %v1110_v0 = vadd.f32 %v1969_v42, %v797_v60 }
 0x124   : > { %v1633_v1 = vpack.c.bf16 %v1094_v63, %v1093_v61  ;;  %v1673_v2 = vpack.c.bf16 %v1110_v0, %v1109_v62 }
 0x126   : > { %1761 = vst [vmem:[%s1980_s17 + $0x38] sm:$0xff] %v1633_v1  }
 0x127   : > { %1769 = vst [vmem:[%s1980_s17 + $0x78] sm:$0xff] %v1673_v2  }
 0x128   : > { %v837_v3 = vpop.f32.mrf.mxu2  ;;  %v877_v4 = vpop.f32.mrf.mxu3 }
 0x129   : > { %v1126_v7 = vadd.f32 %v1969_v42, %v837_v3  ;;  %v1142_v8 = vadd.f32 %v1969_v42, %v877_v4 }
 0x12b   : > { %v1713_v9 = vpack.c.bf16 %v1126_v7, %v1125_v5  ;;  %v1753_v10 = vpack.c.bf16 %v1142_v8, %v1141_v6 }
 0x12d   : > { %1777 = vst [vmem:[%s1980_s17 + $0xb8] sm:$0xff] %v1713_v9  }
 0x12e   : > { %1785 = vst [vmem:[%s1980_s17 + $0xf8] sm:$0xff] %v1753_v10  }
 0x12f PF: > { %s13_s14 = sadd.s32 1, %s1857_s14   ;;  %s2087_s12 = smov %s1853_s13 }
 0x130   : > { %p10_p5 = scmp.ge.s32.totalorder %s13_s14, 4   ;;  %s2088_s13 = smov %s2090_s15 }
 0x132   :  { %12 = sbr.rel (!%p10_p5) target bundleno = 2 (0x2), region = 76 }

// kernel: yolov2_fgfa_forward.4
= control target key start
LH: loop header
LB: loop body
LE: loop exit
PB: predicated region body
PF: predicated region fallthrough
CT: control target
= control target key end

     0   :  { %s2370_s21 = smov 0   ;;  %s2688_s0 = inlined_call_operand.vmem [shape: bf16[1024,128], index: 0, kind: input, shape index: {}]   ;;  %s2689_s1 = inlined_call_operand.vmem [shape: bf16[128,128], index: 1, kind: input, shape index: {}]   ;;  %s2690_s2 = inlined_call_operand.vmem [shape: f32[1,128], index: 2, kind: input, shape index: {}]   ;;  %s2691_s3 = inlined_call_operand.vmem [shape: bf16[128,128], index: 3, kind: input, shape index: {}]   ;;  %s2692_s4 = inlined_call_operand.vmem [shape: f32[1,128], index: 4, kind: input, shape index: {}]   ;;  %s2693_s5 = inlined_call_operand.vmem [shape: bf16[1024,128], index: 5, kind: output, shape index: {0}]   ;;  %s2694_s6 = inlined_call_operand.vmem [shape: bf16[1024,128], index: 6, kind: output, shape index: {1}]  }
   0x1 LB: > { %s1665_s22 = sadd.s32 4294967295, %s2333_s21   ;;  %p1669_p0 = scmp.ge.s32.totalorder %s2333_s21, 1  ;;  %s2333_s21 = sphi %s2370_s21, %s17_s21  }
   0x2   : > { %p216_p1 = scmp.lt.s32.totalorder %s2333_s21, 3 }
   0x4   : > { %p217_p2 = pnand %p1669_p0, %p216_p1 }
   0x5   : > { %s1670_s7 = sshll.u32 (!%p217_p2), %s1665_s22, 6 }
   0x6   : > { %220 = sbr.rel (%p217_p2) target bundleno = 580 (0x244), region = 40  ;;  %p252_p3 = scmp.lt.s32.totalorder (!%p217_p2), %s1670_s7, 127 }
   0xb   : > { %v1909_v0 = vld [vmem:[%s2689_s1 + $0x38] sm:$0xff]  ;;  %v1908_v1 = vld [vmem:[%s2689_s1 + $0x30] sm:$0xff]  ;;  %v1907_v2 = vld [vmem:[%s2689_s1 + $0x28] sm:$0xff]  ;;  %s2696_s7 = smov (!%p252_p3, %s1670_s7), 127 }
   0xc   : > { %593 = vmatpush.bf16.msra.mxu0 %v1909_v0  ;;  %2300 = vmatpush.bf16.msra.mxu2 %v1909_v0  ;;  %v1906_v3 = vld [vmem:[%s2689_s1 + $0x20] sm:$0xff]  ;;  %v1905_v4 = vld [vmem:[%s2689_s1 + $0x18] sm:$0xff]  ;;  %v1904_v5 = vld [vmem:[%s2689_s1 + $0x10] sm:$0xff]  ;;  %s2399_s14 = sshll.u32 %s2696_s7, 2 }
   0xd   : > { %v1903_v6 = vld [vmem:[%s2689_s1 + $0x8] sm:$0xff]  ;;  %v1902_v7 = vld [vmem:[%s2689_s1] sm:$0xff]  ;;  %s2408_s19 = scalar_lea.vmem %s2688_s0, %s2399_s14  ;;  %v1917_v20 = vld [vmem:[%s2691_s3 + $0x38] sm:$0xff]  ;;  %s2464_s18 = scalar_lea.vmem %s2693_s5, %s2399_s14 }
   0xe   : > { %v1870_v8 = vld [vmem:[%s2408_s19] sm:$0xff]  ;;  %v1871_v10 = vld [vmem:[%s2408_s19 + $0x8] sm:$0xff]  ;;  %v1872_v12 = vld [vmem:[%s2408_s19 + $0x10] sm:$0xff]  ;;  %1214 = vmatpush.bf16.msra.mxu1 %v1917_v20  ;;  %2308 = vmatpush.bf16.msra.mxu3 %v1917_v20  ;;  %s2545_s24 = scalar_lea.vmem %s2694_s6, %s2399_s14 }
   0xf   : > { %v1886_v9 = vld [vmem:[%s2408_s19 + $0x80] sm:$0xff]  ;;  %v1887_v11 = vld [vmem:[%s2408_s19 + $0x88] sm:$0xff]  ;;  %v1888_v13 = vld [vmem:[%s2408_s19 + $0x90] sm:$0xff] }
  0x10   : > { %594 = vmatpush.bf16.msra.mxu0 %v1908_v1  ;;  %2301 = vmatpush.bf16.msra.mxu2 %v1908_v1  ;;  %v1873_v14 = vld [vmem:[%s2408_s19 + $0x18] sm:$0xff]  ;;  %v1874_v16 = vld [vmem:[%s2408_s19 + $0x20] sm:$0xff]  ;;  %v1875_v18 = vld [vmem:[%s2408_s19 + $0x28] sm:$0xff] }
  0x11   : > { %v1889_v15 = vld [vmem:[%s2408_s19 + $0x98] sm:$0xff]  ;;  %v1890_v17 = vld [vmem:[%s2408_s19 + $0xa0] sm:$0xff]  ;;  %v1891_v19 = vld [vmem:[%s2408_s19 + $0xa8] sm:$0xff] }
  0x12   : > { %v1916_v21 = vld [vmem:[%s2691_s3 + $0x30] sm:$0xff]  ;;  %v1915_v22 = vld [vmem:[%s2691_s3 + $0x28] sm:$0xff]  ;;  %v1914_v23 = vld [vmem:[%s2691_s3 + $0x20] sm:$0xff] }
  0x13   : > { %1215 = vmatpush.bf16.msra.mxu1 %v1916_v21  ;;  %2309 = vmatpush.bf16.msra.mxu3 %v1916_v21  ;;  %v1876_v24 = vld [vmem:[%s2408_s19 + $0x30] sm:$0xff]  ;;  %v1913_v26 = vld [vmem:[%s2691_s3 + $0x18] sm:$0xff]  ;;  %v1911_v28 = vld [vmem:[%s2691_s3 + $0x8] sm:$0xff] }
  0x14   : > { %595 = vmatpush.bf16.msra.mxu0 %v1907_v2  ;;  %2302 = vmatpush.bf16.msra.mxu2 %v1907_v2  ;;  %v1892_v25 = vld [vmem:[%s2408_s19 + $0xb0] sm:$0xff]  ;;  %v1910_v29 = vld [vmem:[%s2691_s3] sm:$0xff]  ;;  %v1877_v30 = vld [vmem:[%s2408_s19 + $0x38] sm:$0xff] }
  0x15   : > { %v1912_v27 = vld [vmem:[%s2691_s3 + $0x10] sm:$0xff]  ;;  %v1893_v31 = vld [vmem:[%s2408_s19 + $0xb8] sm:$0xff]  ;;  %v2453_v32 = vld [vmem:[%s2690_s2] ss:$0 sm:$0xff] }
  0x16   : > { %v1878_v33 = vld [vmem:[%s2408_s19 + $0x40] sm:$0xff]  ;;  %v1879_v50 = vld [vmem:[%s2408_s19 + $0x48] sm:$0xff] }
  0x17   : > { %1216 = vmatpush.bf16.msra.mxu1 %v1915_v22  ;;  %2310 = vmatpush.bf16.msra.mxu3 %v1915_v22  ;;  %v1894_v34 = vld [vmem:[%s2408_s19 + $0xc0] sm:$0xff]  ;;  %v1895_v51 = vld [vmem:[%s2408_s19 + $0xc8] sm:$0xff] }
  0x18   : > { %596 = vmatpush.bf16.msra.mxu0 %v1906_v3  ;;  %2303 = vmatpush.bf16.msra.mxu2 %v1906_v3 }
  0x1b   : > { %1217 = vmatpush.bf16.msra.mxu1 %v1914_v23  ;;  %2311 = vmatpush.bf16.msra.mxu3 %v1914_v23 }
  0x1c   : > { %597 = vmatpush.bf16.msra.mxu0 %v1905_v4  ;;  %2304 = vmatpush.bf16.msra.mxu2 %v1905_v4 }
  0x1f   : > { %1218 = vmatpush.bf16.msra.mxu1 %v1913_v26  ;;  %2312 = vmatpush.bf16.msra.mxu3 %v1913_v26 }
  0x20   : > { %598 = vmatpush.bf16.msra.mxu0 %v1904_v5  ;;  %2305 = vmatpush.bf16.msra.mxu2 %v1904_v5 }
  0x23   : > { %1219 = vmatpush.bf16.msra.mxu1 %v1912_v27  ;;  %2313 = vmatpush.bf16.msra.mxu3 %v1912_v27 }
  0x24   : > { %599 = vmatpush.bf16.msra.mxu0 %v1903_v6  ;;  %2306 = vmatpush.bf16.msra.mxu2 %v1903_v6 }
  0x27   : > { %1220 = vmatpush.bf16.msra.mxu1 %v1911_v28  ;;  %2314 = vmatpush.bf16.msra.mxu3 %v1911_v28 }
  0x28   : > { %600 = vmatpush.bf16.msra.mxu0 %v1902_v7  ;;  %2307 = vmatpush.bf16.msra.mxu2 %v1902_v7 }
  0x2b   : > { %601 = vmatmul.bf16.vlgmr.msra.gmra.mxu0 %v1870_v8  ;;  %681 = vmatmul.bf16.vlgmr.msra.gmra.mxu2 %v1886_v9 }
  0x2c   : > { %1221 = vmatpush.bf16.msra.mxu1 %v1910_v29  ;;  %2315 = vmatpush.bf16.msra.mxu3 %v1910_v29 }
  0x3b   : > { %606 = vmatmul.bf16.gmra.mxu0 %v1871_v10  ;;  %686 = vmatmul.bf16.gmra.mxu2 %v1887_v11 }
  0x4b   : > { %611 = vmatmul.bf16.gmra.mxu0 %v1872_v12  ;;  %691 = vmatmul.bf16.gmra.mxu2 %v1888_v13  ;;  %v1880_v12 = vld [vmem:[%s2408_s19 + $0x50] sm:$0xff] }
  0x4c   : > { %v1896_v13 = vld [vmem:[%s2408_s19 + $0xd0] sm:$0xff] }
  0x5b   : > { %616 = vmatmul.bf16.gmra.mxu0 %v1873_v14  ;;  %696 = vmatmul.bf16.gmra.mxu2 %v1889_v15 }
  0x6b   : > { %621 = vmatmul.bf16.gmra.mxu0 %v1874_v16  ;;  %701 = vmatmul.bf16.gmra.mxu2 %v1890_v17 }
  0x7b   : > { %626 = vmatmul.bf16.gmra.mxu0 %v1875_v18  ;;  %706 = vmatmul.bf16.gmra.mxu2 %v1891_v19 }
  0x8b   : > { %631 = vmatmul.bf16.gmra.mxu0 %v1876_v24  ;;  %711 = vmatmul.bf16.gmra.mxu2 %v1892_v25 }
  0x9b   : > { %636 = vmatmul.bf16.gmra.mxu0 %v1877_v30  ;;  %716 = vmatmul.bf16.gmra.mxu2 %v1893_v31 }
  0xa8   : > { %v602_v35 = vpop.f32.mrf.mxu0 }
  0xa9   : > { %v603_v36 = vadd.f32 %v2453_v32, %v602_v35 }
  0xab   : > { %641 = vmatmul.bf16.gmra.mxu0 %v1878_v33  ;;  %721 = vmatmul.bf16.gmra.mxu2 %v1894_v34  ;;  %v762_v37 = vmax.f32 %v603_v36, 0.0 }
  0xad   : > { %v826_v40 = vpack.c.bf16 %v762_v37, %v762_v37 }
  0xae   : > { %v682_v38 = vpop.f32.mrf.mxu2 }
  0xaf   : > { %v683_v41 = vadd.f32 %v2453_v32, %v682_v38  ;;  %v1038_v47 = vunpack.c.l.b16 %v826_v40  ;;  %v1897_v40 = vld [vmem:[%s2408_s19 + $0xd8] sm:$0xff] }
  0xb0   : > { %v604_v39 = vpop.f32.mrf.mxu0 }
  0xb1   : > { %v605_v42 = vadd.f32 %v2453_v32, %v604_v39  ;;  %v794_v44 = vmax.f32 %v683_v41, 0.0  ;;  %v1881_v39 = vld [vmem:[%s2408_s19 + $0x58] sm:$0xff] }
  0xb3   : > { %v763_v43 = vmax.f32 %v605_v42, 0.0  ;;  %v858_v54 = vpack.c.bf16 %v794_v44, %v794_v44 }
  0xb5   : > { %v1921_v45 = vpack.c.bf16 %v763_v43, %v762_v37  ;;  %v827_v46 = vpack.c.bf16 %v763_v43, %v763_v43  ;;  %v1070_v61 = vunpack.c.l.b16 %v858_v54 }
  0xb6   : > { %v684_v48 = vpop.f32.mrf.mxu2 }
  0xb7   : > { %1922 = vst [vmem:[%s2464_s18] sm:$0xff] %v1921_v45   ;;  %v685_v49 = vadd.f32 %v2453_v32, %v684_v48  ;;  %v1039_v52 = vunpack.c.l.b16 %v827_v46 }
  0xb8   : > { %v607_v53 = vpop.f32.mrf.mxu0 }
  0xb9   : > { %v795_v55 = vmax.f32 %v685_v49, 0.0  ;;  %v608_v56 = vadd.f32 %v2453_v32, %v607_v53  ;;  %v1102_v57 = vpack.c.b16 %v1039_v52, %v1038_v47 }
  0xbb   : > { %v2001_v58 = vpack.c.bf16 %v795_v55, %v794_v44  ;;  %646 = vmatmul.bf16.gmra.mxu0 %v1879_v50  ;;  %726 = vmatmul.bf16.gmra.mxu2 %v1895_v51  ;;  %v859_v59 = vpack.c.bf16 %v795_v55, %v795_v55  ;;  %v764_v60 = vmax.f32 %v608_v56, 0.0 }
  0xbc   : > { %1222 = vmatmul.bf16.vlgmr.msra.gmra.mxu1 %v1102_v57 }
  0xbd   : > { %2253 = vst [vmem:[%s2464_s18 + $0x80] sm:$0xff] %v2001_v58   ;;  %v1071_v62 = vunpack.c.l.b16 %v859_v59  ;;  %v828_v2 = vpack.c.bf16 %v764_v60, %v764_v60 }
  0xbe   : > { %v687_v63 = vpop.f32.mrf.mxu2 }
  0xbf   : > { %v1118_v0 = vpack.c.b16 %v1071_v62, %v1070_v61  ;;  %v688_v3 = vadd.f32 %v2453_v32, %v687_v63  ;;  %v1040_v9 = vunpack.c.l.b16 %v828_v2  ;;  %v1898_v2 = vld [vmem:[%s2408_s19 + $0xe0] sm:$0xff] }
  0xc0   : > { %v609_v1 = vpop.f32.mrf.mxu0 }
  0xc1   : > { %v610_v4 = vadd.f32 %v2453_v32, %v609_v1  ;;  %1302 = vmatmul.bf16.vlgmr.msra.gmra.mxu3 %v1118_v0  ;;  %v796_v6 = vmax.f32 %v688_v3, 0.0  ;;  %v1882_v1 = vld [vmem:[%s2408_s19 + $0x60] sm:$0xff] }
  0xc3   : > { %v765_v5 = vmax.f32 %v610_v4, 0.0  ;;  %v860_v16 = vpack.c.bf16 %v796_v6, %v796_v6 }
  0xc5   : > { %v1926_v7 = vpack.c.bf16 %v765_v5, %v764_v60  ;;  %v829_v8 = vpack.c.bf16 %v765_v5, %v765_v5  ;;  %v1072_v23 = vunpack.c.l.b16 %v860_v16 }
  0xc6   : > { %v689_v10 = vpop.f32.mrf.mxu2 }
  0xc7   : > { %2238 = vst [vmem:[%s2464_s18 + $0x8] sm:$0xff] %v1926_v7   ;;  %v690_v11 = vadd.f32 %v2453_v32, %v689_v10  ;;  %v1041_v14 = vunpack.c.l.b16 %v829_v8 }
  0xc8   : > { %v612_v15 = vpop.f32.mrf.mxu0 }
  0xc9   : > { %v797_v17 = vmax.f32 %v690_v11, 0.0  ;;  %v613_v18 = vadd.f32 %v2453_v32, %v612_v15  ;;  %v1103_v19 = vpack.c.b16 %v1041_v14, %v1040_v9 }
  0xcb   : > { %v2006_v20 = vpack.c.bf16 %v797_v17, %v796_v6  ;;  %651 = vmatmul.bf16.gmra.mxu0 %v1880_v12  ;;  %731 = vmatmul.bf16.gmra.mxu2 %v1896_v13  ;;  %v861_v21 = vpack.c.bf16 %v797_v17, %v797_v17  ;;  %v766_v22 = vmax.f32 %v613_v18, 0.0 }
  0xcc   : > { %1227 = vmatmul.bf16.gmra.mxu1 %v1103_v19 }
  0xcd   : > { %2254 = vst [vmem:[%s2464_s18 + $0x88] sm:$0xff] %v2006_v20   ;;  %v1073_v24 = vunpack.c.l.b16 %v861_v21  ;;  %v830_v28 = vpack.c.bf16 %v766_v22, %v766_v22 }
  0xce   : > { %v692_v25 = vpop.f32.mrf.mxu2 }
  0xcf   : > { %v1119_v26 = vpack.c.b16 %v1073_v24, %v1072_v23  ;;  %v693_v29 = vadd.f32 %v2453_v32, %v692_v25  ;;  %v1042_v36 = vunpack.c.l.b16 %v830_v28  ;;  %v1899_v28 = vld [vmem:[%s2408_s19 + $0xe8] sm:$0xff] }
  0xd0   : > { %v614_v27 = vpop.f32.mrf.mxu0 }
  0xd1   : > { %v615_v30 = vadd.f32 %v2453_v32, %v614_v27  ;;  %1307 = vmatmul.bf16.gmra.mxu3 %v1119_v26  ;;  %v798_v33 = vmax.f32 %v693_v29, 0.0  ;;  %v1883_v27 = vld [vmem:[%s2408_s19 + $0x68] sm:$0xff] }
  0xd3   : > { %v767_v31 = vmax.f32 %v615_v30, 0.0  ;;  %v862_v43 = vpack.c.bf16 %v798_v33, %v798_v33 }
  0xd5   : > { %v1931_v34 = vpack.c.bf16 %v767_v31, %v766_v22  ;;  %v831_v35 = vpack.c.bf16 %v767_v31, %v767_v31  ;;  %v1074_v50 = vunpack.c.l.b16 %v862_v43 }
  0xd6   : > { %v694_v37 = vpop.f32.mrf.mxu2 }
  0xd7   : > { %2239 = vst [vmem:[%s2464_s18 + $0x10] sm:$0xff] %v1931_v34   ;;  %v695_v38 = vadd.f32 %v2453_v32, %v694_v37  ;;  %v1043_v41 = vunpack.c.l.b16 %v831_v35 }
  0xd8   : > { %v617_v42 = vpop.f32.mrf.mxu0 }
  0xd9   : > { %v799_v44 = vmax.f32 %v695_v38, 0.0  ;;  %v618_v45 = vadd.f32 %v2453_v32, %v617_v42  ;;  %v1104_v46 = vpack.c.b16 %v1043_v41, %v1042_v36 }
  0xdb   : > { %v2011_v47 = vpack.c.bf16 %v799_v44, %v798_v33  ;;  %656 = vmatmul.bf16.gmra.mxu0 %v1881_v39  ;;  %736 = vmatmul.bf16.gmra.mxu2 %v1897_v40  ;;  %v863_v48 = vpack.c.bf16 %v799_v44, %v799_v44  ;;  %v768_v49 = vmax.f32 %v618_v45, 0.0 }
  0xdc   : > { %1232 = vmatmul.bf16.gmra.mxu1 %v1104_v46 }
  0xdd   : > { %2255 = vst [vmem:[%s2464_s18 + $0x90] sm:$0xff] %v2011_v47   ;;  %v1075_v51 = vunpack.c.l.b16 %v863_v48  ;;  %v832_v55 = vpack.c.bf16 %v768_v49, %v768_v49 }
  0xde   : > { %v697_v52 = vpop.f32.mrf.mxu2 }
  0xdf   : > { %v1120_v53 = vpack.c.b16 %v1075_v51, %v1074_v50  ;;  %v698_v56 = vadd.f32 %v2453_v32, %v697_v52  ;;  %v1044_v62 = vunpack.c.l.b16 %v832_v55  ;;  %v1900_v55 = vld [vmem:[%s2408_s19 + $0xf0] sm:$0xff] }
  0xe0   : > { %v619_v54 = vpop.f32.mrf.mxu0 }
  0xe1   : > { %v620_v57 = vadd.f32 %v2453_v32, %v619_v54  ;;  %1312 = vmatmul.bf16.gmra.mxu3 %v1120_v53  ;;  %v800_v59 = vmax.f32 %v698_v56, 0.0  ;;  %v1884_v54 = vld [vmem:[%s2408_s19 + $0x70] sm:$0xff] }
  0xe3   : > { %v769_v58 = vmax.f32 %v620_v57, 0.0  ;;  %v864_v5 = vpack.c.bf16 %v800_v59, %v800_v59 }
  0xe5   : > { %v1936_v60 = vpack.c.bf16 %v769_v58, %v768_v49  ;;  %v833_v61 = vpack.c.bf16 %v769_v58, %v769_v58  ;;  %v1076_v12 = vunpack.c.l.b16 %v864_v5 }
  0xe6   : > { %v699_v63 = vpop.f32.mrf.mxu2 }
  0xe7   : > { %2240 = vst [vmem:[%s2464_s18 + $0x18] sm:$0xff] %v1936_v60   ;;  %v700_v0 = vadd.f32 %v2453_v32, %v699_v63  ;;  %v1045_v3 = vunpack.c.l.b16 %v833_v61 }
  0xe8   : > { %v622_v4 = vpop.f32.mrf.mxu0 }
  0xe9   : > { %v801_v6 = vmax.f32 %v700_v0, 0.0  ;;  %v623_v7 = vadd.f32 %v2453_v32, %v622_v4  ;;  %v1105_v8 = vpack.c.b16 %v1045_v3, %v1044_v62 }
  0xeb   : > { %v2016_v9 = vpack.c.bf16 %v801_v6, %v800_v59  ;;  %661 = vmatmul.bf16.gmra.mxu0 %v1882_v1  ;;  %741 = vmatmul.bf16.gmra.mxu2 %v1898_v2  ;;  %v865_v10 = vpack.c.bf16 %v801_v6, %v801_v6  ;;  %v770_v11 = vmax.f32 %v623_v7, 0.0 }
  0xec   : > { %1237 = vmatmul.bf16.gmra.mxu1 %v1105_v8 }
  0xed   : > { %2256 = vst [vmem:[%s2464_s18 + $0x98] sm:$0xff] %v2016_v9   ;;  %v1077_v13 = vunpack.c.l.b16 %v865_v10  ;;  %v834_v17 = vpack.c.bf16 %v770_v11, %v770_v11 }
  0xee   : > { %v702_v14 = vpop.f32.mrf.mxu2 }
  0xef   : > { %v1121_v15 = vpack.c.b16 %v1077_v13, %v1076_v12  ;;  %v703_v18 = vadd.f32 %v2453_v32, %v702_v14  ;;  %v1046_v24 = vunpack.c.l.b16 %v834_v17  ;;  %v1901_v17 = vld [vmem:[%s2408_s19 + $0xf8] sm:$0xff] }
  0xf0   : > { %v624_v16 = vpop.f32.mrf.mxu0 }
  0xf1   : > { %v625_v19 = vadd.f32 %v2453_v32, %v624_v16  ;;  %1317 = vmatmul.bf16.gmra.mxu3 %v1121_v15  ;;  %v802_v21 = vmax.f32 %v703_v18, 0.0  ;;  %v1885_v16 = vld [vmem:[%s2408_s19 + $0x78] sm:$0xff] }
  0xf3   : > { %v771_v20 = vmax.f32 %v625_v19, 0.0  ;;  %v866_v31 = vpack.c.bf16 %v802_v21, %v802_v21 }
  0xf5   : > { %v835_v22 = vpack.c.bf16 %v771_v20, %v771_v20  ;;  %v1941_v23 = vpack.c.bf16 %v771_v20, %v770_v11  ;;  %v1078_v39 = vunpack.c.l.b16 %v866_v31 }
  0xf6   : > { %v704_v25 = vpop.f32.mrf.mxu2 }
  0xf7   : > { %2241 = vst [vmem:[%s2464_s18 + $0x20] sm:$0xff] %v1941_v23   ;;  %v705_v26 = vadd.f32 %v2453_v32, %v704_v25  ;;  %v1047_v29 = vunpack.c.l.b16 %v835_v22 }
  0xf8   : > { %v627_v30 = vpop.f32.mrf.mxu0 }
  0xf9   : > { %v803_v33 = vmax.f32 %v705_v26, 0.0  ;;  %v628_v34 = vadd.f32 %v2453_v32, %v627_v30  ;;  %v1106_v35 = vpack.c.b16 %v1047_v29, %v1046_v24 }
  0xfb   : > { %v867_v36 = vpack.c.bf16 %v803_v33, %v803_v33  ;;  %v2021_v37 = vpack.c.bf16 %v803_v33, %v802_v21  ;;  %666 = vmatmul.bf16.gmra.mxu0 %v1883_v27  ;;  %746 = vmatmul.bf16.gmra.mxu2 %v1899_v28  ;;  %v772_v38 = vmax.f32 %v628_v34, 0.0 }
  0xfc   : > { %1242 = vmatmul.bf16.gmra.mxu1 %v1106_v35 }
  0xfd   : > { %2257 = vst [vmem:[%s2464_s18 + $0xa0] sm:$0xff] %v2021_v37   ;;  %v1079_v40 = vunpack.c.l.b16 %v867_v36  ;;  %v836_v44 = vpack.c.bf16 %v772_v38, %v772_v38 }
  0xfe   : > { %v707_v41 = vpop.f32.mrf.mxu2 }
  0xff   : > { %v1122_v42 = vpack.c.b16 %v1079_v40, %v1078_v39  ;;  %v708_v45 = vadd.f32 %v2453_v32, %v707_v41  ;;  %v1048_v51 = vunpack.c.l.b16 %v836_v44 }
 0x100   : > { %v629_v43 = vpop.f32.mrf.mxu0 }
 0x101   : > { %v630_v46 = vadd.f32 %v2453_v32, %v629_v43  ;;  %1322 = vmatmul.bf16.gmra.mxu3 %v1122_v42  ;;  %v804_v48 = vmax.f32 %v708_v45, 0.0 }
 0x103   : > { %v773_v47 = vmax.f32 %v630_v46, 0.0  ;;  %v868_v58 = vpack.c.bf16 %v804_v48, %v804_v48 }
 0x105   : > { %v837_v49 = vpack.c.bf16 %v773_v47, %v773_v47  ;;  %v1946_v50 = vpack.c.bf16 %v773_v47, %v772_v38  ;;  %v1080_v1 = vunpack.c.l.b16 %v868_v58 }
 0x106   : > { %v709_v52 = vpop.f32.mrf.mxu2 }
 0x107   : > { %2242 = vst [vmem:[%s2464_s18 + $0x28] sm:$0xff] %v1946_v50   ;;  %v710_v53 = vadd.f32 %v2453_v32, %v709_v52  ;;  %v1049_v56 = vunpack.c.l.b16 %v837_v49 }
 0x108   : > { %v632_v57 = vpop.f32.mrf.mxu0 }
 0x109   : > { %v805_v59 = vmax.f32 %v710_v53, 0.0  ;;  %v633_v60 = vadd.f32 %v2453_v32, %v632_v57  ;;  %v1107_v61 = vpack.c.b16 %v1049_v56, %v1048_v51 }
 0x10b   : > { %v869_v62 = vpack.c.bf16 %v805_v59, %v805_v59  ;;  %v2026_v63 = vpack.c.bf16 %v805_v59, %v804_v48  ;;  %671 = vmatmul.bf16.gmra.mxu0 %v1884_v54  ;;  %751 = vmatmul.bf16.gmra.mxu2 %v1900_v55  ;;  %v774_v0 = vmax.f32 %v633_v60, 0.0 }
 0x10c   : > { %1247 = vmatmul.bf16.gmra.mxu1 %v1107_v61 }
 0x10d   : > { %2258 = vst [vmem:[%s2464_s18 + $0xa8] sm:$0xff] %v2026_v63   ;;  %v1081_v2 = vunpack.c.l.b16 %v869_v62  ;;  %v838_v6 = vpack.c.bf16 %v774_v0, %v774_v0 }
 0x10e   : > { %v712_v3 = vpop.f32.mrf.mxu2 }
 0x10f   : > { %v1123_v4 = vpack.c.b16 %v1081_v2, %v1080_v1  ;;  %v713_v7 = vadd.f32 %v2453_v32, %v712_v3  ;;  %v1050_v13 = vunpack.c.l.b16 %v838_v6 }
 0x110   : > { %v634_v5 = vpop.f32.mrf.mxu0 }
 0x111   : > { %v635_v8 = vadd.f32 %v2453_v32, %v634_v5  ;;  %1327 = vmatmul.bf16.gmra.mxu3 %v1123_v4  ;;  %v806_v10 = vmax.f32 %v713_v7, 0.0 }
 0x113   : > { %v775_v9 = vmax.f32 %v635_v8, 0.0  ;;  %v870_v20 = vpack.c.bf16 %v806_v10, %v806_v10 }
 0x115   : > { %v839_v11 = vpack.c.bf16 %v775_v9, %v775_v9  ;;  %v1951_v12 = vpack.c.bf16 %v775_v9, %v774_v0  ;;  %v1082_v27 = vunpack.c.l.b16 %v870_v20 }
 0x116   : > { %v714_v14 = vpop.f32.mrf.mxu2 }
 0x117   : > { %2243 = vst [vmem:[%s2464_s18 + $0x30] sm:$0xff] %v1951_v12   ;;  %v715_v15 = vadd.f32 %v2453_v32, %v714_v14  ;;  %v1051_v18 = vunpack.c.l.b16 %v839_v11  ;;  %v2534_v12 = vld [vmem:[%s2692_s4] ss:$0 sm:$0xff] }
 0x118   : > { %v637_v19 = vpop.f32.mrf.mxu0 }
 0x119   : > { %v807_v21 = vmax.f32 %v715_v15, 0.0  ;;  %v638_v22 = vadd.f32 %v2453_v32, %v637_v19  ;;  %v1108_v23 = vpack.c.b16 %v1051_v18, %v1050_v13 }
 0x11b   : > { %v871_v24 = vpack.c.bf16 %v807_v21, %v807_v21  ;;  %v2031_v25 = vpack.c.bf16 %v807_v21, %v806_v10  ;;  %676 = vmatmul.bf16.gmra.mxu0 %v1885_v16  ;;  %756 = vmatmul.bf16.gmra.mxu2 %v1901_v17  ;;  %v776_v26 = vmax.f32 %v638_v22, 0.0 }
 0x11c   : > { %1252 = vmatmul.bf16.gmra.mxu1 %v1108_v23 }
 0x11d   : > { %2259 = vst [vmem:[%s2464_s18 + $0xb0] sm:$0xff] %v2031_v25   ;;  %v1083_v28 = vunpack.c.l.b16 %v871_v24  ;;  %v840_v33 = vpack.c.bf16 %v776_v26, %v776_v26 }
 0x11e   : > { %v717_v29 = vpop.f32.mrf.mxu2 }
 0x11f   : > { %v1124_v30 = vpack.c.b16 %v1083_v28, %v1082_v27  ;;  %v718_v34 = vadd.f32 %v2453_v32, %v717_v29  ;;  %v1052_v40 = vunpack.c.l.b16 %v840_v33 }
 0x120   : > { %v639_v31 = vpop.f32.mrf.mxu0 }
 0x121   : > { %v640_v35 = vadd.f32 %v2453_v32, %v639_v31  ;;  %1332 = vmatmul.bf16.gmra.mxu3 %v1124_v30  ;;  %v808_v37 = vmax.f32 %v718_v34, 0.0 }
 0x123   : > { %v777_v36 = vmax.f32 %v640_v35, 0.0  ;;  %v872_v45 = vpack.c.bf16 %v808_v37, %v808_v37 }
 0x125   : > { %v841_v38 = vpack.c.bf16 %v777_v36, %v777_v36  ;;  %v1956_v39 = vpack.c.bf16 %v777_v36, %v776_v26  ;;  %v1084_v52 = vunpack.c.l.b16 %v872_v45 }
 0x126   : > { %v719_v41 = vpop.f32.mrf.mxu2 }
 0x127   : > { %2244 = vst [vmem:[%s2464_s18 + $0x38] sm:$0xff] %v1956_v39   ;;  %v720_v42 = vadd.f32 %v2453_v32, %v719_v41  ;;  %v1053_v43 = vunpack.c.l.b16 %v841_v38 }
 0x128   : > { %v642_v44 = vpop.f32.mrf.mxu0 }
 0x129   : > { %v809_v46 = vmax.f32 %v720_v42, 0.0  ;;  %v643_v47 = vadd.f32 %v2453_v32, %v642_v44  ;;  %v1109_v48 = vpack.c.b16 %v1053_v43, %v1052_v40 }
 0x12b   : > { %v873_v49 = vpack.c.bf16 %v809_v46, %v809_v46  ;;  %v2036_v50 = vpack.c.bf16 %v809_v46, %v808_v37  ;;  %v778_v51 = vmax.f32 %v643_v47, 0.0 }
 0x12c   : > { %1257 = vmatmul.bf16.gmra.mxu1 %v1109_v48 }
 0x12d   : > { %2260 = vst [vmem:[%s2464_s18 + $0xb8] sm:$0xff] %v2036_v50   ;;  %v1085_v53 = vunpack.c.l.b16 %v873_v49  ;;  %v842_v57 = vpack.c.bf16 %v778_v51, %v778_v51 }
 0x12e   : > { %v722_v54 = vpop.f32.mrf.mxu2 }
 0x12f   : > { %v1125_v55 = vpack.c.b16 %v1085_v53, %v1084_v52  ;;  %v723_v58 = vadd.f32 %v2453_v32, %v722_v54  ;;  %v1054_v0 = vunpack.c.l.b16 %v842_v57 }
 0x130   : > { %v644_v56 = vpop.f32.mrf.mxu0 }
 0x131   : > { %v645_v59 = vadd.f32 %v2453_v32, %v644_v56  ;;  %1337 = vmatmul.bf16.gmra.mxu3 %v1125_v55  ;;  %v810_v61 = vmax.f32 %v723_v58, 0.0 }
 0x133   : > { %v779_v60 = vmax.f32 %v645_v59, 0.0  ;;  %v874_v5 = vpack.c.bf16 %v810_v61, %v810_v61 }
 0x135   : > { %v843_v62 = vpack.c.bf16 %v779_v60, %v779_v60  ;;  %v1961_v63 = vpack.c.bf16 %v779_v60, %v778_v51  ;;  %v1086_v14 = vunpack.c.l.b16 %v874_v5 }
 0x136   : > { %v724_v1 = vpop.f32.mrf.mxu2 }
 0x137   : > { %2245 = vst [vmem:[%s2464_s18 + $0x40] sm:$0xff] %v1961_v63   ;;  %v725_v2 = vadd.f32 %v2453_v32, %v724_v1  ;;  %v1055_v3 = vunpack.c.l.b16 %v843_v62 }
 0x138   : > { %v647_v4 = vpop.f32.mrf.mxu0 }
 0x139   : > { %v811_v6 = vmax.f32 %v725_v2, 0.0  ;;  %v648_v7 = vadd.f32 %v2453_v32, %v647_v4  ;;  %v1223_v8 = vpop.f32.mrf.mxu1  ;;  %v1110_v9 = vpack.c.b16 %v1055_v3, %v1054_v0 }
 0x13a   : > { %v1224_v18 = vadd.f32 %v2534_v12, %v1223_v8 }
 0x13b   : > { %v875_v10 = vpack.c.bf16 %v811_v6, %v811_v6  ;;  %v2041_v11 = vpack.c.bf16 %v811_v6, %v810_v61  ;;  %v780_v13 = vmax.f32 %v648_v7, 0.0 }
 0x13c   : > { %1262 = vmatmul.bf16.gmra.mxu1 %v1110_v9  ;;  %v1383_v26 = vmax.f32 %v1224_v18, 0.0 }
 0x13d   : > { %2261 = vst [vmem:[%s2464_s18 + $0xc0] sm:$0xff] %v2041_v11   ;;  %v1087_v15 = vunpack.c.l.b16 %v875_v10  ;;  %v844_v20 = vpack.c.bf16 %v780_v13, %v780_v13 }
 0x13e   : > { %v727_v16 = vpop.f32.mrf.mxu2 }
 0x13f   : > { %v1126_v17 = vpack.c.b16 %v1087_v15, %v1086_v14  ;;  %v728_v21 = vadd.f32 %v2453_v32, %v727_v16  ;;  %v1056_v33 = vunpack.c.l.b16 %v844_v20 }
 0x140   : > { %v649_v19 = vpop.f32.mrf.mxu0 }
 0x141   : > { %v650_v22 = vadd.f32 %v2453_v32, %v649_v19  ;;  %v1225_v23 = vpop.f32.mrf.mxu1  ;;  %1342 = vmatmul.bf16.gmra.mxu3 %v1126_v17  ;;  %v812_v29 = vmax.f32 %v728_v21, 0.0 }
 0x142   : > { %v1226_v24 = vadd.f32 %v2534_v12, %v1225_v23 }
 0x143   : > { %v781_v25 = vmax.f32 %v650_v22, 0.0  ;;  %v876_v39 = vpack.c.bf16 %v812_v29, %v812_v29 }
 0x144   : > { %v1384_v27 = vmax.f32 %v1226_v24, 0.0  ;;  %v1303_v28 = vpop.f32.mrf.mxu3 }
 0x145   : > { %v845_v30 = vpack.c.bf16 %v781_v25, %v781_v25  ;;  %v1966_v31 = vpack.c.bf16 %v781_v25, %v780_v13  ;;  %v1304_v44 = vadd.f32 %v2534_v12, %v1303_v28  ;;  %v1088_v50 = vunpack.c.l.b16 %v876_v39 }
 0x146   : > { %v2081_v34 = vpack.c.bf16 %v1384_v27, %v1383_v26  ;;  %v729_v35 = vpop.f32.mrf.mxu2 }
 0x147   : > { %2246 = vst [vmem:[%s2464_s18 + $0x48] sm:$0xff] %v1966_v31   ;;  %v730_v36 = vadd.f32 %v2453_v32, %v729_v35  ;;  %v1057_v37 = vunpack.c.l.b16 %v845_v30  ;;  %v1415_v53 = vmax.f32 %v1304_v44, 0.0 }
 0x148   : > { %2082 = vst [vmem:[%s2545_s24] sm:$0xff] %v2081_v34   ;;  %v652_v38 = vpop.f32.mrf.mxu0 }
 0x149   : > { %v813_v40 = vmax.f32 %v730_v36, 0.0  ;;  %v653_v41 = vadd.f32 %v2453_v32, %v652_v38  ;;  %v1228_v42 = vpop.f32.mrf.mxu1  ;;  %v1111_v43 = vpack.c.b16 %v1057_v37, %v1056_v33 }
 0x14a   : > { %v1229_v56 = vadd.f32 %v2534_v12, %v1228_v42 }
 0x14b   : > { %v877_v45 = vpack.c.bf16 %v813_v40, %v813_v40  ;;  %v2046_v46 = vpack.c.bf16 %v813_v40, %v812_v29  ;;  %v782_v48 = vmax.f32 %v653_v41, 0.0 }
 0x14c   : > { %1267 = vmatmul.bf16.gmra.mxu1 %v1111_v43  ;;  %v1305_v47 = vpop.f32.mrf.mxu3  ;;  %v1385_v1 = vmax.f32 %v1229_v56, 0.0 }
 0x14d   : > { %2262 = vst [vmem:[%s2464_s18 + $0xc8] sm:$0xff] %v2046_v46   ;;  %v1306_v49 = vadd.f32 %v2534_v12, %v1305_v47  ;;  %v1089_v51 = vunpack.c.l.b16 %v877_v45  ;;  %v846_v58 = vpack.c.bf16 %v782_v48, %v782_v48 }
 0x14e   : > { %v732_v52 = vpop.f32.mrf.mxu2 }
 0x14f   : > { %v1416_v54 = vmax.f32 %v1306_v49, 0.0  ;;  %v1127_v55 = vpack.c.b16 %v1089_v51, %v1088_v50  ;;  %v733_v60 = vadd.f32 %v2453_v32, %v732_v52  ;;  %v1058_v7 = vunpack.c.l.b16 %v846_v58 }
 0x150   : > { %v654_v57 = vpop.f32.mrf.mxu0 }
 0x151   : > { %v2161_v59 = vpack.c.bf16 %v1416_v54, %v1415_v53  ;;  %v655_v61 = vadd.f32 %v2453_v32, %v654_v57  ;;  %v1230_v62 = vpop.f32.mrf.mxu1  ;;  %1347 = vmatmul.bf16.gmra.mxu3 %v1127_v55  ;;  %v814_v4 = vmax.f32 %v733_v60, 0.0 }
 0x152   : > { %v1231_v63 = vadd.f32 %v2534_v12, %v1230_v62 }
 0x153   : > { %2284 = vst [vmem:[%s2545_s24 + $0x80] sm:$0xff] %v2161_v59   ;;  %v783_v0 = vmax.f32 %v655_v61, 0.0  ;;  %v878_v14 = vpack.c.bf16 %v814_v4, %v814_v4 }
 0x154   : > { %v1386_v2 = vmax.f32 %v1231_v63, 0.0  ;;  %v1308_v3 = vpop.f32.mrf.mxu3 }
 0x155   : > { %v847_v5 = vpack.c.bf16 %v783_v0, %v783_v0  ;;  %v1971_v6 = vpack.c.bf16 %v783_v0, %v782_v48  ;;  %v1309_v19 = vadd.f32 %v2534_v12, %v1308_v3  ;;  %v1090_v25 = vunpack.c.l.b16 %v878_v14 }
 0x156   : > { %v2086_v8 = vpack.c.bf16 %v1386_v2, %v1385_v1  ;;  %v734_v9 = vpop.f32.mrf.mxu2 }
 0x157   : > { %2247 = vst [vmem:[%s2464_s18 + $0x50] sm:$0xff] %v1971_v6   ;;  %v735_v10 = vadd.f32 %v2453_v32, %v734_v9  ;;  %v1059_v11 = vunpack.c.l.b16 %v847_v5  ;;  %v1417_v28 = vmax.f32 %v1309_v19, 0.0 }
 0x158   : > { %2269 = vst [vmem:[%s2545_s24 + $0x8] sm:$0xff] %v2086_v8   ;;  %v657_v13 = vpop.f32.mrf.mxu0 }
 0x159   : > { %v815_v15 = vmax.f32 %v735_v10, 0.0  ;;  %v658_v16 = vadd.f32 %v2453_v32, %v657_v13  ;;  %v1233_v17 = vpop.f32.mrf.mxu1  ;;  %v1112_v18 = vpack.c.b16 %v1059_v11, %v1058_v7 }
 0x15a   : > { %v1234_v31 = vadd.f32 %v2534_v12, %v1233_v17 }
 0x15b   : > { %v879_v20 = vpack.c.bf16 %v815_v15, %v815_v15  ;;  %v2051_v21 = vpack.c.bf16 %v815_v15, %v814_v4  ;;  %v784_v23 = vmax.f32 %v658_v16, 0.0 }
 0x15c   : > { %1272 = vmatmul.bf16.gmra.mxu1 %v1112_v18  ;;  %v1310_v22 = vpop.f32.mrf.mxu3  ;;  %v1387_v41 = vmax.f32 %v1234_v31, 0.0 }
 0x15d   : > { %2263 = vst [vmem:[%s2464_s18 + $0xd0] sm:$0xff] %v2051_v21   ;;  %v1311_v24 = vadd.f32 %v2534_v12, %v1310_v22  ;;  %v1091_v26 = vunpack.c.l.b16 %v879_v20  ;;  %v848_v34 = vpack.c.bf16 %v784_v23, %v784_v23 }
 0x15e   : > { %v737_v27 = vpop.f32.mrf.mxu2 }
 0x15f   : > { %v1418_v29 = vmax.f32 %v1311_v24, 0.0  ;;  %v1128_v30 = vpack.c.b16 %v1091_v26, %v1090_v25  ;;  %v738_v36 = vadd.f32 %v2453_v32, %v737_v27  ;;  %v1060_v47 = vunpack.c.l.b16 %v848_v34 }
 0x160   : > { %v659_v33 = vpop.f32.mrf.mxu0 }
 0x161   : > { %v2166_v35 = vpack.c.bf16 %v1418_v29, %v1417_v28  ;;  %v660_v37 = vadd.f32 %v2453_v32, %v659_v33  ;;  %v1235_v38 = vpop.f32.mrf.mxu1  ;;  %1352 = vmatmul.bf16.gmra.mxu3 %v1128_v30  ;;  %v816_v44 = vmax.f32 %v738_v36, 0.0 }
 0x162   : > { %v1236_v39 = vadd.f32 %v2534_v12, %v1235_v38 }
 0x163   : > { %2285 = vst [vmem:[%s2545_s24 + $0x88] sm:$0xff] %v2166_v35   ;;  %v785_v40 = vmax.f32 %v660_v37, 0.0  ;;  %v880_v53 = vpack.c.bf16 %v816_v44, %v816_v44 }
 0x164   : > { %v1388_v42 = vmax.f32 %v1236_v39, 0.0  ;;  %v1313_v43 = vpop.f32.mrf.mxu3 }
 0x165   : > { %v849_v45 = vpack.c.bf16 %v785_v40, %v785_v40  ;;  %v1976_v46 = vpack.c.bf16 %v785_v40, %v784_v23  ;;  %v1314_v58 = vadd.f32 %v2534_v12, %v1313_v43  ;;  %v1092_v0 = vunpack.c.l.b16 %v880_v53 }
 0x166   : > { %v2091_v48 = vpack.c.bf16 %v1388_v42, %v1387_v41  ;;  %v739_v49 = vpop.f32.mrf.mxu2 }
 0x167   : > { %2248 = vst [vmem:[%s2464_s18 + $0x58] sm:$0xff] %v1976_v46   ;;  %v740_v50 = vadd.f32 %v2453_v32, %v739_v49  ;;  %v1061_v51 = vunpack.c.l.b16 %v849_v45  ;;  %v1419_v3 = vmax.f32 %v1314_v58, 0.0 }
 0x168   : > { %2270 = vst [vmem:[%s2545_s24 + $0x10] sm:$0xff] %v2091_v48   ;;  %v662_v52 = vpop.f32.mrf.mxu0 }
 0x169   : > { %v817_v54 = vmax.f32 %v740_v50, 0.0  ;;  %v663_v55 = vadd.f32 %v2453_v32, %v662_v52  ;;  %v1238_v56 = vpop.f32.mrf.mxu1  ;;  %v1113_v57 = vpack.c.b16 %v1061_v51, %v1060_v47 }
 0x16a   : > { %v1239_v6 = vadd.f32 %v2534_v12, %v1238_v56 }
 0x16b   : > { %v881_v59 = vpack.c.bf16 %v817_v54, %v817_v54  ;;  %v2056_v60 = vpack.c.bf16 %v817_v54, %v816_v44  ;;  %v786_v62 = vmax.f32 %v663_v55, 0.0 }
 0x16c   : > { %1277 = vmatmul.bf16.gmra.mxu1 %v1113_v57  ;;  %v1315_v61 = vpop.f32.mrf.mxu3  ;;  %v1389_v16 = vmax.f32 %v1239_v6, 0.0 }
 0x16d   : > { %2264 = vst [vmem:[%s2464_s18 + $0xd8] sm:$0xff] %v2056_v60   ;;  %v1316_v63 = vadd.f32 %v2534_v12, %v1315_v61  ;;  %v1093_v1 = vunpack.c.l.b16 %v881_v59  ;;  %v850_v8 = vpack.c.bf16 %v786_v62, %v786_v62 }
 0x16e   : > { %v742_v2 = vpop.f32.mrf.mxu2 }
 0x16f   : > { %v1420_v4 = vmax.f32 %v1316_v63, 0.0  ;;  %v1129_v5 = vpack.c.b16 %v1093_v1, %v1092_v0  ;;  %v743_v10 = vadd.f32 %v2453_v32, %v742_v2  ;;  %v1062_v19 = vunpack.c.l.b16 %v850_v8 }
 0x170   : > { %v664_v7 = vpop.f32.mrf.mxu0 }
 0x171   : > { %v2171_v9 = vpack.c.bf16 %v1420_v4, %v1419_v3  ;;  %v665_v11 = vadd.f32 %v2453_v32, %v664_v7  ;;  %v1240_v13 = vpop.f32.mrf.mxu1  ;;  %1357 = vmatmul.bf16.gmra.mxu3 %v1129_v5  ;;  %v818_v20 = vmax.f32 %v743_v10, 0.0 }
 0x172   : > { %v1241_v14 = vadd.f32 %v2534_v12, %v1240_v13 }
 0x173   : > { %2286 = vst [vmem:[%s2545_s24 + $0x90] sm:$0xff] %v2171_v9   ;;  %v787_v15 = vmax.f32 %v665_v11, 0.0  ;;  %v882_v28 = vpack.c.bf16 %v818_v20, %v818_v20 }
 0x174   : > { %v1390_v17 = vmax.f32 %v1241_v14, 0.0  ;;  %v1318_v18 = vpop.f32.mrf.mxu3 }
 0x175   : > { %v851_v21 = vpack.c.bf16 %v787_v15, %v787_v15  ;;  %v1981_v22 = vpack.c.bf16 %v787_v15, %v786_v62  ;;  %v1319_v34 = vadd.f32 %v2534_v12, %v1318_v18  ;;  %v1094_v38 = vunpack.c.l.b16 %v882_v28 }
 0x176   : > { %v2096_v23 = vpack.c.bf16 %v1390_v17, %v1389_v16  ;;  %v744_v24 = vpop.f32.mrf.mxu2 }
 0x177   : > { %2249 = vst [vmem:[%s2464_s18 + $0x60] sm:$0xff] %v1981_v22   ;;  %v1063_v25 = vunpack.c.l.b16 %v851_v21  ;;  %v745_v26 = vadd.f32 %v2453_v32, %v744_v24  ;;  %v1421_v43 = vmax.f32 %v1319_v34, 0.0  ;;  %v2606_v24 = vld [vmem:[%s2690_s2] ss:$0 sm:$0xff] }
 0x178   : > { %2271 = vst [vmem:[%s2545_s24 + $0x18] sm:$0xff] %v2096_v23   ;;  %v667_v27 = vpop.f32.mrf.mxu0 }
 0x179   : > { %v819_v29 = vmax.f32 %v745_v26, 0.0  ;;  %v668_v30 = vadd.f32 %v2453_v32, %v667_v27  ;;  %v1243_v31 = vpop.f32.mrf.mxu1  ;;  %v1114_v33 = vpack.c.b16 %v1063_v25, %v1062_v19 }
 0x17a   : > { %v1244_v46 = vadd.f32 %v2534_v12, %v1243_v31 }
 0x17b   : > { %v883_v35 = vpack.c.bf16 %v819_v29, %v819_v29  ;;  %v2061_v36 = vpack.c.bf16 %v819_v29, %v818_v20  ;;  %v788_v40 = vmax.f32 %v668_v30, 0.0 }
 0x17c   : > { %1282 = vmatmul.bf16.gmra.mxu1 %v1114_v33  ;;  %v1320_v37 = vpop.f32.mrf.mxu3  ;;  %v1391_v55 = vmax.f32 %v1244_v46, 0.0 }
 0x17d   : > { %2265 = vst [vmem:[%s2464_s18 + $0xe0] sm:$0xff] %v2061_v36   ;;  %v1095_v39 = vunpack.c.l.b16 %v883_v35  ;;  %v1321_v41 = vadd.f32 %v2534_v12, %v1320_v37  ;;  %v852_v48 = vpack.c.bf16 %v788_v40, %v788_v40 }
 0x17e   : > { %v747_v42 = vpop.f32.mrf.mxu2 }
 0x17f   : > { %v1422_v44 = vmax.f32 %v1321_v41, 0.0  ;;  %v1130_v45 = vpack.c.b16 %v1095_v39, %v1094_v38  ;;  %v748_v50 = vadd.f32 %v2453_v32, %v747_v42  ;;  %v1064_v58 = vunpack.c.l.b16 %v852_v48 }
 0x180   : > { %v669_v47 = vpop.f32.mrf.mxu0 }
 0x181   : > { %v2176_v49 = vpack.c.bf16 %v1422_v44, %v1421_v43  ;;  %v670_v51 = vadd.f32 %v2453_v32, %v669_v47  ;;  %v1245_v52 = vpop.f32.mrf.mxu1  ;;  %1362 = vmatmul.bf16.gmra.mxu3 %v1130_v45  ;;  %v820_v59 = vmax.f32 %v748_v50, 0.0 }
 0x182   : > { %v1246_v53 = vadd.f32 %v2534_v12, %v1245_v52 }
 0x183   : > { %2287 = vst [vmem:[%s2545_s24 + $0x98] sm:$0xff] %v2176_v49   ;;  %v789_v54 = vmax.f32 %v670_v51, 0.0  ;;  %v884_v3 = vpack.c.bf16 %v820_v59, %v820_v59 }
 0x184   : > { %v1392_v56 = vmax.f32 %v1246_v53, 0.0  ;;  %v1323_v57 = vpop.f32.mrf.mxu3 }
 0x185   : > { %v853_v60 = vpack.c.bf16 %v789_v54, %v789_v54  ;;  %v1986_v61 = vpack.c.bf16 %v789_v54, %v788_v40  ;;  %v1324_v8 = vadd.f32 %v2534_v12, %v1323_v57  ;;  %v1096_v13 = vunpack.c.l.b16 %v884_v3 }
 0x186   : > { %v2101_v62 = vpack.c.bf16 %v1392_v56, %v1391_v55  ;;  %v749_v63 = vpop.f32.mrf.mxu2 }
 0x187   : > { %2250 = vst [vmem:[%s2464_s18 + $0x68] sm:$0xff] %v1986_v61   ;;  %v1065_v0 = vunpack.c.l.b16 %v853_v60  ;;  %v750_v1 = vadd.f32 %v2453_v32, %v749_v63  ;;  %v1423_v18 = vmax.f32 %v1324_v8, 0.0 }
 0x188   : > { %2272 = vst [vmem:[%s2545_s24 + $0x20] sm:$0xff] %v2101_v62   ;;  %v672_v2 = vpop.f32.mrf.mxu0 }
 0x189   : > { %v821_v4 = vmax.f32 %v750_v1, 0.0  ;;  %v673_v5 = vadd.f32 %v2453_v32, %v672_v2  ;;  %v1248_v6 = vpop.f32.mrf.mxu1  ;;  %v1115_v7 = vpack.c.b16 %v1065_v0, %v1064_v58 }
 0x18a   : > { %v1249_v32 = vadd.f32 %v2534_v12, %v1248_v6 }
 0x18b   : > { %v885_v9 = vpack.c.bf16 %v821_v4, %v821_v4  ;;  %v2066_v10 = vpack.c.bf16 %v821_v4, %v820_v59  ;;  %v790_v15 = vmax.f32 %v673_v5, 0.0 }
 0x18c   : > { %1287 = vmatmul.bf16.gmra.mxu1 %v1115_v7  ;;  %v1325_v11 = vpop.f32.mrf.mxu3  ;;  %v1393_v30 = vmax.f32 %v1249_v32, 0.0 }
 0x18d   : > { %2266 = vst [vmem:[%s2464_s18 + $0xe8] sm:$0xff] %v2066_v10   ;;  %v1097_v14 = vunpack.c.l.b16 %v885_v9  ;;  %v1326_v16 = vadd.f32 %v2534_v12, %v1325_v11  ;;  %v854_v22 = vpack.c.bf16 %v790_v15, %v790_v15 }
 0x18e   : > { %v752_v17 = vpop.f32.mrf.mxu2 }
 0x18f   : > { %v1424_v19 = vmax.f32 %v1326_v16, 0.0  ;;  %v1131_v20 = vpack.c.b16 %v1097_v14, %v1096_v13  ;;  %v753_v25 = vadd.f32 %v2606_v24, %v752_v17  ;;  %v1066_v34 = vunpack.c.l.b16 %v854_v22 }
 0x190   : > { %v674_v21 = vpop.f32.mrf.mxu0 }
 0x191   : > { %v2181_v23 = vpack.c.bf16 %v1424_v19, %v1423_v18  ;;  %v675_v26 = vadd.f32 %v2606_v24, %v674_v21  ;;  %v1250_v27 = vpop.f32.mrf.mxu1  ;;  %1367 = vmatmul.bf16.gmra.mxu3 %v1131_v20  ;;  %v822_v35 = vmax.f32 %v753_v25, 0.0 }
 0x192   : > { %v1251_v28 = vadd.f32 %v2534_v12, %v1250_v27 }
 0x193   : > { %2288 = vst [vmem:[%s2545_s24 + $0xa0] sm:$0xff] %v2181_v23   ;;  %v791_v29 = vmax.f32 %v675_v26, 0.0  ;;  %v886_v43 = vpack.c.bf16 %v822_v35, %v822_v35 }
 0x194   : > { %v1394_v31 = vmax.f32 %v1251_v28, 0.0  ;;  %v1328_v33 = vpop.f32.mrf.mxu3 }
 0x195   : > { %v855_v36 = vpack.c.bf16 %v791_v29, %v791_v29  ;;  %v1991_v37 = vpack.c.bf16 %v791_v29, %v790_v15  ;;  %v1329_v48 = vadd.f32 %v2534_v12, %v1328_v33  ;;  %v1098_v52 = vunpack.c.l.b16 %v886_v43 }
 0x196   : > { %v2106_v38 = vpack.c.bf16 %v1394_v31, %v1393_v30  ;;  %v754_v39 = vpop.f32.mrf.mxu2 }
 0x197   : > { %2251 = vst [vmem:[%s2464_s18 + $0x70] sm:$0xff] %v1991_v37   ;;  %v1067_v40 = vunpack.c.l.b16 %v855_v36  ;;  %v755_v41 = vadd.f32 %v2606_v24, %v754_v39  ;;  %v1425_v57 = vmax.f32 %v1329_v48, 0.0 }
 0x198   : > { %2273 = vst [vmem:[%s2545_s24 + $0x28] sm:$0xff] %v2106_v38   ;;  %v677_v42 = vpop.f32.mrf.mxu0 }
 0x199   : > { %v823_v44 = vmax.f32 %v755_v41, 0.0  ;;  %v678_v45 = vadd.f32 %v2606_v24, %v677_v42  ;;  %v1253_v46 = vpop.f32.mrf.mxu1  ;;  %v1116_v47 = vpack.c.b16 %v1067_v40, %v1066_v34 }
 0x19a   : > { %v1254_v60 = vadd.f32 %v2534_v12, %v1253_v46 }
 0x19b   : > { %v887_v49 = vpack.c.bf16 %v823_v44, %v823_v44  ;;  %v2071_v50 = vpack.c.bf16 %v823_v44, %v822_v35  ;;  %v792_v54 = vmax.f32 %v678_v45, 0.0 }
 0x19c   : > { %1292 = vmatmul.bf16.gmra.mxu1 %v1116_v47  ;;  %v1330_v51 = vpop.f32.mrf.mxu3  ;;  %v1395_v5 = vmax.f32 %v1254_v60, 0.0 }
 0x19d   : > { %2267 = vst [vmem:[%s2464_s18 + $0xf0] sm:$0xff] %v2071_v50   ;;  %v1099_v53 = vunpack.c.l.b16 %v887_v49  ;;  %v1331_v55 = vadd.f32 %v2534_v12, %v1330_v51  ;;  %v856_v62 = vpack.c.bf16 %v792_v54, %v792_v54 }
 0x19e   : > { %v757_v56 = vpop.f32.mrf.mxu2 }
 0x19f   : > { %v1426_v58 = vmax.f32 %v1331_v55, 0.0  ;;  %v1132_v59 = vpack.c.b16 %v1099_v53, %v1098_v52  ;;  %v758_v0 = vadd.f32 %v2606_v24, %v757_v56  ;;  %v1068_v8 = vunpack.c.l.b16 %v856_v62 }
 0x1a0   : > { %v679_v61 = vpop.f32.mrf.mxu0 }
 0x1a1   : > { %v2186_v63 = vpack.c.bf16 %v1426_v58, %v1425_v57  ;;  %v680_v1 = vadd.f32 %v2606_v24, %v679_v61  ;;  %v1255_v2 = vpop.f32.mrf.mxu1  ;;  %1372 = vmatmul.bf16.gmra.mxu3 %v1132_v59  ;;  %v824_v9 = vmax.f32 %v758_v0, 0.0 }
 0x1a2   : > { %v1256_v3 = vadd.f32 %v2534_v12, %v1255_v2 }
 0x1a3   : > { %2289 = vst [vmem:[%s2545_s24 + $0xa8] sm:$0xff] %v2186_v63   ;;  %v793_v4 = vmax.f32 %v680_v1, 0.0  ;;  %v888_v17 = vpack.c.bf16 %v824_v9, %v824_v9 }
 0x1a4   : > { %v1396_v6 = vmax.f32 %v1256_v3, 0.0  ;;  %v1333_v7 = vpop.f32.mrf.mxu3 }
 0x1a5   : > { %v857_v10 = vpack.c.bf16 %v793_v4, %v793_v4  ;;  %v1996_v11 = vpack.c.bf16 %v793_v4, %v792_v54  ;;  %v1334_v32 = vadd.f32 %v2534_v12, %v1333_v7  ;;  %v1100_v25 = vunpack.c.l.b16 %v888_v17 }
 0x1a6   : > { %v2111_v13 = vpack.c.bf16 %v1396_v6, %v1395_v5  ;;  %v759_v14 = vpop.f32.mrf.mxu2 }
 0x1a7   : > { %2252 = vst [vmem:[%s2464_s18 + $0x78] sm:$0xff] %v1996_v11   ;;  %v1069_v15 = vunpack.c.l.b16 %v857_v10  ;;  %v760_v16 = vadd.f32 %v2606_v24, %v759_v14  ;;  %v1427_v28 = vmax.f32 %v1334_v32, 0.0 }
 0x1a8   : > { %2274 = vst [vmem:[%s2545_s24 + $0x30] sm:$0xff] %v2111_v13  }
 0x1a9   : > { %v825_v18 = vmax.f32 %v760_v16, 0.0  ;;  %v1258_v19 = vpop.f32.mrf.mxu1  ;;  %v1117_v20 = vpack.c.b16 %v1069_v15, %v1068_v8 }
 0x1aa   : > { %v1259_v30 = vadd.f32 %v2534_v12, %v1258_v19 }
 0x1ab   : > { %v889_v21 = vpack.c.bf16 %v825_v18, %v825_v18  ;;  %v2076_v22 = vpack.c.bf16 %v825_v18, %v824_v9 }
 0x1ac   : > { %1297 = vmatmul.bf16.gmra.mxu1 %v1117_v20  ;;  %v1335_v23 = vpop.f32.mrf.mxu3  ;;  %v1397_v35 = vmax.f32 %v1259_v30, 0.0 }
 0x1ad   : > { %2268 = vst [vmem:[%s2464_s18 + $0xf8] sm:$0xff] %v2076_v22   ;;  %v1101_v26 = vunpack.c.l.b16 %v889_v21  ;;  %v1336_v27 = vadd.f32 %v2534_v12, %v1335_v23 }
 0x1af   : > { %v1428_v24 = vmax.f32 %v1336_v27, 0.0  ;;  %v1133_v29 = vpack.c.b16 %v1101_v26, %v1100_v25 }
 0x1b1   : > { %v2191_v31 = vpack.c.bf16 %v1428_v24, %v1427_v28  ;;  %v1260_v33 = vpop.f32.mrf.mxu1  ;;  %1377 = vmatmul.bf16.gmra.mxu3 %v1133_v29 }
 0x1b2   : > { %v1261_v34 = vadd.f32 %v2534_v12, %v1260_v33 }
 0x1b3   : > { %2290 = vst [vmem:[%s2545_s24 + $0xb0] sm:$0xff] %v2191_v31  }
 0x1b4   : > { %v1398_v36 = vmax.f32 %v1261_v34, 0.0  ;;  %v1338_v37 = vpop.f32.mrf.mxu3 }
 0x1b5   : > { %v1339_v40 = vadd.f32 %v2534_v12, %v1338_v37 }
 0x1b6   : > { %v2116_v38 = vpack.c.bf16 %v1398_v36, %v1397_v35 }
 0x1b7   : > { %v1429_v43 = vmax.f32 %v1339_v40, 0.0 }
 0x1b8   : > { %2275 = vst [vmem:[%s2545_s24 + $0x38] sm:$0xff] %v2116_v38  }
 0x1b9   : > { %v1263_v39 = vpop.f32.mrf.mxu1 }
 0x1ba   : > { %v1264_v45 = vadd.f32 %v2534_v12, %v1263_v39 }
 0x1bc   : > { %v1340_v41 = vpop.f32.mrf.mxu3  ;;  %v1399_v49 = vmax.f32 %v1264_v45, 0.0 }
 0x1bd   : > { %v1341_v42 = vadd.f32 %v2534_v12, %v1340_v41 }
 0x1bf   : > { %v1430_v44 = vmax.f32 %v1341_v42, 0.0 }
 0x1c1   : > { %v2196_v46 = vpack.c.bf16 %v1430_v44, %v1429_v43  ;;  %v1265_v47 = vpop.f32.mrf.mxu1 }
 0x1c2   : > { %v1266_v48 = vadd.f32 %v2534_v12, %v1265_v47 }
 0x1c3   : > { %2291 = vst [vmem:[%s2545_s24 + $0xb8] sm:$0xff] %v2196_v46  }
 0x1c4   : > { %v1400_v50 = vmax.f32 %v1266_v48, 0.0  ;;  %v1343_v51 = vpop.f32.mrf.mxu3 }
 0x1c5   : > { %v1344_v54 = vadd.f32 %v2534_v12, %v1343_v51 }
 0x1c6   : > { %v2121_v52 = vpack.c.bf16 %v1400_v50, %v1399_v49 }
 0x1c7   : > { %v1431_v57 = vmax.f32 %v1344_v54, 0.0 }
 0x1c8   : > { %2276 = vst [vmem:[%s2545_s24 + $0x40] sm:$0xff] %v2121_v52  }
 0x1c9   : > { %v1268_v53 = vpop.f32.mrf.mxu1 }
 0x1ca   : > { %v1269_v59 = vadd.f32 %v2534_v12, %v1268_v53 }
 0x1cc   : > { %v1345_v55 = vpop.f32.mrf.mxu3  ;;  %v1401_v63 = vmax.f32 %v1269_v59, 0.0 }
 0x1cd   : > { %v1346_v56 = vadd.f32 %v2534_v12, %v1345_v55 }
 0x1cf   : > { %v1432_v58 = vmax.f32 %v1346_v56, 0.0 }
 0x1d1   : > { %v2201_v60 = vpack.c.bf16 %v1432_v58, %v1431_v57  ;;  %v1270_v61 = vpop.f32.mrf.mxu1 }
 0x1d2   : > { %v1271_v62 = vadd.f32 %v2534_v12, %v1270_v61 }
 0x1d3   : > { %2292 = vst [vmem:[%s2545_s24 + $0xc0] sm:$0xff] %v2201_v60  }
 0x1d4   : > { %v1402_v0 = vmax.f32 %v1271_v62, 0.0  ;;  %v1348_v1 = vpop.f32.mrf.mxu3 }
 0x1d5   : > { %v1349_v4 = vadd.f32 %v2534_v12, %v1348_v1 }
 0x1d6   : > { %v2126_v2 = vpack.c.bf16 %v1402_v0, %v1401_v63 }
 0x1d7   : > { %v1433_v7 = vmax.f32 %v1349_v4, 0.0 }
 0x1d8   : > { %2277 = vst [vmem:[%s2545_s24 + $0x48] sm:$0xff] %v2126_v2  }
 0x1d9   : > { %v1273_v3 = vpop.f32.mrf.mxu1 }
 0x1da   : > { %v1274_v9 = vadd.f32 %v2534_v12, %v1273_v3 }
 0x1dc   : > { %v1350_v5 = vpop.f32.mrf.mxu3  ;;  %v1403_v14 = vmax.f32 %v1274_v9, 0.0 }
 0x1dd   : > { %v1351_v6 = vadd.f32 %v2534_v12, %v1350_v5 }
 0x1df   : > { %v1434_v8 = vmax.f32 %v1351_v6, 0.0 }
 0x1e1   : > { %v2206_v10 = vpack.c.bf16 %v1434_v8, %v1433_v7  ;;  %v1275_v11 = vpop.f32.mrf.mxu1 }
 0x1e2   : > { %v1276_v13 = vadd.f32 %v2534_v12, %v1275_v11 }
 0x1e3   : > { %2293 = vst [vmem:[%s2545_s24 + $0xc8] sm:$0xff] %v2206_v10  }
 0x1e4   : > { %v1404_v15 = vmax.f32 %v1276_v13, 0.0  ;;  %v1353_v16 = vpop.f32.mrf.mxu3 }
 0x1e5   : > { %v1354_v19 = vadd.f32 %v2534_v12, %v1353_v16 }
 0x1e6   : > { %v2131_v17 = vpack.c.bf16 %v1404_v15, %v1403_v14 }
 0x1e7   : > { %v1435_v21 = vmax.f32 %v1354_v19, 0.0 }
 0x1e8   : > { %2278 = vst [vmem:[%s2545_s24 + $0x50] sm:$0xff] %v2131_v17  }
 0x1e9   : > { %v1278_v18 = vpop.f32.mrf.mxu1 }
 0x1ea   : > { %v1279_v23 = vadd.f32 %v2534_v12, %v1278_v18 }
 0x1ec   : > { %v1355_v20 = vpop.f32.mrf.mxu3  ;;  %v1405_v28 = vmax.f32 %v1279_v23, 0.0 }
 0x1ed   : > { %v1356_v32 = vadd.f32 %v2534_v12, %v1355_v20 }
 0x1ef   : > { %v1436_v22 = vmax.f32 %v1356_v32, 0.0 }
 0x1f1   : > { %v2211_v25 = vpack.c.bf16 %v1436_v22, %v1435_v21  ;;  %v1280_v26 = vpop.f32.mrf.mxu1 }
 0x1f2   : > { %v1281_v27 = vadd.f32 %v2534_v12, %v1280_v26 }
 0x1f3   : > { %2294 = vst [vmem:[%s2545_s24 + $0xd0] sm:$0xff] %v2211_v25  }
 0x1f4   : > { %v1406_v24 = vmax.f32 %v1281_v27, 0.0  ;;  %v1358_v29 = vpop.f32.mrf.mxu3 }
 0x1f5   : > { %v1359_v33 = vadd.f32 %v2534_v12, %v1358_v29 }
 0x1f6   : > { %v2136_v30 = vpack.c.bf16 %v1406_v24, %v1405_v28 }
 0x1f7   : > { %v1437_v36 = vmax.f32 %v1359_v33, 0.0 }
 0x1f8   : > { %2279 = vst [vmem:[%s2545_s24 + $0x58] sm:$0xff] %v2136_v30  }
 0x1f9   : > { %v1283_v31 = vpop.f32.mrf.mxu1 }
 0x1fa   : > { %v1284_v38 = vadd.f32 %v2534_v12, %v1283_v31 }
 0x1fc   : > { %v1360_v34 = vpop.f32.mrf.mxu3  ;;  %v1407_v42 = vmax.f32 %v1284_v38, 0.0 }
 0x1fd   : > { %v1361_v35 = vadd.f32 %v2534_v12, %v1360_v34 }
 0x1ff   : > { %v1438_v37 = vmax.f32 %v1361_v35, 0.0 }
 0x201   : > { %v2216_v39 = vpack.c.bf16 %v1438_v37, %v1437_v36  ;;  %v1285_v40 = vpop.f32.mrf.mxu1 }
 0x202   : > { %v1286_v41 = vadd.f32 %v2534_v12, %v1285_v40 }
 0x203   : > { %2295 = vst [vmem:[%s2545_s24 + $0xd8] sm:$0xff] %v2216_v39  }
 0x204   : > { %v1408_v43 = vmax.f32 %v1286_v41, 0.0  ;;  %v1363_v44 = vpop.f32.mrf.mxu3 }
 0x205   : > { %v1364_v47 = vadd.f32 %v2534_v12, %v1363_v44 }
 0x206   : > { %v2141_v45 = vpack.c.bf16 %v1408_v43, %v1407_v42 }
 0x207   : > { %v1439_v50 = vmax.f32 %v1364_v47, 0.0 }
 0x208   : > { %2280 = vst [vmem:[%s2545_s24 + $0x60] sm:$0xff] %v2141_v45  }
 0x209   : > { %v1288_v46 = vpop.f32.mrf.mxu1 }
 0x20a   : > { %v1289_v52 = vadd.f32 %v2534_v12, %v1288_v46 }
 0x20c   : > { %v1365_v48 = vpop.f32.mrf.mxu3  ;;  %v1409_v56 = vmax.f32 %v1289_v52, 0.0 }
 0x20d   : > { %v1366_v49 = vadd.f32 %v2534_v12, %v1365_v48 }
 0x20f   : > { %v1440_v51 = vmax.f32 %v1366_v49, 0.0 }
 0x211   : > { %v2221_v53 = vpack.c.bf16 %v1440_v51, %v1439_v50  ;;  %v1290_v54 = vpop.f32.mrf.mxu1 }
 0x212   : > { %v1291_v55 = vadd.f32 %v2534_v12, %v1290_v54 }
 0x213   : > { %2296 = vst [vmem:[%s2545_s24 + $0xe0] sm:$0xff] %v2221_v53  }
 0x214   : > { %v1410_v57 = vmax.f32 %v1291_v55, 0.0  ;;  %v1368_v58 = vpop.f32.mrf.mxu3 }
 0x215   : > { %v1369_v61 = vadd.f32 %v2534_v12, %v1368_v58 }
 0x216   : > { %v2146_v59 = vpack.c.bf16 %v1410_v57, %v1409_v56 }
 0x217   : > { %v1441_v0 = vmax.f32 %v1369_v61, 0.0 }
 0x218   : > { %2281 = vst [vmem:[%s2545_s24 + $0x68] sm:$0xff] %v2146_v59  }
 0x219   : > { %v1293_v60 = vpop.f32.mrf.mxu1 }
 0x21a   : > { %v1294_v2 = vadd.f32 %v2534_v12, %v1293_v60 }
 0x21c   : > { %v1370_v62 = vpop.f32.mrf.mxu3  ;;  %v1411_v6 = vmax.f32 %v1294_v2, 0.0 }
 0x21d   : > { %v1371_v63 = vadd.f32 %v2534_v12, %v1370_v62 }
 0x21f   : > { %v1442_v1 = vmax.f32 %v1371_v63, 0.0 }
 0x221   : > { %v2226_v3 = vpack.c.bf16 %v1442_v1, %v1441_v0  ;;  %v1295_v4 = vpop.f32.mrf.mxu1 }
 0x222   : > { %v1296_v5 = vadd.f32 %v2534_v12, %v1295_v4 }
 0x223   : > { %2297 = vst [vmem:[%s2545_s24 + $0xe8] sm:$0xff] %v2226_v3  }
 0x224   : > { %v1412_v7 = vmax.f32 %v1296_v5, 0.0  ;;  %v1373_v8 = vpop.f32.mrf.mxu3 }
 0x225   : > { %v1374_v11 = vadd.f32 %v2534_v12, %v1373_v8 }
 0x226   : > { %v2151_v9 = vpack.c.bf16 %v1412_v7, %v1411_v6 }
 0x227   : > { %v1443_v15 = vmax.f32 %v1374_v11, 0.0 }
 0x228   : > { %2282 = vst [vmem:[%s2545_s24 + $0x70] sm:$0xff] %v2151_v9  }
 0x229   : > { %v1298_v10 = vpop.f32.mrf.mxu1 }
 0x22a   : > { %v1299_v17 = vadd.f32 %v2534_v12, %v1298_v10 }
 0x22c   : > { %v1375_v13 = vpop.f32.mrf.mxu3  ;;  %v1413_v32 = vmax.f32 %v1299_v17, 0.0 }
 0x22d   : > { %v1376_v14 = vadd.f32 %v2534_v12, %v1375_v13 }
 0x22f   : > { %v1444_v16 = vmax.f32 %v1376_v14, 0.0 }
 0x231   : > { %v2231_v18 = vpack.c.bf16 %v1444_v16, %v1443_v15  ;;  %v1300_v19 = vpop.f32.mrf.mxu1 }
 0x232   : > { %v1301_v20 = vadd.f32 %v2534_v12, %v1300_v19 }
 0x233   : > { %2298 = vst [vmem:[%s2545_s24 + $0xf0] sm:$0xff] %v2231_v18  }
 0x234   : > { %v1414_v21 = vmax.f32 %v1301_v20, 0.0  ;;  %v1378_v22 = vpop.f32.mrf.mxu3 }
 0x235   : > { %v1379_v25 = vadd.f32 %v2534_v12, %v1378_v22 }
 0x236   : > { %v2156_v23 = vpack.c.bf16 %v1414_v21, %v1413_v32 }
 0x237   : > { %v1445_v28 = vmax.f32 %v1379_v25, 0.0 }
 0x238   : > { %2283 = vst [vmem:[%s2545_s24 + $0x78] sm:$0xff] %v2156_v23  }
 0x23c   : > { %v1380_v26 = vpop.f32.mrf.mxu3 }
 0x23d   : > { %v1381_v27 = vadd.f32 %v2534_v12, %v1380_v26 }
 0x23f   : > { %v1446_v24 = vmax.f32 %v1381_v27, 0.0 }
 0x241   : > { %v2236_v29 = vpack.c.bf16 %v1446_v24, %v1445_v28 }
 0x243   : > { %2299 = vst [vmem:[%s2545_s24 + $0xf8] sm:$0xff] %v2236_v29  }
 0x244 PF: > { %s17_s21 = sadd.s32 1, %s2333_s21  }
 0x245   : > { %p14_p4 = scmp.ge.s32.totalorder %s17_s21, 4  }
 0x247   :  { %16 = sbr.rel (!%p14_p4) target bundleno = 1 (0x1), region = 82 }

// kernel: yolov2_fgfa_forward.7
= control target key start
LH: loop header
LB: loop body
LE: loop exit
PB: predicated region body
PF: predicated region fallthrough
CT: control target
= control target key end

     0   :  { %9 = vsyncpa [#allocation5], 0  ;;  %s5176_s0 = inlined_call_operand.vmem [shape: bf16[256,128], index: 0, kind: input, shape index: {}]   ;;  %s5177_s1 = inlined_call_operand.vmem [shape: bf16[2,256,128], index: 1, kind: input, shape index: {}]   ;;  %s5178_s2 = inlined_call_operand.vmem [shape: bf16[2,256,128], index: 2, kind: input, shape index: {}]   ;;  %s5179_s3 = inlined_call_operand.vmem [shape: bf16[128,128], index: 3, kind: input, shape index: {}]   ;;  %s5180_s4 = inlined_call_operand.hbm [shape: f32[256,128], index: 4, kind: output, shape index: {}]  }
   0x1   :  { %11 = vsyncpa [#allocation5 + $0x1], 0  ;;  %s3244_s15 = smov 0   ;;  %s3246_s16 = smov 0  }
   0x2   :  { %s3248_s17 = smov 0   ;;  %s3250_s18 = smov 0  }
   0x3 LB: > { %s3265_s19 = sadd.s32 4294967295, %s3214_s18   ;;  %s2535_s20 = sadd.s32 4294967294, %s3214_s18   ;;  %s3214_s18 = sphi %s3250_s18, %s5313_s18   ;;  %s3210_s17 = sphi %s3248_s17, %s5312_s17   ;;  %s3206_s16 = sphi %s3246_s16, %s5311_s16   ;;  %s3202_s15 = sphi %s3244_s15, %s5310_s15  }
   0x4   : > { %s3269_s21 = sadd.s32 1, %s3214_s18   ;;  %s50_s22 = sadd.s32 1, %s3210_s17 }
   0x5   : > { %s47_s23 = ssub.s32 %s3214_s18, %s3269_s21  ;;  %p57_p0 = scmp.ne.s32.totalorder %s3210_s17, %s3206_s16 }
   0x6   : > { %p48_p1 = scmp.eq.s32.totalorder %s47_s23, 0  ;;  %p58_p2 = scmp.eq.s32.totalorder %s3214_s18, 0 }
   0x7   : > { %p134_p3 = scmp.eq.s32.totalorder %s3265_s19, 1  ;;  %p139_p4 = scmp.ne.s32.totalorder %s3206_s16, %s3202_s15 }
   0x8   : > { %s3281_s24 = scalar_select %p48_p1, %s3210_s17, %s50_s22  }
   0x9   : > { %p3283_p5 = por %p58_p2, %p57_p0  ;;  %p3287_p6 = por %p134_p3, %p57_p0 }
   0xa   : > { %p140_p7 = scmp.eq.s32.totalorder %s2535_s20, 1  ;;  %p2537_p9 = scmp.ge.s32.totalorder %s3214_s18, 2 }
   0xc   : > { %p3291_p8 = por %p140_p7, %p139_p4  ;;  %159 = sbr.rel (%p2537_p9) target bundleno = 57 (0x39), region = 20 }
  0x11   : > { %171 = sbr.rel (!%p3283_p5) target bundleno = 37 (0x25), region = 28  ;;  %s173_s28 = sand.u32 (%p3283_p5), 1, %s3210_s17  }
  0x12   : > { %s2619_s29 = sshll.u32 (%p3283_p5), %s3214_s18, 6  ;;  %s2538_s30 = sshll.u32 (%p3283_p5), %s173_s28, 7 }
  0x13   : > { %s3305_s7 = scalar_lea.vmem (%p3283_p5), %s5177_s1, %s2619_s29  ;;  %s175_s8 = scalar_lea.vmem (%p3283_p5), [#allocation2], %s2538_s30 }
  0x14   : > { %v195_v0 = vld [vmem:[%s3305_s7] sm:$0xff] (%p3283_p5)   ;;  %v199_v1 = vld [vmem:[%s3305_s7 + $0x8] sm:$0xff] (%p3283_p5)   ;;  %v203_v2 = vld [vmem:[%s3305_s7 + $0x10] sm:$0xff] (%p3283_p5)  }
  0x15   : > { %196 = vst [vmem:[%s175_s8] sm:$0xff] (%p3283_p5), %v195_v0   ;;  %v207_v3 = vld [vmem:[%s3305_s7 + $0x18] sm:$0xff] (%p3283_p5)   ;;  %v211_v4 = vld [vmem:[%s3305_s7 + $0x20] sm:$0xff] (%p3283_p5)   ;;  %v215_v5 = vld [vmem:[%s3305_s7 + $0x28] sm:$0xff] (%p3283_p5)  }
  0x16   : > { %200 = vst [vmem:[%s175_s8 + $0x8] sm:$0xff] %v199_v1   ;;  %v219_v6 = vld [vmem:[%s3305_s7 + $0x30] sm:$0xff]   ;;  %v223_v7 = vld [vmem:[%s3305_s7 + $0x38] sm:$0xff]   ;;  %v227_v8 = vld [vmem:[%s3305_s7 + $0x80] sm:$0xff]  }
  0x17   : > { %204 = vst [vmem:[%s175_s8 + $0x10] sm:$0xff] %v203_v2   ;;  %v231_v9 = vld [vmem:[%s3305_s7 + $0x88] sm:$0xff]   ;;  %v235_v10 = vld [vmem:[%s3305_s7 + $0x90] sm:$0xff]   ;;  %v239_v11 = vld [vmem:[%s3305_s7 + $0x98] sm:$0xff]  }
  0x18   : > { %208 = vst [vmem:[%s175_s8 + $0x18] sm:$0xff] %v207_v3   ;;  %v243_v12 = vld [vmem:[%s3305_s7 + $0xa0] sm:$0xff]   ;;  %v247_v13 = vld [vmem:[%s3305_s7 + $0xa8] sm:$0xff]   ;;  %v251_v14 = vld [vmem:[%s3305_s7 + $0xb0] sm:$0xff]  }
  0x19   : > { %212 = vst [vmem:[%s175_s8 + $0x20] sm:$0xff] %v211_v4   ;;  %v255_v15 = vld [vmem:[%s3305_s7 + $0xb8] sm:$0xff]  }
  0x1a   : > { %216 = vst [vmem:[%s175_s8 + $0x28] sm:$0xff] %v215_v5  }
  0x1b   : > { %220 = vst [vmem:[%s175_s8 + $0x30] sm:$0xff] %v219_v6  }
  0x1c   : > { %224 = vst [vmem:[%s175_s8 + $0x38] sm:$0xff] %v223_v7  }
  0x1d   : > { %228 = vst [vmem:[%s175_s8 + $0x40] sm:$0xff] %v227_v8  }
  0x1e   : > { %232 = vst [vmem:[%s175_s8 + $0x48] sm:$0xff] %v231_v9  }
  0x1f   : > { %236 = vst [vmem:[%s175_s8 + $0x50] sm:$0xff] %v235_v10  }
  0x20   : > { %240 = vst [vmem:[%s175_s8 + $0x58] sm:$0xff] %v239_v11  }
  0x21   : > { %244 = vst [vmem:[%s175_s8 + $0x60] sm:$0xff] %v243_v12  }
  0x22   : > { %248 = vst [vmem:[%s175_s8 + $0x68] sm:$0xff] %v247_v13  }
  0x23   : > { %252 = vst [vmem:[%s175_s8 + $0x70] sm:$0xff] %v251_v14  }
  0x24   : > { %256 = vst [vmem:[%s175_s8 + $0x78] sm:$0xff] %v255_v15  }
  0x25 PF: > { %346 = sbr.rel (!%p3283_p5) target bundleno = 57 (0x39), region = 69  ;;  %s348_s9 = sand.u32 (%p3283_p5), 1, %s3210_s17  }
  0x26   : > { %s2620_s10 = sshll.u32 (%p3283_p5), %s3214_s18, 6  ;;  %s2541_s11 = sshll.u32 (%p3283_p5), %s348_s9, 7 }
  0x27   : > { %s3330_s14 = scalar_lea.vmem (%p3283_p5), %s5178_s2, %s2620_s10  ;;  %s350_s20 = scalar_lea.vmem (%p3283_p5), [#allocation3], %s2541_s11 }
  0x28   : > { %v370_v16 = vld [vmem:[%s3330_s14] sm:$0xff] (%p3283_p5)   ;;  %v374_v17 = vld [vmem:[%s3330_s14 + $0x8] sm:$0xff] (%p3283_p5)   ;;  %v378_v18 = vld [vmem:[%s3330_s14 + $0x10] sm:$0xff] (%p3283_p5)  }
  0x29   : > { %371 = vst [vmem:[%s350_s20] sm:$0xff] (%p3283_p5), %v370_v16   ;;  %v382_v19 = vld [vmem:[%s3330_s14 + $0x18] sm:$0xff] (%p3283_p5)   ;;  %v386_v20 = vld [vmem:[%s3330_s14 + $0x20] sm:$0xff] (%p3283_p5)   ;;  %v390_v21 = vld [vmem:[%s3330_s14 + $0x28] sm:$0xff] (%p3283_p5)  }
  0x2a   : > { %375 = vst [vmem:[%s350_s20 + $0x8] sm:$0xff] %v374_v17   ;;  %v394_v22 = vld [vmem:[%s3330_s14 + $0x30] sm:$0xff]   ;;  %v398_v23 = vld [vmem:[%s3330_s14 + $0x38] sm:$0xff]   ;;  %v402_v24 = vld [vmem:[%s3330_s14 + $0x80] sm:$0xff]  }
  0x2b   : > { %379 = vst [vmem:[%s350_s20 + $0x10] sm:$0xff] %v378_v18   ;;  %v406_v25 = vld [vmem:[%s3330_s14 + $0x88] sm:$0xff]   ;;  %v410_v26 = vld [vmem:[%s3330_s14 + $0x90] sm:$0xff]   ;;  %v414_v27 = vld [vmem:[%s3330_s14 + $0x98] sm:$0xff]  }
  0x2c   : > { %383 = vst [vmem:[%s350_s20 + $0x18] sm:$0xff] %v382_v19   ;;  %v418_v28 = vld [vmem:[%s3330_s14 + $0xa0] sm:$0xff]   ;;  %v422_v29 = vld [vmem:[%s3330_s14 + $0xa8] sm:$0xff]   ;;  %v426_v30 = vld [vmem:[%s3330_s14 + $0xb0] sm:$0xff]  }
  0x2d   : > { %387 = vst [vmem:[%s350_s20 + $0x20] sm:$0xff] %v386_v20   ;;  %v430_v31 = vld [vmem:[%s3330_s14 + $0xb8] sm:$0xff]  }
  0x2e   : > { %391 = vst [vmem:[%s350_s20 + $0x28] sm:$0xff] %v390_v21  }
  0x2f   : > { %395 = vst [vmem:[%s350_s20 + $0x30] sm:$0xff] %v394_v22  }
  0x30   : > { %399 = vst [vmem:[%s350_s20 + $0x38] sm:$0xff] %v398_v23  }
  0x31   : > { %403 = vst [vmem:[%s350_s20 + $0x40] sm:$0xff] %v402_v24  }
  0x32   : > { %407 = vst [vmem:[%s350_s20 + $0x48] sm:$0xff] %v406_v25  }
  0x33   : > { %411 = vst [vmem:[%s350_s20 + $0x50] sm:$0xff] %v410_v26  }
  0x34   : > { %415 = vst [vmem:[%s350_s20 + $0x58] sm:$0xff] %v414_v27  }
  0x35   : > { %419 = vst [vmem:[%s350_s20 + $0x60] sm:$0xff] %v418_v28  }
  0x36   : > { %423 = vst [vmem:[%s350_s20 + $0x68] sm:$0xff] %v422_v29  }
  0x37   : > { %427 = vst [vmem:[%s350_s20 + $0x70] sm:$0xff] %v426_v30  }
  0x38   : > { %431 = vst [vmem:[%s350_s20 + $0x78] sm:$0xff] %v430_v31  }
  0x39 PF: > { %p2544_p10 = scmp.ge.s32.totalorder %s3214_s18, 1  ;;  %p520_p11 = scmp.lt.s32.totalorder %s3214_s18, 3 }
  0x3b   : > { %p521_p12 = pnand %p2544_p10, %p520_p11 }
  0x3d   : > { %524 = sbr.rel (%p521_p12) target bundleno = 799 (0x31f), region = 110 }
  0x42   : > { %s2548_s22 = sshll.u32 %s3265_s19, 4  ;;  %s527_s30 = sand.u32 1, %s3206_s16  }
  0x43   : > { %p569_p13 = scmp.lt.s32.totalorder %s2548_s22, 31  ;;  %s3415_s5 = sshll.u32 %s527_s30, 7 }
  0x44   : > { %s3434_s6 = scalar_lea.vmem [#allocation2], %s3415_s5  ;;  %s5104_s8 = scalar_lea.vmem [#allocation3], %s3415_s5 }
  0x45   : > { %s5315_s22 = smov (!%p569_p13, %s2548_s22), 31  ;;  %v2663_v25 = vld [vmem:[%s3434_s6] sm:$0xff]   ;;  %s5123_s9 = scalar_lea.vmem [#allocation4], %s3415_s5 }
  0x46   : > { %s2549_s23 = sshll.u32 %s5315_s22, 2  ;;  %v3437_v27 = vunpack.c.l.bf16 %v2663_v25  ;;  %v3439_v28 = vunpack.c.h.bf16 %v2663_v25  ;;  %v2802_v25 = vld [vmem:[%s3434_s6 + $0x30] sm:$0xff]   ;;  %s2629_s5 = sshll.u32 %s3265_s19, 7 }
  0x47   : > { %s3354_s29 = scalar_lea.vmem %s5176_s0, %s2549_s23  ;;  %s2433_s12 = scalar_lea.hbm %s5180_s4, %s2629_s5 }
  0x48   : > { %v2791_v32 = vld [vmem:[%s3354_s29 + $0x10] sm:$0xff]   ;;  %v2790_v33 = vld [vmem:[%s3354_s29 + $0x8] sm:$0xff]   ;;  %v2631_v34 = vld [vmem:[%s3354_s29] sm:$0xff]   ;;  %s2434_s13 = sshll.u32 %s5123_s9, 4  ;;  %s2436_s14 = sshll.u32 %s2433_s12, 4  ;;  %s2435_s13 = int_to_ptr.vmem [resolvable:$true] %s2434_s13  ;;  %s2437_s14 = int_to_ptr.hbm [resolvable:$true] %s2436_s14 }
  0x49   : > { %v3359_v35 = vunpack.c.l.bf16 %v2791_v32  ;;  %v3361_v36 = vunpack.c.h.bf16 %v2791_v32  ;;  %v3363_v37 = vunpack.c.l.bf16 %v2790_v33  ;;  %v3365_v38 = vunpack.c.h.bf16 %v2790_v33  ;;  %v2793_v49 = vld [vmem:[%s3354_s29 + $0x20] sm:$0xff]   ;;  %v2792_v51 = vld [vmem:[%s3354_s29 + $0x18] sm:$0xff]   ;;  %v2794_v2 = vld [vmem:[%s3354_s29 + $0x28] sm:$0xff]   ;;  %s2422_s20 = scalar_lea.sflag [#allocation5], %s527_s30  ;;  %s3166_s22 = sshra.s32 %s2437_s14, 4  ;;  %s3167_s22 = int_to_ptr.hbm [resolvable:$true] %s3166_s22 }
  0x4a   : > { %v3367_v39 = vunpack.c.l.bf16 %v2631_v34  ;;  %v3369_v40 = vunpack.c.h.bf16 %v2631_v34  ;;  %v3385_v55 = vunpack.c.l.bf16 %v2793_v49  ;;  %v3387_v56 = vunpack.c.h.bf16 %v2793_v49  ;;  %v2796_v11 = vld [vmem:[%s3354_s29 + $0x38] sm:$0xff]   ;;  %v2795_v13 = vld [vmem:[%s3354_s29 + $0x30] sm:$0xff]   ;;  %s3168_s19 = scalar_lea.hbm %s3167_s22, 128  ;;  %s3172_s28 = scalar_lea.hbm %s5180_s4, 256 }
  0x4b   : > { %v613_v41 = vmul.f32 %v3359_v35, %v3359_v35  ;;  %v614_v42 = vmul.f32 %v3361_v36, %v3361_v36  ;;  %v611_v43 = vmul.f32 %v3363_v37, %v3363_v37  ;;  %v612_v44 = vmul.f32 %v3365_v38, %v3365_v38  ;;  %p3169_p0 = scmp.ne.s32.totalorder %s3167_s22, %s3168_s19  ;;  %p3173_p3 = scmp.lt.s32.totalorder %s3167_s22, %s5180_s4 }
  0x4c   : > { %v609_v45 = vmul.f32 %v3367_v39, %v3367_v39  ;;  %v610_v46 = vmul.f32 %v3369_v40, %v3369_v40  ;;  %v3389_v57 = vunpack.c.l.bf16 %v2792_v51  ;;  %v3391_v58 = vunpack.c.h.bf16 %v2792_v51  ;;  %p3174_p4 = scmp.lt.s32.totalorder %s3172_s28, %s3168_s19 }
  0x4d   : > { %v627_v47 = vpack.c.bf16 %v614_v42, %v613_v41  ;;  %v626_v48 = vpack.c.bf16 %v612_v44, %v611_v43  ;;  %v617_v59 = vmul.f32 %v3385_v55, %v3385_v55  ;;  %v618_v60 = vmul.f32 %v3387_v56, %v3387_v56  ;;  %v2797_v42 = vld [vmem:[%s3434_s6 + $0x8] sm:$0xff]   ;;  %v2798_v43 = vld [vmem:[%s3434_s6 + $0x10] sm:$0xff]   ;;  %p3170_p1 = pnand %p3169_p0, %p3287_p6 }
  0x4e   : > { %v625_v50 = vpack.c.bf16 %v610_v46, %v609_v45  ;;  %v615_v63 = vmul.f32 %v3389_v57, %v3389_v57  ;;  %v616_v0 = vmul.f32 %v3391_v58, %v3391_v58  ;;  %v3402_v5 = vunpack.c.l.bf16 %v2794_v2  ;;  %p3175_p5 = por %p3174_p4, %p3173_p3 }
  0x4f   : > { %v637_v52 = vunpack.c.l.bf16 %v627_v47  ;;  %v635_v53 = vunpack.c.l.bf16 %v626_v48  ;;  %v638_v61 = vunpack.c.h.bf16 %v627_v47  ;;  %v636_v62 = vunpack.c.h.bf16 %v626_v48  ;;  %p3171_p2 = pneg %p3170_p1 }
  0x50   : > { %v633_v54 = vunpack.c.l.bf16 %v625_v50  ;;  %v634_v1 = vunpack.c.h.bf16 %v625_v50  ;;  %v629_v3 = vpack.c.bf16 %v618_v60, %v617_v59  ;;  %v628_v4 = vpack.c.bf16 %v616_v0, %v615_v63  ;;  %v2799_v59 = vld [vmem:[%s3434_s6 + $0x18] sm:$0xff]  }
  0x51   : > { %657 = vadd.xlane.f32.xlu2 %v637_v52  ;;  %653 = vadd.xlane.f32.xlu1 %v635_v53  ;;  %v3404_v6 = vunpack.c.h.bf16 %v2794_v2  ;;  %v619_v9 = vmul.f32 %v3402_v5, %v3402_v5  ;;  %v3417_v14 = vunpack.c.l.bf16 %v2796_v11  ;;  %v3419_v15 = vunpack.c.h.bf16 %v2796_v11  ;;  %p3176_p7 = pnand %p3175_p5, %p3171_p2 }
  0x52   : > { %649 = vadd.xlane.f32.xlu0 %v633_v54  ;;  %v641_v7 = vunpack.c.l.bf16 %v629_v3  ;;  %v640_v8 = vunpack.c.h.bf16 %v628_v4  ;;  %v639_v12 = vunpack.c.l.bf16 %v628_v4  ;;  %v3421_v17 = vunpack.c.l.bf16 %v2795_v13 }
  0x53   : > { %v620_v10 = vmul.f32 %v3404_v6, %v3404_v6  ;;  %v3423_v18 = vunpack.c.h.bf16 %v2795_v13  ;;  %v623_v19 = vmul.f32 %v3417_v14, %v3417_v14  ;;  %v624_v20 = vmul.f32 %v3419_v15, %v3419_v15 }
  0x54   : > { %v621_v23 = vmul.f32 %v3421_v17, %v3421_v17  ;;  %v642_v26 = vunpack.c.h.bf16 %v629_v3  ;;  %v921_v31 = vmul.f32 %v3437_v27, %v3367_v39  ;;  %v922_v32 = vmul.f32 %v3439_v28, %v3369_v40 }
  0x55   : > { %v630_v16 = vpack.c.bf16 %v620_v10, %v619_v9  ;;  %v622_v24 = vmul.f32 %v3423_v18, %v3423_v18  ;;  %v632_v29 = vpack.c.bf16 %v624_v20, %v623_v19  ;;  %v3447_v45 = vunpack.c.l.bf16 %v2797_v42  ;;  %v2801_v9 = vld [vmem:[%s3434_s6 + $0x28] sm:$0xff]  }
  0x56   : > { %v937_v44 = vpack.c.bf16 %v922_v32, %v921_v31  ;;  %v3449_v46 = vunpack.c.h.bf16 %v2797_v42  ;;  %v3451_v47 = vunpack.c.l.bf16 %v2798_v43  ;;  %v3453_v48 = vunpack.c.h.bf16 %v2798_v43 }
  0x57   : > { %v644_v21 = vunpack.c.h.bf16 %v630_v16  ;;  %v643_v22 = vunpack.c.l.bf16 %v630_v16  ;;  %v631_v30 = vpack.c.bf16 %v622_v24, %v621_v23  ;;  %v647_v33 = vunpack.c.l.bf16 %v632_v29 }
  0x58   : > { %v946_v49 = vunpack.c.h.bf16 %v937_v44  ;;  %v945_v50 = vunpack.c.l.bf16 %v937_v44  ;;  %v923_v51 = vmul.f32 %v3447_v45, %v3363_v37  ;;  %v924_v52 = vmul.f32 %v3449_v46, %v3365_v38  ;;  %v2803_v44 = vld [vmem:[%s3434_s6 + $0x38] sm:$0xff]  }
  0x59   : > { %659 = vadd.xlane.f32.xlu2 %v638_v61  ;;  %655 = vadd.xlane.f32.xlu1 %v636_v62  ;;  %v646_v34 = vunpack.c.h.bf16 %v631_v30  ;;  %v645_v41 = vunpack.c.l.bf16 %v631_v30  ;;  %v925_v53 = vmul.f32 %v3451_v47, %v3359_v35  ;;  %v926_v54 = vmul.f32 %v3453_v48, %v3361_v36 }
  0x5a   : > { %651 = vadd.xlane.f32.xlu0 %v634_v1  ;;  %v648_v60 = vunpack.c.h.bf16 %v632_v29  ;;  %v3464_v61 = vunpack.c.l.bf16 %v2799_v59  ;;  %v3466_v62 = vunpack.c.h.bf16 %v2799_v59  ;;  %v938_v63 = vpack.c.bf16 %v924_v52, %v923_v51 }
  0x5b   : > { %v939_v0 = vpack.c.bf16 %v926_v54, %v925_v53  ;;  %v3478_v13 = vunpack.c.l.bf16 %v2801_v9  ;;  %v3480_v16 = vunpack.c.h.bf16 %v2801_v9  ;;  %v3491_v29 = vunpack.c.l.bf16 %v2802_v25 }
  0x5c   : > { %v927_v1 = vmul.f32 %v3464_v61, %v3389_v57  ;;  %v928_v2 = vmul.f32 %v3466_v62, %v3391_v58  ;;  %v948_v4 = vunpack.c.h.bf16 %v938_v63  ;;  %v3493_v30 = vunpack.c.h.bf16 %v2802_v25 }
  0x5d   : > { %v949_v3 = vunpack.c.l.bf16 %v939_v0  ;;  %v931_v23 = vmul.f32 %v3478_v13, %v3402_v5  ;;  %v932_v24 = vmul.f32 %v3480_v16, %v3404_v6  ;;  %v3502_v51 = vunpack.c.h.bf16 %v2803_v44 }
  0x5e   : > { %v940_v10 = vpack.c.bf16 %v928_v2, %v927_v1 }
  0x5f   : > { %v942_v32 = vpack.c.bf16 %v932_v24, %v931_v23  ;;  %v936_v59 = vmul.f32 %v3502_v51, %v3419_v15 }
  0x60   : > { %v952_v19 = vunpack.c.h.bf16 %v940_v10  ;;  %v951_v20 = vunpack.c.l.bf16 %v940_v10 }
  0x61   : > { %665 = vadd.xlane.f32.xlu2 %v641_v7  ;;  %663 = vadd.xlane.f32.xlu1 %v640_v8  ;;  %v947_v7 = vunpack.c.l.bf16 %v938_v63  ;;  %v2800_v8 = vld [vmem:[%s3434_s6 + $0x20] sm:$0xff]   ;;  %v994_v63 = vmul.f32 %v3439_v28, %v3439_v28 }
  0x62   : > { %661 = vadd.xlane.f32.xlu0 %v639_v12  ;;  %v3474_v11 = vunpack.c.l.bf16 %v2800_v8  ;;  %v3476_v12 = vunpack.c.h.bf16 %v2800_v8 }
  0x64   : > { %v1001_v24 = vmul.f32 %v3474_v11, %v3474_v11 }
  0x69   : > { %671 = vadd.xlane.f32.xlu2 %v644_v21  ;;  %669 = vadd.xlane.f32.xlu1 %v643_v22  ;;  %v929_v21 = vmul.f32 %v3474_v11, %v3385_v55  ;;  %v930_v22 = vmul.f32 %v3476_v12, %v3387_v56  ;;  %v1005_v11 = vmul.f32 %v3491_v29, %v3491_v29 }
  0x6a   : > { %667 = vadd.xlane.f32.xlu0 %v642_v26  ;;  %v950_v26 = vunpack.c.h.bf16 %v939_v0  ;;  %v956_v0 = vunpack.c.h.bf16 %v942_v32 }
  0x6b   : > { %v941_v31 = vpack.c.bf16 %v930_v22, %v929_v21 }
  0x6d   : > { %v954_v42 = vunpack.c.h.bf16 %v941_v31  ;;  %v953_v43 = vunpack.c.l.bf16 %v941_v31 }
  0x71   : > { %677 = vadd.xlane.f32.xlu2 %v647_v33  ;;  %675 = vadd.xlane.f32.xlu1 %v646_v34  ;;  %v933_v33 = vmul.f32 %v3491_v29, %v3421_v17  ;;  %v934_v34 = vmul.f32 %v3493_v30, %v3423_v18 }
  0x72   : > { %673 = vadd.xlane.f32.xlu0 %v645_v41  ;;  %v955_v41 = vunpack.c.l.bf16 %v942_v32  ;;  %v1003_v32 = vmul.f32 %v3478_v13, %v3478_v13 }
  0x79   : > { %963 = vadd.xlane.f32.xlu2 %v946_v49  ;;  %961 = vadd.xlane.f32.xlu1 %v945_v50  ;;  %v943_v49 = vpack.c.bf16 %v934_v34, %v933_v33  ;;  %v3500_v50 = vunpack.c.l.bf16 %v2803_v44  ;;  %v1004_v33 = vmul.f32 %v3480_v16, %v3480_v16  ;;  %v2808_v34 = vld [vmem:[%s3434_s6 + $0x60] sm:$0xff]  }
  0x7a   : > { %679 = vadd.xlane.f32.xlu0 %v648_v60  ;;  %v993_v60 = vmul.f32 %v3437_v27, %v3437_v27 }
  0x7b   : > { %v958_v52 = vunpack.c.h.bf16 %v943_v49  ;;  %v957_v53 = vunpack.c.l.bf16 %v943_v49  ;;  %v935_v54 = vmul.f32 %v3500_v50, %v3417_v14  ;;  %v1014_v13 = vpack.c.bf16 %v1004_v33, %v1003_v32  ;;  %v2809_v32 = vld [vmem:[%s3434_s6 + $0x68] sm:$0xff]  }
  0x7c   : > { %v1009_v2 = vpack.c.bf16 %v994_v63, %v993_v60  ;;  %v1008_v60 = vmul.f32 %v3502_v51, %v3502_v51 }
  0x7d   : > { %v944_v1 = vpack.c.bf16 %v936_v59, %v935_v54  ;;  %v2804_v54 = vld [vmem:[%s3434_s6 + $0x40] sm:$0xff]   ;;  %v1007_v59 = vmul.f32 %v3500_v50, %v3500_v50 }
  0x7e   : > { %v1018_v21 = vunpack.c.h.bf16 %v1009_v2 }
  0x7f   : > { %v960_v8 = vunpack.c.h.bf16 %v944_v1  ;;  %v959_v9 = vunpack.c.l.bf16 %v944_v1 }
  0x81   : > { %969 = vadd.xlane.f32.xlu2 %v949_v3  ;;  %967 = vadd.xlane.f32.xlu1 %v948_v4  ;;  %v995_v3 = vmul.f32 %v3447_v45, %v3447_v45  ;;  %v996_v4 = vmul.f32 %v3449_v46, %v3449_v46  ;;  %v999_v45 = vmul.f32 %v3464_v61, %v3464_v61 }
  0x82   : > { %965 = vadd.xlane.f32.xlu0 %v947_v7  ;;  %v1017_v7 = vunpack.c.l.bf16 %v1009_v2  ;;  %v1000_v46 = vmul.f32 %v3466_v62, %v3466_v62 }
  0x83   : > { %v1010_v10 = vpack.c.bf16 %v996_v4, %v995_v3  ;;  %v3557_v3 = vunpack.c.l.bf16 %v2804_v54  ;;  %v3559_v4 = vunpack.c.h.bf16 %v2804_v54 }
  0x84   : > { %v1012_v23 = vpack.c.bf16 %v1000_v46, %v999_v45  ;;  %v2806_v45 = vld [vmem:[%s3434_s6 + $0x50] sm:$0xff]  }
  0x85   : > { %v1020_v27 = vunpack.c.h.bf16 %v1010_v10  ;;  %v1019_v28 = vunpack.c.l.bf16 %v1010_v10 }
  0x89   : > { %975 = vadd.xlane.f32.xlu2 %v952_v19  ;;  %973 = vadd.xlane.f32.xlu1 %v951_v20  ;;  %v997_v19 = vmul.f32 %v3451_v47, %v3451_v47  ;;  %v998_v20 = vmul.f32 %v3453_v48, %v3453_v48  ;;  %v1002_v47 = vmul.f32 %v3476_v12, %v3476_v12  ;;  %v1023_v48 = vunpack.c.l.bf16 %v1012_v23 }
  0x8a   : > { %971 = vadd.xlane.f32.xlu0 %v950_v26  ;;  %v1006_v12 = vmul.f32 %v3493_v30, %v3493_v30  ;;  %v1028_v30 = vunpack.c.h.bf16 %v1014_v13 }
  0x8b   : > { %v1011_v22 = vpack.c.bf16 %v998_v20, %v997_v19  ;;  %v1013_v61 = vpack.c.bf16 %v1002_v47, %v1001_v24  ;;  %v1427_v19 = vmul.f32 %v3559_v4, %v3559_v4 }
  0x8c   : > { %v1015_v44 = vpack.c.bf16 %v1006_v12, %v1005_v11  ;;  %v3591_v11 = vunpack.c.l.bf16 %v2809_v32  ;;  %v3593_v12 = vunpack.c.h.bf16 %v2809_v32 }
  0x8d   : > { %v1022_v25 = vunpack.c.h.bf16 %v1011_v22  ;;  %v1021_v26 = vunpack.c.l.bf16 %v1011_v22  ;;  %v1026_v62 = vunpack.c.h.bf16 %v1013_v61  ;;  %v1025_v31 = vunpack.c.l.bf16 %v1013_v61 }
  0x8e   : > { %v1029_v49 = vunpack.c.l.bf16 %v1015_v44  ;;  %v1030_v20 = vunpack.c.h.bf16 %v1015_v44  ;;  %v3576_v22 = vunpack.c.l.bf16 %v2806_v45 }
  0x90   : > { %v1430_v61 = vmul.f32 %v3576_v22, %v3576_v22 }
  0x91   : > { %981 = vadd.xlane.f32.xlu2 %v955_v41  ;;  %979 = vadd.xlane.f32.xlu1 %v954_v42  ;;  %v1024_v41 = vunpack.c.h.bf16 %v1012_v23  ;;  %v3537_v42 = vunpack.c.l.bf16 %v2808_v34  ;;  %v3578_v23 = vunpack.c.h.bf16 %v2806_v45  ;;  %v2807_v45 = vld [vmem:[%s3434_s6 + $0x58] sm:$0xff]  }
  0x92   : > { %977 = vadd.xlane.f32.xlu0 %v953_v43  ;;  %v3539_v43 = vunpack.c.h.bf16 %v2808_v34 }
  0x93   : > { %v1434_v16 = vmul.f32 %v3537_v42, %v3537_v42 }
  0x94   : > { %v1435_v29 = vmul.f32 %v3539_v43, %v3539_v43 }
  0x96   : > { %v1446_v63 = vpack.c.bf16 %v1435_v29, %v1434_v16  ;;  %v1436_v29 = vmul.f32 %v3591_v11, %v3591_v11 }
  0x98   : > { %v1459_v51 = vunpack.c.h.bf16 %v1446_v63 }
  0x99   : > { %987 = vadd.xlane.f32.xlu2 %v958_v52  ;;  %985 = vadd.xlane.f32.xlu1 %v957_v53  ;;  %v1027_v52 = vunpack.c.l.bf16 %v1014_v13  ;;  %v2810_v53 = vld [vmem:[%s3434_s6 + $0x70] sm:$0xff]  }
  0x9a   : > { %983 = vadd.xlane.f32.xlu0 %v956_v0  ;;  %v3551_v0 = vpack.c.bf16 %v1008_v60, %v1007_v59  ;;  %v3553_v1 = vunpack.c.l.bf16 %v2810_v53  ;;  %v3555_v2 = vunpack.c.h.bf16 %v2810_v53 }
  0x9c   : > { %v1438_v10 = vmul.f32 %v3553_v1, %v3553_v1 }
  0xa1   : > { %1033 = vadd.xlane.f32.xlu2 %v1017_v7  ;;  %991 = vadd.xlane.f32.xlu1 %v960_v8  ;;  %v1458_v8 = vunpack.c.l.bf16 %v1446_v63 }
  0xa2   : > { %989 = vadd.xlane.f32.xlu0 %v959_v9 }
  0xa9   : > { %1039 = vadd.xlane.f32.xlu2 %v1020_v27  ;;  %1037 = vadd.xlane.f32.xlu1 %v1019_v28  ;;  %v1439_v27 = vmul.f32 %v3555_v2, %v3555_v2  ;;  %v1426_v28 = vmul.f32 %v3557_v3, %v3557_v3 }
  0xaa   : > { %1035 = vadd.xlane.f32.xlu0 %v1018_v21 }
  0xab   : > { %v1448_v46 = vpack.c.bf16 %v1439_v27, %v1438_v10  ;;  %v1442_v21 = vpack.c.bf16 %v1427_v19, %v1426_v28  ;;  %v1032_v28 = vunpack.c.h.bf16 %v3551_v0  ;;  %v1031_v19 = vunpack.c.l.bf16 %v3551_v0 }
  0xb1   : > { %1045 = vadd.xlane.f32.xlu2 %v1023_v48  ;;  %1043 = vadd.xlane.f32.xlu1 %v1022_v25  ;;  %v1450_v25 = vunpack.c.l.bf16 %v1442_v21 }
  0xb2   : > { %1041 = vadd.xlane.f32.xlu0 %v1021_v26  ;;  %v1463_v26 = vunpack.c.h.bf16 %v1448_v46 }
  0xb9   : > { %1051 = vadd.xlane.f32.xlu2 %v1026_v62  ;;  %1049 = vadd.xlane.f32.xlu1 %v1025_v31  ;;  %v1431_v62 = vmul.f32 %v3578_v23, %v3578_v23  ;;  %v1462_v31 = vunpack.c.l.bf16 %v1448_v46 }
  0xba   : > { %1047 = vadd.xlane.f32.xlu0 %v1024_v41 }
  0xbb   : > { %v1444_v33 = vpack.c.bf16 %v1431_v62, %v1430_v61  ;;  %v3630_v61 = vunpack.c.h.bf16 %v2807_v45 }
  0xbd   : > { %v1455_v44 = vunpack.c.h.bf16 %v1444_v33  ;;  %v1454_v16 = vunpack.c.l.bf16 %v1444_v33 }
  0xc1   : > { %1057 = vadd.xlane.f32.xlu2 %v1029_v49  ;;  %1055 = vadd.xlane.f32.xlu1 %v1028_v30  ;;  %v1437_v49 = vmul.f32 %v3593_v12, %v3593_v12  ;;  %v2811_v30 = vld [vmem:[%s3434_s6 + $0x78] sm:$0xff]  }
  0xc2   : > { %1053 = vadd.xlane.f32.xlu0 %v1027_v52  ;;  %v1451_v52 = vunpack.c.h.bf16 %v1442_v21  ;;  %v3606_v53 = vunpack.c.l.bf16 %v2811_v30  ;;  %v3608_v54 = vunpack.c.h.bf16 %v2811_v30 }
  0xc3   : > { %v1447_v59 = vpack.c.bf16 %v1437_v49, %v1436_v29  ;;  %v1433_v49 = vmul.f32 %v3630_v61, %v3630_v61 }
  0xc4   : > { %v3561_v7 = vpop.xlane.xlu2 %657  ;;  %v3563_v50 = vpop.xlane.xlu1 %653 }
  0xc5   : > { %5212 = vst [vmem:[#allocation7_spill] sm:$0xff] %v3563_v50  ;;  %v3565_v9 = vpop.xlane.xlu0 %649  ;;  %v1460_v27 = vunpack.c.l.bf16 %v1447_v59  ;;  %v1461_v30 = vunpack.c.h.bf16 %v1447_v59  ;;  %vm736_vm9 = vcmp.eq.f32.partialorder %v3561_v7, inf  ;;  %vm738_vm12 = vcmp.eq.f32.partialorder %v3561_v7, 0.0 }
  0xc6   : > { %2896 = vrsqrt.f32 %v3565_v9  ;;  %vm688_vm0 = vcmp.eq.f32.partialorder %v3565_v9, inf  ;;  %vm690_vm1 = vcmp.eq.f32.partialorder %v3565_v9, 0.0 }
  0xc7   : > { %2898 = vrsqrt.f32 %v3561_v7 }
  0xc8   : > { %2900 = vrsqrt.f32 %v3563_v50 }
  0xc9   : > { %1484 = vadd.xlane.f32.xlu2 %v1459_v51  ;;  %1482 = vadd.xlane.f32.xlu1 %v1458_v8  ;;  %v1440_v51 = vmul.f32 %v3606_v53, %v3606_v53  ;;  %v1441_v8 = vmul.f32 %v3608_v54, %v3608_v54 }
  0xca   : > { %1059 = vadd.xlane.f32.xlu0 %v1030_v20  ;;  %v2805_v20 = vld [vmem:[%s3434_s6 + $0x48] sm:$0xff]  }
  0xcb   : > { %v1449_v46 = vpack.c.bf16 %v1441_v8, %v1440_v51  ;;  %v3624_v21 = vunpack.c.l.bf16 %v2805_v20 }
  0xcc   : > { %v3580_v24 = vpop.xlane.xlu2 %659  ;;  %v3582_v47 = vpop.xlane.xlu1 %655 }
  0xcd   : > { %5213 = vst [vmem:[#allocation8_spill] sm:$0xff] %v3582_v47  ;;  %v3584_v48 = vpop.xlane.xlu0 %651  ;;  %v1465_v32 = vunpack.c.h.bf16 %v1449_v46  ;;  %v1464_v0 = vunpack.c.l.bf16 %v1449_v46  ;;  %2902 = vrsqrt.f32 %v3580_v24  ;;  %vm748_vm11 = vcmp.eq.f32.partialorder %v3580_v24, inf }
  0xce   : > { %vm700_vm8 = vcmp.eq.f32.partialorder %v3584_v48, inf  ;;  %vm702_vm10 = vcmp.eq.f32.partialorder %v3584_v48, 0.0  ;;  %vm750_vm13 = vcmp.eq.f32.partialorder %v3580_v24, 0.0 }
  0xd1   : > { %1466 = vadd.xlane.f32.xlu2 %v1450_v25  ;;  %1492 = vadd.xlane.f32.xlu1 %v1463_v26  ;;  %v3626_v25 = vunpack.c.h.bf16 %v2805_v20  ;;  %v3628_v26 = vunpack.c.l.bf16 %v2807_v45 }
  0xd2   : > { %1490 = vadd.xlane.f32.xlu0 %v1462_v31 }
  0xd3   : > { %v1432_v29 = vmul.f32 %v3628_v26, %v3628_v26 }
  0xd4   : > { %v3595_v34 = vpop.xlane.xlu2 %665  ;;  %v3597_v41 = vpop.xlane.xlu1 %663 }
  0xd5   : > { %5214 = vst [vmem:[#allocation9_spill] sm:$0xff] %v3597_v41  ;;  %v3599_v13 = vpop.xlane.xlu0 %661  ;;  %v1445_v51 = vpack.c.bf16 %v1433_v49, %v1432_v29  ;;  %2904 = vrsqrt.f32 %v3595_v34  ;;  %vm784_vm2 = vcmp.eq.f32.partialorder %v3595_v34, inf  ;;  %vm786_vm3 = vcmp.eq.f32.partialorder %v3595_v34, 0.0 }
  0xd6   : > { %5215 = vst [vmem:[#allocation10_spill] sm:$0xff] %v3599_v13  ;;  %2906 = vrsqrt.f32 %v3582_v47 }
  0xd7   : > { %v1456_v20 = vunpack.c.l.bf16 %v1445_v51  ;;  %2908 = vrsqrt.f32 %v3584_v48 }
  0xd8   : > { %2910 = vrsqrt.f32 %v3597_v41 }
  0xd9   : > { %1476 = vadd.xlane.f32.xlu2 %v1455_v44  ;;  %1474 = vadd.xlane.f32.xlu1 %v1454_v16  ;;  %v1428_v44 = vmul.f32 %v3624_v21, %v3624_v21  ;;  %v1429_v16 = vmul.f32 %v3626_v25, %v3626_v25 }
  0xda   : > { %1468 = vadd.xlane.f32.xlu0 %v1451_v52 }
  0xdb   : > { %v1443_v52 = vpack.c.bf16 %v1429_v16, %v1428_v44 }
  0xdc   : > { %v3610_v60 = vpop.xlane.xlu2 %671  ;;  %v3612_v63 = vpop.xlane.xlu1 %669 }
  0xdd   : > { %v3618_v10 = vpop.xlane.xlu0 %667  ;;  %v1453_v45 = vunpack.c.h.bf16 %v1443_v52  ;;  %v1452_v46 = vunpack.c.l.bf16 %v1443_v52  ;;  %v1367_v52 = vmul.f32 %v3555_v2, %v3423_v18  ;;  %vm808_vm14 = vcmp.eq.f32.partialorder %v3612_v63, inf }
  0xde   : > { %2912 = vrsqrt.f32 %v3618_v10  ;;  %vm796_vm4 = vcmp.eq.f32.partialorder %v3618_v10, inf  ;;  %vm798_vm5 = vcmp.eq.f32.partialorder %v3618_v10, 0.0  ;;  %vm810_vm15 = vcmp.eq.f32.partialorder %v3612_v63, 0.0 }
  0xdf   : > { %2914 = vrsqrt.f32 %v3599_v13 }
  0xe1   : > { %1486 = vadd.xlane.f32.xlu2 %v1460_v27  ;;  %1063 = vadd.xlane.f32.xlu1 %v1032_v28  ;;  %v1362_v28 = vmul.f32 %v3537_v42, %v3385_v55 }
  0xe2   : > { %1061 = vadd.xlane.f32.xlu0 %v1031_v19  ;;  %v1363_v19 = vmul.f32 %v3539_v43, %v3387_v56 }
  0xe4   : > { %v3632_v62 = vpop.xlane.xlu2 %677  ;;  %v3634_v31 = vpop.xlane.xlu1 %675 }
  0xe5   : > { %v3636_v33 = vpop.xlane.xlu0 %673 }
  0xe6   : > { %2916 = vrsqrt.f32 %v3636_v33  ;;  %vm832_vm6 = vcmp.eq.f32.partialorder %v3636_v33, inf  ;;  %vm834_vm7 = vcmp.eq.f32.partialorder %v3636_v33, 0.0 }
  0xe7   : > { %2918 = vrsqrt.f32 %v3610_v60 }
  0xe8   : > { %2920 = vrsqrt.f32 %v3612_v63 }
  0xe9   : > { %1496 = vadd.xlane.f32.xlu2 %v1465_v32  ;;  %1494 = vadd.xlane.f32.xlu1 %v1464_v0  ;;  %v3659_v32 = vpop.eup %2896  ;;  %v1374_v0 = vpack.c.bf16 %v1363_v19, %v1362_v28  ;;  %v1354_v28 = vmul.f32 %v3557_v3, %v3367_v39  ;;  %v1355_v19 = vmul.f32 %v3559_v4, %v3369_v40  ;;  %2922 = vrsqrt.f32 %v3632_v62 }
  0xea   : > { %1488 = vadd.xlane.f32.xlu0 %v1461_v30  ;;  %v3661_v44 = vpop.eup %2898  ;;  %v682_v55 = vmul.f32 %v3659_v32, %v3565_v9  ;;  %v1366_v30 = vmul.f32 %v3553_v1, %v3421_v17  ;;  %2924 = vrsqrt.f32 %v3634_v31 }
  0xeb   : > { %v3663_v16 = vpop.eup %2900  ;;  %v1387_v43 = vunpack.c.h.bf16 %v1374_v0  ;;  %v1386_v29 = vunpack.c.l.bf16 %v1374_v0  ;;  %v3690_v18 = vpack.c.bf16 %v1355_v19, %v1354_v28 }
  0xec   : > { %v3648_v8 = vpop.xlane.xlu2 %963  ;;  %v3650_v27 = vpop.xlane.xlu1 %961  ;;  %v683_v17 = vmul.f32 %v3659_v32, %v682_v55  ;;  %v1376_v39 = vpack.c.bf16 %v1367_v52, %v1366_v30  ;;  %v1358_v30 = vmul.f32 %v3576_v22, %v3359_v35  ;;  %v1359_v52 = vmul.f32 %v3578_v23, %v3361_v36 }
  0xed   : > { %5216 = vst [vmem:[#allocation11_spill] sm:$0xff] %v3648_v8  ;;  %v3657_v59 = vpop.xlane.xlu0 %679  ;;  %v3692_v40 = vpop.eup %2902 }
  0xee   : > { %5217 = vst [vmem:[#allocation12_spill] sm:$0xff] %v3650_v27  ;;  %v684_v3 = vmul.f32 0.5, %v683_v17  ;;  %v3698_v4 = vpop.eup %2904  ;;  %v1372_v36 = vpack.c.bf16 %v1359_v52, %v1358_v30  ;;  %2926 = vrsqrt.f32 %v3657_v59 }
  0xef   : > { %5218 = vst [vmem:[#allocation13_spill] sm:$0xff] %v3657_v59  ;;  %v3712_v28 = vpop.eup %2906 }
  0xf0   : > { %v685_v17 = vsub.f32 1.5, %v684_v3 }
  0xf1   : > { %1478 = vadd.xlane.f32.xlu2 %v1456_v20  ;;  %1472 = vadd.xlane.f32.xlu1 %v1453_v45  ;;  %v730_v20 = vmul.f32 %v3661_v44, %v3561_v7  ;;  %v706_v45 = vmul.f32 %v3663_v16, %v3563_v50 }
  0xf2   : > { %1470 = vadd.xlane.f32.xlu0 %v1452_v46  ;;  %v1457_v46 = vunpack.c.h.bf16 %v1445_v51 }
  0xf3   : > { %v731_v1 = vmul.f32 %v3661_v44, %v730_v20  ;;  %v707_v2 = vmul.f32 %v3663_v16, %v706_v45  ;;  %v1390_v45 = vunpack.c.l.bf16 %v1376_v39 }
  0xf4   : > { %v3668_v56 = vpop.xlane.xlu2 %969  ;;  %v3670_v42 = vpop.xlane.xlu1 %967 }
  0xf5   : > { %5219 = vst [vmem:[#allocation14_spill] sm:$0xff] %v3668_v56  ;;  %v3672_v49 = vpop.xlane.xlu0 %965  ;;  %v732_v19 = vmul.f32 0.5, %v731_v1  ;;  %v708_v20 = vmul.f32 0.5, %v707_v2  ;;  %v718_v1 = vmul.f32 %v3712_v28, %v3582_v47  ;;  %v686_v2 = vmul.f32 %v3659_v32, %v685_v17 }
  0xf6   : > { %5220 = vst [vmem:[#allocation15_spill] sm:$0xff] %v3670_v42  ;;  %v778_v42 = vmul.f32 %v3698_v4, %v3595_v34  ;;  %v1365_v32 = vmul.f32 %v3593_v12, %v3404_v6  ;;  %v1369_v17 = vmul.f32 %v3608_v54, %v3419_v15 }
  0xf7   : > { %5221 = vst [vmem:[#allocation16_spill] sm:$0xff] %v3672_v49  ;;  %v733_v23 = vsub.f32 1.5, %v732_v19  ;;  %v1364_v19 = vmul.f32 %v3591_v11, %v3402_v5  ;;  %v1379_v5 = vunpack.c.h.bf16 %v3690_v18  ;;  %v719_v12 = vmul.f32 %v3712_v28, %v718_v1 }
  0xf8   : > { %v687_v54 = vmul.f32 %v686_v2, %v3565_v9  ;;  %v691_v1 = vand.u32 2147483648, %v3565_v9 }
  0xf9   : > { %1412 = vadd.xlane.f32.xlu2 %v1387_v43  ;;  %1410 = vadd.xlane.f32.xlu1 %v1386_v29  ;;  %v1378_v43 = vunpack.c.l.bf16 %v3690_v18  ;;  %v1391_v29 = vunpack.c.h.bf16 %v1376_v39  ;;  %v709_v39 = vsub.f32 1.5, %v708_v20  ;;  %v1383_v20 = vunpack.c.h.bf16 %v1372_v36 }
  0xfa   : > { %1480 = vadd.xlane.f32.xlu0 %v1457_v46  ;;  %v3714_v46 = vpop.eup %2908  ;;  %v734_v11 = vmul.f32 %v3661_v44, %v733_v23  ;;  %v1375_v44 = vpack.c.bf16 %v1365_v32, %v1364_v19 }
  0xfb   : > { %v694_v49 = vmul.f32 %v3714_v46, %v3584_v48 }
  0xfc   : > { %v3701_v51 = vpop.xlane.xlu2 %975  ;;  %v3703_v0 = vpop.xlane.xlu1 %973  ;;  %v1388_v27 = vunpack.c.l.bf16 %v1375_v44 }
  0xfd   : > { %5222 = vst [vmem:[#allocation17_spill] sm:$0xff] %v3701_v51  ;;  %v3705_v55 = vpop.xlane.xlu0 %971  ;;  %v742_v51 = vmul.f32 %v3692_v40, %v3580_v24  ;;  %v695_v18 = vmul.f32 %v3714_v46, %v694_v49  ;;  %v720_v49 = vmul.f32 0.5, %v719_v12 }
  0xfe   : > { %5223 = vst [vmem:[#allocation18_spill] sm:$0xff] %v3703_v0  ;;  %v3720_v0 = vpop.eup %2910 }
  0xff   : > { %5224 = vst [vmem:[#allocation19_spill] sm:$0xff] %v3705_v55  ;;  %v3722_v35 = vpop.eup %2912  ;;  %v743_v3 = vmul.f32 %v3692_v40, %v742_v51 }
 0x100   : > { %v3725_v22 = vpop.eup %2914 }
 0x101   : > { %1394 = vadd.xlane.f32.xlu2 %v1378_v43  ;;  %1420 = vadd.xlane.f32.xlu1 %v1391_v29  ;;  %v779_v43 = vmul.f32 %v3698_v4, %v778_v42  ;;  %v790_v29 = vmul.f32 %v3722_v35, %v3618_v10  ;;  %v1368_v42 = vmul.f32 %v3606_v53, %v3417_v14  ;;  %v3758_v6 = vpop.eup %2916 }
 0x102   : > { %1418 = vadd.xlane.f32.xlu0 %v1390_v45  ;;  %v1382_v45 = vunpack.c.l.bf16 %v1372_v36  ;;  %v754_v56 = vmul.f32 %v3725_v22, %v3599_v13  ;;  %v3763_v15 = vpop.eup %2918  ;;  %v710_v53 = vmul.f32 %v3663_v16, %v709_v39  ;;  %v744_v36 = vmul.f32 0.5, %v743_v3 }
 0x103   : > { %v780_v14 = vmul.f32 0.5, %v779_v43  ;;  %v791_v55 = vmul.f32 %v3722_v35, %v790_v29  ;;  %v3770_v23 = vpack.c.bf16 %v1369_v17, %v1368_v42  ;;  %v3773_v43 = vpop.eup %2920  ;;  %v826_v2 = vmul.f32 %v3758_v6, %v3636_v33 }
 0x104   : > { %v3738_v30 = vpop.xlane.xlu2 %981  ;;  %v3740_v52 = vpop.xlane.xlu1 %979  ;;  %v755_v39 = vmul.f32 %v3725_v22, %v754_v56  ;;  %v814_v29 = vmul.f32 %v3763_v15, %v3610_v60  ;;  %v745_v32 = vsub.f32 1.5, %v744_v36  ;;  %v1357_v42 = vmul.f32 %v3626_v25, %v3365_v38 }
 0x105   : > { %5225 = vst [vmem:[#allocation20_spill] sm:$0xff] %v3738_v30  ;;  %v3746_v51 = vpop.xlane.xlu0 %977  ;;  %v766_v30 = vmul.f32 %v3720_v0, %v3597_v41  ;;  %v781_v3 = vsub.f32 1.5, %v780_v14  ;;  %v3783_v19 = vpop.eup %2922  ;;  %v696_v17 = vmul.f32 0.5, %v695_v18  ;;  %v1392_v12 = vunpack.c.l.bf16 %v3770_v23 }
 0x106   : > { %5226 = vst [vmem:[#allocation21_spill] sm:$0xff] %v3740_v52  ;;  %v1389_v14 = vunpack.c.h.bf16 %v1375_v44  ;;  %v756_v8 = vmul.f32 0.5, %v755_v39  ;;  %v802_v38 = vmul.f32 %v3773_v43, %v3612_v63  ;;  %v850_v25 = vmul.f32 %v3783_v19, %v3632_v62  ;;  %v3807_v18 = vpop.eup %2924 }
 0x107   : > { %5227 = vst [vmem:[#allocation22_spill] sm:$0xff] %v3746_v51  ;;  %v767_v16 = vmul.f32 %v3720_v0, %v766_v30  ;;  %v3815_v39 = vpop.eup %2926 }
 0x108   : > { %v757_v51 = vsub.f32 1.5, %v756_v8 }
 0x109   : > { %1404 = vadd.xlane.f32.xlu2 %v1383_v20  ;;  %1402 = vadd.xlane.f32.xlu1 %v1382_v45  ;;  %v792_v20 = vmul.f32 0.5, %v791_v55  ;;  %v1356_v45 = vmul.f32 %v3624_v21, %v3363_v37  ;;  %v689_v55 = vsel %vm688_vm0, %v3565_v9, %v687_v54  ;;  %v768_v36 = vmul.f32 0.5, %v767_v16 }
 0x10a   : > { %1396 = vadd.xlane.f32.xlu0 %v1379_v5  ;;  %v782_v37 = vmul.f32 %v3698_v4, %v781_v3  ;;  %v815_v21 = vmul.f32 %v3763_v15, %v814_v29  ;;  %v3810_v54 = vmul.f32 %v734_v11, %v3561_v7  ;;  %v3813_v16 = vmul.f32 %v710_v53, %v3563_v50 }
 0x10b   : > { %v793_v44 = vsub.f32 1.5, %v792_v20  ;;  %v1371_v4 = vpack.c.bf16 %v1357_v42, %v1356_v45  ;;  %v721_v3 = vsub.f32 1.5, %v720_v49  ;;  %v787_v29 = vand.u32 2147483648, %v3595_v34 }
 0x10c   : > { %v3785_v30 = vpop.xlane.xlu2 %987  ;;  %v3787_v56 = vpop.xlane.xlu1 %985  ;;  %5231 = vst [vmem:[#allocation26_spill] sm:$0xff] %v3813_v16  ;;  %v769_v11 = vsub.f32 1.5, %v768_v36  ;;  %v783_v53 = vmul.f32 %v782_v37, %v3595_v34  ;;  %v816_v20 = vmul.f32 0.5, %v815_v21  ;;  %v803_v45 = vmul.f32 %v3773_v43, %v802_v38 }
 0x10d   : > { %5228 = vst [vmem:[#allocation23_spill] sm:$0xff] %v3785_v30  ;;  %v3793_v5 = vpop.xlane.xlu0 %983  ;;  %v827_v30 = vmul.f32 %v3758_v6, %v826_v2  ;;  %v746_v2 = vmul.f32 %v3692_v40, %v745_v32  ;;  %v851_v40 = vmul.f32 %v3783_v19, %v850_v25  ;;  %v794_v49 = vmul.f32 %v3722_v35, %v793_v44 }
 0x10e   : > { %5229 = vst [vmem:[#allocation24_spill] sm:$0xff] %v3787_v56  ;;  %v697_v56 = vsub.f32 1.5, %v696_v17  ;;  %v838_v9 = vmul.f32 %v3807_v18, %v3634_v31  ;;  %v1381_v32 = vunpack.c.h.bf16 %v1371_v4  ;;  %v1380_v42 = vunpack.c.l.bf16 %v1371_v4 }
 0x10f   : > { %5230 = vst [vmem:[#allocation25_spill] sm:$0xff] %v3793_v5  ;;  %v692_v5 = vsel %vm690_vm1, %v691_v1, %v689_v55  ;;  %v828_v52 = vmul.f32 0.5, %v827_v30  ;;  %v862_v1 = vmul.f32 %v3815_v39, %v3657_v59  ;;  %v1360_v17 = vmul.f32 %v3628_v26, %v3389_v57 }
 0x110   : > { %v1361_v35 = vmul.f32 %v3630_v61, %v3391_v58  ;;  %v1393_v36 = vunpack.c.h.bf16 %v3770_v23  ;;  %v3845_v37 = vmul.f32 %v746_v2, %v3580_v24  ;;  %v770_v21 = vmul.f32 %v3720_v0, %v769_v11 }
 0x111   : > { %1422 = vadd.xlane.f32.xlu2 %v1392_v12  ;;  %1416 = vadd.xlane.f32.xlu1 %v1389_v14  ;;  %v722_v12 = vmul.f32 %v3712_v28, %v721_v3  ;;  %v698_v14 = vmul.f32 %v3714_v46, %v697_v56  ;;  %v829_v55 = vsub.f32 1.5, %v828_v52  ;;  %v817_v38 = vsub.f32 1.5, %v816_v20 }
 0x112   : > { %1414 = vadd.xlane.f32.xlu0 %v1388_v27  ;;  %v3848_v25 = vadd.f32 1e-10, %v692_v5  ;;  %v758_v57 = vmul.f32 %v3725_v22, %v757_v51  ;;  %v804_v26 = vmul.f32 0.5, %v803_v45  ;;  %v839_v58 = vmul.f32 %v3807_v18, %v838_v9 }
 0x113   : > { %v785_v61 = vsel %vm784_vm2, %v3595_v34, %v783_v53  ;;  %v795_v28 = vmul.f32 %v794_v49, %v3618_v10  ;;  %v852_v46 = vmul.f32 0.5, %v851_v40  ;;  %v863_v52 = vmul.f32 %v3815_v39, %v862_v1 }
 0x114   : > { %v3830_v8 = vpop.xlane.xlu2 %1033  ;;  %v3832_v27 = vpop.xlane.xlu1 %991  ;;  %v1373_v0 = vpack.c.bf16 %v1361_v35, %v1360_v17  ;;  %v3858_v23 = vmul.f32 %v722_v12, %v3582_v47  ;;  %v699_v22 = vmul.f32 %v698_v14, %v3584_v48  ;;  %v830_v51 = vmul.f32 %v3758_v6, %v829_v55 }
 0x115   : > { %5232 = vst [vmem:[#allocation27_spill] sm:$0xff] %v3832_v27  ;;  %v3834_v30 = vpop.xlane.xlu0 %989  ;;  %2928 = vrsqrt.f32 %v3830_v8  ;;  %v3866_v5 = vmul.f32 %v770_v21, %v3597_v41  ;;  %v818_v44 = vmul.f32 %v3763_v15, %v817_v38  ;;  %v799_v4 = vand.u32 2147483648, %v3618_v10 }
 0x116   : > { %5233 = vst [vmem:[#allocation28_spill] sm:$0xff] %v3834_v30  ;;  %v3872_v2 = vmul.f32 %v758_v57, %v3599_v13  ;;  %v805_v3 = vsub.f32 1.5, %v804_v26  ;;  %v840_v11 = vmul.f32 0.5, %v839_v58  ;;  %v788_v20 = vsel %vm786_vm3, %v787_v29, %v785_v61 }
 0x117   : > { %5234 = vst [vmem:[#allocation29_spill] sm:$0xff] %v3858_v23  ;;  %v853_v45 = vsub.f32 1.5, %v852_v46  ;;  %v864_v40 = vmul.f32 0.5, %v863_v52  ;;  %v1385_v15 = vunpack.c.h.bf16 %v1373_v0  ;;  %v797_v9 = vsel %vm796_vm4, %v3618_v10, %v795_v28 }
 0x118   : > { %5235 = vst [vmem:[#allocation30_spill] sm:$0xff] %v3866_v5  ;;  %v831_v1 = vmul.f32 %v830_v51, %v3636_v33  ;;  %v3890_v34 = vmul.f32 %v818_v44, %v3610_v60  ;;  %v3892_v29 = vadd.f32 1e-10, %v788_v20  ;;  %v806_v17 = vmul.f32 %v3773_v43, %v805_v3 }
 0x119   : > { %1400 = vadd.xlane.f32.xlu2 %v1381_v32  ;;  %1398 = vadd.xlane.f32.xlu1 %v1380_v42  ;;  %5236 = vst [vmem:[#allocation31_spill] sm:$0xff] %v3872_v2  ;;  %v1384_v42 = vunpack.c.l.bf16 %v1373_v0  ;;  %v841_v35 = vsub.f32 1.5, %v840_v11  ;;  %v835_v12 = vand.u32 2147483648, %v3636_v33  ;;  %v854_v14 = vmul.f32 %v3783_v19, %v853_v45 }
 0x11a   : > { %1424 = vadd.xlane.f32.xlu0 %v1393_v36  ;;  %v865_v55 = vsub.f32 1.5, %v864_v40  ;;  %v800_v36 = vsel %vm798_vm5, %v799_v4, %v797_v9  ;;  %v833_v43 = vsel %vm832_vm6, %v3636_v33, %v831_v1  ;;  %v701_v38 = vsel %vm700_vm8, %v3584_v48, %v699_v22 }
 0x11b   : > { %v3863_v56 = vpop.eup %2928  ;;  %v737_v10 = vsel %vm736_vm9, %v3561_v7, %v3810_v54  ;;  %v842_v57 = vmul.f32 %v3807_v18, %v841_v35  ;;  %v703_v61 = vand.u32 2147483648, %v3584_v48  ;;  %v749_v28 = vsel %vm748_vm11, %v3580_v24, %v3845_v37 }
 0x11c   : > { %v3874_v6 = vpop.xlane.xlu2 %1039  ;;  %v3876_v53 = vpop.xlane.xlu1 %1037  ;;  %v1066_v32 = vmul.f32 %v3863_v56, %v3830_v8  ;;  %v739_v46 = vand.u32 2147483648, %v3561_v7  ;;  %v866_v52 = vmul.f32 %v3815_v39, %v865_v55  ;;  %v836_v54 = vsel %vm834_vm7, %v835_v12, %v833_v43 }
 0x11d   : > { %5237 = vst [vmem:[#allocation32_spill] sm:$0xff] %v3874_v6  ;;  %v3880_v49 = vpop.xlane.xlu0 %1035  ;;  %2930 = vrsqrt.f32 %v3874_v6  ;;  %v751_v18 = vand.u32 2147483648, %v3580_v24  ;;  %v704_v44 = vsel %vm702_vm10, %v703_v61, %v701_v38  ;;  %v807_v39 = vmul.f32 %v806_v17, %v3612_v63 }
 0x11e   : > { %5238 = vst [vmem:[#allocation33_spill] sm:$0xff] %v3876_v53  ;;  %2932 = vrsqrt.f32 %v3880_v49  ;;  %v1067_v21 = vmul.f32 %v3863_v56, %v1066_v32  ;;  %v740_v37 = vsel %vm738_vm12, %v739_v46, %v737_v10  ;;  %v3942_v7 = vmul.f32 %v854_v14, %v3632_v62 }
 0x11f   : > { %2934 = vrsqrt.f32 %v3876_v53  ;;  %v752_v33 = vsel %vm750_vm13, %v751_v18, %v749_v28  ;;  %v843_v11 = vmul.f32 %v842_v57, %v3634_v31  ;;  %v3945_v48 = vadd.f32 1e-10, %v800_v36 }
 0x120   : > { %v1068_v51 = vmul.f32 0.5, %v1067_v21  ;;  %v3947_v20 = vadd.f32 1e-10, %v836_v54  ;;  %v3950_v24 = vmul.f32 %v866_v52, %v3657_v59  ;;  %v3954_v40 = vadd.f32 1e-10, %v704_v44 }
 0x121   : > { %1408 = vadd.xlane.f32.xlu1 %v1385_v15  ;;  %v3956_v15 = vadd.f32 1e-10, %v740_v37  ;;  %v1075_v1 = vand.u32 2147483648, %v3830_v8  ;;  %v3960_v32 = vadd.f32 1e-10, %v752_v33  ;;  %vm844_vm0 = vcmp.eq.f32.partialorder %v3634_v31, inf }
 0x122   : > { %1406 = vadd.xlane.f32.xlu0 %v1384_v42  ;;  %5240 = vst [vmem:[#allocation35_spill] sm:$0xff] %v3950_v24  ;;  %v1069_v9 = vsub.f32 1.5, %v1068_v51  ;;  %v809_v14 = vsel %vm808_vm14, %v3612_v63, %v807_v39  ;;  %v811_v55 = vand.u32 2147483648, %v3612_v63  ;;  %vm820_vm1 = vcmp.eq.f32.partialorder %v3610_v60, inf }
 0x123   : > { %v3912_v19 = vpop.eup %2930  ;;  %5241 = vst [vmem:[#allocation36_spill] sm:$0xff] %v3956_v15  ;;  %vm1072_vm2 = vcmp.eq.f32.partialorder %v3830_v8, inf  ;;  %vm846_vm3 = vcmp.eq.f32.partialorder %v3634_v31, 0.0  ;;  %v847_v38 = vand.u32 2147483648, %v3634_v31  ;;  %v845_v57 = vsel %vm844_vm0, %v3634_v31, %v843_v11 }
 0x124   : > { %v3915_v26 = vpop.xlane.xlu2 %1045  ;;  %v3917_v58 = vpop.xlane.xlu1 %1043  ;;  %v1102_v4 = vmul.f32 %v3912_v19, %v3874_v6  ;;  %v1070_v10 = vmul.f32 %v3863_v56, %v1069_v9  ;;  %v821_v61 = vsel %vm820_vm1, %v3610_v60, %v3890_v34  ;;  %v812_v52 = vsel %vm810_vm15, %v811_v55, %v809_v14 }
 0x125   : > { %5239 = vst [vmem:[#allocation34_spill] sm:$0xff] %v3915_v26  ;;  %v3924_v0 = vpop.xlane.xlu0 %1041  ;;  %v3930_v22 = vpop.eup %2932  ;;  %2936 = vrsqrt.f32 %v3915_v26  ;;  %vm1074_vm4 = vcmp.eq.f32.partialorder %v3830_v8, 0.0  ;;  %vm822_vm5 = vcmp.eq.f32.partialorder %v3610_v60, 0.0  ;;  %v823_v34 = vand.u32 2147483648, %v3610_v60 }
 0x126   : > { %v3939_v3 = vpop.eup %2934  ;;  %v1078_v45 = vmul.f32 %v3930_v22, %v3880_v49  ;;  %2938 = vrsqrt.f32 %v3924_v0  ;;  %v1103_v42 = vmul.f32 %v3912_v19, %v1102_v4  ;;  %v848_v63 = vsel %vm846_vm3, %v847_v38, %v845_v57 }
 0x127   : > { %v1090_v17 = vmul.f32 %v3939_v3, %v3876_v53  ;;  %v1071_v39 = vmul.f32 %v1070_v10, %v3830_v8  ;;  %v4006_v4 = vadd.f32 1e-10, %v812_v52  ;;  %vm856_vm6 = vcmp.eq.f32.partialorder %v3632_v62, inf }
 0x128   : > { %v1079_v21 = vmul.f32 %v3930_v22, %v1078_v45  ;;  %v1104_v28 = vmul.f32 0.5, %v1103_v42  ;;  %v824_v33 = vsel %vm822_vm5, %v823_v34, %v821_v61  ;;  %vm858_vm7 = vcmp.eq.f32.partialorder %v3632_v62, 0.0 }
 0x129   : > { %v1091_v46 = vmul.f32 %v3939_v3, %v1090_v17  ;;  %5243 = vst [vmem:[#allocation38_spill] sm:$0xff] %v4006_v4  ;;  %v859_v61 = vand.u32 2147483648, %v3632_v62  ;;  %vm1108_vm8 = vcmp.eq.f32.partialorder %v3874_v6, inf  ;;  %vm1084_vm9 = vcmp.eq.f32.partialorder %v3880_v49, inf }
 0x12a   : > { %v1080_v51 = vmul.f32 0.5, %v1079_v21  ;;  %v1105_v45 = vsub.f32 1.5, %v1104_v28  ;;  %v4020_v21 = vadd.f32 1e-10, %v848_v63  ;;  %v4029_v28 = vadd.f32 1e-10, %v824_v33 }
 0x12b   : > { %v3975_v36 = vpop.eup %2936  ;;  %v1092_v9 = vmul.f32 0.5, %v1091_v46  ;;  %v1073_v46 = vsel %vm1072_vm2, %v3830_v8, %v1071_v39  ;;  %vm1096_vm10 = vcmp.eq.f32.partialorder %v3876_v53, inf  ;;  %vm1144_vm11 = vcmp.eq.f32.partialorder %v3915_v26, inf }
 0x12c   : > { %v3967_v35 = vpop.xlane.xlu2 %1051  ;;  %v3969_v12 = vpop.xlane.xlu1 %1049  ;;  %v1138_v18 = vmul.f32 %v3975_v36, %v3915_v26  ;;  %v1081_v10 = vsub.f32 1.5, %v1080_v51  ;;  %5245 = vst [vmem:[#allocation40_spill] sm:$0xff] %v4029_v28  ;;  %v1106_v34 = vmul.f32 %v3912_v19, %v1105_v45  ;;  %vm1120_vm13 = vcmp.eq.f32.partialorder %v3924_v0, inf }
 0x12d   : > { %v3979_v43 = vpop.xlane.xlu0 %1047  ;;  %2940 = vrsqrt.f32 %v3967_v35  ;;  %v3993_v54 = vpop.eup %2938  ;;  %v1093_v51 = vsub.f32 1.5, %v1092_v9  ;;  %vm1180_vm12 = vcmp.eq.f32.partialorder %v3967_v35, inf  ;;  %vm1182_vm14 = vcmp.eq.f32.partialorder %v3967_v35, 0.0 }
 0x12e   : > { %5242 = vst [vmem:[#allocation37_spill] sm:$0xff] %v3979_v43  ;;  %2942 = vrsqrt.f32 %v3917_v58  ;;  %v1114_v60 = vmul.f32 %v3993_v54, %v3924_v0  ;;  %v1139_v31 = vmul.f32 %v3975_v36, %v1138_v18  ;;  %v857_v18 = vsel %vm856_vm6, %v3632_v62, %v3942_v7 }
 0x12f   : > { %2944 = vrsqrt.f32 %v3979_v43  ;;  %v1082_v19 = vmul.f32 %v3930_v22, %v1081_v10  ;;  %v860_v22 = vsel %vm858_vm7, %v859_v61, %v857_v18  ;;  %v1094_v45 = vmul.f32 %v3939_v3, %v1093_v51 }
 0x130   : > { %2946 = vrsqrt.f32 %v3969_v12  ;;  %v1115_v63 = vmul.f32 %v3993_v54, %v1114_v60  ;;  %v1076_v60 = vsel %vm1074_vm4, %v1075_v1, %v1073_v46  ;;  %v4087_v51 = vadd.f32 1e-10, %v860_v22 }
 0x131   : > { %v1083_v61 = vmul.f32 %v1082_v19, %v3880_v49  ;;  %vm1168_vm15 = vcmp.eq.f32.partialorder %v3969_v12, inf  ;;  %vm1132_vm0 = vcmp.eq.f32.partialorder %v3917_v58, inf  ;;  %vm1170_vm1 = vcmp.eq.f32.partialorder %v3969_v12, 0.0 }
 0x132   : > { %v1116_v9 = vmul.f32 0.5, %v1115_v63  ;;  %5246 = vst [vmem:[#allocation41_spill] sm:$0xff] %v4087_v51  ;;  %v1095_v63 = vmul.f32 %v1094_v45, %v3876_v53  ;;  %vm1156_vm2 = vcmp.eq.f32.partialorder %v3979_v43, inf }
 0x133   : > { %v2941_v11 = vpop.eup %2940  ;;  %v4104_v45 = vsel %vm1084_vm9, %v3880_v49, %v1083_v61 }
 0x134   : > { %v4012_v42 = vpop.eup %2942  ;;  %v1174_v17 = vmul.f32 %v2941_v11, %v3967_v35  ;;  %v4016_v14 = vpop.xlane.xlu2 %1057 }
 0x135   : > { %v4018_v55 = vpop.xlane.xlu1 %1055  ;;  %v4023_v38 = vpop.eup %2944  ;;  %2948 = vrsqrt.f32 %v4016_v14  ;;  %v1126_v33 = vmul.f32 %v4012_v42, %v3917_v58  ;;  %vm1216_vm3 = vcmp.eq.f32.partialorder %v4016_v14, inf }
 0x136   : > { %5244 = vst [vmem:[#allocation39_spill] sm:$0xff] %v4018_v55  ;;  %v4025_v57 = vpop.xlane.xlu0 %1053  ;;  %v1175_v52 = vmul.f32 %v2941_v11, %v1174_v17  ;;  %v1140_v17 = vmul.f32 0.5, %v1139_v31  ;;  %v1150_v56 = vmul.f32 %v4023_v38, %v3979_v43  ;;  %v4048_v7 = vpop.eup %2946  ;;  %vm1204_vm5 = vcmp.eq.f32.partialorder %v4018_v55, inf }
 0x137   : > { %2950 = vrsqrt.f32 %v4025_v57  ;;  %v1162_v39 = vmul.f32 %v4048_v7, %v3969_v12  ;;  %v1127_v8 = vmul.f32 %v4012_v42, %v1126_v33  ;;  %v1117_v33 = vsub.f32 1.5, %v1116_v9 }
 0x138   : > { %v1176_v37 = vmul.f32 0.5, %v1175_v52  ;;  %2952 = vrsqrt.f32 %v4018_v55  ;;  %v1107_v52 = vmul.f32 %v1106_v34, %v3874_v6  ;;  %v1151_v46 = vmul.f32 %v4023_v38, %v1150_v56 }
 0x139   : > { %v1163_v5 = vmul.f32 %v4048_v7, %v1162_v39  ;;  %v1128_v39 = vmul.f32 0.5, %v1127_v8  ;;  %vm1192_vm4 = vcmp.eq.f32.partialorder %v4025_v57, inf }
 0x13a   : > { %v1177_v31 = vsub.f32 1.5, %v1176_v37  ;;  %v1141_v37 = vsub.f32 1.5, %v1140_v17 }
 0x13b   : > { %v4063_v10 = vpop.eup %2948  ;;  %v1164_v56 = vmul.f32 0.5, %v1163_v5  ;;  %v4097_v5 = vsel %vm1108_vm8, %v3874_v6, %v1107_v52  ;;  %v1129_v61 = vsub.f32 1.5, %v1128_v39 }
 0x13c   : > { %v1178_v44 = vmul.f32 %v2941_v11, %v1177_v31  ;;  %v4072_v41 = vpop.xlane.xlu2 %1484  ;;  %v1210_v18 = vmul.f32 %v4063_v10, %v4016_v14  ;;  %v4085_v11 = vadd.f32 1e-10, %v1076_v60  ;;  %5247 = vst [vmem:[#allocation42_spill] sm:$0xff] %v4097_v5  ;;  %v1142_v19 = vmul.f32 %v3975_v36, %v1141_v37 }
 0x13d   : > { %v4068_v1 = vpop.eup %2950  ;;  %v4074_v62 = vpop.xlane.xlu1 %1482  ;;  %2954 = vrsqrt.f32 %v4072_v41  ;;  %v1152_v60 = vmul.f32 0.5, %v1151_v46  ;;  %v1165_v36 = vsub.f32 1.5, %v1164_v56  ;;  %v4119_v37 = vsel %vm1096_vm10, %v3876_v53, %v1095_v63 }
 0x13e   : > { %v1186_v3 = vmul.f32 %v4068_v1, %v4025_v57  ;;  %v4081_v34 = vpop.xlane.xlu0 %1059  ;;  %v4092_v17 = vpop.eup %2952  ;;  %v1179_v31 = vmul.f32 %v1178_v44, %v3967_v35  ;;  %v1211_v22 = vmul.f32 %v4063_v10, %v1210_v18  ;;  %5248 = vst [vmem:[#allocation43_spill] sm:$0xff] %v4119_v37  ;;  %v1118_v46 = vmul.f32 %v3993_v54, %v1117_v33 }
 0x13f   : > { %2956 = vrsqrt.f32 %v4081_v34  ;;  %v1198_v44 = vmul.f32 %v4092_v17, %v4018_v55  ;;  %v1143_v52 = vmul.f32 %v1142_v19, %v3915_v26  ;;  %v1153_v56 = vsub.f32 1.5, %v1152_v60 }
 0x140   : > { %v1187_v9 = vmul.f32 %v4068_v1, %v1186_v3  ;;  %2958 = vrsqrt.f32 %v4074_v62  ;;  %v1183_v3 = vand.u32 2147483648, %v3967_v35  ;;  %v1181_v2 = vsel %vm1180_vm12, %v3967_v35, %v1179_v31 }
 0x141   : > { %v1212_v33 = vmul.f32 0.5, %v1211_v22  ;;  %v1166_v60 = vmul.f32 %v4048_v7, %v1165_v36  ;;  %v1199_v31 = vmul.f32 %v4092_v17, %v1198_v44  ;;  %v1119_v23 = vmul.f32 %v1118_v46, %v3924_v0 }
 0x142   : > { %v1188_v54 = vmul.f32 0.5, %v1187_v9  ;;  %v1130_v9 = vmul.f32 %v4012_v42, %v1129_v61  ;;  %v1171_v22 = vand.u32 2147483648, %v3969_v12  ;;  %v4153_v7 = vsel %vm1144_vm11, %v3915_v26, %v1143_v52 }
 0x143   : > { %v4114_v8 = vpop.eup %2954  ;;  %5249 = vst [vmem:[#allocation44_spill] sm:$0xff] %v4153_v7  ;;  %v1154_v46 = vmul.f32 %v4023_v38, %v1153_v56  ;;  %v1213_v61 = vsub.f32 1.5, %v1212_v33  ;;  %v1184_v16 = vsel %vm1182_vm14, %v1183_v3, %v1181_v2  ;;  %v1167_v47 = vmul.f32 %v1166_v60, %v3969_v12 }
 0x144   : > { %v1607_v13 = vmul.f32 %v4114_v8, %v4072_v41  ;;  %v4131_v27 = vpop.xlane.xlu2 %1466  ;;  %v1189_v42 = vsub.f32 1.5, %v1188_v54  ;;  %v1200_v7 = vmul.f32 0.5, %v1199_v31  ;;  %v4169_v38 = vsel %vm1120_vm13, %v3924_v0, %v1119_v23 }
 0x145   : > { %v4123_v18 = vpop.eup %2956  ;;  %v4133_v63 = vpop.xlane.xlu1 %1492  ;;  %2960 = vrsqrt.f32 %v4131_v27  ;;  %v1131_v56 = vmul.f32 %v1130_v9, %v3917_v58  ;;  %v1266_v52 = vadd.f32 1e-10, %v1184_v16  ;;  %v1155_v23 = vmul.f32 %v1154_v46, %v3979_v43 }
 0x146   : > { %v1222_v39 = vmul.f32 %v4123_v18, %v4081_v34  ;;  %v4138_v19 = vpop.xlane.xlu0 %1490  ;;  %v1608_v5 = vmul.f32 %v4114_v8, %v1607_v13  ;;  %v2959_v37 = vpop.eup %2958  ;;  %v1190_v9 = vmul.f32 %v4068_v1, %v1189_v42  ;;  %v1214_v35 = vmul.f32 %v4063_v10, %v1213_v61 }
 0x147   : > { %2962 = vrsqrt.f32 %v4138_v19  ;;  %v1595_v44 = vmul.f32 %v2959_v37, %v4074_v62  ;;  %v1201_v16 = vsub.f32 1.5, %v1200_v7  ;;  %v1282_v61 = vmul.f32 %v1266_v52, %v3945_v48 }
 0x148   : > { %2964 = vrsqrt.f32 %v4133_v63  ;;  %v1223_v13 = vmul.f32 %v4123_v18, %v1222_v39  ;;  %v1609_v36 = vmul.f32 0.5, %v1608_v5  ;;  %vm1613_vm6 = vcmp.eq.f32.partialorder %v4072_v41, inf }
 0x149   : > { %v1596_v39 = vmul.f32 %v2959_v37, %v1595_v44  ;;  %v1215_v50 = vmul.f32 %v1214_v35, %v4016_v14  ;;  %v1202_v6 = vmul.f32 %v4092_v17, %v1201_v16  ;;  %v1191_v52 = vmul.f32 %v1190_v9, %v4025_v57 }
 0x14a   : > { %v1224_v54 = vmul.f32 0.5, %v1223_v13  ;;  %v1610_v33 = vsub.f32 1.5, %v1609_v36  ;;  %vm1228_vm7 = vcmp.eq.f32.partialorder %v4081_v34, inf  ;;  %vm1615_vm8 = vcmp.eq.f32.partialorder %v4072_v41, 0.0 }
 0x14b   : > { %v4164_v5 = vpop.eup %2960  ;;  %v1597_v60 = vmul.f32 0.5, %v1596_v39  ;;  %v1169_v39 = vsel %vm1168_vm15, %v3969_v12, %v1167_v47  ;;  %v4204_v47 = vsel %vm1132_vm0, %v3917_v58, %v1131_v56  ;;  %vm1601_vm9 = vcmp.eq.f32.partialorder %v4074_v62, inf }
 0x14c   : > { %v4176_v31 = vpop.xlane.xlu2 %1476  ;;  %v1499_v10 = vmul.f32 %v4164_v5, %v4131_v27  ;;  %v1225_v42 = vsub.f32 1.5, %v1224_v54  ;;  %v1611_v7 = vmul.f32 %v4114_v8, %v1610_v33  ;;  %v1172_v54 = vsel %vm1170_vm1, %v1171_v22, %v1169_v39 }
 0x14d   : > { %v4174_v3 = vpop.eup %2962  ;;  %v4178_v44 = vpop.xlane.xlu1 %1474  ;;  %v1598_v2 = vsub.f32 1.5, %v1597_v60  ;;  %2966 = vrsqrt.f32 %v4176_v31  ;;  %v4219_v8 = vsel %vm1156_vm2, %v3979_v43, %v1155_v23  ;;  %v1616_v39 = vand.u32 2147483648, %v4072_v41 }
 0x14e   : > { %v4180_v26 = vpop.eup %2964  ;;  %v1643_v13 = vmul.f32 %v4174_v3, %v4138_v19  ;;  %v4188_v36 = vpop.xlane.xlu0 %1468  ;;  %5250 = vst [vmem:[#allocation45_spill] sm:$0xff] %v4219_v8  ;;  %v1500_v33 = vmul.f32 %v4164_v5, %v1499_v10  ;;  %v1226_v17 = vmul.f32 %v4123_v18, %v1225_v42  ;;  %v1612_v12 = vmul.f32 %v1611_v7, %v4072_v41 }
 0x14f   : > { %v1655_v46 = vmul.f32 %v4180_v26, %v4133_v63  ;;  %2968 = vrsqrt.f32 %v4188_v36  ;;  %v1599_v56 = vmul.f32 %v2959_v37, %v1598_v2  ;;  %v1265_v16 = vadd.f32 1e-10, %v1172_v54 }
 0x150   : > { %v1644_v1 = vmul.f32 %v4174_v3, %v1643_v13  ;;  %2970 = vrsqrt.f32 %v4178_v44  ;;  %v1217_v18 = vsel %vm1216_vm3, %v4016_v14, %v1215_v50  ;;  %v1203_v10 = vmul.f32 %v1202_v6, %v4018_v55 }
 0x151   : > { %2972 = vrcp.f32 %v1282_v61  ;;  %v4251_v7 = vsel %vm1192_vm4, %v4025_v57, %v1191_v52  ;;  %v1501_v61 = vmul.f32 0.5, %v1500_v33  ;;  %vm1218_vm10 = vcmp.eq.f32.partialorder %v4016_v14, 0.0 }
 0x152   : > { %v1645_v13 = vmul.f32 0.5, %v1644_v1  ;;  %v1656_v1 = vmul.f32 %v4180_v26, %v1655_v46  ;;  %v1600_v46 = vmul.f32 %v1599_v56, %v4074_v62  ;;  %5251 = vst [vmem:[#allocation46_spill] sm:$0xff] %v4251_v7  ;;  %v1227_v50 = vmul.f32 %v1226_v17, %v4081_v34 }
 0x153   : > { %v4225_v35 = vpop.eup %2966  ;;  %v1614_v54 = vsel %vm1613_vm6, %v4072_v41, %v1612_v12  ;;  %v1281_v33 = vmul.f32 %v1265_v16, %v3892_v29  ;;  %vm1603_vm11 = vcmp.eq.f32.partialorder %v4074_v62, 0.0  ;;  %vm1086_vm12 = vcmp.eq.f32.partialorder %v3880_v49, 0.0 }
 0x154   : > { %v4229_v37 = vpop.xlane.xlu2 %1486  ;;  %v1646_v23 = vsub.f32 1.5, %v1645_v13  ;;  %v1657_v13 = vmul.f32 0.5, %v1656_v1  ;;  %v1559_v56 = vmul.f32 %v4225_v35, %v4176_v31  ;;  %v4271_v17 = vsel %vm1204_vm5, %v4018_v55, %v1203_v10 }
 0x155   : > { %v4231_v22 = vpop.xlane.xlu1 %1063  ;;  %v4234_v2 = vpop.eup %2968  ;;  %2974 = vrsqrt.f32 %v4229_v37  ;;  %5252 = vst [vmem:[#allocation47_spill] sm:$0xff] %v4271_v17  ;;  %v1604_v12 = vand.u32 2147483648, %v4074_v62  ;;  %v1502_v16 = vsub.f32 1.5, %v1501_v61  ;;  %v1617_v43 = vsel %vm1615_vm8, %v1616_v39, %v1614_v54  ;;  %v5254_v54 = vld [vmem:[#allocation21_spill] sm:$0xff] }
 0x156   : > { %v4236_v9 = vpop.xlane.xlu0 %1061  ;;  %v4246_v42 = vpop.eup %2970  ;;  %v1511_v6 = vmul.f32 %v4234_v2, %v4188_v36  ;;  %v1647_v52 = vmul.f32 %v4174_v3, %v1646_v23  ;;  %v1602_v3 = vsel %vm1601_vm9, %v4074_v62, %v1600_v46  ;;  %v1658_v8 = vsub.f32 1.5, %v1657_v13 }
 0x157   : > { %2976 = vrsqrt.f32 %v4236_v9  ;;  %v2973_v1 = vpop.eup %2972  ;;  %v1547_v60 = vmul.f32 %v4246_v42, %v4178_v44  ;;  %vm1649_vm13 = vcmp.eq.f32.partialorder %v4138_v19, inf  ;;  %v4287_v10 = vsel %vm1228_vm7, %v4081_v34, %v1227_v50 }
 0x158   : > { %2978 = vrsqrt.f32 %v4231_v22  ;;  %v1512_v53 = vmul.f32 %v4234_v2, %v1511_v6  ;;  %v1560_v46 = vmul.f32 %v4225_v35, %v1559_v56  ;;  %v1648_v39 = vmul.f32 %v1647_v52, %v4138_v19 }
 0x159   : > { %v4303_v50 = vmul.f32 %v2973_v1, %v5254_v54  ;;  %2980 = vrcp.f32 %v1281_v33  ;;  %v1605_v6 = vsel %vm1603_vm11, %v1604_v12, %v1602_v3  ;;  %v1548_v56 = vmul.f32 %v4246_v42, %v1547_v60 }
 0x15a   : > { %v1699_v59 = vadd.f32 1e-10, %v1617_v43  ;;  %v1503_v52 = vmul.f32 %v4164_v5, %v1502_v16  ;;  %v1659_v51 = vmul.f32 %v4180_v26, %v1658_v8  ;;  %v1513_v62 = vmul.f32 0.5, %v1512_v53 }
 0x15b   : > { %v4279_v23 = vpop.eup %2974  ;;  %v1561_v33 = vmul.f32 0.5, %v1560_v46  ;;  %vm1754_vm14 = vcmask 7168   ;;  %v1698_v3 = vadd.f32 1e-10, %v1605_v6  ;;  %v1650_v43 = vsel %vm1649_vm13, %v4138_v19, %v1648_v39 }
 0x15c   : > { %v1619_v24 = vmul.f32 %v4279_v23, %v4229_v37  ;;  %v4293_v30 = vpop.xlane.xlu2 %1496  ;;  %v5255_v26 = vand.u32 2147483648, %v4016_v14  ;;  %v1549_v53 = vmul.f32 0.5, %v1548_v56  ;;  %v1715_v5 = vmul.f32 %v1699_v59, %v3945_v48 }
 0x15d   : > { %5253 = vst [vmem:[#allocation48_spill] sm:$0xff] %v4293_v30  ;;  %v4295_v61 = vpop.xlane.xlu1 %1494  ;;  %v4297_v41 = vpop.eup %2976  ;;  %2982 = vrsqrt.f32 %v4293_v30  ;;  %vm1651_vm15 = vcmp.eq.f32.partialorder %v4138_v19, 0.0  ;;  %v4333_v54 = vmul.f32 %v4085_v11, %v3848_v25  ;;  %v5256_v39 = vand.u32 2147483648, %v3880_v49 }
 0x15e   : > { %v4300_v13 = vpop.xlane.xlu0 %1488  ;;  %v1234_v28 = vmul.f32 %v4297_v41, %v4236_v9  ;;  %v4311_v17 = vpop.eup %2978  ;;  %v1620_v1 = vmul.f32 %v4279_v23, %v1619_v24  ;;  %v1220_v24 = vsel %vm1218_vm10, %v5255_v26, %v1217_v18  ;;  %v1562_v59 = vsub.f32 1.5, %v1561_v33 }
 0x15f   : > { %2984 = vrsqrt.f32 %v4300_v13  ;;  %v1246_v12 = vmul.f32 %v4311_v17, %v4231_v22  ;;  %v2981_v8 = vpop.eup %2980  ;;  %v1269_v46 = vadd.f32 1e-10, %v1220_v24  ;;  %v1088_v14 = vsel %vm1086_vm12, %v5256_v39, %v4104_v45 }
 0x160   : > { %v1235_v60 = vmul.f32 %v4297_v41, %v1234_v28  ;;  %2986 = vrsqrt.f32 %v4295_v61  ;;  %v1652_v28 = vand.u32 2147483648, %v4138_v19  ;;  %v1621_v16 = vmul.f32 0.5, %v1620_v1 }
 0x161   : > { %v1714_v56 = vmul.f32 %v1698_v3, %v3892_v29  ;;  %v1247_v11 = vmul.f32 %v4311_v17, %v1246_v12  ;;  %v1285_v49 = vmul.f32 %v1269_v46, %v3947_v20  ;;  %v1258_v45 = vadd.f32 1e-10, %v1088_v14 }
 0x162   : > { %v1236_v48 = vmul.f32 0.5, %v1235_v60  ;;  %v1653_v1 = vsel %vm1651_vm15, %v1652_v28, %v1650_v43  ;;  %v1514_v33 = vsub.f32 1.5, %v1513_v62  ;;  %v1550_v60 = vsub.f32 1.5, %v1549_v53 }
 0x163   : > { %v4340_v18 = vpop.eup %2982  ;;  %v1622_v29 = vsub.f32 1.5, %v1621_v16  ;;  %v4362_v12 = vmul.f32 %v1258_v45, %v3954_v40  ;;  %v1702_v53 = vadd.f32 1e-10, %v1653_v1  ;;  %vm1134_vm0 = vcmp.eq.f32.partialorder %v3917_v58, 0.0  ;;  %v5258_v45 = vld [vmem:[#allocation22_spill] sm:$0xff] }
 0x164   : > { %v4342_v6 = vpop.xlane.xlu2 %1478  ;;  %v1679_v3 = vmul.f32 %v4340_v18, %v4293_v30  ;;  %v1237_v43 = vsub.f32 1.5, %v1236_v48  ;;  %v1248_v16 = vmul.f32 0.5, %v1247_v11  ;;  %v1782_v46 = vsel %vm1754_vm14, %v4303_v50, -inf }
 0x165   : > { %v4344_v19 = vpop.xlane.xlu1 %1472  ;;  %v4347_v26 = vpop.eup %2984  ;;  %2988 = vrsqrt.f32 %v4342_v6  ;;  %v4372_v14 = vmul.f32 %v1659_v51, %v4133_v63  ;;  %v1515_v30 = vmul.f32 %v4234_v2, %v1514_v33  ;;  %v1551_v11 = vmul.f32 %v4246_v42, %v1550_v60 }
 0x166   : > { %5257 = vst [vmem:[#allocation21_spill] sm:$0xff] %v4344_v19  ;;  %v4350_v24 = vpop.xlane.xlu0 %1470  ;;  %v1631_v39 = vmul.f32 %v4347_v26, %v4300_v13  ;;  %2990 = vrcp.f32 %v1715_v5  ;;  %v4356_v55 = vpop.eup %2986  ;;  %v1504_v5 = vmul.f32 %v1503_v52, %v4131_v27  ;;  %v1563_v52 = vmul.f32 %v4225_v35, %v1562_v59 }
 0x167   : > { %2992 = vrsqrt.f32 %v4350_v24  ;;  %v1667_v62 = vmul.f32 %v4356_v55, %v4295_v61  ;;  %v1238_v51 = vmul.f32 %v4297_v41, %v1237_v43  ;;  %vm1240_vm1 = vcmp.eq.f32.partialorder %v4236_v9, inf }
 0x168   : > { %v1632_v28 = vmul.f32 %v4347_v26, %v1631_v39  ;;  %2994 = vrcp.f32 %v1714_v56  ;;  %v4377_v39 = vmul.f32 %v2981_v8, %v5258_v45  ;;  %v1680_v56 = vmul.f32 %v4340_v18, %v1679_v3 }
 0x169   : > { %v1668_v48 = vmul.f32 %v4356_v55, %v1667_v62  ;;  %2996 = vrsqrt.f32 %v4344_v19  ;;  %v1623_v62 = vmul.f32 %v4279_v23, %v1622_v29  ;;  %v1718_v45 = vmul.f32 %v1702_v53, %v3947_v20 }
 0x16a   : > { %v1633_v7 = vmul.f32 0.5, %v1632_v28  ;;  %v1249_v2 = vsub.f32 1.5, %v1248_v16  ;;  %2998 = vrcp.f32 %v1285_v49  ;;  %v1779_v20 = vsel %vm1754_vm14, %v4377_v39, -inf }
 0x16b   : > { %v4379_v1 = vpop.eup %2988  ;;  %v1669_v60 = vmul.f32 0.5, %v1668_v48  ;;  %vm1230_vm2 = vcmp.eq.f32.partialorder %v4081_v34, 0.0  ;;  %v4404_v3 = vmul.f32 %v1515_v30, %v4188_v36  ;;  %v4410_v49 = vmul.f32 %v1551_v11, %v4178_v44 }
 0x16c   : > { %v2991_v4 = vpop.eup %2990  ;;  %v1413_v8 = vpop.xlane.xlu2 %1412  ;;  %v1571_v35 = vmul.f32 %v4379_v1, %v4342_v6  ;;  %v1681_v43 = vmul.f32 0.5, %v1680_v56  ;;  %v4415_v53 = vmul.f32 %v1623_v62, %v4229_v37  ;;  %v1634_v16 = vsub.f32 1.5, %v1633_v7 }
 0x16d   : > { %v4389_v15 = vpop.eup %2992  ;;  %v4395_v59 = vmul.f32 %v2991_v4, %v1413_v8  ;;  %v1411_v33 = vpop.xlane.xlu1 %1410  ;;  %v4407_v4 = vmul.f32 %v1563_v52, %v4176_v31  ;;  %3000 = vrcp.f32 %v1718_v45  ;;  %v1239_v8 = vmul.f32 %v1238_v51, %v4236_v9 }
 0x16e   : > { %v4393_v42 = vpop.xlane.xlu0 %1480  ;;  %v1523_v23 = vmul.f32 %v4389_v15, %v4350_v24  ;;  %v2995_v29 = vpop.eup %2994  ;;  %v1250_v30 = vmul.f32 %v4311_v17, %v1249_v2  ;;  %v1572_v52 = vmul.f32 %v4379_v1, %v1571_v35  ;;  %v1670_v41 = vsub.f32 1.5, %v1669_v60 }
 0x16f   : > { %v4412_v28 = vpop.eup %2996  ;;  %v4417_v48 = vmul.f32 %v2995_v29, %v1411_v33  ;;  %v1783_v11 = vsel %vm1754_vm14, %v4395_v59, -inf  ;;  %vm1505_vm3 = vcmp.eq.f32.partialorder %v4131_v27, inf  ;;  %v5259_v7 = vand.u32 2147483648, %v3917_v58 }
 0x170   : > { %v1524_v56 = vmul.f32 %v4389_v15, %v1523_v23  ;;  %v2999_v51 = vpop.eup %2998  ;;  %v1682_v45 = vsub.f32 1.5, %v1681_v43  ;;  %v1535_v17 = vmul.f32 %v4412_v28, %v4344_v19  ;;  %v1506_v2 = vsel %vm1505_vm3, %v4131_v27, %v1504_v5  ;;  %v5260_v43 = vld [vmem:[#allocation24_spill] sm:$0xff] }
 0x171   : > { %v4431_v62 = vsel %vm1134_vm0, %v5259_v7, %v4204_v47  ;;  %vm1507_vm4 = vcmp.eq.f32.partialorder %v4131_v27, 0.0  ;;  %v1635_v35 = vmul.f32 %v4347_v26, %v1634_v16  ;;  %v1784_v33 = vmax.f32 %v1782_v46, %v1783_v11 }
 0x172   : > { %v1780_v60 = vsel %vm1754_vm14, %v4417_v48, -inf  ;;  %v1508_v23 = vand.u32 2147483648, %v4131_v27  ;;  %v4444_v58 = vsel %vm1240_vm1, %v4236_v9, %v1239_v8  ;;  %v4447_v47 = vmul.f32 %v1250_v30, %v4231_v22 }
 0x173   : > { %v1573_v29 = vmul.f32 0.5, %v1572_v52  ;;  %v4450_v7 = vmul.f32 %v2999_v51, %v5260_v43  ;;  %v3001_v26 = vpop.eup %3000  ;;  %v1671_v46 = vmul.f32 %v4356_v55, %v1670_v41  ;;  %v1525_v16 = vmul.f32 0.5, %v1524_v56 }
 0x174   : > { %3002 = vrsqrt.f32 %v4393_v42  ;;  %v1509_v27 = vsel %vm1507_vm4, %v1508_v23, %v1506_v2  ;;  %v1536_v11 = vmul.f32 %v4412_v28, %v1535_v17  ;;  %v4455_v19 = vmax.f32 %v1779_v20, %v1780_v60 }
 0x175   : > { %3004 = vrcp.f32 %v4333_v54  ;;  %v4461_v30 = vmul.f32 %v1635_v35, %v4300_v13  ;;  %v4464_v52 = vmul.f32 %v4340_v18, %v1682_v45  ;;  %v1812_v55 = vsub.f32 %v4303_v50, %v1784_v33 }
 0x176   : > { %v1419_v5 = vpop.xlane.xlu0 %1418  ;;  %v5261_v41 = vand.u32 2147483648, %v4081_v34  ;;  %v1574_v20 = vsub.f32 1.5, %v1573_v29  ;;  %v1791_v51 = vsel %vm1754_vm14, %v4450_v7, -inf  ;;  %v1690_v17 = vadd.f32 1e-10, %v1509_v27 }
 0x177   : > { %v4457_v8 = vmul.f32 %v3001_v26, %v1419_v5  ;;  %v4477_v2 = vmul.f32 %v1671_v46, %v4295_v61  ;;  %v1526_v18 = vsub.f32 1.5, %v1525_v16  ;;  %v1828_v50 = vsub.f32 %v4395_v59, %v1784_v33 }
 0x178   : > { %v1232_v56 = vsel %vm1230_vm2, %v5261_v41, %v4287_v10  ;;  %vm1122_vm5 = vcmp.eq.f32.partialorder %v3924_v0, 0.0  ;;  %v4483_v34 = vmul.f32 0.5, %v1536_v11  ;;  %v1811_v10 = vsub.f32 %v4377_v39, %v4455_v19 }
 0x179   : > { %v1792_v54 = vsel %vm1754_vm14, %v4457_v8, -inf  ;;  %v1706_v35 = vmul.f32 %v1690_v17, %v3848_v25  ;;  %v1270_v60 = vadd.f32 1e-10, %v1232_v56  ;;  %v1853_v29 = vmul.f32 1.442695, %v1812_v55 }
 0x17a   : > { %v4480_v45 = vmax.f32 %v1791_v51, %v1792_v54  ;;  %v4488_v23 = vpop.eup %3002  ;;  %vm1661_vm6 = vcmp.eq.f32.partialorder %v4133_v63, inf  ;;  %v4496_v43 = vmul.f32 %v4379_v1, %v1574_v20  ;;  %v4502_v26 = vmul.f32 %v4389_v15, %v1526_v18 }
 0x17b   : > { %v3005_v33 = vpop.eup %3004  ;;  %3006 = vrcp.f32 %v1706_v35  ;;  %v1286_v39 = vmul.f32 %v1270_v60, %v4020_v21  ;;  %v1662_v25 = vsel %vm1661_vm6, %v4133_v63, %v4372_v14  ;;  %v1885_v46 = vmul.f32 1.442695, %v1828_v50  ;;  %v5262_v14 = vld [vmem:[#allocation12_spill] sm:$0xff] }
 0x17c   : > { %v1815_v5 = vsub.f32 %v4450_v7, %v4480_v45  ;;  %v1831_v59 = vsub.f32 %v4457_v8, %v4480_v45  ;;  %v1827_v16 = vsub.f32 %v4417_v48, %v4455_v19  ;;  %v1664_v27 = vand.u32 2147483648, %v4133_v63  ;;  %v1395_v19 = vpop.xlane.xlu2 %1394 }
 0x17d   : > { %v1538_v11 = vsub.f32 1.5, %v4483_v34  ;;  %v1583_v1 = vmul.f32 %v4488_v23, %v4393_v42  ;;  %vm1663_vm7 = vcmp.eq.f32.partialorder %v4133_v63, 0.0  ;;  %vm1517_vm8 = vcmp.eq.f32.partialorder %v4188_v36, inf }
 0x17e   : > { %3008 = vpow2.f32 %v1853_v29  ;;  %v4513_v55 = vmul.f32 %v3005_v33, %v5262_v14  ;;  %v1665_v15 = vsel %vm1663_vm7, %v1664_v27, %v1662_v25  ;;  %v1518_v41 = vsel %vm1517_vm8, %v4188_v36, %v4404_v3  ;;  %v5264_v25 = vld [vmem:[#allocation36_spill] sm:$0xff] }
 0x17f   : > { %vm1194_vm9 = vcmp.eq.f32.partialorder %v4025_v57, 0.0  ;;  %3010 = vrcp.f32 %v1286_v39  ;;  %v1703_v48 = vadd.f32 1e-10, %v1665_v15  ;;  %vm1519_vm10 = vcmp.eq.f32.partialorder %v4188_v36, 0.0 }
 0x180   : > { %v1520_v56 = vand.u32 2147483648, %v4188_v36  ;;  %3012 = vrcp.f32 %v4362_v12  ;;  %vm1565_vm11 = vcmp.eq.f32.partialorder %v4176_v31, inf  ;;  %vm1567_vm12 = vcmp.eq.f32.partialorder %v4176_v31, 0.0 }
 0x181   : > { %v1568_v63 = vand.u32 2147483648, %v4176_v31  ;;  %v3007_v20 = vpop.eup %3006  ;;  %v1719_v3 = vmul.f32 %v1703_v48, %v4020_v21  ;;  %v1566_v54 = vsel %vm1565_vm11, %v4176_v31, %v4407_v4  ;;  %v1262_v17 = vadd.f32 1e-10, %v4431_v62 }
 0x182   : > { %v1521_v51 = vsel %vm1519_vm10, %v1520_v56, %v1518_v41  ;;  %v4528_v18 = vmul.f32 %v3007_v20, %v1395_v19  ;;  %v5263_v12 = vand.u32 2147483648, %v3924_v0  ;;  %v1584_v31 = vmul.f32 %v4488_v23, %v1583_v1  ;;  %v1421_v19 = vpop.xlane.xlu1 %1420 }
 0x183   : > { %v1691_v36 = vadd.f32 1e-10, %v1521_v51  ;;  %v1569_v50 = vsel %vm1567_vm12, %v1568_v63, %v1566_v54  ;;  %3014 = vrcp.f32 %v1719_v3  ;;  %v1278_v21 = vmul.f32 %v1262_v17, %v3960_v32  ;;  %v5267_v3 = vld [vmem:[#allocation23_spill] sm:$0xff] }
 0x184   : > { %v1124_v34 = vsel %vm1122_vm5, %v5263_v12, %v4169_v38  ;;  %v1695_v35 = vadd.f32 1e-10, %v1569_v50  ;;  %v4536_v29 = vpop.eup %3008  ;;  %v1755_v4 = vsel %vm1754_vm14, %v4513_v55, -inf  ;;  %v1756_v62 = vsel %vm1754_vm14, %v4528_v18, -inf  ;;  %v5268_v17 = vld [vmem:[#allocation11_spill] sm:$0xff]  ;;  %v1405_v50 = vpop.xlane.xlu2 %1404 }
 0x185   : > { %v1261_v60 = vadd.f32 1e-10, %v1124_v34  ;;  %v1707_v33 = vmul.f32 %v1691_v36, %v3954_v40  ;;  %v3011_v39 = vpop.eup %3010  ;;  %v4544_v0 = vmax.f32 %v1755_v4, %v1756_v62  ;;  %3016 = vrcp.f32 %v1278_v21  ;;  %v5269_v21 = vld [vmem:[#allocation19_spill] sm:$0xff] }
 0x186   : > { %v1711_v38 = vmul.f32 %v1695_v35, %v3960_v32  ;;  %v3013_v14 = vpop.eup %3012  ;;  %v1851_v15 = vmul.f32 1.442695, %v1811_v10  ;;  %v4548_v41 = vmul.f32 1.442695, %v1827_v16  ;;  %vm1553_vm13 = vcmp.eq.f32.partialorder %v4178_v44, inf  ;;  %v5265_v16 = vld [vmem:[#allocation46_spill] sm:$0xff] }
 0x187   : > { %v1277_v27 = vmul.f32 %v1261_v60, %v5264_v25  ;;  %3018 = vrcp.f32 %v1707_v33  ;;  %v1803_v1 = vsub.f32 %v4513_v55, %v4544_v0  ;;  %v1819_v40 = vsub.f32 %v4528_v18, %v4544_v0 }
 0x188   : > { %3020 = vrcp.f32 %v1711_v38  ;;  %v1554_v32 = vsel %vm1553_vm13, %v4178_v44, %v4410_v49  ;;  %v4558_v48 = vmul.f32 %v4412_v28, %v1538_v11  ;;  %v1556_v10 = vand.u32 2147483648, %v4178_v44  ;;  %v1397_v28 = vpop.xlane.xlu0 %1396 }
 0x189   : > { %3022 = vpow2.f32 %v1885_v46  ;;  %v5266_v56 = vand.u32 2147483648, %v4025_v57  ;;  %v3015_v63 = vpop.eup %3014  ;;  %vm1242_vm15 = vcmp.eq.f32.partialorder %v4236_v9, 0.0  ;;  %v4567_v20 = vmul.f32 0.5, %v1584_v31  ;;  %v5270_v31 = vld [vmem:[#allocation38_spill] sm:$0xff] }
 0x18a   : > { %v4570_v51 = vmul.f32 %v3011_v39, %v5267_v3  ;;  %vm1555_vm0 = vcmp.eq.f32.partialorder %v4178_v44, 0.0  ;;  %vm1625_vm1 = vcmp.eq.f32.partialorder %v4229_v37, inf  ;;  %v4574_v49 = vmul.f32 %v3015_v63, %v1421_v19 }
 0x18b   : > { %v1196_v55 = vsel %vm1194_vm9, %v5266_v56, %v5265_v16  ;;  %v1557_v46 = vsel %vm1555_vm0, %v1556_v10, %v1554_v32  ;;  %v1626_v57 = vsel %vm1625_vm1, %v4229_v37, %v4415_v53  ;;  %v3017_v54 = vpop.eup %3016  ;;  %v4579_v36 = vmul.f32 %v3013_v14, %v5268_v17 }
 0x18c   : > { %v1267_v11 = vadd.f32 1e-10, %v1196_v55  ;;  %3024 = vrcp.f32 %v1277_v27  ;;  %v1694_v12 = vadd.f32 1e-10, %v1557_v46  ;;  %v1628_v34 = vand.u32 2147483648, %v4229_v37 }
 0x18d   : > { %v3019_v44 = vpop.eup %3018  ;;  %v1795_v35 = vsel %vm1754_vm14, %v4574_v49, -inf  ;;  %v4585_v60 = vmul.f32 %v3017_v54, %v5269_v21  ;;  %vm1627_vm2 = vcmp.eq.f32.partialorder %v4229_v37, 0.0  ;;  %v1859_v62 = vmul.f32 1.442695, %v1815_v5  ;;  %v5271_v37 = vld [vmem:[#allocation39_spill] sm:$0xff] }
 0x18e   : > { %v1283_v4 = vmul.f32 %v1267_v11, %v5270_v31  ;;  %v3021_v53 = vpop.eup %3020  ;;  %v4592_v33 = vmul.f32 %v3019_v44, %v1397_v28  ;;  %v1710_v39 = vmul.f32 %v1694_v12, %v5264_v25  ;;  %v1629_v38 = vsel %vm1627_vm2, %v1628_v34, %v1626_v57 }
 0x18f   : > { %v4595_v27 = vpop.eup %3022  ;;  %v1794_v14 = vsel %vm1754_vm14, %v4570_v51, -inf  ;;  %v4599_v19 = vmul.f32 %v3021_v53, %v1405_v50  ;;  %v1700_v32 = vadd.f32 1e-10, %v1629_v38  ;;  %vm1206_vm3 = vcmp.eq.f32.partialorder %v5271_v37, 0.0  ;;  %v5273_v50 = vld [vmem:[#allocation14_spill] sm:$0xff] }
 0x190   : > { %3026 = vrcp.f32 %v1283_v4  ;;  %v4602_v10 = vmax.f32 %v1794_v14, %v1795_v35  ;;  %v1758_v7 = vsel %vm1754_vm14, %v4579_v36, -inf  ;;  %v1759_v5 = vsel %vm1754_vm14, %v4592_v33, -inf  ;;  %v1415_v21 = vpop.xlane.xlu0 %1414 }
 0x191   : > { %v1770_v25 = vsel %vm1754_vm14, %v4585_v60, -inf  ;;  %v4610_v16 = vmax.f32 %v1758_v7, %v1759_v5  ;;  %v1771_v56 = vsel %vm1754_vm14, %v4599_v19, -inf  ;;  %3028 = vrcp.f32 %v1710_v39 }
 0x192   : > { %v1716_v55 = vmul.f32 %v1700_v32, %v5270_v31  ;;  %v3025_v63 = vpop.eup %3024  ;;  %3030 = vpow2.f32 %v1851_v15  ;;  %v1891_v3 = vmul.f32 1.442695, %v1831_v59  ;;  %v1835_v28 = vmul.f32 1.442695, %v1803_v1  ;;  %v5275_v31 = vld [vmem:[#allocation41_spill] sm:$0xff] }
 0x193   : > { %v4618_v46 = vmax.f32 %v1770_v25, %v1771_v56  ;;  %v1804_v11 = vsub.f32 %v4579_v36, %v4610_v16  ;;  %v1820_v57 = vsub.f32 %v4592_v33, %v4610_v16  ;;  %v5272_v54 = vand.u32 2147483648, %v4236_v9  ;;  %v1403_v9 = vpop.xlane.xlu1 %1402 }
 0x194   : > { %3032 = vrcp.f32 %v1716_v55  ;;  %v1816_v8 = vsub.f32 %v4570_v51, %v4602_v10  ;;  %v1586_v17 = vsub.f32 1.5, %v4567_v20  ;;  %v4638_v12 = vmul.f32 %v3025_v63, %v5273_v50  ;;  %v5274_v51 = vld [vmem:[#allocation20_spill] sm:$0xff] }
 0x195   : > { %v1244_v15 = vsel %vm1242_vm15, %v5272_v54, %v4444_v58  ;;  %3034 = vpow2.f32 %v4548_v41  ;;  %v1808_v45 = vsub.f32 %v4585_v60, %v4618_v46  ;;  %v1824_v59 = vsub.f32 %v4599_v19, %v4618_v46  ;;  %v5278_v54 = vld [vmem:[#allocation13_spill] sm:$0xff] }
 0x196   : > { %v3027_v1 = vpop.eup %3026  ;;  %3036 = vpow2.f32 %v1859_v62  ;;  %v1271_v58 = vadd.f32 1e-10, %v1244_v15  ;;  %v4642_v41 = vsel %vm1754_vm14, %v4595_v27, 0.0  ;;  %vm1673_vm4 = vcmp.eq.f32.partialorder %v4295_v61, inf }
 0x197   : > { %3038 = vpow2.f32 %v1891_v3  ;;  %v4645_v34 = vmul.f32 %v3027_v1, %v5274_v51  ;;  %v3029_v44 = vpop.eup %3028  ;;  %v1867_v35 = vmul.f32 1.442695, %v1819_v40  ;;  %v1674_v53 = vsel %vm1673_vm4, %v4295_v61, %v4477_v2  ;;  %v5276_v2 = vld [vmem:[#allocation47_spill] sm:$0xff] }
 0x198   : > { %3040 = vpow2.f32 %v1835_v28  ;;  %v1287_v4 = vmul.f32 %v1271_v58, %v5275_v31  ;;  %v4654_v62 = vpop.eup %3030  ;;  %v1832_v33 = vsub.f32 %v4574_v49, %v4602_v10  ;;  %v1861_v39 = vmul.f32 1.442695, %v1816_v8 }
 0x199   : > { %v4658_v38 = vmul.f32 %v3029_v44, %v1403_v9  ;;  %v1676_v14 = vand.u32 2147483648, %v4295_v61  ;;  %vm1252_vm5 = vcmp.eq.f32.partialorder %v4231_v22, inf  ;;  %v1767_v18 = vsel %vm1754_vm14, %v4638_v12, -inf }
 0x19a   : > { %v3033_v19 = vpop.eup %3032  ;;  %v1785_v0 = vsel %vm1754_vm14, %v4645_v34, -inf  ;;  %vm1675_vm6 = vcmp.eq.f32.partialorder %v4295_v61, 0.0  ;;  %v5277_v40 = vand.u32 2147483648, %v5271_v37  ;;  %vm1637_vm7 = vcmp.eq.f32.partialorder %v4300_v13, inf }
 0x19b   : > { %v4672_v32 = vpop.eup %3034  ;;  %v1768_v10 = vsel %vm1754_vm14, %v4658_v38, -inf  ;;  %v4676_v7 = vmul.f32 %v3033_v19, %v1415_v21  ;;  %v1677_v5 = vsel %vm1675_vm6, %v1676_v14, %v1674_v53  ;;  %vm1639_vm8 = vcmp.eq.f32.partialorder %v4300_v13, 0.0 }
 0x19c   : > { %v1208_v49 = vsel %vm1206_vm3, %v5277_v40, %v5276_v2  ;;  %v4679_v25 = vpop.eup %3036  ;;  %v4681_v56 = vmax.f32 %v1767_v18, %v1768_v10  ;;  %v1704_v61 = vadd.f32 1e-10, %v1677_v5  ;;  %3042 = vrcp.f32 %v1287_v4 }
 0x19d   : > { %v1268_v55 = vadd.f32 1e-10, %v1208_v49  ;;  %v4684_v37 = vpop.eup %3038  ;;  %v1786_v63 = vsel %vm1754_vm14, %v4676_v7, -inf  ;;  %v1638_v3 = vsel %vm1637_vm7, %v4300_v13, %v4461_v30  ;;  %v1640_v28 = vand.u32 2147483648, %v4300_v13  ;;  %v5279_v30 = vld [vmem:[#allocation40_spill] sm:$0xff]  ;;  %v1423_v49 = vpop.xlane.xlu2 %1422 }
 0x19e   : > { %vm868_vm9 = vcmp.eq.f32.partialorder %v5278_v54, inf  ;;  %v4692_v15 = vpop.eup %3040  ;;  %v1807_v8 = vsub.f32 %v4638_v12, %v4681_v56  ;;  %v1823_v1 = vsub.f32 %v4658_v38, %v4681_v56  ;;  %v4698_v50 = vmax.f32 %v1785_v0, %v1786_v63  ;;  %v5280_v0 = vld [vmem:[#allocation48_spill] sm:$0xff] }
 0x19f   : > { %v1720_v9 = vmul.f32 %v1704_v61, %v5275_v31  ;;  %vm1254_vm10 = vcmp.eq.f32.partialorder %v4231_v22, 0.0  ;;  %v1893_v58 = vmul.f32 1.442695, %v1832_v33  ;;  %v1284_v51 = vmul.f32 %v1268_v55, %v5279_v30 }
 0x1a0   : > { %v1641_v13 = vsel %vm1639_vm8, %v1640_v28, %v1638_v3  ;;  %3044 = vpow2.f32 %v1867_v35  ;;  %v1869_v44 = vmul.f32 1.442695, %v1820_v57  ;;  %v1877_v21 = vmul.f32 1.442695, %v1824_v59 }
 0x1a1   : > { %v1813_v4 = vsub.f32 %v4645_v34, %v4698_v50  ;;  %v3216_v53 = vmov 0   ;;  %v1829_v38 = vsub.f32 %v4676_v7, %v4698_v50  ;;  %3046 = vrcp.f32 %v1720_v9 }
 0x1a2   : > { %2894 = vset.pattern.permute.xlu0 %v3216_v53  ;;  %2893 = vset.pattern.permute.xlu2 %v3216_v53  ;;  %v1701_v31 = vadd.f32 1e-10, %v1641_v13  ;;  %v1926_v33 = vsel %vm1754_vm14, %v4536_v29, 0.0  ;;  %v1587_v57 = vmul.f32 %v4488_v23, %v1586_v17  ;;  %v1924_v59 = vsel %vm1754_vm14, %v4672_v32, 0.0  ;;  %v3043_v14 = vpop.eup %3042 }
 0x1a3   : > { %2895 = vset.pattern.permute.xlu1 %v3216_v53  ;;  %3048 = vpow2.f32 %v1861_v39  ;;  %v1923_v35 = vsel %vm1754_vm14, %v4654_v62, 0.0  ;;  %v1253_v19 = vsel %vm1252_vm5, %v4231_v22, %v4447_v47  ;;  %v1255_v18 = vand.u32 2147483648, %v4231_v22  ;;  %v5281_v47 = vld [vmem:[#allocation21_spill] sm:$0xff] }
 0x1a4   : > { %3050 = vpow2.f32 %v1893_v58  ;;  %v1717_v20 = vmul.f32 %v1701_v31, %v5279_v30  ;;  %v1684_v23 = vmul.f32 %v4464_v52, %v5280_v0  ;;  %v4726_v17 = vmul.f32 %v4496_v43, %v4342_v6  ;;  %v5282_v43 = vld [vmem:[#allocation28_spill] sm:$0xff] }
 0x1a5   : > { %3052 = vpow2.f32 %v1869_v44  ;;  %v1928_v39 = vadd.f32 %v4642_v41, %v1926_v33  ;;  %v4731_v2 = vmul.f32 %v4502_v26, %v4350_v24  ;;  %v4735_v40 = vmul.f32 %v4558_v48, %v5281_v47  ;;  %v5283_v41 = vld [vmem:[#allocation35_spill] sm:$0xff]  ;;  %v1417_v44 = vpop.xlane.xlu1 %1416  ;;  %v5285_v31 = vld [vmem:[#allocation32_spill] sm:$0xff] }
 0x1a6   : > { %3054 = vpow2.f32 %v1877_v21  ;;  %v1925_v10 = vadd.f32 %v1924_v59, %v1923_v35  ;;  %v4737_v5 = vpop.eup %3044  ;;  %v4740_v52 = vmul.f32 %v1587_v57, %v4393_v42  ;;  %v4743_v61 = vmul.f32 %v3043_v14, %v5282_v43 }
 0x1a7   : > { %3056 = vrcp.f32 %v1284_v51  ;;  %v869_v26 = vsel %vm868_vm9, %v5278_v54, %v5283_v41  ;;  %v3047_v55 = vpop.eup %3046  ;;  %v1837_v48 = vmul.f32 1.442695, %v1804_v11  ;;  %v1845_v63 = vmul.f32 1.442695, %v1808_v45  ;;  %v5284_v51 = vld [vmem:[#allocation33_spill] sm:$0xff] }
 0x1a8   : > { %3058 = vrcp.f32 %v1717_v20  ;;  %v871_v3 = vand.u32 2147483648, %v5278_v54  ;;  %v4758_v9 = vmul.f32 %v3047_v55, %v1423_v49  ;;  %vm870_vm11 = vcmp.eq.f32.partialorder %v5278_v54, 0.0 }
 0x1a9   : > { %v4756_v28 = vpop.eup %3048  ;;  %3060 = vrcp.f32 %v1928_v39  ;;  %v1256_v58 = vsel %vm1254_vm10, %v1255_v18, %v1253_v19  ;;  %v4767_v36 = vsel %vm1754_vm14, %v4684_v37, 0.0  ;;  %vm1685_vm12 = vcmp.eq.f32.partialorder %v5280_v0, inf  ;;  %v5286_v19 = vld [vmem:[#allocation25_spill] sm:$0xff] }
 0x1aa   : > { %v4763_v30 = vpop.eup %3050  ;;  %3062 = vrcp.f32 %v1925_v10  ;;  %v872_v60 = vsel %vm870_vm11, %v871_v3, %v869_v26  ;;  %v1875_v46 = vmul.f32 1.442695, %v1823_v1  ;;  %v1797_v11 = vsel %vm1754_vm14, %v4743_v61, -inf }
 0x1ab   : > { %v4770_v16 = vpop.eup %3052  ;;  %v1798_v22 = vsel %vm1754_vm14, %v4758_v9, -inf  ;;  %v1686_v45 = vsel %vm1685_vm12, %v5280_v0, %v1684_v23  ;;  %vm1098_vm13 = vcmp.eq.f32.partialorder %v5284_v51, 0.0  ;;  %3064 = vpow2.f32 %v1837_v48 }
 0x1ac   : > { %v4777_v54 = vpop.eup %3054  ;;  %v4780_v13 = vmax.f32 %v1797_v11, %v1798_v22  ;;  %v1272_v21 = vadd.f32 1e-10, %v1256_v58  ;;  %v1688_v53 = vand.u32 2147483648, %v5280_v0  ;;  %vm1110_vm15 = vcmp.eq.f32.partialorder %v5285_v31, 0.0  ;;  %v5290_v22 = vld [vmem:[#allocation29_spill] sm:$0xff] }
 0x1ad   : > { %v3057_v1 = vpop.eup %3056  ;;  %3066 = vpow2.f32 %v1845_v63  ;;  %v1843_v33 = vmul.f32 1.442695, %v1807_v8  ;;  %v888_v57 = vadd.f32 1e-10, %v872_v60  ;;  %vm1687_vm0 = vcmp.eq.f32.partialorder %v5280_v0, 0.0  ;;  %v5289_v60 = vld [vmem:[#allocation26_spill] sm:$0xff] }
 0x1ae   : > { %v3059_v59 = vpop.eup %3058  ;;  %v1817_v35 = vsub.f32 %v4743_v61, %v4780_v13  ;;  %v1833_v14 = vsub.f32 %v4758_v9, %v4780_v13  ;;  %v4793_v18 = vmul.f32 %v3057_v1, %v5286_v19  ;;  %v1689_v20 = vsel %vm1687_vm0, %v1688_v53, %v1686_v45  ;;  %v5291_v13 = vld [vmem:[#allocation43_spill] sm:$0xff]  ;;  %v5293_v1 = vld [vmem:[#allocation42_spill] sm:$0xff] }
 0x1af   : > { %v4795_v23 = vpop.eup %3060  ;;  %v4799_v12 = vsel %vm1754_vm14, %v4737_v5, 0.0  ;;  %v4803_v56 = vsel %vm1754_vm14, %v4763_v30, 0.0  ;;  %3068 = vpow2.f32 %v1875_v46  ;;  %v4805_v8 = vmul.f32 %v3059_v59, %v1417_v44  ;;  %v5295_v19 = vld [vmem:[#allocation34_spill] sm:$0xff] }
 0x1b0   : > { %v4807_v0 = vpop.eup %3062  ;;  %v4811_v39 = vsel %vm1754_vm14, %v4770_v16, 0.0  ;;  %v4815_v49 = vsel %vm1754_vm14, %v4777_v54, 0.0  ;;  %v1972_v10 = vmul.f32 %v4795_v23, %v4536_v29  ;;  %v1288_v43 = vmul.f32 %v1272_v21, %v888_v57  ;;  %v5287_v29 = vld [vmem:[#allocation7_spill] sm:$0xff] }
 0x1b1   : > { %v1788_v61 = vsel %vm1754_vm14, %v4793_v18, -inf  ;;  %v1789_v41 = vsel %vm1754_vm14, %v4805_v8, -inf  ;;  %v1971_v26 = vmul.f32 %v4807_v0, %v4654_v62  ;;  %v1705_v55 = vadd.f32 1e-10, %v1689_v20  ;;  %v4825_v48 = vpop.eup %3064  ;;  %v5288_v62 = vld [vmem:[#allocation8_spill] sm:$0xff] }
 0x1b2   : > { %3070 = vpow2.f32 %v1843_v33  ;;  %v1855_v63 = vmul.f32 1.442695, %v1813_v4  ;;  %v4830_v3 = vmax.f32 %v1788_v61, %v1789_v41  ;;  %2074 = vperm.xlu0 %2894, %v1972_v10   ;;  %vm712_vm1 = vcmp.eq.f32.partialorder %v5287_v29, inf }
 0x1b3   : > { %v4833_v9 = vpop.eup %3066  ;;  %v1887_v58 = vmul.f32 1.442695, %v1829_v38  ;;  %2069 = vperm.xlu2 %2893, %v1971_v26   ;;  %vm724_vm2 = vcmp.eq.f32.partialorder %v5288_v62, inf  ;;  %v713_v46 = vsel %vm712_vm1, %v5287_v29, %v5289_v60  ;;  %v715_v34 = vand.u32 2147483648, %v5287_v29 }
 0x1b4   : > { %v1814_v4 = vsub.f32 %v4793_v18, %v4830_v3  ;;  %v1830_v11 = vsub.f32 %v4805_v8, %v4830_v3  ;;  %v725_v45 = vsel %vm724_vm2, %v5288_v62, %v5290_v22  ;;  %vm714_vm3 = vcmp.eq.f32.partialorder %v5287_v29, 0.0  ;;  %v5303_v3 = vld [vmem:[#allocation9_spill] sm:$0xff] }
 0x1b5   : > { %v4849_v7 = vpop.eup %3068  ;;  %3072 = vrcp.f32 %v1288_v43  ;;  %v1721_v50 = vmul.f32 %v1705_v55, %v888_v57  ;;  %v716_v38 = vsel %vm714_vm3, %v715_v34, %v713_v46  ;;  %v5292_v44 = vand.u32 2147483648, %v5284_v51 }
 0x1b6   : > { %3074 = vpow2.f32 %v1855_v63  ;;  %v727_v53 = vand.u32 2147483648, %v5288_v62  ;;  %v5294_v33 = vand.u32 2147483648, %v5285_v31  ;;  %vm1529_vm4 = vcmp.eq.f32.partialorder %v4350_v24, inf }
 0x1b7   : > { %v1100_v21 = vsel %vm1098_vm13, %v5292_v44, %v5291_v13  ;;  %vm1146_vm5 = vcmp.eq.f32.partialorder %v5295_v19, 0.0  ;;  %vm726_vm6 = vcmp.eq.f32.partialorder %v5288_v62, 0.0  ;;  %v875_v57 = vadd.f32 1e-10, %v716_v38  ;;  %v5297_v13 = vld [vmem:[#allocation27_spill] sm:$0xff] }
 0x1b8   : > { %v1112_v59 = vsel %vm1110_vm15, %v5294_v33, %v5293_v1  ;;  %v1259_v18 = vadd.f32 1e-10, %v1100_v21  ;;  %v1530_v51 = vsel %vm1529_vm4, %v4350_v24, %v4731_v2  ;;  %v4867_v20 = vpop.eup %3070  ;;  %v4871_v10 = vsel %vm1754_vm14, %v4849_v7, 0.0  ;;  %v5299_v33 = vld [vmem:[#allocation31_spill] sm:$0xff] }
 0x1b9   : > { %3076 = vpow2.f32 %v1887_v58  ;;  %v728_v31 = vsel %vm726_vm6, %v727_v53, %v725_v45  ;;  %v1532_v43 = vand.u32 2147483648, %v4350_v24  ;;  %v1260_v61 = vadd.f32 1e-10, %v1112_v59  ;;  %v5296_v45 = vld [vmem:[#allocation37_spill] sm:$0xff] }
 0x1ba   : > { %3078 = vrcp.f32 %v1721_v50  ;;  %v1275_v41 = vmul.f32 %v1259_v18, %v875_v57  ;;  %vm1531_vm7 = vcmp.eq.f32.partialorder %v4350_v24, 0.0  ;;  %vm1541_vm8 = vcmp.eq.f32.partialorder %v5281_v47, inf  ;;  %v1425_v50 = vpop.xlane.xlu0 %1424 }
 0x1bb   : > { %v1533_v26 = vsel %vm1531_vm7, %v1532_v43, %v1530_v51  ;;  %v1899_v2 = vsel %vm1754_vm14, %v4692_v15, 0.0  ;;  %v1935_v55 = vsel %vm1754_vm14, %v4679_v25, 0.0  ;;  %v3073_v63 = vpop.eup %3072  ;;  %v4880_v29 = vmul.f32 1.442695, %v1817_v35 }
 0x1bc   : > { %v4882_v58 = vmul.f32 1.442695, %v1833_v14  ;;  %v876_v62 = vadd.f32 1e-10, %v728_v31  ;;  %v1542_v60 = vsel %vm1541_vm8, %v5281_v47, %v4735_v40  ;;  %v4886_v46 = vpop.eup %3074  ;;  %3080 = vrcp.f32 %v1275_v41  ;;  %v5300_v31 = vld [vmem:[#allocation44_spill] sm:$0xff] }
 0x1bd   : > { %v1692_v24 = vadd.f32 1e-10, %v1533_v26  ;;  %v1901_v34 = vadd.f32 %v4799_v12, %v1899_v2  ;;  %v1937_v22 = vadd.f32 %v4767_v36, %v1935_v55  ;;  %vm1158_vm9 = vcmp.eq.f32.partialorder %v5296_v45, 0.0  ;;  %v5298_v36 = vld [vmem:[#allocation10_spill] sm:$0xff] }
 0x1be   : > { %v4891_v38 = vmul.f32 %v1260_v61, %v876_v62  ;;  %vm1543_vm10 = vcmp.eq.f32.partialorder %v5281_v47, 0.0  ;;  %v1544_v35 = vand.u32 2147483648, %v5281_v47  ;;  %v1938_v40 = vsel %vm1754_vm14, %v4756_v28, 0.0 }
 0x1bf   : > { %v4897_v14 = vpop.eup %3076  ;;  %v4900_v44 = vmul.f32 %v3073_v63, %v5297_v13  ;;  %v1708_v12 = vmul.f32 %v1692_v24, %v875_v57  ;;  %3082 = vrcp.f32 %v1901_v34  ;;  %vm760_vm11 = vcmp.eq.f32.partialorder %v5298_v36, inf  ;;  %v5302_v34 = vld [vmem:[#allocation16_spill] sm:$0xff] }
 0x1c0   : > { %v3079_v21 = vpop.eup %3078  ;;  %v1545_v53 = vsel %vm1543_vm10, %v1544_v35, %v1542_v60  ;;  %v1940_v1 = vadd.f32 %v4803_v56, %v1938_v40  ;;  %v761_v59 = vsel %vm760_vm11, %v5298_v36, %v5299_v33  ;;  %v763_v47 = vand.u32 2147483648, %v5298_v36  ;;  %v5304_v35 = vld [vmem:[#allocation30_spill] sm:$0xff] }
 0x1c1   : > { %v1857_v18 = vmul.f32 1.442695, %v1814_v4  ;;  %v4907_v51 = vmul.f32 %v3079_v21, %v1425_v50  ;;  %vm762_vm12 = vcmp.eq.f32.partialorder %v5298_v36, 0.0  ;;  %v5301_v57 = vand.u32 2147483648, %v5295_v19  ;;  %v5305_v36 = vld [vmem:[#allocation45_spill] sm:$0xff] }
 0x1c2   : > { %3084 = vrcp.f32 %v1708_v12  ;;  %v764_v61 = vsel %vm762_vm12, %v763_v47, %v761_v59  ;;  %vm1577_vm13 = vcmp.eq.f32.partialorder %v4342_v6, inf  ;;  %v3081_v56 = vpop.eup %3080  ;;  %v1889_v4 = vmul.f32 1.442695, %v1830_v11  ;;  %v1399_v11 = vpop.xlane.xlu1 %1398 }
 0x1c3   : > { %v1148_v43 = vsel %vm1146_vm5, %v5301_v57, %v5300_v31  ;;  %v1800_v26 = vsel %vm1754_vm14, %v4900_v44, -inf  ;;  %3086 = vrcp.f32 %v1937_v22  ;;  %v1578_v2 = vsel %vm1577_vm13, %v4342_v6, %v4726_v17 }
 0x1c4   : > { %v1263_v41 = vadd.f32 1e-10, %v1148_v43  ;;  %v1693_v55 = vadd.f32 1e-10, %v1545_v53  ;;  %3088 = vrcp.f32 %v1940_v1  ;;  %v879_v19 = vadd.f32 1e-10, %v764_v61 }
 0x1c5   : > { %v1580_v63 = vand.u32 2147483648, %v4342_v6  ;;  %v4924_v60 = vpop.eup %3082  ;;  %v1801_v24 = vsel %vm1754_vm14, %v4907_v51, -inf  ;;  %v4929_v8 = vmul.f32 %v3081_v56, %v5302_v34  ;;  %vm1579_vm15 = vcmp.eq.f32.partialorder %v4342_v6, 0.0 }
 0x1c6   : > { %vm772_vm0 = vcmp.eq.f32.partialorder %v5303_v3, inf  ;;  %v1963_v17 = vmul.f32 %v4924_v60, %v4692_v15  ;;  %v1279_v22 = vmul.f32 %v1263_v41, %v879_v19  ;;  %3090 = vpow2.f32 %v1889_v4 }
 0x1c7   : > { %v1581_v50 = vsel %vm1579_vm15, %v1580_v63, %v1578_v2  ;;  %v773_v40 = vsel %vm772_vm0, %v5303_v3, %v5304_v35  ;;  %v775_v12 = vand.u32 2147483648, %v5303_v3  ;;  %v5306_v21 = vand.u32 2147483648, %v5296_v45  ;;  %v1407_v63 = vpop.xlane.xlu0 %1406 }
 0x1c8   : > { %v1696_v13 = vadd.f32 1e-10, %v1581_v50  ;;  %v3085_v53 = vpop.eup %3084  ;;  %3092 = vpow2.f32 %v1857_v18  ;;  %v4943_v1 = vmax.f32 %v1800_v26, %v1801_v24  ;;  %2029 = vperm.xlu0 %2894, %v1963_v17   ;;  %vm774_vm1 = vcmp.eq.f32.partialorder %v5303_v3, 0.0 }
 0x1c9   : > { %v1160_v6 = vsel %vm1158_vm9, %v5306_v21, %v5305_v36  ;;  %v3087_v33 = vpop.eup %3086  ;;  %v1709_v59 = vmul.f32 %v1693_v55, %v876_v62  ;;  %v4946_v47 = vmul.f32 %v3085_v53, %v1399_v11  ;;  %v776_v57 = vsel %vm774_vm1, %v775_v12, %v773_v40 }
 0x1ca   : > { %v1264_v15 = vadd.f32 1e-10, %v1160_v6  ;;  %v1712_v31 = vmul.f32 %v1696_v13, %v879_v19  ;;  %v4948_v43 = vpop.eup %3088  ;;  %v1761_v45 = vsel %vm1754_vm14, %v4929_v8, -inf  ;;  %v1975_v61 = vmul.f32 %v3087_v33, %v4679_v25 }
 0x1cb   : > { %3094 = vrcp.f32 %v1279_v22  ;;  %v880_v18 = vadd.f32 1e-10, %v776_v57  ;;  %v1762_v41 = vsel %vm1754_vm14, %v4946_v47, -inf  ;;  %v1976_v56 = vmul.f32 %v4948_v43, %v4756_v28 }
 0x1cc   : > { %3096 = vrcp.f32 %v1712_v31  ;;  %vm1589_vm2 = vcmp.eq.f32.partialorder %v4393_v42, inf  ;;  %v4959_v62 = vmax.f32 %v1761_v45, %v1762_v41  ;;  %2089 = vperm.xlu1 %2895, %v1975_v61   ;;  %v4963_v26 = vpop.eup %3090  ;;  %v1930_v2 = vsel %vm1754_vm14, %v4897_v14, 0.0 }
 0x1cd   : > { %3098 = vpow2.f32 %v4882_v58  ;;  %v1280_v4 = vmul.f32 %v1264_v15, %v880_v18  ;;  %v1590_v25 = vsel %vm1589_vm2, %v4393_v42, %v4740_v52  ;;  %2094 = vperm.xlu2 %2893, %v1976_v56   ;;  %v1592_v28 = vand.u32 2147483648, %v4393_v42 }
 0x1ce   : > { %3100 = vrcp.f32 %v4891_v38  ;;  %v1914_v58 = vsel %vm1754_vm14, %v4833_v9, 0.0  ;;  %v4971_v55 = vpop.eup %3092  ;;  %v1805_v52 = vsub.f32 %v4929_v8, %v4959_v62  ;;  %v1821_v19 = vsub.f32 %v4946_v47, %v4959_v62 }
 0x1cf   : > { %3102 = vpow2.f32 %v4880_v29  ;;  %vm1591_vm3 = vcmp.eq.f32.partialorder %v4393_v42, 0.0  ;;  %v1818_v38 = vsub.f32 %v4900_v44, %v4943_v1  ;;  %v1916_v34 = vadd.f32 %v4815_v49, %v1914_v58  ;;  %v5309_v58 = vld [vmem:[#allocation17_spill] sm:$0xff] }
 0x1d0   : > { %3104 = vrcp.f32 %v1709_v59  ;;  %v1593_v24 = vsel %vm1591_vm3, %v1592_v28, %v1590_v25  ;;  %v1933_v29 = vsel %vm1754_vm14, %v4963_v26, 0.0  ;;  %v1834_v11 = vsub.f32 %v4907_v51, %v4943_v1  ;;  %v1401_v1 = vpop.xlane.xlu2 %1400  ;;  %v1409_v25 = vpop.xlane.xlu1 %1408 }
 0x1d1   : > { %v3095_v3 = vpop.eup %3094  ;;  %3106 = vrcp.f32 %v1280_v4  ;;  %v1991_v17 = vmul.f32 %v3087_v33, %v4684_v37  ;;  %v1697_v42 = vadd.f32 1e-10, %v1593_v24  ;;  %v1911_v44 = vsel %vm1754_vm14, %v4867_v20, 0.0 }
 0x1d2   : > { %v3097_v22 = vpop.eup %3096  ;;  %3108 = vrcp.f32 %v1916_v34  ;;  %v1902_v50 = vsel %vm1754_vm14, %v4825_v48, 0.0  ;;  %v1988_v40 = vmul.f32 %v4795_v23, %v4595_v27  ;;  %v1913_v51 = vadd.f32 %v4871_v10, %v1911_v44  ;;  %v5307_v27 = vld [vmem:[#allocation18_spill] sm:$0xff] }
 0x1d3   : > { %v4991_v49 = vpop.eup %3098  ;;  %v4993_v35 = vmul.f32 %v3097_v22, %v1407_v63  ;;  %v1904_v37 = vadd.f32 %v4811_v39, %v1902_v50  ;;  %v1713_v12 = vmul.f32 %v1697_v42, %v880_v18  ;;  %v1987_v36 = vmul.f32 %v4807_v0, %v4672_v32 }
 0x1d4   : > { %v3101_v13 = vpop.eup %3100  ;;  %v1932_v21 = vsel %vm1754_vm14, %v4971_v55, 0.0  ;;  %v5005_v6 = vmul.f32 %v4924_v60, %v4737_v5  ;;  %v1311_v23 = vmul.f32 %v3095_v3, %v5307_v27  ;;  %2219 = vperm.xlu1 %2895, %v1988_v40   ;;  %3110 = vrcp.f32 %v1913_v51  ;;  %v5308_v5 = vld [vmem:[#allocation15_spill] sm:$0xff] }
 0x1d5   : > { %v5007_v53 = vpop.eup %3102  ;;  %v1934_v39 = vadd.f32 %v1933_v29, %v1932_v21  ;;  %v1942_v15 = vsel %vm1754_vm14, %v4991_v49, 0.0  ;;  %3112 = vrcp.f32 %v1713_v12  ;;  %2214 = vperm.xlu2 %2893, %v1987_v36   ;;  %v1929_v32 = vsel %vm1754_vm14, %v4886_v46, 0.0 }
 0x1d6   : > { %v3105_v10 = vpop.eup %3104  ;;  %v5015_v60 = vmul.f32 %v3101_v13, %v5308_v5  ;;  %v1774_v33 = vsel %vm1754_vm14, %v4993_v35, -inf  ;;  %3114 = vrcp.f32 %v1904_v37  ;;  %v1931_v59 = vadd.f32 %v1930_v2, %v1929_v32 }
 0x1d7   : > { %v3107_v0 = vpop.eup %3106  ;;  %v1865_v57 = vmul.f32 1.442695, %v1818_v38  ;;  %v1897_v45 = vmul.f32 1.442695, %v1834_v11  ;;  %v5019_v61 = vmul.f32 %v3105_v10, %v1401_v1  ;;  %3116 = vrcp.f32 %v1934_v39 }
 0x1d8   : > { %v3109_v31 = vpop.eup %3108  ;;  %v1773_v18 = vsel %vm1754_vm14, %v1311_v23, -inf  ;;  %3118 = vrcp.f32 %v1931_v59  ;;  %v1764_v2 = vsel %vm1754_vm14, %v5015_v60, -inf  ;;  %v1312_v38 = vmul.f32 %v3107_v0, %v5309_v58 }
 0x1d9   : > { %v1968_v41 = vmul.f32 %v3109_v31, %v4833_v9  ;;  %v5024_v56 = vmul.f32 %v3109_v31, %v4777_v54  ;;  %v1775_v4 = vmax.f32 %v1773_v18, %v1774_v33  ;;  %v1992_v63 = vmul.f32 %v4948_v43, %v4763_v30 }
 0x1da   : > { %v3111_v28 = vpop.eup %3110  ;;  %v1941_v24 = vsel %vm1754_vm14, %v5007_v53, 0.0  ;;  %3120 = vpow2.f32 %v1865_v57  ;;  %v1765_v11 = vsel %vm1754_vm14, %v5019_v61, -inf  ;;  %v1871_v22 = vmul.f32 1.442695, %v1821_v19 }
 0x1db   : > { %2054 = vperm.xlu0 %2894, %v1968_v41   ;;  %v3113_v9 = vpop.eup %3112  ;;  %v1983_v54 = vmul.f32 %v3111_v28, %v4849_v7  ;;  %v1967_v34 = vmul.f32 %v3111_v28, %v4867_v20  ;;  %v1943_v3 = vadd.f32 %v1942_v15, %v1941_v24  ;;  %3122 = vpow2.f32 %v1897_v45 }
 0x1dc   : > { %v3115_v29 = vpop.eup %3114  ;;  %v1745_v30 = vmul.f32 %v3113_v9, %v1409_v25  ;;  %2239 = vperm.xlu1 %2895, %v1992_v63   ;;  %v1809_v42 = vsub.f32 %v1311_v23, %v1775_v4  ;;  %v1825_v50 = vsub.f32 %v4993_v35, %v1775_v4  ;;  %v1776_v40 = vsel %vm1754_vm14, %v1312_v38, -inf }
 0x1dd   : > { %v3117_v43 = vpop.eup %3116  ;;  %2234 = vperm.xlu2 %2893, %v1991_v17   ;;  %v1964_v44 = vmul.f32 %v3115_v29, %v4825_v48  ;;  %v1980_v7 = vmul.f32 %v3115_v29, %v4770_v16  ;;  %3124 = vrcp.f32 %v1943_v3  ;;  %v1839_v19 = vmul.f32 1.442695, %v1805_v52 }
 0x1de   : > { %v3119_v20 = vpop.eup %3118  ;;  %v1777_v51 = vsel %vm1754_vm14, %v1745_v30, -inf  ;;  %v1974_v47 = vmul.f32 %v3117_v43, %v4971_v55  ;;  %v1766_v16 = vmax.f32 %v1764_v2, %v1765_v11  ;;  %3126 = vpow2.f32 %v1871_v22 }
 0x1df   : > { %v1778_v37 = vmax.f32 %v1776_v40, %v1777_v51  ;;  %v1989_v17 = vmul.f32 %v3119_v20, %v4897_v14  ;;  %v1973_v48 = vmul.f32 %v3119_v20, %v4886_v46  ;;  %v1847_v35 = vmul.f32 1.442695, %v1809_v42  ;;  %v2627_v20 = vld [vmem:[%s5179_s3 + $0x30] sm:$0xff]  ;;  %v2625_v40 = vld [vmem:[%s5179_s3 + $0x20] sm:$0xff] }
 0x1e0   : > { %v5051_v13 = vpop.eup %3120  ;;  %v1879_v1 = vmul.f32 1.442695, %v1825_v50  ;;  %3128 = vpow2.f32 %v1839_v19  ;;  %v1806_v8 = vsub.f32 %v5015_v60, %v1766_v16  ;;  %v5057_v46 = vmul.f32 %v3117_v43, %v4963_v26  ;;  %v2626_v50 = vld [vmem:[%s5179_s3 + $0x28] sm:$0xff] }
 0x1e1   : > { %v1810_v12 = vsub.f32 %v1312_v38, %v1778_v37  ;;  %v1826_v36 = vsub.f32 %v1745_v30, %v1778_v37  ;;  %v3123_v21 = vpop.eup %3122  ;;  %v1822_v52 = vsub.f32 %v5019_v61, %v1766_v16  ;;  %3130 = vpow2.f32 %v1847_v35  ;;  %v2623_v37 = vld [vmem:[%s5179_s3 + $0x10] sm:$0xff]  ;;  %v2621_v16 = vld [vmem:[%s5179_s3] sm:$0xff] }
 0x1e2   : > { %3132 = vpow2.f32 %v1879_v1  ;;  %v1945_v39 = vsel %vm1754_vm14, %v3123_v21, 0.0  ;;  %v1944_v15 = vsel %vm1754_vm14, %v5051_v13, 0.0  ;;  %v1841_v32 = vmul.f32 1.442695, %v1806_v8 }
 0x1e3   : > { %2194 = vperm.xlu0 %2894, %v1983_v54   ;;  %v3125_v55 = vpop.eup %3124  ;;  %v1881_v27 = vmul.f32 1.442695, %v1826_v36  ;;  %v1849_v10 = vmul.f32 1.442695, %v1810_v12  ;;  %v1873_v0 = vmul.f32 1.442695, %v1822_v52 }
 0x1e4   : > { %2049 = vperm.xlu1 %2895, %v1967_v34   ;;  %v1977_v62 = vmul.f32 %v3125_v55, %v5007_v53  ;;  %v1993_v14 = vmul.f32 %v3125_v55, %v4991_v49  ;;  %v3127_v23 = vpop.eup %3126  ;;  %v1946_v49 = vadd.f32 %v1945_v39, %v1944_v15  ;;  %v2823_v36 = vld [vmem:[%s5104_s8 + $0x60] sm:$0xff]  }
 0x1e5   : > { %2034 = vperm.xlu2 %2893, %v1964_v44   ;;  %3134 = vpow2.f32 %v1881_v27  ;;  %v1906_v26 = vsel %vm1754_vm14, %v3127_v23, 0.0  ;;  %v2628_v44 = vld [vmem:[%s5179_s3 + $0x38] sm:$0xff]  ;;  %v2815_v55 = vld [vmem:[%s5104_s8 + $0x20] sm:$0xff]   ;;  %v2776_v8 = vunpack.c.l.bf16 %v2823_v36  ;;  %v2777_v52 = vunpack.c.h.bf16 %v2823_v36 }
 0x1e6   : > { %v3129_v53 = vpop.eup %3128  ;;  %3136 = vpow2.f32 %v1849_v10  ;;  %2828 = vmatpush.bf16.msra.mxu2 %v2628_v44  ;;  %2829 = vmatpush.bf16.msra.mxu3 %v2628_v44 }
 0x1e7   : > { %v3131_v5 = vpop.eup %3130  ;;  %3138 = vpow2.f32 %v1841_v32  ;;  %v1905_v33 = vsel %vm1754_vm14, %v3129_v53, 0.0  ;;  %2827 = vmatpush.bf16.msra.mxu1 %v2628_v44  ;;  %2356 = vmatpush.bf16.msra.mxu0 %v2628_v44 }
 0x1e8   : > { %v5064_v60 = vpop.eup %3132  ;;  %3140 = vpow2.f32 %v1873_v0  ;;  %v1907_v59 = vadd.f32 %v1906_v26, %v1905_v33  ;;  %v1917_v45 = vsel %vm1754_vm14, %v3131_v5, 0.0  ;;  %v2825_v0 = vld [vmem:[%s5104_s8 + $0x70] sm:$0xff]  }
 0x1e9   : > { %3142 = vrcp.f32 %v1946_v49  ;;  %v1918_v57 = vsel %vm1754_vm14, %v5064_v60, 0.0  ;;  %v2784_v33 = vunpack.c.l.bf16 %v2825_v0 }
 0x1ea   : > { %3144 = vrcp.f32 %v1907_v59  ;;  %v1919_v4 = vadd.f32 %v1918_v57, %v1917_v45  ;;  %2831 = vmatpush.bf16.msra.mxu2 %v2627_v20  ;;  %2832 = vmatpush.bf16.msra.mxu3 %v2627_v20 }
 0x1eb   : > { %2084 = vperm.xlu0 %2894, %v1974_v47   ;;  %v3135_v31 = vpop.eup %3134  ;;  %2830 = vmatpush.bf16.msra.mxu1 %v2627_v20  ;;  %v2624_v47 = vld [vmem:[%s5179_s3 + $0x18] sm:$0xff] }
 0x1ec   : > { %2179 = vperm.xlu1 %2895, %v1980_v7   ;;  %v3137_v61 = vpop.eup %3136  ;;  %v1921_v41 = vsel %vm1754_vm14, %v3135_v31, 0.0  ;;  %3146 = vrcp.f32 %v1919_v4  ;;  %2357 = vmatpush.bf16.msra.mxu0 %v2627_v20 }
 0x1ed   : > { %2174 = vperm.xlu2 %2893, %v5005_v6   ;;  %v3139_v18 = vpop.eup %3138  ;;  %v1920_v6 = vsel %vm1754_vm14, %v3137_v61, 0.0 }
 0x1ee   : > { %v3141_v25 = vpop.eup %3140  ;;  %v1922_v58 = vadd.f32 %v1921_v41, %v1920_v6  ;;  %v1908_v54 = vsel %vm1754_vm14, %v3139_v18, 0.0  ;;  %2834 = vmatpush.bf16.msra.mxu2 %v2626_v50  ;;  %2835 = vmatpush.bf16.msra.mxu3 %v2626_v50  ;;  %v2813_v6 = vld [vmem:[%s5104_s8 + $0x10] sm:$0xff]  }
 0x1ef   : > { %v3143_v28 = vpop.eup %3142  ;;  %v1909_v24 = vsel %vm1754_vm14, %v3141_v25, 0.0  ;;  %2833 = vmatpush.bf16.msra.mxu1 %v2626_v50 }
 0x1f0   : > { %v3145_v2 = vpop.eup %3144  ;;  %3148 = vrcp.f32 %v1922_v58  ;;  %v1994_v9 = vmul.f32 %v3143_v28, %v3123_v21  ;;  %v1978_v34 = vmul.f32 %v3143_v28, %v5051_v13  ;;  %v1910_v3 = vadd.f32 %v1909_v24, %v1908_v54  ;;  %2358 = vmatpush.bf16.msra.mxu0 %v2626_v50 }
 0x1f1   : > { %v1965_v38 = vmul.f32 %v3145_v2, %v3129_v53  ;;  %v1981_v63 = vmul.f32 %v3145_v2, %v3127_v23  ;;  %v2817_v53 = vld [vmem:[%s5104_s8 + $0x30] sm:$0xff]   ;;  %v2736_v54 = vunpack.c.l.bf16 %v2813_v6 }
 0x1f2   : > { %v3147_v29 = vpop.eup %3146  ;;  %3150 = vrcp.f32 %v1910_v3  ;;  %2837 = vmatpush.bf16.msra.mxu2 %v2625_v40  ;;  %2838 = vmatpush.bf16.msra.mxu3 %v2625_v40  ;;  %v2752_v49 = vunpack.c.l.bf16 %v2817_v53 }
 0x1f3   : > { %2224 = vperm.xlu0 %2894, %v1989_v17   ;;  %v1969_v30 = vmul.f32 %v3147_v29, %v3131_v5  ;;  %v1985_v51 = vmul.f32 %v3147_v29, %v5064_v60  ;;  %2836 = vmatpush.bf16.msra.mxu1 %v2625_v40  ;;  %v2622_v17 = vld [vmem:[%s5179_s3 + $0x8] sm:$0xff]  ;;  %v2753_v60 = vunpack.c.h.bf16 %v2817_v53  ;;  %v2819_v29 = vld [vmem:[%s5104_s8 + $0x40] sm:$0xff]  }
 0x1f4   : > { %2079 = vperm.xlu1 %2895, %v1973_v48   ;;  %2359 = vmatpush.bf16.msra.mxu0 %v2625_v40  ;;  %v2760_v44 = vunpack.c.l.bf16 %v2819_v29 }
 0x1f5   : > { %2199 = vperm.xlu2 %2893, %v5024_v56  }
 0x1f6   : > { %v3149_v11 = vpop.eup %3148  ;;  %2840 = vmatpush.bf16.msra.mxu2 %v2624_v47  ;;  %2841 = vmatpush.bf16.msra.mxu3 %v2624_v47 }
 0x1f7   : > { %v1970_v22 = vmul.f32 %v3149_v11, %v3137_v61  ;;  %v1986_v56 = vmul.f32 %v3149_v11, %v3135_v31  ;;  %2839 = vmatpush.bf16.msra.mxu1 %v2624_v47  ;;  %v2785_v31 = vunpack.c.h.bf16 %v2825_v0  ;;  %v2821_v61 = vld [vmem:[%s5104_s8 + $0x50] sm:$0xff]  }
 0x1f8   : > { %v3151_v43 = vpop.eup %3150  ;;  %2360 = vmatpush.bf16.msra.mxu0 %v2624_v47  ;;  %v2769_v58 = vunpack.c.h.bf16 %v2821_v61  ;;  %v2768_v24 = vunpack.c.l.bf16 %v2821_v61  ;;  %v2761_v47 = vunpack.c.h.bf16 %v2819_v29 }
 0x1f9   : > { %v1982_v42 = vmul.f32 %v3151_v43, %v3141_v25  ;;  %v1966_v7 = vmul.f32 %v3151_v43, %v3139_v18  ;;  %v2727_v43 = vld [vmem:[%s5104_s8] sm:$0xff]  }
 0x1fa   : > { %2843 = vmatpush.bf16.msra.mxu2 %v2623_v37  ;;  %2844 = vmatpush.bf16.msra.mxu3 %v2623_v37  ;;  %v2728_v50 = vunpack.c.l.bf16 %v2727_v43  ;;  %v2729_v40 = vunpack.c.h.bf16 %v2727_v43 }
 0x1fb   : > { %2249 = vperm.xlu0 %2894, %v1994_v9   ;;  %2842 = vmatpush.bf16.msra.mxu1 %v2623_v37 }
 0x1fc   : > { %2104 = vperm.xlu1 %2895, %v1978_v34   ;;  %2361 = vmatpush.bf16.msra.mxu0 %v2623_v37 }
 0x1fd   : > { %2099 = vperm.xlu2 %2893, %v1977_v62  }
 0x1fe   : > { %2846 = vmatpush.bf16.msra.mxu2 %v2622_v17  ;;  %2847 = vmatpush.bf16.msra.mxu3 %v2622_v17 }
 0x1ff   : > { %2845 = vmatpush.bf16.msra.mxu1 %v2622_v17 }
 0x200   : > { %2362 = vmatpush.bf16.msra.mxu0 %v2622_v17  ;;  %v2824_v17 = vld [vmem:[%s5104_s8 + $0x68] sm:$0xff]  }
 0x202   : > { %2849 = vmatpush.bf16.msra.mxu2 %v2621_v16  ;;  %2850 = vmatpush.bf16.msra.mxu3 %v2621_v16 }
 0x203   : > { %2059 = vperm.xlu0 %2894, %v1969_v30   ;;  %2848 = vmatpush.bf16.msra.mxu1 %v2621_v16 }
 0x204   : > { %2244 = vperm.xlu1 %2895, %v1993_v14   ;;  %2363 = vmatpush.bf16.msra.mxu0 %v2621_v16  ;;  %v2744_v14 = vunpack.c.l.bf16 %v2815_v55 }
 0x205   : > { %2229 = vperm.xlu2 %2893, %v5057_v46   ;;  %v2745_v46 = vunpack.c.h.bf16 %v2815_v55 }
 0x20b   : > { %2189 = vperm.xlu0 %2894, %v1982_v42  }
 0x20c   : > { %2044 = vperm.xlu1 %2895, %v1966_v7  }
 0x20d   : > { %2039 = vperm.xlu2 %2893, %v1965_v38   ;;  %v2070_v19 = vpop.permute.xlu2 %2069 }
 0x20e   : > { %v2115_v39 = vmul.f32 %v2744_v14, %v2070_v19 }
 0x214   : > { %2184 = vperm.xlu1 %2895, %v1981_v63   ;;  %v2737_v63 = vunpack.c.h.bf16 %v2813_v6 }
 0x215   : > { %2064 = vperm.xlu2 %2893, %v1970_v22  }
 0x21c   : > { %2209 = vperm.xlu1 %2895, %v1986_v56  }
 0x21d   : > { %2204 = vperm.xlu2 %2893, %v1985_v51  }
 0x224   : > { %v2075_v12 = vpop.permute.xlu0 %2074 }
 0x225   : > { %v2116_v10 = vmul.f32 %v2745_v46, %v2075_v12  ;;  %v2816_v12 = vld [vmem:[%s5104_s8 + $0x28] sm:$0xff]   ;;  %v2780_v46 = vunpack.c.l.bf16 %v2824_v17 }
 0x226   : > { %v2749_v14 = vunpack.c.h.bf16 %v2816_v12 }
 0x227   : > { %v2095_v48 = vpop.permute.xlu2 %2094 }
 0x228   : > { %v2120_v41 = vmul.f32 %v2753_v60, %v2095_v48 }
 0x22f   : > { %v2215_v13 = vpop.permute.xlu2 %2214 }
 0x230   : > { %v2260_v27 = vmul.f32 %v2776_v8, %v2215_v13 }
 0x232   : > { %v2276_v26 = vadd.f32 %v2260_v27, %v2115_v39  ;;  %v2748_v27 = vunpack.c.l.bf16 %v2816_v12 }
 0x237   : > { %v2235_v35 = vpop.permute.xlu2 %2234 }
 0x238   : > { %v2264_v4 = vmul.f32 %v2784_v33, %v2235_v35 }
 0x23a   : > { %v2030_v62 = vpop.permute.xlu0 %2029 }
 0x23b   : > { %v2107_v16 = vmul.f32 %v2728_v50, %v2030_v62 }
 0x23e   : > { %v2090_v21 = vpop.permute.xlu1 %2089 }
 0x23f   : > { %v2035_v1 = vpop.permute.xlu2 %2034  ;;  %v2119_v45 = vmul.f32 %v2752_v49, %v2090_v21  ;;  %v2781_v21 = vunpack.c.h.bf16 %v2824_v17  ;;  %v2818_v49 = vld [vmem:[%s5104_s8 + $0x38] sm:$0xff]  }
 0x240   : > { %v2108_v13 = vmul.f32 %v2729_v40, %v2035_v1  ;;  %v2757_v33 = vunpack.c.h.bf16 %v2818_v49 }
 0x241   : > { %v2280_v2 = vadd.f32 %v2264_v4, %v2119_v45 }
 0x246   : > { %v2220_v23 = vpop.permute.xlu1 %2219 }
 0x247   : > { %v2175_v15 = vpop.permute.xlu2 %2174  ;;  %v2261_v32 = vmul.f32 %v2777_v52, %v2220_v23 }
 0x248   : > { %v2252_v37 = vmul.f32 %v2760_v44, %v2175_v15 }
 0x249   : > { %v2277_v5 = vadd.f32 %v2261_v32, %v2116_v10 }
 0x24a   : > { %v2268_v36 = vadd.f32 %v2252_v37, %v2107_v16 }
 0x24b   : > { %v2288_v59 = vpack.c.bf16 %v2277_v5, %v2276_v26  ;;  %v2826_v5 = vld [vmem:[%s5104_s8 + $0x78] sm:$0xff]  }
 0x24d   : > { %v2055_v57 = vpop.permute.xlu0 %2054  ;;  %2384 = vmatmul.bf16.vlgmr.msra.gmra.mxu2 %v2288_v59  ;;  %v2756_v59 = vunpack.c.l.bf16 %v2818_v49 }
 0x24e   : > { %v2240_v18 = vpop.permute.xlu1 %2239  ;;  %v2112_v22 = vmul.f32 %v2737_v63, %v2055_v57  ;;  %v2788_v57 = vunpack.c.l.bf16 %v2826_v5  ;;  %v2812_v63 = vld [vmem:[%s5104_s8 + $0x8] sm:$0xff]  }
 0x24f   : > { %v2200_v25 = vpop.permute.xlu2 %2199  ;;  %v2265_v28 = vmul.f32 %v2785_v31, %v2240_v18  ;;  %v2789_v31 = vunpack.c.h.bf16 %v2826_v5 }
 0x250   : > { %v2257_v3 = vmul.f32 %v2769_v58, %v2200_v25 }
 0x251   : > { %v2281_v38 = vadd.f32 %v2265_v28, %v2120_v41 }
 0x252   : > { %v2273_v7 = vadd.f32 %v2257_v3, %v2112_v22 }
 0x253   : > { %v2290_v9 = vpack.c.bf16 %v2281_v38, %v2280_v2 }
 0x255   : > { %v2195_v34 = vpop.permute.xlu0 %2194  ;;  %2394 = vmatmul.bf16.vlgmr.msra.gmra.mxu3 %v2290_v9  ;;  %v2820_v9 = vld [vmem:[%s5104_s8 + $0x48] sm:$0xff]  }
 0x256   : > { %v2050_v11 = vpop.permute.xlu1 %2049  ;;  %v2256_v56 = vmul.f32 %v2768_v24, %v2195_v34  ;;  %v2732_v34 = vunpack.c.l.bf16 %v2812_v63  ;;  %v2765_v3 = vunpack.c.h.bf16 %v2820_v9  ;;  %v2764_v29 = vunpack.c.l.bf16 %v2820_v9 }
 0x257   : > { %v2111_v30 = vmul.f32 %v2736_v54, %v2050_v11  ;;  %v2100_v42 = vpop.permute.xlu2 %2099  ;;  %v2733_v54 = vunpack.c.h.bf16 %v2812_v63 }
 0x258   : > { %v2121_v41 = vmul.f32 %v2756_v59, %v2100_v42 }
 0x259   : > { %v2272_v20 = vadd.f32 %v2256_v56, %v2111_v30  ;;  %v2822_v56 = vld [vmem:[%s5104_s8 + $0x58] sm:$0xff]  }
 0x25a   : > { %v2773_v17 = vunpack.c.h.bf16 %v2822_v56 }
 0x25b   : > { %v2286_v51 = vpack.c.bf16 %v2273_v7, %v2272_v20  ;;  %v2814_v7 = vld [vmem:[%s5104_s8 + $0x18] sm:$0xff]   ;;  %v2772_v20 = vunpack.c.l.bf16 %v2822_v56 }
 0x25d   : > { %v2085_v19 = vpop.permute.xlu0 %2084  ;;  %2374 = vmatmul.bf16.vlgmr.msra.gmra.mxu1 %v2286_v51 }
 0x25e   : > { %v2180_v48 = vpop.permute.xlu1 %2179  ;;  %v2118_v15 = vmul.f32 %v2749_v14, %v2085_v19  ;;  %v2741_v19 = vunpack.c.h.bf16 %v2814_v7 }
 0x25f   : > { %v2253_v35 = vmul.f32 %v2761_v47, %v2180_v48  ;;  %v2230_v8 = vpop.permute.xlu2 %2229  ;;  %v2740_v47 = vunpack.c.l.bf16 %v2814_v7 }
 0x260   : > { %v2263_v39 = vmul.f32 %v2781_v21, %v2230_v8 }
 0x261   : > { %v2269_v55 = vadd.f32 %v2253_v35, %v2108_v13 }
 0x262   : > { %v2279_v1 = vadd.f32 %v2263_v39, %v2118_v15 }
 0x263   : > { %v2284_v52 = vpack.c.bf16 %v2269_v55, %v2268_v36 }
 0x265   : > { %v2225_v23 = vpop.permute.xlu0 %2224  ;;  %2364 = vmatmul.bf16.vlgmr.msra.gmra.mxu0 %v2284_v52 }
 0x266   : > { %v2080_v10 = vpop.permute.xlu1 %2079  ;;  %v2262_v32 = vmul.f32 %v2780_v46, %v2225_v23 }
 0x267   : > { %v2117_v62 = vmul.f32 %v2748_v27, %v2080_v10  ;;  %v2040_v61 = vpop.permute.xlu2 %2039 }
 0x268   : > { %v2109_v43 = vmul.f32 %v2732_v34, %v2040_v61 }
 0x269   : > { %v2278_v53 = vadd.f32 %v2262_v32, %v2117_v62 }
 0x26b   : > { %v2289_v0 = vpack.c.bf16 %v2279_v1, %v2278_v53 }
 0x26d   : > { %2389 = vmatmul.bf16.gmra.mxu2 %v2289_v0  ;;  %v2250_v60 = vpop.permute.xlu0 %2249 }
 0x26e   : > { %v2105_v26 = vpop.permute.xlu1 %2104  ;;  %v2267_v4 = vmul.f32 %v2789_v31, %v2250_v60 }
 0x26f   : > { %v2122_v45 = vmul.f32 %v2757_v33, %v2105_v26  ;;  %v2065_v24 = vpop.permute.xlu2 %2064 }
 0x270   : > { %v2114_v35 = vmul.f32 %v2741_v19, %v2065_v24 }
 0x271   : > { %v2283_v28 = vadd.f32 %v2267_v4, %v2122_v45 }
 0x275   : > { %v2060_v2 = vpop.permute.xlu0 %2059 }
 0x276   : > { %v2245_v18 = vpop.permute.xlu1 %2244  ;;  %v2113_v13 = vmul.f32 %v2740_v47, %v2060_v2 }
 0x277   : > { %v2266_v25 = vmul.f32 %v2788_v57, %v2245_v18  ;;  %v2205_v51 = vpop.permute.xlu2 %2204 }
 0x278   : > { %v2258_v48 = vmul.f32 %v2772_v20, %v2205_v51 }
 0x279   : > { %v2282_v6 = vadd.f32 %v2266_v25, %v2121_v41 }
 0x27a   : > { %v2274_v36 = vadd.f32 %v2258_v48, %v2113_v13 }
 0x27b   : > { %v2291_v58 = vpack.c.bf16 %v2283_v28, %v2282_v6 }
 0x27d   : > { %2399 = vmatmul.bf16.gmra.mxu3 %v2291_v58  ;;  %v2190_v11 = vpop.permute.xlu0 %2189 }
 0x27e   : > { %v2045_v38 = vpop.permute.xlu1 %2044  ;;  %v2255_v42 = vmul.f32 %v2765_v3, %v2190_v11 }
 0x27f   : > { %v2110_v22 = vmul.f32 %v2733_v54, %v2045_v38 }
 0x281   : > { %v2271_v50 = vadd.f32 %v2255_v42, %v2110_v22 }
 0x286   : > { %v2185_v30 = vpop.permute.xlu1 %2184 }
 0x287   : > { %v2254_v44 = vmul.f32 %v2764_v29, %v2185_v30 }
 0x289   : > { %v2270_v40 = vadd.f32 %v2254_v44, %v2109_v43 }
 0x28b   : > { %v2285_v37 = vpack.c.bf16 %v2271_v50, %v2270_v40 }
 0x28d   : > { %2369 = vmatmul.bf16.gmra.mxu0 %v2285_v37 }
 0x28e   : > { %v2210_v16 = vpop.permute.xlu1 %2209 }
 0x28f   : > { %v2259_v12 = vmul.f32 %v2773_v17, %v2210_v16 }
 0x291   : > { %v2275_v21 = vadd.f32 %v2259_v12, %v2114_v35 }
 0x293   : > { %v2287_v55 = vpack.c.bf16 %v2275_v21, %v2274_v36 }
 0x295   : > { %2379 = vmatmul.bf16.gmra.mxu1 %v2287_v55 }
 0x2d0   : > { %v2385_v8 = vpop.f32.mrf.mxu2 }
 0x2d1   : > { %2413 = vst [vmem:[%s5123_s9 + $0x40] sm:$0xff] %v2385_v8 }
 0x2d8   : > { %v2387_v14 = vpop.f32.mrf.mxu2  ;;  %v2395_v46 = vpop.f32.mrf.mxu3 }
 0x2d9   : > { %2414 = vst [vmem:[%s5123_s9 + $0x48] sm:$0xff] %v2387_v14 }
 0x2da   : > { %2417 = vst [vmem:[%s5123_s9 + $0x60] sm:$0xff] %v2395_v46  ;;  %v2375_v52 = vpop.f32.mrf.mxu1 }
 0x2db   : > { %2409 = vst [vmem:[%s5123_s9 + $0x20] sm:$0xff] %v2375_v52 }
 0x2e0   : > { %v2397_v27 = vpop.f32.mrf.mxu3 }
 0x2e1   : > { %2418 = vst [vmem:[%s5123_s9 + $0x68] sm:$0xff] %v2397_v27 }
 0x2e2   : > { %v2365_v23 = vpop.f32.mrf.mxu0  ;;  %v2377_v39 = vpop.f32.mrf.mxu1 }
 0x2e3   : > { %2405 = vst [vmem:[%s5123_s9] sm:$0xff] %v2365_v23 }
 0x2e4   : > { %2410 = vst [vmem:[%s5123_s9 + $0x28] sm:$0xff] %v2377_v39 }
 0x2ea   : > { %v2367_v10 = vpop.f32.mrf.mxu0 }
 0x2eb   : > { %2406 = vst [vmem:[%s5123_s9 + $0x8] sm:$0xff] %v2367_v10 }
 0x2f0   : > { %v2390_v15 = vpop.f32.mrf.mxu2 }
 0x2f1   : > { %2415 = vst [vmem:[%s5123_s9 + $0x50] sm:$0xff] %v2390_v15 }
 0x2f8   : > { %v2392_v32 = vpop.f32.mrf.mxu2 }
 0x2f9   : > { %2416 = vst [vmem:[%s5123_s9 + $0x58] sm:$0xff] %v2392_v32 }
 0x300   : > { %v2400_v62 = vpop.f32.mrf.mxu3 }
 0x301   : > { %2419 = vst [vmem:[%s5123_s9 + $0x70] sm:$0xff] %v2400_v62 }
 0x308   : > { %v2402_v1 = vpop.f32.mrf.mxu3 }
 0x309   : > { %2420 = vst [vmem:[%s5123_s9 + $0x78] sm:$0xff] %v2402_v1 }
 0x30a   : > { %v2370_v53 = vpop.f32.mrf.mxu0 }
 0x30b   : > { %2407 = vst [vmem:[%s5123_s9 + $0x10] sm:$0xff] %v2370_v53 }
 0x312   : > { %v2372_v0 = vpop.f32.mrf.mxu0  ;;  %v2380_v26 = vpop.f32.mrf.mxu1 }
 0x313   : > { %2408 = vst [vmem:[%s5123_s9 + $0x18] sm:$0xff] %v2372_v0 }
 0x314   : > { %2411 = vst [vmem:[%s5123_s9 + $0x30] sm:$0xff] %v2380_v26 }
 0x31a   : > { %v2382_v49 = vpop.f32.mrf.mxu1 }
 0x31b   : > { %2412 = vst [vmem:[%s5123_s9 + $0x38] sm:$0xff] %v2382_v49 }
 0x31c   : > { %3179 = shalt.err (!%p3176_p7)
}
 0x31d   : > { %s3217_s30 = smov 128   ;;  %s3218_s7 = smov 8  }
 0x31e   : > { %2851 = dma.vmem_to_hbm [thread:$0]  (%p3287_p6), %s2435_s13, 2048, %s2437_s14, %s2422_s20, %s3217_s30, %s3217_s30, %s3218_s7  }
 0x31f PF: > { %s2451_s8 = sand.u32 1, %s3202_s15   ;;  %p2854_p10 = pnand %p2537_p9, %p3291_p8 }
 0x320   : > { %s2452_s9 = scalar_lea.sflag [#allocation5], %s2451_s8 }
 0x321   : > { %p2855_p11 = pneg %p2854_p10 }
 0x323   : > { %3197 = dma.done.wait (%p2855_p11), %s2452_s9, 2048  }
 0x324   : > { %3199 = vsyncadd (%p2855_p11), %s2452_s9, 4294965248  ;;  %p14_p12 = scmp.ge.s32.totalorder %s3269_s21, 4   ;;  %s5310_s15 = smov %s3206_s16 }
 0x325   : > { %s5311_s16 = smov %s3210_s17  ;;  %s5312_s17 = smov %s3281_s24 }
 0x326   : > { %s5313_s18 = smov %s3269_s21  ;;  %16 = sbr.rel (!%p14_p12) target bundleno = 3 (0x3), region = 171 }
 0x32b   :  { %2458 = vsyncpa [#allocation5], 1 }
 0x32c   :  { %2460 = vsyncpa [#allocation5 + $0x1], 1 }

// kernel: yolov2_fgfa_forward.5
= control target key start
LH: loop header
LB: loop body
LE: loop exit
PB: predicated region body
PF: predicated region fallthrough
CT: control target
= control target key end

     0   :  { %s2359_s12 = smov 0   ;;  %s2949_s0 = inlined_call_operand.vmem [shape: bf16[6,10,18,128], index: 0, kind: input, shape index: {}]   ;;  %s2950_s1 = inlined_call_operand.vmem [shape: bf16[3,384,128], index: 1, kind: input, shape index: {}]   ;;  %s2951_s2 = inlined_call_operand.vmem [shape: f32[1,128], index: 2, kind: input, shape index: {}]   ;;  %s2952_s3 = inlined_call_operand.vmem [shape: bf16[6,128,128], index: 3, kind: output, shape index: {}]  }
   0x1 LB: > { %s1733_s13 = sadd.s32 4294967295, %s2337_s12   ;;  %p1737_p0 = scmp.ge.s32.totalorder %s2337_s12, 1  ;;  %s2337_s12 = sphi %s2359_s12, %s13_s12  }
   0x2   : > { %p137_p1 = scmp.lt.s32.totalorder %s2337_s12, 7 }
   0x4   : > { %p138_p2 = pnand %p1737_p0, %p137_p1 }
   0x5   : > { %p161_p3 = scmp.lt.s32.totalorder (!%p138_p2), %s1733_s13, 5 }
   0x6   : > { %141 = sbr.rel (%p138_p2) target bundleno = 469 (0x1d5), region = 32 }
   0xb   : > { %v2185_v0 = vld [vmem:[%s2950_s1 + $0x38] sm:$0xff]  ;;  %v2184_v1 = vld [vmem:[%s2950_s1 + $0x30] sm:$0xff]  ;;  %v2183_v2 = vld [vmem:[%s2950_s1 + $0x28] sm:$0xff]  ;;  %s2954_s13 = smov (!%p161_p3, %s1733_s13), 5  ;;  %vm291_vm0 = vsmask.f32 7424 }
   0xc   : > { %655 = vmatpush.bf16.msra.mxu0 %v2185_v0  ;;  %2297 = vmatpush.bf16.msra.mxu1 %v2185_v0  ;;  %v2182_v3 = vld [vmem:[%s2950_s1 + $0x20] sm:$0xff]  ;;  %v2181_v4 = vld [vmem:[%s2950_s1 + $0x18] sm:$0xff]  ;;  %v2180_v5 = vld [vmem:[%s2950_s1 + $0x10] sm:$0xff]  ;;  %s2321_s28 = smul.u32 120, %s2954_s13  ;;  %vm422_vm1 = vcmask 1046528   ;;  %s2167_s18 = sshll.u32 %s2954_s13, 6 }
   0xd   : > { %2298 = vmatpush.bf16.msra.mxu2 %v2185_v0  ;;  %2299 = vmatpush.bf16.msra.mxu3 %v2185_v0  ;;  %v2179_v6 = vld [vmem:[%s2950_s1 + $0x8] sm:$0xff]  ;;  %v2178_v7 = vld [vmem:[%s2950_s1] sm:$0xff]  ;;  %v2201_v8 = vld [vmem:[%s2950_s1 + $0xb8] sm:$0xff]  ;;  %s2896_s21 = scalar_lea.vmem %s2952_s3, %s2167_s18 }
   0xe   : > { %s2401_s6 = scalar_lea.vmem %s2949_s0, %s2321_s28  ;;  %v2209_v9 = vld [vmem:[%s2950_s1 + $0xf8] sm:$0xff]  ;;  %v2200_v16 = vld [vmem:[%s2950_s1 + $0xb0] sm:$0xff]  ;;  %v2199_v20 = vld [vmem:[%s2950_s1 + $0xa8] sm:$0xff] }
   0xf   : > { %v2410_v10 = vld [vmem:[%s2401_s6] sm:$0xff]  ;;  %v2413_v11 = vld [vmem:[%s2401_s6 + $0x18] sm:$0xff]  ;;  %v2416_v12 = vld [vmem:[%s2401_s6 + $0x30] sm:$0xff] }
  0x10   : > { %656 = vmatpush.bf16.msra.mxu0 %v2184_v1  ;;  %2300 = vmatpush.bf16.msra.mxu1 %v2184_v1  ;;  %v2419_v13 = vld [vmem:[%s2401_s6 + $0x48] sm:$0xff]  ;;  %v2193_v14 = vld [vmem:[%s2950_s1 + $0x78] sm:$0xff]  ;;  %v2208_v17 = vld [vmem:[%s2950_s1 + $0xf0] sm:$0xff]  ;;  %v295_v45 = vshll.u32 %v2410_v10, 16  ;;  %v293_v52 = vshrl.u32 %v2410_v10, 16 }
  0x11   : > { %2301 = vmatpush.bf16.msra.mxu2 %v2184_v1  ;;  %2302 = vmatpush.bf16.msra.mxu3 %v2184_v1  ;;  %v2217_v15 = vld [vmem:[%s2950_s1 + $0x138] sm:$0xff]  ;;  %v2192_v18 = vld [vmem:[%s2950_s1 + $0x70] sm:$0xff]  ;;  %v2207_v21 = vld [vmem:[%s2950_s1 + $0xe8] sm:$0xff] }
  0x12   : > { %v2216_v19 = vld [vmem:[%s2950_s1 + $0x130] sm:$0xff]  ;;  %v2191_v22 = vld [vmem:[%s2950_s1 + $0x68] sm:$0xff]  ;;  %v2198_v24 = vld [vmem:[%s2950_s1 + $0xa0] sm:$0xff]  ;;  %v297_v53 = vrot.slane %v295_v45, 1 }
  0x13   : > { %v2215_v23 = vld [vmem:[%s2950_s1 + $0x128] sm:$0xff]  ;;  %v2206_v25 = vld [vmem:[%s2950_s1 + $0xe0] sm:$0xff]  ;;  %v2197_v28 = vld [vmem:[%s2950_s1 + $0x98] sm:$0xff] }
  0x14   : > { %657 = vmatpush.bf16.msra.mxu0 %v2183_v2  ;;  %2303 = vmatpush.bf16.msra.mxu1 %v2183_v2  ;;  %v2190_v26 = vld [vmem:[%s2950_s1 + $0x60] sm:$0xff]  ;;  %v2205_v29 = vld [vmem:[%s2950_s1 + $0xd8] sm:$0xff]  ;;  %v173_v30 = vld [vmem:[%s2401_s6 + $0x8] sm:$0x1]  ;;  %v298_v0 = vor.u32 %v297_v53, %v293_v52 }
  0x15   : > { %2304 = vmatpush.bf16.msra.mxu2 %v2183_v2  ;;  %2305 = vmatpush.bf16.msra.mxu3 %v2183_v2  ;;  %v2214_v27 = vld [vmem:[%s2950_s1 + $0x120] sm:$0xff]  ;;  %v2475_v31 = vld [vmem:[%s2401_s6 + $0xc] sm:$0xff]  ;;  %v176_v33 = vld [vmem:[%s2401_s6 + $0x14] sm:$0x1]  ;;  %v271_v38 = vunpack.c.l.b16 %v173_v30  ;;  %v423_v2 = vrot.slane %v2410_v10, 1 }
  0x16   : > { %v2478_v32 = vld [vmem:[%s2401_s6 + $0x24] sm:$0xff]  ;;  %v2482_v34 = vld [vmem:[%s2401_s6 + $0x3c] sm:$0xff]  ;;  %v2485_v35 = vld [vmem:[%s2401_s6 + $0x54] sm:$0xff]  ;;  %v272_v41 = vunpack.c.l.b16 %v176_v33  ;;  %v307_v49 = vshll.u32 %v2475_v31, 16  ;;  %v305_v57 = vshrl.u32 %v2475_v31, 16 }
  0x17   : > { %v2189_v36 = vld [vmem:[%s2950_s1 + $0x58] sm:$0xff]  ;;  %v2196_v39 = vld [vmem:[%s2950_s1 + $0x90] sm:$0xff]  ;;  %v281_v44 = vpack.c.b16 %v271_v38, %v271_v38  ;;  %v2195_v46 = vld [vmem:[%s2950_s1 + $0x88] sm:$0xff] }
  0x18   : > { %658 = vmatpush.bf16.msra.mxu0 %v2182_v3  ;;  %2306 = vmatpush.bf16.msra.mxu1 %v2182_v3  ;;  %v2213_v37 = vld [vmem:[%s2950_s1 + $0x118] sm:$0xff]  ;;  %v2204_v40 = vld [vmem:[%s2950_s1 + $0xd0] sm:$0xff]  ;;  %v2203_v47 = vld [vmem:[%s2950_s1 + $0xc8] sm:$0xff]  ;;  %v2516_v48 = vpack.c.b16 %v272_v41, %v272_v41  ;;  %v309_v58 = vrot.slane %v307_v49, 1  ;;  %v429_v49 = vrot.slane %v2413_v11, 1 }
  0x19   : > { %2307 = vmatpush.bf16.msra.mxu2 %v2182_v3  ;;  %2308 = vmatpush.bf16.msra.mxu3 %v2182_v3  ;;  %v2188_v42 = vld [vmem:[%s2950_s1 + $0x50] sm:$0xff]  ;;  %v2187_v50 = vld [vmem:[%s2950_s1 + $0x48] sm:$0xff]  ;;  %v300_v54 = vshll.u32 %v281_v44, 16  ;;  %v2194_v55 = vld [vmem:[%s2950_s1 + $0x80] sm:$0xff]  ;;  %v424_v3 = vrot.slane %v281_v44, 1  ;;  %v331_v44 = vshll.u32 %v2478_v32, 16 }
  0x1a   : > { %v2212_v43 = vld [vmem:[%s2950_s1 + $0x110] sm:$0xff]  ;;  %v2211_v51 = vld [vmem:[%s2950_s1 + $0x108] sm:$0xff]  ;;  %v2202_v56 = vld [vmem:[%s2950_s1 + $0xc0] sm:$0xff]  ;;  %v312_v59 = vshll.u32 %v2516_v48, 16  ;;  %v427_v30 = vrot.slane %v2516_v48, 1 }
  0x1b   : > { %v2233_v60 = vld [vmem:[%s2950_s1 + $0x1b8] sm:$0xff]  ;;  %v2186_v62 = vld [vmem:[%s2950_s1 + $0x40] sm:$0xff]  ;;  %v302_v1 = vrot.slane %v300_v54, 1 }
  0x1c   : > { %659 = vmatpush.bf16.msra.mxu0 %v2181_v4  ;;  %2309 = vmatpush.bf16.msra.mxu1 %v2181_v4  ;;  %v2241_v61 = vld [vmem:[%s2950_s1 + $0x1f8] sm:$0xff]  ;;  %v2210_v63 = vld [vmem:[%s2950_s1 + $0x100] sm:$0xff] }
  0x1d   : > { %2310 = vmatpush.bf16.msra.mxu2 %v2181_v4  ;;  %2311 = vmatpush.bf16.msra.mxu3 %v2181_v4  ;;  %v310_v4 = vor.u32 %v309_v58, %v305_v57  ;;  %v2238_v41 = vld [vmem:[%s2950_s1 + $0x1e0] sm:$0xff]  ;;  %v185_v53 = vld [vmem:[%s2401_s6 + $0x38] sm:$0x1] }
  0x1e   : > { %v2246_v45 = vld [vmem:[%s2950_s1 + $0x220] sm:$0xff]  ;;  %v2229_v57 = vld [vmem:[%s2950_s1 + $0x198] sm:$0xff] }
  0x1f   : > { %v2237_v58 = vld [vmem:[%s2950_s1 + $0x1d8] sm:$0xff] }
  0x20   : > { %660 = vmatpush.bf16.msra.mxu0 %v2180_v5  ;;  %2312 = vmatpush.bf16.msra.mxu1 %v2180_v5 }
  0x21   : > { %2313 = vmatpush.bf16.msra.mxu2 %v2180_v5  ;;  %2314 = vmatpush.bf16.msra.mxu3 %v2180_v5  ;;  %v314_v5 = vrot.slane %v312_v59, 1  ;;  %v2221_v59 = vld [vmem:[%s2950_s1 + $0x158] sm:$0xff] }
  0x24   : > { %661 = vmatpush.bf16.msra.mxu0 %v2179_v6  ;;  %2315 = vmatpush.bf16.msra.mxu1 %v2179_v6 }
  0x25   : > { %2316 = vmatpush.bf16.msra.mxu2 %v2179_v6  ;;  %2317 = vmatpush.bf16.msra.mxu3 %v2179_v6  ;;  %v2225_v6 = vld [vmem:[%s2950_s1 + $0x178] sm:$0xff] }
  0x28   : > { %662 = vmatpush.bf16.msra.mxu0 %v2178_v7  ;;  %2318 = vmatpush.bf16.msra.mxu1 %v2178_v7 }
  0x29   : > { %2319 = vmatpush.bf16.msra.mxu2 %v2178_v7  ;;  %2320 = vmatpush.bf16.msra.mxu3 %v2178_v7  ;;  %v2249_v7 = vld [vmem:[%s2950_s1 + $0x238] sm:$0xff] }
  0x2b   : > { %663 = vmatmul.bf16.vlgmr.msra.gmra.mxu0 %v2410_v10  ;;  %673 = vmatmul.bf16.vlgmr.msra.gmra.mxu1 %v2413_v11  ;;  %v2240_v10 = vld [vmem:[%s2950_s1 + $0x1f0] sm:$0xff] }
  0x2c   : > { %683 = vmatmul.bf16.vlgmr.msra.gmra.mxu2 %v2416_v12  ;;  %693 = vmatmul.bf16.vlgmr.msra.gmra.mxu3 %v2419_v13 }
  0x2d   : > { %753 = vmatpush.bf16.msrb.mxu2 %v2201_v8  ;;  %1027 = vmatpush.bf16.msrb.mxu3 %v2209_v9  ;;  %v179_v8 = vld [vmem:[%s2401_s6 + $0x20] sm:$0x1]  ;;  %v2232_v9 = vld [vmem:[%s2950_s1 + $0x1b0] sm:$0xff] }
  0x2e   : > { %704 = vmatpush.bf16.msrb.mxu1 %v2193_v14  ;;  %1076 = vmatpush.bf16.msrb.mxu0 %v2217_v15  ;;  %v303_v14 = vsel %vm291_vm0, %v298_v0, %v302_v1  ;;  %v425_v15 = vsel %vm422_vm1, %v423_v2, %v424_v3  ;;  %v432_v2 = vrot.slane %v2478_v32, 1 }
  0x31   : > { %754 = vmatpush.bf16.msrb.mxu2 %v2200_v16  ;;  %1028 = vmatpush.bf16.msrb.mxu3 %v2208_v17  ;;  %v315_v16 = vsel %vm291_vm0, %v310_v4, %v314_v5  ;;  %v273_v17 = vunpack.c.l.b16 %v179_v8 }
  0x32   : > { %705 = vmatpush.bf16.msrb.mxu1 %v2192_v18  ;;  %1077 = vmatpush.bf16.msrb.mxu0 %v2216_v19  ;;  %v2224_v18 = vld [vmem:[%s2950_s1 + $0x170] sm:$0xff] }
  0x33   : > { %v2248_v19 = vld [vmem:[%s2950_s1 + $0x230] sm:$0xff] }
  0x35   : > { %755 = vmatpush.bf16.msrb.mxu2 %v2199_v20  ;;  %1029 = vmatpush.bf16.msrb.mxu3 %v2207_v21  ;;  %v2231_v20 = vld [vmem:[%s2950_s1 + $0x1a8] sm:$0xff] }
  0x36   : > { %706 = vmatpush.bf16.msrb.mxu1 %v2191_v22  ;;  %1078 = vmatpush.bf16.msrb.mxu0 %v2215_v23  ;;  %v2239_v21 = vld [vmem:[%s2950_s1 + $0x1e8] sm:$0xff]  ;;  %v283_v22 = vpack.c.b16 %v273_v17, %v273_v17  ;;  %v319_v23 = vshll.u32 %v2413_v11, 16  ;;  %v355_v17 = vshll.u32 %v2482_v34, 16 }
  0x39   : > { %756 = vmatpush.bf16.msrb.mxu2 %v2198_v24  ;;  %1030 = vmatpush.bf16.msrb.mxu3 %v2206_v25  ;;  %v2223_v24 = vld [vmem:[%s2950_s1 + $0x168] sm:$0xff] }
  0x3a   : > { %707 = vmatpush.bf16.msrb.mxu1 %v2190_v26  ;;  %1079 = vmatpush.bf16.msrb.mxu0 %v2214_v27  ;;  %v2247_v25 = vld [vmem:[%s2950_s1 + $0x228] sm:$0xff]  ;;  %v317_v26 = vshrl.u32 %v2413_v11, 16  ;;  %v321_v27 = vrot.slane %v319_v23, 1 }
  0x3b   : > { %668 = vmatmul.bf16.gmra.mxu0 %v2475_v31  ;;  %678 = vmatmul.bf16.gmra.mxu1 %v2478_v32 }
  0x3c   : > { %688 = vmatmul.bf16.gmra.mxu2 %v2482_v34  ;;  %698 = vmatmul.bf16.gmra.mxu3 %v2485_v35  ;;  %v322_v33 = vor.u32 %v321_v27, %v317_v26  ;;  %v191_v26 = vld [vmem:[%s2401_s6 + $0x50] sm:$0x1] }
  0x3d   : > { %757 = vmatpush.bf16.msrb.mxu2 %v2197_v28  ;;  %1031 = vmatpush.bf16.msrb.mxu3 %v2205_v29  ;;  %v324_v28 = vshll.u32 %v283_v22, 16  ;;  %v426_v29 = vrot.slane %v2475_v31, 1 }
  0x3e   : > { %708 = vmatpush.bf16.msrb.mxu1 %v2189_v36  ;;  %1080 = vmatpush.bf16.msrb.mxu0 %v2213_v37  ;;  %v182_v37 = vld [vmem:[%s2401_s6 + $0x2c] sm:$0x1] }
  0x3f   : > { %v326_v36 = vrot.slane %v324_v28, 1  ;;  %v2588_v38 = vsel %vm422_vm1, %v426_v29, %v427_v30  ;;  %v277_v29 = vunpack.c.l.b16 %v191_v26  ;;  %v2227_v30 = vld [vmem:[%s2950_s1 + $0x188] sm:$0xff] }
  0x41   : > { %758 = vmatpush.bf16.msrb.mxu2 %v2196_v39  ;;  %1032 = vmatpush.bf16.msrb.mxu3 %v2204_v40  ;;  %v2591_v39 = vsel %vm291_vm0, %v322_v33, %v326_v36  ;;  %v274_v40 = vunpack.c.l.b16 %v182_v37  ;;  %v2235_v33 = vld [vmem:[%s2950_s1 + $0x1c8] sm:$0xff]  ;;  %v287_v36 = vpack.c.b16 %v277_v29, %v277_v29  ;;  %v367_v37 = vshll.u32 %v2419_v13, 16 }
  0x42   : > { %709 = vmatpush.bf16.msrb.mxu1 %v2188_v42  ;;  %1081 = vmatpush.bf16.msrb.mxu0 %v2212_v43  ;;  %v2222_v42 = vld [vmem:[%s2950_s1 + $0x160] sm:$0xff] }
  0x43   : > { %v284_v43 = vpack.c.b16 %v274_v40, %v274_v40  ;;  %v2219_v40 = vld [vmem:[%s2950_s1 + $0x148] sm:$0xff] }
  0x45   : > { %759 = vmatpush.bf16.msrb.mxu2 %v2195_v46  ;;  %1033 = vmatpush.bf16.msrb.mxu3 %v2203_v47  ;;  %v329_v46 = vshrl.u32 %v2478_v32, 16  ;;  %v333_v47 = vrot.slane %v331_v44, 1  ;;  %v336_v48 = vshll.u32 %v284_v43, 16  ;;  %v433_v3 = vrot.slane %v284_v43, 1 }
  0x46   : > { %710 = vmatpush.bf16.msrb.mxu1 %v2187_v50  ;;  %1082 = vmatpush.bf16.msrb.mxu0 %v2211_v51  ;;  %v430_v50 = vrot.slane %v283_v22, 1  ;;  %v435_v22 = vrot.slane %v2416_v12, 1  ;;  %v372_v43 = vshll.u32 %v287_v36, 16  ;;  %v438_v44 = vrot.slane %v2482_v34, 1 }
  0x47   : > { %v334_v51 = vor.u32 %v333_v47, %v329_v46  ;;  %v338_v52 = vrot.slane %v336_v48, 1  ;;  %v194_v48 = vld [vmem:[%s2401_s6 + $0x5c] sm:$0x1] }
  0x48   : > { %v2613_v54 = vsel %vm422_vm1, %v429_v49, %v430_v50  ;;  %v374_v47 = vrot.slane %v372_v43, 1 }
  0x49   : > { %760 = vmatpush.bf16.msrb.mxu2 %v2194_v55  ;;  %1034 = vmatpush.bf16.msrb.mxu3 %v2202_v56  ;;  %v2616_v55 = vsel %vm291_vm0, %v334_v51, %v338_v52  ;;  %v275_v56 = vunpack.c.l.b16 %v185_v53  ;;  %v278_v51 = vunpack.c.l.b16 %v194_v48  ;;  %v2226_v52 = vld [vmem:[%s2950_s1 + $0x180] sm:$0xff] }
  0x4a   : > { %711 = vmatpush.bf16.msrb.mxu1 %v2186_v62  ;;  %1083 = vmatpush.bf16.msrb.mxu0 %v2210_v63  ;;  %v2245_v62 = vld [vmem:[%s2950_s1 + $0x218] sm:$0xff]  ;;  %v341_v63 = vshrl.u32 %v2416_v12, 16  ;;  %v2234_v53 = vld [vmem:[%s2950_s1 + $0x1c0] sm:$0xff] }
  0x4c   : > { %761 = vmatmul.bf16.vlgmr.msrb.gmra.mxu2 %v425_v15  ;;  %1035 = vmatmul.bf16.vlgmr.msrb.gmra.mxu3 %v2475_v31  ;;  %v2230_v31 = vld [vmem:[%s2950_s1 + $0x1a0] sm:$0xff]  ;;  %v2220_v15 = vld [vmem:[%s2950_s1 + $0x150] sm:$0xff] }
  0x4d   : > { %1415 = vmatpush.bf16.msra.mxu2 %v2233_v60  ;;  %1464 = vmatpush.bf16.msra.mxu3 %v2241_v61  ;;  %v285_v60 = vpack.c.b16 %v275_v56, %v275_v56  ;;  %v343_v61 = vshll.u32 %v2416_v12, 16  ;;  %v288_v56 = vpack.c.b16 %v278_v51, %v278_v51 }
  0x4e   : > { %1125 = vmatpush.bf16.msra.mxu1 %v2225_v6  ;;  %1513 = vmatpush.bf16.msra.mxu0 %v2249_v7  ;;  %v188_v6 = vld [vmem:[%s2401_s6 + $0x44] sm:$0x1]  ;;  %v2639_v7 = vsel %vm422_vm1, %v432_v2, %v433_v3  ;;  %v197_v3 = vld [vmem:[%s2401_s6 + $0x68] sm:$0x1] }
  0x4f   : > { %712 = vmatmul.bf16.vlgmr.msrb.gmra.mxu1 %v303_v14  ;;  %1084 = vmatmul.bf16.vlgmr.msrb.gmra.mxu0 %v315_v16  ;;  %v345_v0 = vrot.slane %v343_v61, 1  ;;  %v348_v1 = vshll.u32 %v285_v60, 16  ;;  %v2236_v14 = vld [vmem:[%s2950_s1 + $0x1d0] sm:$0xff]  ;;  %v436_v23 = vrot.slane %v285_v60, 1  ;;  %v377_v60 = vshrl.u32 %v2485_v35, 16 }
  0x51   : > { %1416 = vmatpush.bf16.msra.mxu2 %v2232_v9  ;;  %1465 = vmatpush.bf16.msra.mxu3 %v2240_v10  ;;  %v346_v4 = vor.u32 %v345_v0, %v341_v63  ;;  %v350_v5 = vrot.slane %v348_v1, 1  ;;  %v276_v9 = vunpack.c.l.b16 %v188_v6  ;;  %v2228_v10 = vld [vmem:[%s2950_s1 + $0x190] sm:$0xff]  ;;  %v2665_v27 = vsel %vm422_vm1, %v435_v22, %v436_v23 }
  0x52   : > { %1126 = vmatpush.bf16.msra.mxu1 %v2224_v18  ;;  %1514 = vmatpush.bf16.msra.mxu0 %v2248_v19  ;;  %v2244_v18 = vld [vmem:[%s2950_s1 + $0x210] sm:$0xff]  ;;  %v353_v19 = vshrl.u32 %v2482_v34, 16  ;;  %v441_v63 = vrot.slane %v2419_v13, 1  ;;  %v442_v0 = vrot.slane %v287_v36, 1 }
  0x53   : > { %v2642_v8 = vsel %vm291_vm0, %v346_v4, %v350_v5 }
  0x54   : > { %v2719_v6 = vsel %vm422_vm1, %v441_v63, %v442_v0 }
  0x55   : > { %1417 = vmatpush.bf16.msra.mxu2 %v2231_v20  ;;  %1466 = vmatpush.bf16.msra.mxu3 %v2239_v21  ;;  %v357_v20 = vrot.slane %v355_v17, 1 }
  0x56   : > { %1127 = vmatpush.bf16.msra.mxu1 %v2223_v24  ;;  %1515 = vmatpush.bf16.msra.mxu0 %v2247_v25 }
  0x57   : > { %v358_v24 = vor.u32 %v357_v20, %v353_v19 }
  0x59   : > { %1418 = vmatpush.bf16.msra.mxu2 %v2230_v31  ;;  %1467 = vmatpush.bf16.msra.mxu3 %v2238_v41  ;;  %v2243_v31 = vld [vmem:[%s2950_s1 + $0x208] sm:$0xff]  ;;  %v365_v41 = vshrl.u32 %v2419_v13, 16 }
  0x5a   : > { %1128 = vmatpush.bf16.msra.mxu1 %v2222_v42  ;;  %1516 = vmatpush.bf16.msra.mxu0 %v2246_v45  ;;  %v369_v42 = vrot.slane %v367_v37, 1 }
  0x5c   : > { %766 = vmatmul.bf16.gmra.mxu2 %v2588_v38  ;;  %1040 = vmatmul.bf16.gmra.mxu3 %v2413_v11  ;;  %v370_v46 = vor.u32 %v369_v42, %v365_v41 }
  0x5d   : > { %1419 = vmatpush.bf16.msra.mxu2 %v2229_v57  ;;  %1468 = vmatpush.bf16.msra.mxu3 %v2237_v58  ;;  %v379_v57 = vshll.u32 %v2485_v35, 16  ;;  %v2218_v58 = vld [vmem:[%s2950_s1 + $0x140] sm:$0xff] }
  0x5e   : > { %1129 = vmatpush.bf16.msra.mxu1 %v2221_v59  ;;  %1517 = vmatpush.bf16.msra.mxu0 %v2245_v62  ;;  %v2694_v50 = vsel %vm291_vm0, %v370_v46, %v374_v47  ;;  %v2242_v59 = vld [vmem:[%s2950_s1 + $0x200] sm:$0xff]  ;;  %v384_v62 = vshll.u32 %v288_v56, 16 }
  0x5f   : > { %717 = vmatmul.bf16.gmra.mxu1 %v315_v16  ;;  %1089 = vmatmul.bf16.gmra.mxu0 %v2591_v39  ;;  %v286_v16 = vpack.c.b16 %v276_v9, %v276_v9  ;;  %v381_v61 = vrot.slane %v379_v57, 1 }
  0x60   : > { %v386_v2 = vrot.slane %v384_v62, 1 }
  0x61   : > { %1420 = vmatpush.bf16.msra.mxu2 %v2228_v10  ;;  %1469 = vmatpush.bf16.msra.mxu3 %v2236_v14  ;;  %v360_v21 = vshll.u32 %v286_v16, 16  ;;  %v439_v45 = vrot.slane %v286_v16, 1  ;;  %v382_v1 = vor.u32 %v381_v61, %v377_v60  ;;  %v2725_v10 = vld [vmem:[%s2401_s6 + $0x60] sm:$0xff]  ;;  %v279_v14 = vunpack.c.l.b16 %v197_v3 }
  0x62   : > { %1130 = vmatpush.bf16.msra.mxu1 %v2220_v15  ;;  %1518 = vmatpush.bf16.msra.mxu0 %v2244_v18  ;;  %v391_v16 = vshll.u32 %v2725_v10, 16 }
  0x63   : > { %v362_v25 = vrot.slane %v360_v21, 1  ;;  %v2691_v49 = vsel %vm422_vm1, %v438_v44, %v439_v45  ;;  %v2722_v9 = vsel %vm291_vm0, %v382_v1, %v386_v2  ;;  %v2731_v15 = vpack.c.b16 %v279_v14, %v279_v14 }
  0x64   : > { %v389_v21 = vshrl.u32 %v2725_v10, 16  ;;  %v393_v22 = vrot.slane %v391_v16, 1 }
  0x65   : > { %v2668_v28 = vsel %vm291_vm0, %v358_v24, %v362_v25  ;;  %1421 = vmatpush.bf16.msra.mxu2 %v2227_v30  ;;  %1470 = vmatpush.bf16.msra.mxu3 %v2235_v33  ;;  %v396_v23 = vshll.u32 %v2731_v15, 16  ;;  %v444_v24 = vrot.slane %v2485_v35, 1  ;;  %v445_v25 = vrot.slane %v288_v56, 1 }
  0x66   : > { %1131 = vmatpush.bf16.msra.mxu1 %v2219_v40  ;;  %1519 = vmatpush.bf16.msra.mxu0 %v2243_v31  ;;  %v394_v26 = vor.u32 %v393_v22, %v389_v21 }
  0x67   : > { %v398_v29 = vrot.slane %v396_v23, 1  ;;  %v2750_v40 = vsel %vm422_vm1, %v444_v24, %v445_v25 }
  0x69   : > { %1422 = vmatpush.bf16.msra.mxu2 %v2226_v52  ;;  %1471 = vmatpush.bf16.msra.mxu3 %v2234_v53  ;;  %v2753_v31 = vsel %vm291_vm0, %v394_v26, %v398_v29 }
  0x6a   : > { %1132 = vmatpush.bf16.msra.mxu1 %v2218_v58  ;;  %1520 = vmatpush.bf16.msra.mxu0 %v2242_v59 }
  0x6c   : > { %771 = vmatmul.bf16.gmra.mxu2 %v2613_v54  ;;  %1045 = vmatmul.bf16.gmra.mxu3 %v2478_v32 }
  0x6f   : > { %722 = vmatmul.bf16.gmra.mxu1 %v2591_v39  ;;  %1094 = vmatmul.bf16.gmra.mxu0 %v2616_v55 }
  0x7c   : > { %776 = vmatmul.bf16.gmra.mxu2 %v2639_v7  ;;  %1050 = vmatmul.bf16.gmra.mxu3 %v2416_v12 }
  0x7f   : > { %727 = vmatmul.bf16.gmra.mxu1 %v2616_v55  ;;  %1099 = vmatmul.bf16.gmra.mxu0 %v2642_v8 }
  0x8c   : > { %781 = vmatmul.bf16.gmra.mxu2 %v2665_v27  ;;  %1055 = vmatmul.bf16.gmra.mxu3 %v2482_v34 }
  0x8f   : > { %732 = vmatmul.bf16.gmra.mxu1 %v2642_v8  ;;  %1104 = vmatmul.bf16.gmra.mxu0 %v2668_v28 }
  0x9c   : > { %786 = vmatmul.bf16.gmra.mxu2 %v2691_v49  ;;  %1060 = vmatmul.bf16.gmra.mxu3 %v2419_v13 }
  0x9f   : > { %737 = vmatmul.bf16.gmra.mxu1 %v2668_v28  ;;  %1109 = vmatmul.bf16.gmra.mxu0 %v2694_v50 }
  0xa8   : > { %v664_v4 = vpop.f32.mrf.mxu0  ;;  %v2716_v5 = vpop.f32.mrf.mxu1 }
  0xac   : > { %791 = vmatmul.bf16.gmra.mxu2 %v2719_v6  ;;  %1065 = vmatmul.bf16.gmra.mxu3 %v2485_v35 }
  0xaf   : > { %742 = vmatmul.bf16.gmra.mxu1 %v2694_v50  ;;  %1114 = vmatmul.bf16.gmra.mxu0 %v2722_v9  ;;  %v2734_v17 = vpop.f32.mrf.mxu2  ;;  %v2736_v18 = vpop.f32.mrf.mxu3 }
  0xb0   : > { %v666_v19 = vpop.f32.mrf.mxu0  ;;  %v2738_v20 = vpop.f32.mrf.mxu1 }
  0xb7   : > { %v2743_v30 = vpop.f32.mrf.mxu2  ;;  %v2745_v33 = vpop.f32.mrf.mxu3 }
  0xb8   : > { %v669_v36 = vpop.f32.mrf.mxu0  ;;  %v2747_v37 = vpop.f32.mrf.mxu1 }
  0xbc   : > { %796 = vmatmul.bf16.gmra.mxu2 %v2750_v40  ;;  %1070 = vmatmul.bf16.gmra.mxu3 %v2725_v10 }
  0xbf   : > { %747 = vmatmul.bf16.gmra.mxu1 %v2722_v9  ;;  %1119 = vmatmul.bf16.gmra.mxu0 %v2753_v31  ;;  %v2759_v41 = vpop.f32.mrf.mxu2  ;;  %v2761_v42 = vpop.f32.mrf.mxu3 }
  0xc0   : > { %v671_v43 = vpop.f32.mrf.mxu0  ;;  %v2763_v44 = vpop.f32.mrf.mxu1 }
  0xc7   : > { %v2765_v45 = vpop.f32.mrf.mxu2  ;;  %v2767_v46 = vpop.f32.mrf.mxu3 }
  0xcc   : > { %v713_v47 = vpop.f32.mrf.mxu1  ;;  %v1085_v51 = vpop.f32.mrf.mxu0  ;;  %1423 = vmatmul.bf16.vlgmr.msra.gmra.mxu2 %v2413_v11  ;;  %1472 = vmatmul.bf16.vlgmr.msra.gmra.mxu3 %v2591_v39 }
  0xcd   : > { %v714_v48 = vadd.f32 %v713_v47, %v664_v4 }
  0xcf   : > { %1133 = vmatmul.bf16.vlgmr.msra.gmra.mxu1 %v2588_v38  ;;  %1521 = vmatmul.bf16.vlgmr.msra.gmra.mxu0 %v2613_v54  ;;  %v762_v52 = vpop.f32.mrf.mxu2  ;;  %v1036_v56 = vpop.f32.mrf.mxu3 }
  0xd0   : > { %v2773_v53 = vadd.f32 %v762_v52, %v714_v48  ;;  %v2775_v57 = vadd.f32 %v1085_v51, %v1036_v56 }
  0xd4   : > { %v715_v58 = vpop.f32.mrf.mxu1  ;;  %v1087_v60 = vpop.f32.mrf.mxu0 }
  0xd5   : > { %v716_v59 = vadd.f32 %v715_v58, %v666_v19 }
  0xd7   : > { %v764_v61 = vpop.f32.mrf.mxu2  ;;  %v1038_v63 = vpop.f32.mrf.mxu3 }
  0xd8   : > { %v2777_v62 = vadd.f32 %v764_v61, %v716_v59  ;;  %v2779_v38 = vadd.f32 %v1087_v60, %v1038_v63 }
  0xdc   : > { %v718_v11 = vpop.f32.mrf.mxu1  ;;  %v1090_v39 = vpop.f32.mrf.mxu0  ;;  %1428 = vmatmul.bf16.gmra.mxu2 %v2478_v32  ;;  %1477 = vmatmul.bf16.gmra.mxu3 %v2616_v55 }
  0xdd   : > { %v719_v0 = vadd.f32 %v718_v11, %v669_v36 }
  0xdf   : > { %1138 = vmatmul.bf16.gmra.mxu1 %v2613_v54  ;;  %1526 = vmatmul.bf16.gmra.mxu0 %v2639_v7  ;;  %v767_v1 = vpop.f32.mrf.mxu2  ;;  %v1041_v3 = vpop.f32.mrf.mxu3 }
  0xe0   : > { %v2785_v2 = vadd.f32 %v767_v1, %v719_v0  ;;  %v2787_v4 = vadd.f32 %v1090_v39, %v1041_v3 }
  0xe4   : > { %v720_v14 = vpop.f32.mrf.mxu1  ;;  %v1092_v19 = vpop.f32.mrf.mxu0 }
  0xe5   : > { %v721_v16 = vadd.f32 %v720_v14, %v671_v43 }
  0xe7   : > { %v769_v21 = vpop.f32.mrf.mxu2  ;;  %v1043_v23 = vpop.f32.mrf.mxu3 }
  0xe8   : > { %v2789_v22 = vadd.f32 %v769_v21, %v721_v16  ;;  %v2791_v54 = vadd.f32 %v1092_v19, %v1043_v23 }
  0xec   : > { %v723_v32 = vpop.f32.mrf.mxu1  ;;  %v1095_v24 = vpop.f32.mrf.mxu0  ;;  %1433 = vmatmul.bf16.gmra.mxu2 %v2416_v12  ;;  %1482 = vmatmul.bf16.gmra.mxu3 %v2642_v8 }
  0xed   : > { %v724_v55 = vadd.f32 %v723_v32, %v2716_v5 }
  0xef   : > { %1143 = vmatmul.bf16.gmra.mxu1 %v2639_v7  ;;  %1531 = vmatmul.bf16.gmra.mxu0 %v2665_v27  ;;  %v772_v25 = vpop.f32.mrf.mxu2  ;;  %v1046_v29 = vpop.f32.mrf.mxu3 }
  0xf0   : > { %v2798_v26 = vadd.f32 %v772_v25, %v724_v55  ;;  %v2800_v36 = vadd.f32 %v1095_v24, %v1046_v29 }
  0xf4   : > { %v725_v43 = vpop.f32.mrf.mxu1  ;;  %v1097_v48 = vpop.f32.mrf.mxu0 }
  0xf5   : > { %v726_v47 = vadd.f32 %v725_v43, %v2738_v20 }
  0xf7   : > { %v774_v5 = vpop.f32.mrf.mxu2  ;;  %v1048_v7 = vpop.f32.mrf.mxu3 }
  0xf8   : > { %v2803_v51 = vadd.f32 %v774_v5, %v726_v47  ;;  %v2805_v52 = vadd.f32 %v1097_v48, %v1048_v7  ;;  %v200_v7 = vld [vmem:[%s2401_s6 + $0x74] sm:$0x1] }
  0xfc   : > { %v728_v12 = vpop.f32.mrf.mxu1  ;;  %v1100_v56 = vpop.f32.mrf.mxu0  ;;  %1438 = vmatmul.bf16.gmra.mxu2 %v2482_v34  ;;  %1487 = vmatmul.bf16.gmra.mxu3 %v2668_v28 }
  0xfd   : > { %v729_v8 = vadd.f32 %v728_v12, %v2747_v37 }
  0xff   : > { %1148 = vmatmul.bf16.gmra.mxu1 %v2665_v27  ;;  %1536 = vmatmul.bf16.gmra.mxu0 %v2691_v49  ;;  %v777_v20 = vpop.f32.mrf.mxu2  ;;  %v1051_v59 = vpop.f32.mrf.mxu3 }
 0x100   : > { %v2812_v58 = vadd.f32 %v777_v20, %v729_v8  ;;  %v2814_v60 = vadd.f32 %v1100_v56, %v1051_v59  ;;  %v2177_v20 = vld [vmem:[%s2401_s6 + $0x6c] sm:$0xff] }
 0x104   : > { %v730_v61 = vpop.f32.mrf.mxu1  ;;  %v1102_v11 = vpop.f32.mrf.mxu0 }
 0x105   : > { %v731_v63 = vadd.f32 %v730_v61, %v2763_v44 }
 0x107   : > { %v779_v37 = vpop.f32.mrf.mxu2  ;;  %v1053_v27 = vpop.f32.mrf.mxu3 }
 0x108   : > { %v2817_v0 = vadd.f32 %v779_v37, %v731_v63  ;;  %v2819_v39 = vadd.f32 %v1102_v11, %v1053_v27  ;;  %v280_v63 = vunpack.c.l.b16 %v200_v7 }
 0x10a   : > { %v290_v11 = vpack.c.b16 %v280_v63, %v280_v63 }
 0x10c   : > { %v733_v34 = vpop.f32.mrf.mxu1  ;;  %v1105_v28 = vpop.f32.mrf.mxu0  ;;  %1443 = vmatmul.bf16.gmra.mxu2 %v2419_v13  ;;  %1492 = vmatmul.bf16.gmra.mxu3 %v2694_v50 }
 0x10d   : > { %v734_v1 = vadd.f32 %v733_v34, %v2734_v17 }
 0x10f   : > { %1153 = vmatmul.bf16.gmra.mxu1 %v2691_v49  ;;  %1541 = vmatmul.bf16.gmra.mxu0 %v2719_v6  ;;  %v782_v44 = vpop.f32.mrf.mxu2  ;;  %v1056_v14 = vpop.f32.mrf.mxu3 }
 0x110   : > { %v2826_v3 = vadd.f32 %v782_v44, %v734_v1  ;;  %v2828_v16 = vadd.f32 %v1105_v28, %v1056_v14  ;;  %v401_v44 = vshrl.u32 %v2177_v20, 16 }
 0x114   : > { %v735_v19 = vpop.f32.mrf.mxu1  ;;  %v1107_v21 = vpop.f32.mrf.mxu0 }
 0x115   : > { %v736_v23 = vadd.f32 %v735_v19, %v2743_v30 }
 0x117   : > { %v784_v32 = vpop.f32.mrf.mxu2  ;;  %v1058_v13 = vpop.f32.mrf.mxu3 }
 0x118   : > { %v2831_v49 = vadd.f32 %v784_v32, %v736_v23  ;;  %v2833_v55 = vadd.f32 %v1107_v21, %v1058_v13  ;;  %v450_v23 = vrot.slane %v2177_v20, 1  ;;  %v451_v32 = vrot.slane %v290_v11, 1 }
 0x11c   : > { %v738_v50 = vpop.f32.mrf.mxu1  ;;  %v1110_v24 = vpop.f32.mrf.mxu0  ;;  %1448 = vmatmul.bf16.gmra.mxu2 %v2485_v35  ;;  %1497 = vmatmul.bf16.gmra.mxu3 %v2722_v9  ;;  %v448_v35 = vrot.slane %v2731_v15, 1  ;;  %v403_v15 = vshll.u32 %v2177_v20, 16 }
 0x11d   : > { %v739_v17 = vadd.f32 %v738_v50, %v2759_v41 }
 0x11e   : > { %v405_v14 = vrot.slane %v403_v15, 1 }
 0x11f   : > { %1158 = vmatmul.bf16.gmra.mxu1 %v2719_v6  ;;  %1546 = vmatmul.bf16.gmra.mxu0 %v2750_v40  ;;  %v787_v30 = vpop.f32.mrf.mxu2  ;;  %v1061_v29 = vpop.f32.mrf.mxu3  ;;  %v447_v6 = vrot.slane %v2725_v10, 1 }
 0x120   : > { %v2840_v25 = vadd.f32 %v787_v30, %v739_v17  ;;  %v2842_v43 = vadd.f32 %v1110_v24, %v1061_v29  ;;  %v406_v21 = vor.u32 %v405_v14, %v401_v44 }
 0x121   : > { %v449_v61 = vsel %vm422_vm1, %v447_v6, %v448_v35 }
 0x124   : > { %v740_v47 = vpop.f32.mrf.mxu1  ;;  %v1112_v48 = vpop.f32.mrf.mxu0 }
 0x125   : > { %v741_v5 = vadd.f32 %v740_v47, %v2765_v45  ;;  %v452_v47 = vsel %vm422_vm1, %v450_v23, %v451_v32 }
 0x127   : > { %v789_v9 = vpop.f32.mrf.mxu2  ;;  %v1063_v41 = vpop.f32.mrf.mxu3 }
 0x128   : > { %v2848_v12 = vadd.f32 %v789_v9, %v741_v5  ;;  %v2850_v8 = vadd.f32 %v1112_v48, %v1063_v41 }
 0x12c   : > { %v743_v56 = vpop.f32.mrf.mxu1  ;;  %v1115_v59 = vpop.f32.mrf.mxu0  ;;  %1453 = vmatmul.bf16.gmra.mxu2 %v2725_v10  ;;  %1502 = vmatmul.bf16.gmra.mxu3 %v2753_v31 }
 0x12d   : > { %v744_v45 = vadd.f32 %v743_v56, %v2736_v18 }
 0x12f   : > { %1163 = vmatmul.bf16.gmra.mxu1 %v2750_v40  ;;  %1551 = vmatmul.bf16.gmra.mxu0 %v449_v61  ;;  %v792_v37 = vpop.f32.mrf.mxu2  ;;  %v1066_v34 = vpop.f32.mrf.mxu3  ;;  %v408_v40 = vshll.u32 %v290_v11, 16 }
 0x130   : > { %v2858_v27 = vadd.f32 %v792_v37, %v744_v45  ;;  %v2860_v28 = vadd.f32 %v1115_v59, %v1066_v34 }
 0x131   : > { %v410_v31 = vrot.slane %v408_v40, 1 }
 0x133   : > { %v411_v29 = vsel %vm291_vm0, %v406_v21, %v410_v31 }
 0x134   : > { %v745_v1 = vpop.f32.mrf.mxu1  ;;  %v1117_v19 = vpop.f32.mrf.mxu0 }
 0x135   : > { %v746_v10 = vadd.f32 %v745_v1, %v2745_v33 }
 0x137   : > { %v794_v13 = vpop.f32.mrf.mxu2  ;;  %v1068_v50 = vpop.f32.mrf.mxu3 }
 0x138   : > { %v2863_v18 = vadd.f32 %v794_v13, %v746_v10  ;;  %v2865_v24 = vadd.f32 %v1117_v19, %v1068_v50 }
 0x13c   : > { %v748_v17 = vpop.f32.mrf.mxu1  ;;  %v1120_v30 = vpop.f32.mrf.mxu0  ;;  %1458 = vmatmul.bf16.gmra.mxu2 %v2177_v20  ;;  %1507 = vmatmul.bf16.gmra.mxu3 %v411_v29 }
 0x13d   : > { %v749_v33 = vadd.f32 %v748_v17, %v2761_v42 }
 0x13f   : > { %1168 = vmatmul.bf16.gmra.mxu1 %v449_v61  ;;  %1556 = vmatmul.bf16.gmra.mxu0 %v452_v47  ;;  %v797_v48 = vpop.f32.mrf.mxu2  ;;  %v1071_v6 = vpop.f32.mrf.mxu3 }
 0x140   : > { %v2870_v5 = vadd.f32 %v797_v48, %v749_v33  ;;  %v2872_v35 = vadd.f32 %v1120_v30, %v1071_v6 }
 0x144   : > { %v750_v9 = vpop.f32.mrf.mxu1  ;;  %v1122_v7 = vpop.f32.mrf.mxu0 }
 0x145   : > { %v751_v41 = vadd.f32 %v750_v9, %v2767_v46 }
 0x147   : > { %v799_v56 = vpop.f32.mrf.mxu2  ;;  %v1073_v63 = vpop.f32.mrf.mxu3 }
 0x148   : > { %v2875_v59 = vadd.f32 %v799_v56, %v751_v41  ;;  %v2877_v61 = vadd.f32 %v1122_v7, %v1073_v63 }
 0x14c   : > { %v1134_v20 = vpop.f32.mrf.mxu1  ;;  %v1522_v42 = vpop.f32.mrf.mxu0 }
 0x14d   : > { %v1135_v15 = vadd.f32 %v1134_v20, %v2775_v57  ;;  %v2886_v57 = vld [vmem:[%s2951_s2] ss:$0 sm:$0xff] }
 0x14f   : > { %v1174_v45 = vadd.f32 %v1135_v15, %v2773_v53  ;;  %v1424_v11 = vpop.f32.mrf.mxu2  ;;  %v1473_v37 = vpop.f32.mrf.mxu3 }
 0x150   : > { %v1474_v34 = vadd.f32 %v1473_v37, %v1424_v11 }
 0x152   : > { %v1523_v19 = vadd.f32 %v1522_v42, %v1474_v34 }
 0x154   : > { %v1136_v1 = vpop.f32.mrf.mxu1  ;;  %v1524_v46 = vpop.f32.mrf.mxu0  ;;  %v1562_v10 = vadd.f32 %v1523_v19, %v1174_v45 }
 0x155   : > { %v1137_v44 = vadd.f32 %v1136_v1, %v2779_v38 }
 0x156   : > { %v1614_v50 = vadd.f32 %v2886_v57, %v1562_v10 }
 0x157   : > { %v1175_v14 = vadd.f32 %v1137_v44, %v2777_v62  ;;  %v1426_v40 = vpop.f32.mrf.mxu2  ;;  %v1475_v21 = vpop.f32.mrf.mxu3 }
 0x158   : > { %v1476_v53 = vadd.f32 %v1475_v21, %v1426_v40  ;;  %v1630_v47 = vmax.f32 %v1614_v50, 0.0 }
 0x15a   : > { %v1525_v13 = vadd.f32 %v1524_v46, %v1476_v53 }
 0x15c   : > { %v1139_v31 = vpop.f32.mrf.mxu1  ;;  %v1527_v32 = vpop.f32.mrf.mxu0  ;;  %v1563_v62 = vadd.f32 %v1525_v13, %v1175_v14 }
 0x15d   : > { %v1140_v23 = vadd.f32 %v1139_v31, %v2787_v4 }
 0x15e   : > { %v1615_v17 = vadd.f32 %v2886_v57, %v1563_v62 }
 0x15f   : > { %v1176_v38 = vadd.f32 %v1140_v23, %v2785_v2  ;;  %v1429_v30 = vpop.f32.mrf.mxu2  ;;  %v1478_v29 = vpop.f32.mrf.mxu3 }
 0x160   : > { %v1631_v33 = vmax.f32 %v1615_v17, 0.0  ;;  %v1479_v48 = vadd.f32 %v1478_v29, %v1429_v30 }
 0x162   : > { %v2253_v9 = vpack.c.bf16 %v1631_v33, %v1630_v47  ;;  %v1528_v41 = vadd.f32 %v1527_v32, %v1479_v48 }
 0x164   : > { %v1141_v6 = vpop.f32.mrf.mxu1  ;;  %v1529_v4 = vpop.f32.mrf.mxu0  ;;  %2254 = vst [vmem:[%s2896_s21] sm:$0xff] %v2253_v9   ;;  %v1564_v20 = vadd.f32 %v1528_v41, %v1176_v38 }
 0x165   : > { %v1142_v2 = vadd.f32 %v1141_v6, %v2791_v54 }
 0x166   : > { %v1616_v54 = vadd.f32 %v2886_v57, %v1564_v20 }
 0x167   : > { %v1177_v7 = vadd.f32 %v1142_v2, %v2789_v22  ;;  %v1431_v56 = vpop.f32.mrf.mxu2  ;;  %v1480_v63 = vpop.f32.mrf.mxu3 }
 0x168   : > { %v1481_v15 = vadd.f32 %v1480_v63, %v1431_v56  ;;  %v1632_v14 = vmax.f32 %v1616_v54, 0.0 }
 0x16a   : > { %v1530_v37 = vadd.f32 %v1529_v4, %v1481_v15 }
 0x16c   : > { %v1144_v42 = vpop.f32.mrf.mxu1  ;;  %v1532_v11 = vpop.f32.mrf.mxu0  ;;  %v1565_v1 = vadd.f32 %v1530_v37, %v1177_v7 }
 0x16d   : > { %v1145_v45 = vadd.f32 %v1144_v42, %v2800_v36 }
 0x16e   : > { %v1617_v44 = vadd.f32 %v2886_v57, %v1565_v1 }
 0x16f   : > { %v1178_v34 = vadd.f32 %v1145_v45, %v2798_v26  ;;  %v1434_v22 = vpop.f32.mrf.mxu2  ;;  %v1483_v46 = vpop.f32.mrf.mxu3 }
 0x170   : > { %v1633_v19 = vmax.f32 %v1617_v44, 0.0  ;;  %v1484_v40 = vadd.f32 %v1483_v46, %v1434_v22 }
 0x172   : > { %v2258_v36 = vpack.c.bf16 %v1633_v19, %v1632_v14  ;;  %v1533_v23 = vadd.f32 %v1532_v11, %v1484_v40 }
 0x174   : > { %v1146_v21 = vpop.f32.mrf.mxu1  ;;  %v1534_v53 = vpop.f32.mrf.mxu0  ;;  %2290 = vst [vmem:[%s2896_s21 + $0x8] sm:$0xff] %v2258_v36   ;;  %v1566_v13 = vadd.f32 %v1533_v23, %v1178_v34 }
 0x175   : > { %v1147_v10 = vadd.f32 %v1146_v21, %v2805_v52 }
 0x176   : > { %v1618_v52 = vadd.f32 %v2886_v57, %v1566_v13 }
 0x177   : > { %v1179_v31 = vadd.f32 %v1147_v10, %v2803_v51  ;;  %v1436_v26 = vpop.f32.mrf.mxu2  ;;  %v1485_v32 = vpop.f32.mrf.mxu3 }
 0x178   : > { %v1486_v38 = vadd.f32 %v1485_v32, %v1436_v26  ;;  %v1634_v6 = vmax.f32 %v1618_v52, 0.0 }
 0x17a   : > { %v1535_v30 = vadd.f32 %v1534_v53, %v1486_v38 }
 0x17c   : > { %v1149_v50 = vpop.f32.mrf.mxu1  ;;  %v1537_v17 = vpop.f32.mrf.mxu0  ;;  %v1567_v47 = vadd.f32 %v1535_v30, %v1179_v31 }
 0x17d   : > { %v1150_v62 = vadd.f32 %v1149_v50, %v2814_v60 }
 0x17e   : > { %v1619_v33 = vadd.f32 %v2886_v57, %v1567_v47 }
 0x17f   : > { %v1180_v29 = vadd.f32 %v1150_v62, %v2812_v58  ;;  %v1439_v51 = vpop.f32.mrf.mxu2  ;;  %v1488_v48 = vpop.f32.mrf.mxu3 }
 0x180   : > { %v1635_v2 = vmax.f32 %v1619_v33, 0.0  ;;  %v1489_v4 = vadd.f32 %v1488_v48, %v1439_v51 }
 0x182   : > { %v2263_v60 = vpack.c.bf16 %v1635_v2, %v1634_v6  ;;  %v1538_v63 = vadd.f32 %v1537_v17, %v1489_v4 }
 0x184   : > { %v1151_v9 = vpop.f32.mrf.mxu1  ;;  %v1539_v41 = vpop.f32.mrf.mxu0  ;;  %2291 = vst [vmem:[%s2896_s21 + $0x10] sm:$0xff] %v2263_v60   ;;  %v1568_v15 = vadd.f32 %v1538_v63, %v1180_v29 }
 0x185   : > { %v1152_v7 = vadd.f32 %v1151_v9, %v2819_v39 }
 0x186   : > { %v1620_v39 = vadd.f32 %v2886_v57, %v1568_v15 }
 0x187   : > { %v1181_v56 = vadd.f32 %v1152_v7, %v2817_v0  ;;  %v1441_v58 = vpop.f32.mrf.mxu2  ;;  %v1490_v20 = vpop.f32.mrf.mxu3 }
 0x188   : > { %v1491_v42 = vadd.f32 %v1490_v20, %v1441_v58  ;;  %v1636_v46 = vmax.f32 %v1620_v39, 0.0 }
 0x18a   : > { %v1540_v34 = vadd.f32 %v1539_v41, %v1491_v42 }
 0x18c   : > { %v1154_v45 = vpop.f32.mrf.mxu1  ;;  %v1542_v37 = vpop.f32.mrf.mxu0  ;;  %v1569_v1 = vadd.f32 %v1540_v34, %v1181_v56 }
 0x18d   : > { %v1155_v11 = vadd.f32 %v1154_v45, %v2828_v16 }
 0x18e   : > { %v1621_v44 = vadd.f32 %v2886_v57, %v1569_v1 }
 0x18f   : > { %v1182_v54 = vadd.f32 %v1155_v11, %v2826_v3  ;;  %v1444_v0 = vpop.f32.mrf.mxu2  ;;  %v1493_v22 = vpop.f32.mrf.mxu3 }
 0x190   : > { %v1637_v14 = vmax.f32 %v1621_v44, 0.0  ;;  %v1494_v19 = vadd.f32 %v1493_v22, %v1444_v0 }
 0x192   : > { %v2268_v16 = vpack.c.bf16 %v1637_v14, %v1636_v46  ;;  %v1543_v36 = vadd.f32 %v1542_v37, %v1494_v19 }
 0x194   : > { %v1156_v40 = vpop.f32.mrf.mxu1  ;;  %v1544_v10 = vpop.f32.mrf.mxu0  ;;  %2292 = vst [vmem:[%s2896_s21 + $0x18] sm:$0xff] %v2268_v16   ;;  %v1570_v23 = vadd.f32 %v1543_v36, %v1182_v54 }
 0x195   : > { %v1157_v21 = vadd.f32 %v1156_v40, %v2833_v55 }
 0x196   : > { %v1622_v55 = vadd.f32 %v2886_v57, %v1570_v23 }
 0x197   : > { %v1183_v53 = vadd.f32 %v1157_v21, %v2831_v49  ;;  %v1446_v3 = vpop.f32.mrf.mxu2  ;;  %v1495_v31 = vpop.f32.mrf.mxu3 }
 0x198   : > { %v1496_v26 = vadd.f32 %v1495_v31, %v1446_v3  ;;  %v1638_v52 = vmax.f32 %v1622_v55, 0.0 }
 0x19a   : > { %v1545_v50 = vadd.f32 %v1544_v10, %v1496_v26 }
 0x19c   : > { %v1159_v32 = vpop.f32.mrf.mxu1  ;;  %v1547_v38 = vpop.f32.mrf.mxu0  ;;  %v1571_v17 = vadd.f32 %v1545_v50, %v1183_v53 }
 0x19d   : > { %v1160_v13 = vadd.f32 %v1159_v32, %v2842_v43 }
 0x19e   : > { %v1623_v30 = vadd.f32 %v2886_v57, %v1571_v17 }
 0x19f   : > { %v1184_v62 = vadd.f32 %v1160_v13, %v2840_v25  ;;  %v1449_v49 = vpop.f32.mrf.mxu2  ;;  %v1498_v29 = vpop.f32.mrf.mxu3 }
 0x1a0   : > { %v1639_v47 = vmax.f32 %v1623_v30, 0.0  ;;  %v1499_v33 = vadd.f32 %v1498_v29, %v1449_v49 }
 0x1a2   : > { %v2273_v43 = vpack.c.bf16 %v1639_v47, %v1638_v52  ;;  %v1548_v4 = vadd.f32 %v1547_v38, %v1499_v33 }
 0x1a4   : > { %v1161_v51 = vpop.f32.mrf.mxu1  ;;  %v1549_v6 = vpop.f32.mrf.mxu0  ;;  %2293 = vst [vmem:[%s2896_s21 + $0x20] sm:$0xff] %v2273_v43   ;;  %v1572_v7 = vadd.f32 %v1548_v4, %v1184_v62 }
 0x1a5   : > { %v1162_v48 = vadd.f32 %v1161_v51, %v2850_v8 }
 0x1a6   : > { %v1624_v8 = vadd.f32 %v2886_v57, %v1572_v7 }
 0x1a7   : > { %v1185_v2 = vadd.f32 %v1162_v48, %v2848_v12  ;;  %v1451_v25 = vpop.f32.mrf.mxu2  ;;  %v1500_v9 = vpop.f32.mrf.mxu3 }
 0x1a8   : > { %v1501_v41 = vadd.f32 %v1500_v9, %v1451_v25  ;;  %v1640_v11 = vmax.f32 %v1624_v8, 0.0 }
 0x1aa   : > { %v1550_v63 = vadd.f32 %v1549_v6, %v1501_v41 }
 0x1ac   : > { %v1164_v60 = vpop.f32.mrf.mxu1  ;;  %v1552_v20 = vpop.f32.mrf.mxu0  ;;  %v1573_v15 = vadd.f32 %v1550_v63, %v1185_v2 }
 0x1ad   : > { %v1165_v56 = vadd.f32 %v1164_v60, %v2860_v28 }
 0x1ae   : > { %v1625_v42 = vadd.f32 %v2886_v57, %v1573_v15 }
 0x1af   : > { %v1186_v58 = vadd.f32 %v1165_v56, %v2858_v27  ;;  %v1454_v12 = vpop.f32.mrf.mxu2  ;;  %v1503_v45 = vpop.f32.mrf.mxu3 }
 0x1b0   : > { %v1641_v37 = vmax.f32 %v1625_v42, 0.0  ;;  %v1504_v34 = vadd.f32 %v1503_v45, %v1454_v12 }
 0x1b2   : > { %v2278_v1 = vpack.c.bf16 %v1641_v37, %v1640_v11  ;;  %v1553_v44 = vadd.f32 %v1552_v20, %v1504_v34 }
 0x1b4   : > { %v1166_v54 = vpop.f32.mrf.mxu1  ;;  %2294 = vst [vmem:[%s2896_s21 + $0x28] sm:$0xff] %v2278_v1   ;;  %v1554_v27 = vpop.f32.mrf.mxu0  ;;  %v1574_v46 = vadd.f32 %v1553_v44, %v1186_v58 }
 0x1b5   : > { %v1167_v39 = vadd.f32 %v1166_v54, %v2865_v24 }
 0x1b6   : > { %v1626_v16 = vadd.f32 %v2886_v57, %v1574_v46 }
 0x1b7   : > { %v1187_v28 = vadd.f32 %v1167_v39, %v2863_v18  ;;  %v1456_v0 = vpop.f32.mrf.mxu2  ;;  %v1505_v22 = vpop.f32.mrf.mxu3 }
 0x1b8   : > { %v1506_v14 = vadd.f32 %v1505_v22, %v1456_v0  ;;  %v1642_v31 = vmax.f32 %v1626_v16, 0.0 }
 0x1ba   : > { %v1555_v21 = vadd.f32 %v1554_v27, %v1506_v14 }
 0x1bc   : > { %v1169_v19 = vpop.f32.mrf.mxu1  ;;  %v1575_v24 = vadd.f32 %v1555_v21, %v1187_v28  ;;  %v1557_v36 = vpop.f32.mrf.mxu0 }
 0x1bd   : > { %v1170_v40 = vadd.f32 %v1169_v19, %v2872_v35 }
 0x1be   : > { %v1627_v53 = vadd.f32 %v2886_v57, %v1575_v24 }
 0x1bf   : > { %v1188_v10 = vadd.f32 %v1170_v40, %v2870_v5  ;;  %v1459_v18 = vpop.f32.mrf.mxu2  ;;  %v1508_v3 = vpop.f32.mrf.mxu3 }
 0x1c0   : > { %v1643_v23 = vmax.f32 %v1627_v53, 0.0  ;;  %v1509_v26 = vadd.f32 %v1508_v3, %v1459_v18 }
 0x1c2   : > { %v2283_v38 = vpack.c.bf16 %v1643_v23, %v1642_v31  ;;  %v1558_v5 = vadd.f32 %v1557_v36, %v1509_v26 }
 0x1c4   : > { %v1171_v32 = vpop.f32.mrf.mxu1  ;;  %2295 = vst [vmem:[%s2896_s21 + $0x30] sm:$0xff] %v2283_v38   ;;  %v1576_v55 = vadd.f32 %v1558_v5, %v1188_v10  ;;  %v1559_v30 = vpop.f32.mrf.mxu0 }
 0x1c5   : > { %v1172_v13 = vadd.f32 %v1171_v32, %v2877_v61 }
 0x1c6   : > { %v1628_v29 = vadd.f32 %v2886_v57, %v1576_v55 }
 0x1c7   : > { %v1189_v35 = vadd.f32 %v1172_v13, %v2875_v59  ;;  %v1461_v50 = vpop.f32.mrf.mxu2  ;;  %v1510_v62 = vpop.f32.mrf.mxu3 }
 0x1c8   : > { %v1511_v17 = vadd.f32 %v1510_v62, %v1461_v50  ;;  %v1644_v33 = vmax.f32 %v1628_v29, 0.0 }
 0x1ca   : > { %v1560_v49 = vadd.f32 %v1559_v30, %v1511_v17 }
 0x1cc   : > { %v1577_v52 = vadd.f32 %v1560_v49, %v1189_v35 }
 0x1ce   : > { %v1629_v47 = vadd.f32 %v2886_v57, %v1577_v52 }
 0x1d0   : > { %v1645_v51 = vmax.f32 %v1629_v47, 0.0 }
 0x1d2   : > { %v2288_v61 = vpack.c.bf16 %v1645_v51, %v1644_v33 }
 0x1d4   : > { %2296 = vst [vmem:[%s2896_s21 + $0x38] sm:$0xff] %v2288_v61  }
 0x1d5 PF: > { %s13_s12 = sadd.s32 1, %s2337_s12  }
 0x1d6   : > { %p10_p4 = scmp.ge.s32.totalorder %s13_s12, 8  }
 0x1d8   :  { %12 = sbr.rel (!%p10_p4) target bundleno = 1 (0x1), region = 64 }

</bundles_post_ra>
